<compile_context>
chip_gen: v6e
topology: v6e:2x2x1
jax: 0.10.0
libtpu: 0.0.40
codegen_flags: <defaults>
</compile_context>

<pallas_src>
import jax
import jax.numpy as jnp
from jax.experimental import pallas as pl
from jax.experimental.pallas import tpu as pltpu

L_IN = 192          # input length required by the encoder's Linear(32, 64)
Z_LEN = 64          # latent length (fixed by Linear(32, 64))
KC = 15             # encoder conv kernel size
KT = 7              # decoder transposed-conv kernel size


# ----------------------------------------------------------------------------
# Static window propagation for the early-cropped decoder
# ----------------------------------------------------------------------------

def _phase_ranges(out_start, out_len):
    """Even/odd output-phase ranges of a stride-2 ConvTranspose1d restricted to
    global output columns [out_start, out_start + out_len)."""
    m_lo = -(-out_start // 2)                            # even outputs n = 2m
    ne = (out_start + out_len - 1) // 2 - m_lo + 1
    mo_lo = -(-(out_start - 1) // 2)                     # odd outputs n = 2m+1
    no = (out_start + out_len - 2) // 2 - mo_lo + 1
    return m_lo, ne, mo_lo, no


def _input_window(out_start, out_len):
    """Input window (start, len) needed to produce the given output window."""
    m_lo, ne, mo_lo, no = _phase_ranges(out_start, out_len)
    lo = min(m_lo - (KT // 2), mo_lo - (KT // 2 - 1))
    hi = max(m_lo + ne, mo_lo + no)
    return lo, hi - lo


def _decoder_windows():
    lens, l = [], Z_LEN
    for _ in range(4):
        l = 2 * (l - 1) + KT
        lens.append(l)                                   # [133, 271, 547, 1099]
    d = lens[-1] - L_IN                                  # 907
    wins = [(d // 2, L_IN)]                              # final crop == t4 window
    for _ in range(4):
        wins.insert(0, _input_window(*wins[0]))
    full = [Z_LEN] + lens
    for (s, n), fl in zip(wins, full):                   # windows stay interior:
        assert 0 <= s and s + n <= fl, (s, n, fl)        # no zero-padding needed
    return wins   # [(23,18) y0, (52,29) t1, (109,53) t2, (224,99) t3, (453,192) t4]


# ----------------------------------------------------------------------------
# Host-side weight folding + packing (one lane-dense buffer + 2 wide buffers)
# ----------------------------------------------------------------------------

def _prepare_inputs(params):
    f32 = jnp.float32
    p = {k: jnp.asarray(v, f32) for k, v in params.items()}

    def conv_fold(w, b):                 # Conv1d weight (Cout, Cin, K)
        cout, cin, k = w.shape
        w2 = jnp.transpose(w, (0, 2, 1)).reshape(cout, k * cin)   # tap-major
        return jnp.concatenate([w2, b.reshape(cout, 1)], axis=1)  # bias column

    def convt_fold(w, b):                # ConvTranspose1d weight (Cin, Cout, K)
        cin, cout, k = w.shape
        wt = jnp.transpose(w, (1, 2, 0))                           # (Cout, K, Cin)
        we = wt[:, 0::2, :].reshape(cout, ((k + 1) // 2) * cin)    # even taps
        wo = wt[:, 1::2, :].reshape(cout, (k // 2) * cin)          # odd taps
        bc = b.reshape(cout, 1)
        return (jnp.concatenate([we, bc], 1), jnp.concatenate([wo, bc], 1))

    e1 = conv_fold(p['e_c1_w'], p['e_c1_b'])              # (32, 31)
    e2 = conv_fold(p['e_c2_w'], p['e_c2_b'])              # (64, 481)
    e3 = conv_fold(p['e_c3_w'], p['e_c3_b'])              # (32, 961)
    t1e, t1o = convt_fold(p['d_t1_w'], p['d_t1_b'])       # (32,5),(32,4)
    t2e, t2o = convt_fold(p['d_t2_w'], p['d_t2_b'])       # (64,129),(64,97)
    t3e, t3o = convt_fold(p['d_t3_w'], p['d_t3_b'])       # (64,257),(64,193)
    t4e, t4o = convt_fold(p['d_t4_w'], p['d_t4_b'])       # (4,257),(4,193)

    e4w = p['e_c4_w'].reshape(1, -1)                      # (1, 32) 1x1 conv
    elin = p['e_lin_w'].T                                 # (32, 64)
    # Fold the 1x1 conv through the linear encoder tail (exact linear algebra):
    #   W4 @ (h @ Wl^T + bl) + b4 == (W4 @ h) @ Wl^T + (sum(W4) * bl + b4)
    bias_z = (jnp.sum(e4w) * p['e_lin_b'] + p['e_c4_b'][0]).reshape(1, Z_LEN)
    dlin = p['d_lin_w'].T                                 # (64, 64)
    dlinb = p['d_lin_b'].reshape(1, Z_LEN)

    entries = [
        ('e1', e1), ('e4w', e4w), ('elin', elin), ('bz', bias_z),
        ('dlin', dlin), ('dlinb', dlinb),
        ('t1e', t1e), ('t1o', t1o), ('t2e', t2e), ('t2o', t2o),
        ('t3e', t3e), ('t3o', t3o), ('t4e', t4e), ('t4o', t4o),
        ('a1', p['a1']), ('a2', p['a2']), ('a3', p['a3']),
        ('a4', p['a4']), ('a5', p['a5']), ('a6', p['a6']),
    ]
    width = max(int(a.shape[1]) for _, a in entries)      # 257
    off, r0 = {}, 0
    for name, a in entries:
        r, c = int(a.shape[0]), int(a.shape[1])
        off[name] = (r0, r, c)
        r0 += -(-r // 8) * 8                              # 8-row align each entry
    wp = jnp.zeros((r0, width), f32)
    for name, a in entries:
        s, r, c = off[name]
        wp = wp.at[s:s + r, 0:c].set(a)
    return wp, e2, e3, off


# ----------------------------------------------------------------------------
# Kernel (one grid step == one batch element)
# ----------------------------------------------------------------------------

def _build_kernel(off, wins):
    f32 = jnp.float32
    (s0, n0), (s1, n1), (s2, n2), (s3, n3), (s4, n4) = wins
    ODD0 = 264        # row offset of the odd-phase stack (disjoint from even)

    def kernel(x_ref, r_ref, wp_ref, w2_ref, w3_ref, o_ref, st_ref):

        def W(name):
            r0, r, c = off[name]
            return wp_ref[r0:r0 + r, 0:c]

        def prelu(v, a):                                  # a: (1,1) alpha
            return jnp.where(v >= 0.0, v, a * v)

        def conv(h, w, k):
            """Stride-1 'same' Conv1d as one im2col dot (bias folded into w)."""
            cin, l = h.shape
            pad = (k - 1) // 2
            for j in range(k):
                ofs = j - pad
                r0 = j * cin
                lo, hi = max(0, -ofs), min(l, l - ofs)
                if lo:
                    st_ref[r0:r0 + cin, 0:lo] = jnp.zeros((cin, lo), f32)
                if hi < l:
                    st_ref[r0:r0 + cin, hi:l] = jnp.zeros((cin, l - hi), f32)
                st_ref[r0:r0 + cin, lo:hi] = h[:, lo + ofs:hi + ofs]
            st_ref[k * cin:k * cin + 1, 0:l] = jnp.ones((1, l), f32)  # bias row
            return jnp.dot(w, st_ref[0:k * cin + 1, 0:l],
                           preferred_element_type=f32)

        def maxpool(h, k):
            """nn.MaxPool1d(kernel_size=k): max of k shifts + 0/1 downsample."""
            c, l = h.shape
            lout = l // k
            span = k * (lout - 1) + 1
            m = h[:, 0:span]
            for i in range(1, k):
                m = jnp.maximum(m, h[:, i:i + span])
            rr = jax.lax.broadcasted_iota(jnp.int32, (span, lout), 0)
            cc = jax.lax.broadcasted_iota(jnp.int32, (span, lout), 1)
            sel = (rr == k * cc).astype(f32)
            return jnp.dot(m, sel, preferred_element_type=f32)

        def conv_t(h, h_start, we, wo, out_start, out_len, alpha):
            """Windowed ConvTranspose1d(K=7, stride=2), polyphase, one dot per
            phase (bias folded into we/wo), tiny 0/1 interleave matmuls."""
            cin = h.shape[0]
            nh = h.shape[1]
            m_lo, ne, mo_lo, no = _phase_ranges(out_start, out_len)
            # even phase: y[2m] = sum_j x[m-j] w[2j]
            for j in range(4):
                b0 = m_lo - j - h_start
                assert 0 <= b0 and b0 + ne <= nh
                st_ref[j * cin:(j + 1) * cin, 0:ne] = h[:, b0:b0 + ne]
            st_ref[4 * cin:4 * cin + 1, 0:ne] = jnp.ones((1, ne), f32)
            ev = jnp.dot(we, st_ref[0:4 * cin + 1, 0:ne],
                         preferred_element_type=f32)
            # odd phase: y[2m+1] = sum_j x[m-j] w[2j+1]  (disjoint scratch rows)
            for j in range(3):
                b0 = mo_lo - j - h_start
                assert 0 <= b0 and b0 + no <= nh
                st_ref[ODD0 + j * cin:ODD0 + (j + 1) * cin, 0:no] = h[:, b0:b0 + no]
            st_ref[ODD0 + 3 * cin:ODD0 + 3 * cin + 1, 0:no] = jnp.ones((1, no), f32)
            od = jnp.dot(wo, st_ref[ODD0:ODD0 + 3 * cin + 1, 0:no],
                         preferred_element_type=f32)
            # interleave the two phases into window column order
            se = out_start % 2
            rr = jax.lax.broadcasted_iota(jnp.int32, (ne, out_len), 0)
            cc = jax.lax.broadcasted_iota(jnp.int32, (ne, out_len), 1)
            pe = (cc == 2 * rr + se).astype(f32)
            ro = jax.lax.broadcasted_iota(jnp.int32, (no, out_len), 0)
            co = jax.lax.broadcasted_iota(jnp.int32, (no, out_len), 1)
            po = (co == 2 * ro + (1 - se)).astype(f32)
            y = (jnp.dot(ev, pe, preferred_element_type=f32)
                 + jnp.dot(od, po, preferred_element_type=f32))
            return y if alpha is None else prelu(y, alpha)

        x = x_ref[0].astype(f32)                          # (2, 192)
        r = r_ref[0].astype(f32)                          # (1, 64)

        # ------------------------------ encoder ------------------------------
        h = prelu(conv(x, W('e1'), KC), W('a1'))          # (32, 192)
        h = maxpool(h, 3)                                 # (32, 64)
        h = prelu(conv(h, w2_ref[...], KC), W('a2'))      # (64, 64)
        h = maxpool(h, 2)                                 # (64, 32)
        h = prelu(conv(h, w3_ref[...], KC), W('a3'))      # (32, 32)
        # z = [1x1 conv o Linear(32,64)](h)  ==  (W4 @ h) @ Wl^T + bias_z
        z = jnp.dot(jnp.dot(W('e4w'), h, preferred_element_type=f32),
                    W('elin'), preferred_element_type=f32) + W('bz')   # (1, 64)

        # ------------------------------ decoder ------------------------------
        y0 = jnp.dot(z + r, W('dlin'), preferred_element_type=f32) + W('dlinb')
        h = conv_t(y0[:, s0:s0 + n0], s0, W('t1e'), W('t1o'), s1, n1, W('a4'))
        h = conv_t(h, s1, W('t2e'), W('t2o'), s2, n2, W('a5'))
        h = conv_t(h, s2, W('t3e'), W('t3o'), s3, n3, W('a6'))
        y = conv_t(h, s3, W('t4e'), W('t4o'), s4, n4, None)            # (4, 192)

        # t4's window IS the centered crop y[:, :, d0:d0-d] of the reference.
        o_ref[0] = y.astype(o_ref.dtype)

    return kernel


# ----------------------------------------------------------------------------
# Wrapper
# ----------------------------------------------------------------------------

def forward(x, params, noise_key):
    """Matches TestModel.forward (x_stacked / out_mask are dead code)."""
    b, cin, l = x.shape
    assert (cin, l) == (2, L_IN), "encoder Linear(32, 64) requires L == 192"

    wp, w_e2, w_e3, off = _prepare_inputs(params)
    wins = _decoder_windows()
    kernel = _build_kernel(off, wins)

    # r = torch.randn_like(z): same distribution, deterministic JAX stream.
    r = jax.random.normal(noise_key, (b, 1, Z_LEN), jnp.float32)

    in_specs = [
        pl.BlockSpec((1, 2, L_IN), lambda i: (i, 0, 0)),     # x: one row / step
        pl.BlockSpec((1, 1, Z_LEN), lambda i: (i, 0, 0)),    # noise
        pl.BlockSpec(wp.shape, lambda i: (0, 0)),            # packed weights
        pl.BlockSpec(w_e2.shape, lambda i: (0, 0)),          # e2 folded weight
        pl.BlockSpec(w_e3.shape, lambda i: (0, 0)),          # e3 folded weight
    ]

    return pl.pallas_call(
        kernel,
        grid=(b,),
        in_specs=in_specs,
        out_specs=pl.BlockSpec((1, 4, L_IN), lambda i: (i, 0, 0)),
        out_shape=jax.ShapeDtypeStruct((b, 4, L_IN), jnp.float32),
        # im2col / phase-stack scratch: 15*64+1 <= 968 rows, <= 192 columns.
        scratch_shapes=[pltpu.VMEM((968, 192), jnp.float32)],
        compiler_params=pltpu.CompilerParams(
            dimension_semantics=("parallel",),   # 2 TCs on v7x; tiny loop on v5e/v6e
            vmem_limit_bytes=16 * 1024 * 1024,
        ),
    )(x.astype(jnp.float32), r, wp, w_e2, w_e3)


# ----------------------------------------------------------------------------
# Parameters (PyTorch-layout weights, random init; PReLU alpha = 0.25 default)
# ----------------------------------------------------------------------------

def init_params(key):
    c1, c2, c3 = 32, 64, 32
    c4, c5, c6 = 32, 64, 64
    ks = jax.random.split(key, 20)

    def conv_w(k, cout, cin, ksz):
        return jax.random.normal(k, (cout, cin, ksz), jnp.float32) / (cin * ksz) ** 0.5

    def convT_w(k, cin, cout, ksz):
        return jax.random.normal(k, (cin, cout, ksz), jnp.float32) / (cin * ksz) ** 0.5

    def lin_w(k, out_f, in_f):
        return jax.random.normal(k, (out_f, in_f), jnp.float32) / in_f ** 0.5

    def bias(k, n):
        return jax.random.normal(k, (n,), jnp.float32) * 0.01

    alpha = jnp.full((1, 1), 0.25, jnp.float32)          # nn.PReLU() default init
    return dict(
        # encoder
        e_c1_w=conv_w(ks[0], c1, 2, 15),   e_c1_b=bias(ks[1], c1),
        e_c2_w=conv_w(ks[2], c2, c1, 15),  e_c2_b=bias(ks[3], c2),
        e_c3_w=conv_w(ks[4], c3, c2, 15),  e_c3_b=bias(ks[5], c3),
        e_lin_w=lin_w(ks[6], 64, 32),      e_lin_b=bias(ks[7], 64),
        e_c4_w=conv_w(ks[8], 1, c3, 1),    e_c4_b=bias(ks[9], 1),
        # decoder
        d_lin_w=lin_w(ks[10], 64, 64),     d_lin_b=bias(ks[11], 64),
        d_t1_w=convT_w(ks[12], 1, c4, 7),  d_t1_b=bias(ks[13], c4),
        d_t2_w=convT_w(ks[14], c4, c5, 7), d_t2_b=bias(ks[15], c5),
        d_t3_w=convT_w(ks[16], c5, c6, 7), d_t3_b=bias(ks[17], c6),
        d_t4_w=convT_w(ks[18], c6, 4, 7),  d_t4_b=bias(ks[19], 4),
        # PReLU alphas (6 separate nn.PReLU modules)
        a1=alpha, a2=alpha, a3=alpha, a4=alpha, a5=alpha, a6=alpha,
    )


if __name__ == "__main__":
    key = jax.random.PRNGKey(0)
    pkey, xkey, nkey = jax.random.split(key, 3)
    params = init_params(pkey)
    # L must be 192 so that after MaxPool(3) and MaxPool(2) the length is 32,
    # matching the nn.Linear(32, 64) inside the encoder.
    x = jax.random.normal(xkey, (2, 2, L_IN), jnp.float32)

    fwd = jax.jit(forward)
    y = fwd(x, params, nkey)
    jax.block_until_ready(y)
    assert y.shape == (2, 4, L_IN), y.shape
    assert bool(jnp.all(jnp.isfinite(y)))
    print("KERNEL_OK")
</pallas_src>

<mosaic_0001>
module attributes {stable_mosaic.version = 11 : i64} {
  func.func @kernel(%arg0: i32, %arg1: memref<1x2x192xf32, #tpu.memory_space<vmem>>, %arg2: memref<1x1x64xf32, #tpu.memory_space<vmem>>, %arg3: memref<536x257xf32, #tpu.memory_space<vmem>>, %arg4: memref<64x481xf32, #tpu.memory_space<vmem>>, %arg5: memref<32x961xf32, #tpu.memory_space<vmem>>, %arg6: memref<1x4x192xf32, #tpu.memory_space<vmem>>, %arg7: memref<968x192xf32, #tpu.memory_space<vmem>>) attributes {dimension_semantics = [#tpu.dimension_semantics<parallel>], iteration_bounds = array<i64: 2>, scalar_prefetch = 0 : i64, scratch_operands = 1 : i64, tpu.core_type = #tpu.core_type<tc>, window_params = [{transform_indices = @transform_0, window_bounds = array<i64: 1, 2, 192>}, {transform_indices = @transform_1, window_bounds = array<i64: 1, 1, 64>}, {pipeline_mode = #tpu.pipeline_mode<synchronous>, transform_indices = @transform_2, window_bounds = array<i64: 536, 257>}, {pipeline_mode = #tpu.pipeline_mode<synchronous>, transform_indices = @transform_3, window_bounds = array<i64: 64, 481>}, {pipeline_mode = #tpu.pipeline_mode<synchronous>, transform_indices = @transform_4, window_bounds = array<i64: 32, 961>}, {transform_indices = @transform_5, window_bounds = array<i64: 1, 4, 192>}]} {
    %c0 = arith.constant 0 : index
    %c0_0 = arith.constant 0 : index
    %c0_1 = arith.constant 0 : index
    %0 = vector.load %arg1[%c0, %c0_0, %c0_1] : memref<1x2x192xf32, #tpu.memory_space<vmem>>, vector<1x2x192xf32>
    %1 = vector.shape_cast %0 : vector<1x2x192xf32> to vector<2x192xf32>
    %c0_2 = arith.constant 0 : index
    %c0_3 = arith.constant 0 : index
    %c0_4 = arith.constant 0 : index
    %2 = vector.load %arg2[%c0_2, %c0_3, %c0_4] : memref<1x1x64xf32, #tpu.memory_space<vmem>>, vector<1x1x64xf32>
    %3 = vector.shape_cast %2 : vector<1x1x64xf32> to vector<1x64xf32>
    %c0_5 = arith.constant 0 : index
    %c0_6 = arith.constant 0 : index
    %4 = vector.load %arg3[%c0_5, %c0_6] : memref<536x257xf32, #tpu.memory_space<vmem>>, vector<32x31xf32>
    %cst = arith.constant 0.000000e+00 : f32
    %5 = vector.broadcast %cst : f32 to vector<2x7xf32>
    %c0_7 = arith.constant 0 : index
    %c0_8 = arith.constant 0 : index
    %6 = vector.load %arg7[%c0_7, %c0_8] : memref<968x192xf32, #tpu.memory_space<vmem>>, vector<2x7xf32>
    tpu.vector_store %arg7[%c0_7, %c0_8], %5 {strides = array<i32>} : memref<968x192xf32, #tpu.memory_space<vmem>>, vector<2x7xf32>,
    %7 = vector.extract_strided_slice %1 {offsets = [0, 0], sizes = [2, 185], strides = [1, 1]} : vector<2x192xf32> to vector<2x185xf32>
    %c0_9 = arith.constant 0 : index
    %c7 = arith.constant 7 : index
    %8 = vector.load %arg7[%c0_9, %c7] : memref<968x192xf32, #tpu.memory_space<vmem>>, vector<2x185xf32>
    tpu.vector_store %arg7[%c0_9, %c7], %7 {strides = array<i32>} : memref<968x192xf32, #tpu.memory_space<vmem>>, vector<2x185xf32>,
    %cst_10 = arith.constant 0.000000e+00 : f32
    %9 = vector.broadcast %cst_10 : f32 to vector<2x6xf32>
    %c2 = arith.constant 2 : index
    %c0_11 = arith.constant 0 : index
    %10 = vector.load %arg7[%c2, %c0_11] : memref<968x192xf32, #tpu.memory_space<vmem>>, vector<2x6xf32>
    tpu.vector_store %arg7[%c2, %c0_11], %9 {strides = array<i32>} : memref<968x192xf32, #tpu.memory_space<vmem>>, vector<2x6xf32>,
    %11 = vector.extract_strided_slice %1 {offsets = [0, 0], sizes = [2, 186], strides = [1, 1]} : vector<2x192xf32> to vector<2x186xf32>
    %c2_12 = arith.constant 2 : index
    %c6 = arith.constant 6 : index
    %12 = vector.load %arg7[%c2_12, %c6] : memref<968x192xf32, #tpu.memory_space<vmem>>, vector<2x186xf32>
    tpu.vector_store %arg7[%c2_12, %c6], %11 {strides = array<i32>} : memref<968x192xf32, #tpu.memory_space<vmem>>, vector<2x186xf32>,
    %cst_13 = arith.constant 0.000000e+00 : f32
    %13 = vector.broadcast %cst_13 : f32 to vector<2x5xf32>
    %c4 = arith.constant 4 : index
    %c0_14 = arith.constant 0 : index
    %14 = vector.load %arg7[%c4, %c0_14] : memref<968x192xf32, #tpu.memory_space<vmem>>, vector<2x5xf32>
    tpu.vector_store %arg7[%c4, %c0_14], %13 {strides = array<i32>} : memref<968x192xf32, #tpu.memory_space<vmem>>, vector<2x5xf32>,
    %15 = vector.extract_strided_slice %1 {offsets = [0, 0], sizes = [2, 187], strides = [1, 1]} : vector<2x192xf32> to vector<2x187xf32>
    %c4_15 = arith.constant 4 : index
    %c5 = arith.constant 5 : index
    %16 = vector.load %arg7[%c4_15, %c5] : memref<968x192xf32, #tpu.memory_space<vmem>>, vector<2x187xf32>
    tpu.vector_store %arg7[%c4_15, %c5], %15 {strides = array<i32>} : memref<968x192xf32, #tpu.memory_space<vmem>>, vector<2x187xf32>,
    %cst_16 = arith.constant 0.000000e+00 : f32
    %17 = vector.broadcast %cst_16 : f32 to vector<2x4xf32>
    %c6_17 = arith.constant 6 : index
    %c0_18 = arith.constant 0 : index
    %18 = vector.load %arg7[%c6_17, %c0_18] : memref<968x192xf32, #tpu.memory_space<vmem>>, vector<2x4xf32>
    tpu.vector_store %arg7[%c6_17, %c0_18], %17 {strides = array<i32>} : memref<968x192xf32, #tpu.memory_space<vmem>>, vector<2x4xf32>,
    %19 = vector.extract_strided_slice %1 {offsets = [0, 0], sizes = [2, 188], strides = [1, 1]} : vector<2x192xf32> to vector<2x188xf32>
    %c6_19 = arith.constant 6 : index
    %c4_20 = arith.constant 4 : index
    %20 = vector.load %arg7[%c6_19, %c4_20] : memref<968x192xf32, #tpu.memory_space<vmem>>, vector<2x188xf32>
    tpu.vector_store %arg7[%c6_19, %c4_20], %19 {strides = array<i32>} : memref<968x192xf32, #tpu.memory_space<vmem>>, vector<2x188xf32>,
    %cst_21 = arith.constant 0.000000e+00 : f32
    %21 = vector.broadcast %cst_21 : f32 to vector<2x3xf32>
    %c8 = arith.constant 8 : index
    %c0_22 = arith.constant 0 : index
    %22 = vector.load %arg7[%c8, %c0_22] : memref<968x192xf32, #tpu.memory_space<vmem>>, vector<2x3xf32>
    tpu.vector_store %arg7[%c8, %c0_22], %21 {strides = array<i32>} : memref<968x192xf32, #tpu.memory_space<vmem>>, vector<2x3xf32>,
    %23 = vector.extract_strided_slice %1 {offsets = [0, 0], sizes = [2, 189], strides = [1, 1]} : vector<2x192xf32> to vector<2x189xf32>
    %c8_23 = arith.constant 8 : index
    %c3 = arith.constant 3 : index
    %24 = vector.load %arg7[%c8_23, %c3] : memref<968x192xf32, #tpu.memory_space<vmem>>, vector<2x189xf32>
    tpu.vector_store %arg7[%c8_23, %c3], %23 {strides = array<i32>} : memref<968x192xf32, #tpu.memory_space<vmem>>, vector<2x189xf32>,
    %cst_24 = arith.constant 0.000000e+00 : f32
    %25 = vector.broadcast %cst_24 : f32 to vector<2x2xf32>
    %c10 = arith.constant 10 : index
    %c0_25 = arith.constant 0 : index
    %26 = vector.load %arg7[%c10, %c0_25] : memref<968x192xf32, #tpu.memory_space<vmem>>, vector<2x2xf32>
    tpu.vector_store %arg7[%c10, %c0_25], %25 {strides = array<i32>} : memref<968x192xf32, #tpu.memory_space<vmem>>, vector<2x2xf32>,
    %27 = vector.extract_strided_slice %1 {offsets = [0, 0], sizes = [2, 190], strides = [1, 1]} : vector<2x192xf32> to vector<2x190xf32>
    %c10_26 = arith.constant 10 : index
    %c2_27 = arith.constant 2 : index
    %28 = vector.load %arg7[%c10_26, %c2_27] : memref<968x192xf32, #tpu.memory_space<vmem>>, vector<2x190xf32>
    tpu.vector_store %arg7[%c10_26, %c2_27], %27 {strides = array<i32>} : memref<968x192xf32, #tpu.memory_space<vmem>>, vector<2x190xf32>,
    %cst_28 = arith.constant 0.000000e+00 : f32
    %29 = vector.broadcast %cst_28 : f32 to vector<2x1xf32>
    %c12 = arith.constant 12 : index
    %c0_29 = arith.constant 0 : index
    %30 = vector.load %arg7[%c12, %c0_29] : memref<968x192xf32, #tpu.memory_space<vmem>>, vector<2x1xf32>
    tpu.vector_store %arg7[%c12, %c0_29], %29 {strides = array<i32>} : memref<968x192xf32, #tpu.memory_space<vmem>>, vector<2x1xf32>,
    %31 = vector.extract_strided_slice %1 {offsets = [0, 0], sizes = [2, 191], strides = [1, 1]} : vector<2x192xf32> to vector<2x191xf32>
    %c12_30 = arith.constant 12 : index
    %c1 = arith.constant 1 : index
    %32 = vector.load %arg7[%c12_30, %c1] : memref<968x192xf32, #tpu.memory_space<vmem>>, vector<2x191xf32>
    tpu.vector_store %arg7[%c12_30, %c1], %31 {strides = array<i32>} : memref<968x192xf32, #tpu.memory_space<vmem>>, vector<2x191xf32>,
    %c14 = arith.constant 14 : index
    %c0_31 = arith.constant 0 : index
    %33 = vector.load %arg7[%c14, %c0_31] : memref<968x192xf32, #tpu.memory_space<vmem>>, vector<2x192xf32>
    tpu.vector_store %arg7[%c14, %c0_31], %1 {strides = array<i32>} : memref<968x192xf32, #tpu.memory_space<vmem>>, vector<2x192xf32>,
    %cst_32 = arith.constant 0.000000e+00 : f32
    %34 = vector.broadcast %cst_32 : f32 to vector<2x1xf32>
    %c16 = arith.constant 16 : index
    %c191 = arith.constant 191 : index
    %35 = vector.load %arg7[%c16, %c191] : memref<968x192xf32, #tpu.memory_space<vmem>>, vector<2x1xf32>
    tpu.vector_store %arg7[%c16, %c191], %34 {strides = array<i32>} : memref<968x192xf32, #tpu.memory_space<vmem>>, vector<2x1xf32>,
    %36 = vector.extract_strided_slice %1 {offsets = [0, 1], sizes = [2, 191], strides = [1, 1]} : vector<2x192xf32> to vector<2x191xf32>
    %c16_33 = arith.constant 16 : index
    %c0_34 = arith.constant 0 : index
    %37 = vector.load %arg7[%c16_33, %c0_34] : memref<968x192xf32, #tpu.memory_space<vmem>>, vector<2x191xf32>
    tpu.vector_store %arg7[%c16_33, %c0_34], %36 {strides = array<i32>} : memref<968x192xf32, #tpu.memory_space<vmem>>, vector<2x191xf32>,
    %cst_35 = arith.constant 0.000000e+00 : f32
    %38 = vector.broadcast %cst_35 : f32 to vector<2x2xf32>
    %c18 = arith.constant 18 : index
    %c190 = arith.constant 190 : index
    %39 = vector.load %arg7[%c18, %c190] : memref<968x192xf32, #tpu.memory_space<vmem>>, vector<2x2xf32>
    tpu.vector_store %arg7[%c18, %c190], %38 {strides = array<i32>} : memref<968x192xf32, #tpu.memory_space<vmem>>, vector<2x2xf32>,
    %40 = vector.extract_strided_slice %1 {offsets = [0, 2], sizes = [2, 190], strides = [1, 1]} : vector<2x192xf32> to vector<2x190xf32>
    %c18_36 = arith.constant 18 : index
    %c0_37 = arith.constant 0 : index
    %41 = vector.load %arg7[%c18_36, %c0_37] : memref<968x192xf32, #tpu.memory_space<vmem>>, vector<2x190xf32>
    tpu.vector_store %arg7[%c18_36, %c0_37], %40 {strides = array<i32>} : memref<968x192xf32, #tpu.memory_space<vmem>>, vector<2x190xf32>,
    %cst_38 = arith.constant 0.000000e+00 : f32
    %42 = vector.broadcast %cst_38 : f32 to vector<2x3xf32>
    %c20 = arith.constant 20 : index
    %c189 = arith.constant 189 : index
    %43 = vector.load %arg7[%c20, %c189] : memref<968x192xf32, #tpu.memory_space<vmem>>, vector<2x3xf32>
    tpu.vector_store %arg7[%c20, %c189], %42 {strides = array<i32>} : memref<968x192xf32, #tpu.memory_space<vmem>>, vector<2x3xf32>,
    %44 = vector.extract_strided_slice %1 {offsets = [0, 3], sizes = [2, 189], strides = [1, 1]} : vector<2x192xf32> to vector<2x189xf32>
    %c20_39 = arith.constant 20 : index
    %c0_40 = arith.constant 0 : index
    %45 = vector.load %arg7[%c20_39, %c0_40] : memref<968x192xf32, #tpu.memory_space<vmem>>, vector<2x189xf32>
    tpu.vector_store %arg7[%c20_39, %c0_40], %44 {strides = array<i32>} : memref<968x192xf32, #tpu.memory_space<vmem>>, vector<2x189xf32>,
    %cst_41 = arith.constant 0.000000e+00 : f32
    %46 = vector.broadcast %cst_41 : f32 to vector<2x4xf32>
    %c22 = arith.constant 22 : index
    %c188 = arith.constant 188 : index
    %47 = vector.load %arg7[%c22, %c188] : memref<968x192xf32, #tpu.memory_space<vmem>>, vector<2x4xf32>
    tpu.vector_store %arg7[%c22, %c188], %46 {strides = array<i32>} : memref<968x192xf32, #tpu.memory_space<vmem>>, vector<2x4xf32>,
    %48 = vector.extract_strided_slice %1 {offsets = [0, 4], sizes = [2, 188], strides = [1, 1]} : vector<2x192xf32> to vector<2x188xf32>
    %c22_42 = arith.constant 22 : index
    %c0_43 = arith.constant 0 : index
    %49 = vector.load %arg7[%c22_42, %c0_43] : memref<968x192xf32, #tpu.memory_space<vmem>>, vector<2x188xf32>
    tpu.vector_store %arg7[%c22_42, %c0_43], %48 {strides = array<i32>} : memref<968x192xf32, #tpu.memory_space<vmem>>, vector<2x188xf32>,
    %cst_44 = arith.constant 0.000000e+00 : f32
    %50 = vector.broadcast %cst_44 : f32 to vector<2x5xf32>
    %c24 = arith.constant 24 : index
    %c187 = arith.constant 187 : index
    %51 = vector.load %arg7[%c24, %c187] : memref<968x192xf32, #tpu.memory_space<vmem>>, vector<2x5xf32>
    tpu.vector_store %arg7[%c24, %c187], %50 {strides = array<i32>} : memref<968x192xf32, #tpu.memory_space<vmem>>, vector<2x5xf32>,
    %52 = vector.extract_strided_slice %1 {offsets = [0, 5], sizes = [2, 187], strides = [1, 1]} : vector<2x192xf32> to vector<2x187xf32>
    %c24_45 = arith.constant 24 : index
    %c0_46 = arith.constant 0 : index
    %53 = vector.load %arg7[%c24_45, %c0_46] : memref<968x192xf32, #tpu.memory_space<vmem>>, vector<2x187xf32>
    tpu.vector_store %arg7[%c24_45, %c0_46], %52 {strides = array<i32>} : memref<968x192xf32, #tpu.memory_space<vmem>>, vector<2x187xf32>,
    %cst_47 = arith.constant 0.000000e+00 : f32
    %54 = vector.broadcast %cst_47 : f32 to vector<2x6xf32>
    %c26 = arith.constant 26 : index
    %c186 = arith.constant 186 : index
    %55 = vector.load %arg7[%c26, %c186] : memref<968x192xf32, #tpu.memory_space<vmem>>, vector<2x6xf32>
    tpu.vector_store %arg7[%c26, %c186], %54 {strides = array<i32>} : memref<968x192xf32, #tpu.memory_space<vmem>>, vector<2x6xf32>,
    %56 = vector.extract_strided_slice %1 {offsets = [0, 6], sizes = [2, 186], strides = [1, 1]} : vector<2x192xf32> to vector<2x186xf32>
    %c26_48 = arith.constant 26 : index
    %c0_49 = arith.constant 0 : index
    %57 = vector.load %arg7[%c26_48, %c0_49] : memref<968x192xf32, #tpu.memory_space<vmem>>, vector<2x186xf32>
    tpu.vector_store %arg7[%c26_48, %c0_49], %56 {strides = array<i32>} : memref<968x192xf32, #tpu.memory_space<vmem>>, vector<2x186xf32>,
    %cst_50 = arith.constant 0.000000e+00 : f32
    %58 = vector.broadcast %cst_50 : f32 to vector<2x7xf32>
    %c28 = arith.constant 28 : index
    %c185 = arith.constant 185 : index
    %59 = vector.load %arg7[%c28, %c185] : memref<968x192xf32, #tpu.memory_space<vmem>>, vector<2x7xf32>
    tpu.vector_store %arg7[%c28, %c185], %58 {strides = array<i32>} : memref<968x192xf32, #tpu.memory_space<vmem>>, vector<2x7xf32>,
    %60 = vector.extract_strided_slice %1 {offsets = [0, 7], sizes = [2, 185], strides = [1, 1]} : vector<2x192xf32> to vector<2x185xf32>
    %c28_51 = arith.constant 28 : index
    %c0_52 = arith.constant 0 : index
    %61 = vector.load %arg7[%c28_51, %c0_52] : memref<968x192xf32, #tpu.memory_space<vmem>>, vector<2x185xf32>
    tpu.vector_store %arg7[%c28_51, %c0_52], %60 {strides = array<i32>} : memref<968x192xf32, #tpu.memory_space<vmem>>, vector<2x185xf32>,
    %cst_53 = arith.constant 1.000000e+00 : f32
    %62 = vector.broadcast %cst_53 : f32 to vector<1x192xf32>
    %c30 = arith.constant 30 : index
    %c0_54 = arith.constant 0 : index
    %63 = vector.load %arg7[%c30, %c0_54] : memref<968x192xf32, #tpu.memory_space<vmem>>, vector<1x192xf32>
    tpu.vector_store %arg7[%c30, %c0_54], %62 {strides = array<i32>} : memref<968x192xf32, #tpu.memory_space<vmem>>, vector<1x192xf32>,
    %c0_55 = arith.constant 0 : index
    %c0_56 = arith.constant 0 : index
    %64 = vector.load %arg7[%c0_55, %c0_56] : memref<968x192xf32, #tpu.memory_space<vmem>>, vector<31x192xf32>
    %cst_57 = arith.constant dense<0.000000e+00> : vector<32x192xf32>
    %65 = tpu.matmul %4, %64, %cst_57 {dimension_numbers = #tpu.dot_dimension_numbers<[1], [0], [0], [1], [0, 0, 1, 1], [], []>} : vector<32x31xf32>, vector<31x192xf32>, vector<32x192xf32> -> vector<32x192xf32>
    %c488 = arith.constant 488 : index
    %c0_58 = arith.constant 0 : index
    %66 = vector.load %arg3[%c488, %c0_58] : memref<536x257xf32, #tpu.memory_space<vmem>>, vector<1x1xf32>
    %cst_59 = arith.constant 0.000000e+00 : f32
    %67 = vector.broadcast %cst_59 : f32 to vector<32x192xf32>
    %68 = arith.cmpf oge, %65, %67 : vector<32x192xf32>
    %69 = vector.broadcast %66 : vector<1x1xf32> to vector<32x192xf32>
    %70 = arith.mulf %69, %65 : vector<32x192xf32>
    %71 = arith.select %68, %65, %70 : vector<32x192xi1>, vector<32x192xf32>
    %72 = vector.extract_strided_slice %71 {offsets = [0, 0], sizes = [32, 190], strides = [1, 1]} : vector<32x192xf32> to vector<32x190xf32>
    %73 = vector.extract_strided_slice %71 {offsets = [0, 1], sizes = [32, 190], strides = [1, 1]} : vector<32x192xf32> to vector<32x190xf32>
    %74 = arith.maximumf %72, %73 : vector<32x190xf32>
    %75 = vector.extract_strided_slice %71 {offsets = [0, 2], sizes = [32, 190], strides = [1, 1]} : vector<32x192xf32> to vector<32x190xf32>
    %76 = arith.maximumf %74, %75 : vector<32x190xf32>
    %77 = tpu.iota {dimensions = array<i32: 0>} : vector<190x64xi32>
    %78 = tpu.iota {dimensions = array<i32: 1>} : vector<190x64xi32>
    %c3_i32 = arith.constant 3 : i32
    %79 = vector.broadcast %c3_i32 : i32 to vector<190x64xi32>
    %80 = arith.muli %79, %78 : vector<190x64xi32>
    %81 = arith.cmpi eq, %77, %80 : vector<190x64xi32>
    %82 = arith.extui %81 : vector<190x64xi1> to vector<190x64xi32>
    %83 = arith.sitofp %82 : vector<190x64xi32> to vector<190x64xf32>
    %cst_60 = arith.constant dense<0.000000e+00> : vector<32x64xf32>
    %84 = tpu.matmul %76, %83, %cst_60 {dimension_numbers = #tpu.dot_dimension_numbers<[1], [0], [0], [1], [0, 0, 1, 1], [], []>} : vector<32x190xf32>, vector<190x64xf32>, vector<32x64xf32> -> vector<32x64xf32>
    %c0_61 = arith.constant 0 : index
    %c0_62 = arith.constant 0 : index
    %85 = vector.load %arg4[%c0_61, %c0_62] : memref<64x481xf32, #tpu.memory_space<vmem>>, vector<64x481xf32>
    %cst_63 = arith.constant 0.000000e+00 : f32
    %86 = vector.broadcast %cst_63 : f32 to vector<32x7xf32>
    %c0_64 = arith.constant 0 : index
    %c0_65 = arith.constant 0 : index
    %87 = vector.load %arg7[%c0_64, %c0_65] : memref<968x192xf32, #tpu.memory_space<vmem>>, vector<32x7xf32>
    tpu.vector_store %arg7[%c0_64, %c0_65], %86 {strides = array<i32>} : memref<968x192xf32, #tpu.memory_space<vmem>>, vector<32x7xf32>,
    %88 = vector.extract_strided_slice %84 {offsets = [0, 0], sizes = [32, 57], strides = [1, 1]} : vector<32x64xf32> to vector<32x57xf32>
    %c0_66 = arith.constant 0 : index
    %c7_67 = arith.constant 7 : index
    %89 = vector.load %arg7[%c0_66, %c7_67] : memref<968x192xf32, #tpu.memory_space<vmem>>, vector<32x57xf32>
    tpu.vector_store %arg7[%c0_66, %c7_67], %88 {strides = array<i32>} : memref<968x192xf32, #tpu.memory_space<vmem>>, vector<32x57xf32>,
    %cst_68 = arith.constant 0.000000e+00 : f32
    %90 = vector.broadcast %cst_68 : f32 to vector<32x6xf32>
    %c32 = arith.constant 32 : index
    %c0_69 = arith.constant 0 : index
    %91 = vector.load %arg7[%c32, %c0_69] : memref<968x192xf32, #tpu.memory_space<vmem>>, vector<32x6xf32>
    tpu.vector_store %arg7[%c32, %c0_69], %90 {strides = array<i32>} : memref<968x192xf32, #tpu.memory_space<vmem>>, vector<32x6xf32>,
    %92 = vector.extract_strided_slice %84 {offsets = [0, 0], sizes = [32, 58], strides = [1, 1]} : vector<32x64xf32> to vector<32x58xf32>
    %c32_70 = arith.constant 32 : index
    %c6_71 = arith.constant 6 : index
    %93 = vector.load %arg7[%c32_70, %c6_71] : memref<968x192xf32, #tpu.memory_space<vmem>>, vector<32x58xf32>
    tpu.vector_store %arg7[%c32_70, %c6_71], %92 {strides = array<i32>} : memref<968x192xf32, #tpu.memory_space<vmem>>, vector<32x58xf32>,
    %cst_72 = arith.constant 0.000000e+00 : f32
    %94 = vector.broadcast %cst_72 : f32 to vector<32x5xf32>
    %c64 = arith.constant 64 : index
    %c0_73 = arith.constant 0 : index
    %95 = vector.load %arg7[%c64, %c0_73] : memref<968x192xf32, #tpu.memory_space<vmem>>, vector<32x5xf32>
    tpu.vector_store %arg7[%c64, %c0_73], %94 {strides = array<i32>} : memref<968x192xf32, #tpu.memory_space<vmem>>, vector<32x5xf32>,
    %96 = vector.extract_strided_slice %84 {offsets = [0, 0], sizes = [32, 59], strides = [1, 1]} : vector<32x64xf32> to vector<32x59xf32>
    %c64_74 = arith.constant 64 : index
    %c5_75 = arith.constant 5 : index
    %97 = vector.load %arg7[%c64_74, %c5_75] : memref<968x192xf32, #tpu.memory_space<vmem>>, vector<32x59xf32>
    tpu.vector_store %arg7[%c64_74, %c5_75], %96 {strides = array<i32>} : memref<968x192xf32, #tpu.memory_space<vmem>>, vector<32x59xf32>,
    %cst_76 = arith.constant 0.000000e+00 : f32
    %98 = vector.broadcast %cst_76 : f32 to vector<32x4xf32>
    %c96 = arith.constant 96 : index
    %c0_77 = arith.constant 0 : index
    %99 = vector.load %arg7[%c96, %c0_77] : memref<968x192xf32, #tpu.memory_space<vmem>>, vector<32x4xf32>
    tpu.vector_store %arg7[%c96, %c0_77], %98 {strides = array<i32>} : memref<968x192xf32, #tpu.memory_space<vmem>>, vector<32x4xf32>,
    %100 = vector.extract_strided_slice %84 {offsets = [0, 0], sizes = [32, 60], strides = [1, 1]} : vector<32x64xf32> to vector<32x60xf32>
    %c96_78 = arith.constant 96 : index
    %c4_79 = arith.constant 4 : index
    %101 = vector.load %arg7[%c96_78, %c4_79] : memref<968x192xf32, #tpu.memory_space<vmem>>, vector<32x60xf32>
    tpu.vector_store %arg7[%c96_78, %c4_79], %100 {strides = array<i32>} : memref<968x192xf32, #tpu.memory_space<vmem>>, vector<32x60xf32>,
    %cst_80 = arith.constant 0.000000e+00 : f32
    %102 = vector.broadcast %cst_80 : f32 to vector<32x3xf32>
    %c128 = arith.constant 128 : index
    %c0_81 = arith.constant 0 : index
    %103 = vector.load %arg7[%c128, %c0_81] : memref<968x192xf32, #tpu.memory_space<vmem>>, vector<32x3xf32>
    tpu.vector_store %arg7[%c128, %c0_81], %102 {strides = array<i32>} : memref<968x192xf32, #tpu.memory_space<vmem>>, vector<32x3xf32>,
    %104 = vector.extract_strided_slice %84 {offsets = [0, 0], sizes = [32, 61], strides = [1, 1]} : vector<32x64xf32> to vector<32x61xf32>
    %c128_82 = arith.constant 128 : index
    %c3_83 = arith.constant 3 : index
    %105 = vector.load %arg7[%c128_82, %c3_83] : memref<968x192xf32, #tpu.memory_space<vmem>>, vector<32x61xf32>
    tpu.vector_store %arg7[%c128_82, %c3_83], %104 {strides = array<i32>} : memref<968x192xf32, #tpu.memory_space<vmem>>, vector<32x61xf32>,
    %cst_84 = arith.constant 0.000000e+00 : f32
    %106 = vector.broadcast %cst_84 : f32 to vector<32x2xf32>
    %c160 = arith.constant 160 : index
    %c0_85 = arith.constant 0 : index
    %107 = vector.load %arg7[%c160, %c0_85] : memref<968x192xf32, #tpu.memory_space<vmem>>, vector<32x2xf32>
    tpu.vector_store %arg7[%c160, %c0_85], %106 {strides = array<i32>} : memref<968x192xf32, #tpu.memory_space<vmem>>, vector<32x2xf32>,
    %108 = vector.extract_strided_slice %84 {offsets = [0, 0], sizes = [32, 62], strides = [1, 1]} : vector<32x64xf32> to vector<32x62xf32>
    %c160_86 = arith.constant 160 : index
    %c2_87 = arith.constant 2 : index
    %109 = vector.load %arg7[%c160_86, %c2_87] : memref<968x192xf32, #tpu.memory_space<vmem>>, vector<32x62xf32>
    tpu.vector_store %arg7[%c160_86, %c2_87], %108 {strides = array<i32>} : memref<968x192xf32, #tpu.memory_space<vmem>>, vector<32x62xf32>,
    %cst_88 = arith.constant 0.000000e+00 : f32
    %110 = vector.broadcast %cst_88 : f32 to vector<32x1xf32>
    %c192 = arith.constant 192 : index
    %c0_89 = arith.constant 0 : index
    %111 = vector.load %arg7[%c192, %c0_89] : memref<968x192xf32, #tpu.memory_space<vmem>>, vector<32x1xf32>
    tpu.vector_store %arg7[%c192, %c0_89], %110 {strides = array<i32>} : memref<968x192xf32, #tpu.memory_space<vmem>>, vector<32x1xf32>,
    %112 = vector.extract_strided_slice %84 {offsets = [0, 0], sizes = [32, 63], strides = [1, 1]} : vector<32x64xf32> to vector<32x63xf32>
    %c192_90 = arith.constant 192 : index
    %c1_91 = arith.constant 1 : index
    %113 = vector.load %arg7[%c192_90, %c1_91] : memref<968x192xf32, #tpu.memory_space<vmem>>, vector<32x63xf32>
    tpu.vector_store %arg7[%c192_90, %c1_91], %112 {strides = array<i32>} : memref<968x192xf32, #tpu.memory_space<vmem>>, vector<32x63xf32>,
    %c224 = arith.constant 224 : index
    %c0_92 = arith.constant 0 : index
    %114 = vector.load %arg7[%c224, %c0_92] : memref<968x192xf32, #tpu.memory_space<vmem>>, vector<32x64xf32>
    tpu.vector_store %arg7[%c224, %c0_92], %84 {strides = array<i32>} : memref<968x192xf32, #tpu.memory_space<vmem>>, vector<32x64xf32>,
    %cst_93 = arith.constant 0.000000e+00 : f32
    %115 = vector.broadcast %cst_93 : f32 to vector<32x1xf32>
    %c256 = arith.constant 256 : index
    %c63 = arith.constant 63 : index
    %116 = vector.load %arg7[%c256, %c63] : memref<968x192xf32, #tpu.memory_space<vmem>>, vector<32x1xf32>
    tpu.vector_store %arg7[%c256, %c63], %115 {strides = array<i32>} : memref<968x192xf32, #tpu.memory_space<vmem>>, vector<32x1xf32>,
    %117 = vector.extract_strided_slice %84 {offsets = [0, 1], sizes = [32, 63], strides = [1, 1]} : vector<32x64xf32> to vector<32x63xf32>
    %c256_94 = arith.constant 256 : index
    %c0_95 = arith.constant 0 : index
    %118 = vector.load %arg7[%c256_94, %c0_95] : memref<968x192xf32, #tpu.memory_space<vmem>>, vector<32x63xf32>
    tpu.vector_store %arg7[%c256_94, %c0_95], %117 {strides = array<i32>} : memref<968x192xf32, #tpu.memory_space<vmem>>, vector<32x63xf32>,
    %cst_96 = arith.constant 0.000000e+00 : f32
    %119 = vector.broadcast %cst_96 : f32 to vector<32x2xf32>
    %c288 = arith.constant 288 : index
    %c62 = arith.constant 62 : index
    %120 = vector.load %arg7[%c288, %c62] : memref<968x192xf32, #tpu.memory_space<vmem>>, vector<32x2xf32>
    tpu.vector_store %arg7[%c288, %c62], %119 {strides = array<i32>} : memref<968x192xf32, #tpu.memory_space<vmem>>, vector<32x2xf32>,
    %121 = vector.extract_strided_slice %84 {offsets = [0, 2], sizes = [32, 62], strides = [1, 1]} : vector<32x64xf32> to vector<32x62xf32>
    %c288_97 = arith.constant 288 : index
    %c0_98 = arith.constant 0 : index
    %122 = vector.load %arg7[%c288_97, %c0_98] : memref<968x192xf32, #tpu.memory_space<vmem>>, vector<32x62xf32>
    tpu.vector_store %arg7[%c288_97, %c0_98], %121 {strides = array<i32>} : memref<968x192xf32, #tpu.memory_space<vmem>>, vector<32x62xf32>,
    %cst_99 = arith.constant 0.000000e+00 : f32
    %123 = vector.broadcast %cst_99 : f32 to vector<32x3xf32>
    %c320 = arith.constant 320 : index
    %c61 = arith.constant 61 : index
    %124 = vector.load %arg7[%c320, %c61] : memref<968x192xf32, #tpu.memory_space<vmem>>, vector<32x3xf32>
    tpu.vector_store %arg7[%c320, %c61], %123 {strides = array<i32>} : memref<968x192xf32, #tpu.memory_space<vmem>>, vector<32x3xf32>,
    %125 = vector.extract_strided_slice %84 {offsets = [0, 3], sizes = [32, 61], strides = [1, 1]} : vector<32x64xf32> to vector<32x61xf32>
    %c320_100 = arith.constant 320 : index
    %c0_101 = arith.constant 0 : index
    %126 = vector.load %arg7[%c320_100, %c0_101] : memref<968x192xf32, #tpu.memory_space<vmem>>, vector<32x61xf32>
    tpu.vector_store %arg7[%c320_100, %c0_101], %125 {strides = array<i32>} : memref<968x192xf32, #tpu.memory_space<vmem>>, vector<32x61xf32>,
    %cst_102 = arith.constant 0.000000e+00 : f32
    %127 = vector.broadcast %cst_102 : f32 to vector<32x4xf32>
    %c352 = arith.constant 352 : index
    %c60 = arith.constant 60 : index
    %128 = vector.load %arg7[%c352, %c60] : memref<968x192xf32, #tpu.memory_space<vmem>>, vector<32x4xf32>
    tpu.vector_store %arg7[%c352, %c60], %127 {strides = array<i32>} : memref<968x192xf32, #tpu.memory_space<vmem>>, vector<32x4xf32>,
    %129 = vector.extract_strided_slice %84 {offsets = [0, 4], sizes = [32, 60], strides = [1, 1]} : vector<32x64xf32> to vector<32x60xf32>
    %c352_103 = arith.constant 352 : index
    %c0_104 = arith.constant 0 : index
    %130 = vector.load %arg7[%c352_103, %c0_104] : memref<968x192xf32, #tpu.memory_space<vmem>>, vector<32x60xf32>
    tpu.vector_store %arg7[%c352_103, %c0_104], %129 {strides = array<i32>} : memref<968x192xf32, #tpu.memory_space<vmem>>, vector<32x60xf32>,
    %cst_105 = arith.constant 0.000000e+00 : f32
    %131 = vector.broadcast %cst_105 : f32 to vector<32x5xf32>
    %c384 = arith.constant 384 : index
    %c59 = arith.constant 59 : index
    %132 = vector.load %arg7[%c384, %c59] : memref<968x192xf32, #tpu.memory_space<vmem>>, vector<32x5xf32>
    tpu.vector_store %arg7[%c384, %c59], %131 {strides = array<i32>} : memref<968x192xf32, #tpu.memory_space<vmem>>, vector<32x5xf32>,
    %133 = vector.extract_strided_slice %84 {offsets = [0, 5], sizes = [32, 59], strides = [1, 1]} : vector<32x64xf32> to vector<32x59xf32>
    %c384_106 = arith.constant 384 : index
    %c0_107 = arith.constant 0 : index
    %134 = vector.load %arg7[%c384_106, %c0_107] : memref<968x192xf32, #tpu.memory_space<vmem>>, vector<32x59xf32>
    tpu.vector_store %arg7[%c384_106, %c0_107], %133 {strides = array<i32>} : memref<968x192xf32, #tpu.memory_space<vmem>>, vector<32x59xf32>,
    %cst_108 = arith.constant 0.000000e+00 : f32
    %135 = vector.broadcast %cst_108 : f32 to vector<32x6xf32>
    %c416 = arith.constant 416 : index
    %c58 = arith.constant 58 : index
    %136 = vector.load %arg7[%c416, %c58] : memref<968x192xf32, #tpu.memory_space<vmem>>, vector<32x6xf32>
    tpu.vector_store %arg7[%c416, %c58], %135 {strides = array<i32>} : memref<968x192xf32, #tpu.memory_space<vmem>>, vector<32x6xf32>,
    %137 = vector.extract_strided_slice %84 {offsets = [0, 6], sizes = [32, 58], strides = [1, 1]} : vector<32x64xf32> to vector<32x58xf32>
    %c416_109 = arith.constant 416 : index
    %c0_110 = arith.constant 0 : index
    %138 = vector.load %arg7[%c416_109, %c0_110] : memref<968x192xf32, #tpu.memory_space<vmem>>, vector<32x58xf32>
    tpu.vector_store %arg7[%c416_109, %c0_110], %137 {strides = array<i32>} : memref<968x192xf32, #tpu.memory_space<vmem>>, vector<32x58xf32>,
    %cst_111 = arith.constant 0.000000e+00 : f32
    %139 = vector.broadcast %cst_111 : f32 to vector<32x7xf32>
    %c448 = arith.constant 448 : index
    %c57 = arith.constant 57 : index
    %140 = vector.load %arg7[%c448, %c57] : memref<968x192xf32, #tpu.memory_space<vmem>>, vector<32x7xf32>
    tpu.vector_store %arg7[%c448, %c57], %139 {strides = array<i32>} : memref<968x192xf32, #tpu.memory_space<vmem>>, vector<32x7xf32>,
    %141 = vector.extract_strided_slice %84 {offsets = [0, 7], sizes = [32, 57], strides = [1, 1]} : vector<32x64xf32> to vector<32x57xf32>
    %c448_112 = arith.constant 448 : index
    %c0_113 = arith.constant 0 : index
    %142 = vector.load %arg7[%c448_112, %c0_113] : memref<968x192xf32, #tpu.memory_space<vmem>>, vector<32x57xf32>
    tpu.vector_store %arg7[%c448_112, %c0_113], %141 {strides = array<i32>} : memref<968x192xf32, #tpu.memory_space<vmem>>, vector<32x57xf32>,
    %cst_114 = arith.constant 1.000000e+00 : f32
    %143 = vector.broadcast %cst_114 : f32 to vector<1x64xf32>
    %c480 = arith.constant 480 : index
    %c0_115 = arith.constant 0 : index
    %144 = vector.load %arg7[%c480, %c0_115] : memref<968x192xf32, #tpu.memory_space<vmem>>, vector<1x64xf32>
    tpu.vector_store %arg7[%c480, %c0_115], %143 {strides = array<i32>} : memref<968x192xf32, #tpu.memory_space<vmem>>, vector<1x64xf32>,
    %c0_116 = arith.constant 0 : index
    %c0_117 = arith.constant 0 : index
    %145 = vector.load %arg7[%c0_116, %c0_117] : memref<968x192xf32, #tpu.memory_space<vmem>>, vector<481x64xf32>
    %cst_118 = arith.constant dense<0.000000e+00> : vector<64x64xf32>
    %146 = tpu.matmul %85, %145, %cst_118 {dimension_numbers = #tpu.dot_dimension_numbers<[1], [0], [0], [1], [0, 0, 1, 1], [], []>} : vector<64x481xf32>, vector<481x64xf32>, vector<64x64xf32> -> vector<64x64xf32>
    %c496 = arith.constant 496 : index
    %c0_119 = arith.constant 0 : index
    %147 = vector.load %arg3[%c496, %c0_119] : memref<536x257xf32, #tpu.memory_space<vmem>>, vector<1x1xf32>
    %cst_120 = arith.constant 0.000000e+00 : f32
    %148 = vector.broadcast %cst_120 : f32 to vector<64x64xf32>
    %149 = arith.cmpf oge, %146, %148 : vector<64x64xf32>
    %150 = vector.broadcast %147 : vector<1x1xf32> to vector<64x64xf32>
    %151 = arith.mulf %150, %146 : vector<64x64xf32>
    %152 = arith.select %149, %146, %151 : vector<64x64xi1>, vector<64x64xf32>
    %153 = vector.extract_strided_slice %152 {offsets = [0, 0], sizes = [64, 63], strides = [1, 1]} : vector<64x64xf32> to vector<64x63xf32>
    %154 = vector.extract_strided_slice %152 {offsets = [0, 1], sizes = [64, 63], strides = [1, 1]} : vector<64x64xf32> to vector<64x63xf32>
    %155 = arith.maximumf %153, %154 : vector<64x63xf32>
    %156 = tpu.iota {dimensions = array<i32: 0>} : vector<63x32xi32>
    %157 = tpu.iota {dimensions = array<i32: 1>} : vector<63x32xi32>
    %c2_i32 = arith.constant 2 : i32
    %158 = vector.broadcast %c2_i32 : i32 to vector<63x32xi32>
    %159 = arith.muli %158, %157 : vector<63x32xi32>
    %160 = arith.cmpi eq, %156, %159 : vector<63x32xi32>
    %161 = arith.extui %160 : vector<63x32xi1> to vector<63x32xi32>
    %162 = arith.sitofp %161 : vector<63x32xi32> to vector<63x32xf32>
    %cst_121 = arith.constant dense<0.000000e+00> : vector<64x32xf32>
    %163 = tpu.matmul %155, %162, %cst_121 {dimension_numbers = #tpu.dot_dimension_numbers<[1], [0], [0], [1], [0, 0, 1, 1], [], []>} : vector<64x63xf32>, vector<63x32xf32>, vector<64x32xf32> -> vector<64x32xf32>
    %c0_122 = arith.constant 0 : index
    %c0_123 = arith.constant 0 : index
    %164 = vector.load %arg5[%c0_122, %c0_123] : memref<32x961xf32, #tpu.memory_space<vmem>>, vector<32x961xf32>
    %cst_124 = arith.constant 0.000000e+00 : f32
    %165 = vector.broadcast %cst_124 : f32 to vector<64x7xf32>
    %c0_125 = arith.constant 0 : index
    %c0_126 = arith.constant 0 : index
    %166 = vector.load %arg7[%c0_125, %c0_126] : memref<968x192xf32, #tpu.memory_space<vmem>>, vector<64x7xf32>
    tpu.vector_store %arg7[%c0_125, %c0_126], %165 {strides = array<i32>} : memref<968x192xf32, #tpu.memory_space<vmem>>, vector<64x7xf32>,
    %167 = vector.extract_strided_slice %163 {offsets = [0, 0], sizes = [64, 25], strides = [1, 1]} : vector<64x32xf32> to vector<64x25xf32>
    %c0_127 = arith.constant 0 : index
    %c7_128 = arith.constant 7 : index
    %168 = vector.load %arg7[%c0_127, %c7_128] : memref<968x192xf32, #tpu.memory_space<vmem>>, vector<64x25xf32>
    tpu.vector_store %arg7[%c0_127, %c7_128], %167 {strides = array<i32>} : memref<968x192xf32, #tpu.memory_space<vmem>>, vector<64x25xf32>,
    %cst_129 = arith.constant 0.000000e+00 : f32
    %169 = vector.broadcast %cst_129 : f32 to vector<64x6xf32>
    %c64_130 = arith.constant 64 : index
    %c0_131 = arith.constant 0 : index
    %170 = vector.load %arg7[%c64_130, %c0_131] : memref<968x192xf32, #tpu.memory_space<vmem>>, vector<64x6xf32>
    tpu.vector_store %arg7[%c64_130, %c0_131], %169 {strides = array<i32>} : memref<968x192xf32, #tpu.memory_space<vmem>>, vector<64x6xf32>,
    %171 = vector.extract_strided_slice %163 {offsets = [0, 0], sizes = [64, 26], strides = [1, 1]} : vector<64x32xf32> to vector<64x26xf32>
    %c64_132 = arith.constant 64 : index
    %c6_133 = arith.constant 6 : index
    %172 = vector.load %arg7[%c64_132, %c6_133] : memref<968x192xf32, #tpu.memory_space<vmem>>, vector<64x26xf32>
    tpu.vector_store %arg7[%c64_132, %c6_133], %171 {strides = array<i32>} : memref<968x192xf32, #tpu.memory_space<vmem>>, vector<64x26xf32>,
    %cst_134 = arith.constant 0.000000e+00 : f32
    %173 = vector.broadcast %cst_134 : f32 to vector<64x5xf32>
    %c128_135 = arith.constant 128 : index
    %c0_136 = arith.constant 0 : index
    %174 = vector.load %arg7[%c128_135, %c0_136] : memref<968x192xf32, #tpu.memory_space<vmem>>, vector<64x5xf32>
    tpu.vector_store %arg7[%c128_135, %c0_136], %173 {strides = array<i32>} : memref<968x192xf32, #tpu.memory_space<vmem>>, vector<64x5xf32>,
    %175 = vector.extract_strided_slice %163 {offsets = [0, 0], sizes = [64, 27], strides = [1, 1]} : vector<64x32xf32> to vector<64x27xf32>
    %c128_137 = arith.constant 128 : index
    %c5_138 = arith.constant 5 : index
    %176 = vector.load %arg7[%c128_137, %c5_138] : memref<968x192xf32, #tpu.memory_space<vmem>>, vector<64x27xf32>
    tpu.vector_store %arg7[%c128_137, %c5_138], %175 {strides = array<i32>} : memref<968x192xf32, #tpu.memory_space<vmem>>, vector<64x27xf32>,
    %cst_139 = arith.constant 0.000000e+00 : f32
    %177 = vector.broadcast %cst_139 : f32 to vector<64x4xf32>
    %c192_140 = arith.constant 192 : index
    %c0_141 = arith.constant 0 : index
    %178 = vector.load %arg7[%c192_140, %c0_141] : memref<968x192xf32, #tpu.memory_space<vmem>>, vector<64x4xf32>
    tpu.vector_store %arg7[%c192_140, %c0_141], %177 {strides = array<i32>} : memref<968x192xf32, #tpu.memory_space<vmem>>, vector<64x4xf32>,
    %179 = vector.extract_strided_slice %163 {offsets = [0, 0], sizes = [64, 28], strides = [1, 1]} : vector<64x32xf32> to vector<64x28xf32>
    %c192_142 = arith.constant 192 : index
    %c4_143 = arith.constant 4 : index
    %180 = vector.load %arg7[%c192_142, %c4_143] : memref<968x192xf32, #tpu.memory_space<vmem>>, vector<64x28xf32>
    tpu.vector_store %arg7[%c192_142, %c4_143], %179 {strides = array<i32>} : memref<968x192xf32, #tpu.memory_space<vmem>>, vector<64x28xf32>,
    %cst_144 = arith.constant 0.000000e+00 : f32
    %181 = vector.broadcast %cst_144 : f32 to vector<64x3xf32>
    %c256_145 = arith.constant 256 : index
    %c0_146 = arith.constant 0 : index
    %182 = vector.load %arg7[%c256_145, %c0_146] : memref<968x192xf32, #tpu.memory_space<vmem>>, vector<64x3xf32>
    tpu.vector_store %arg7[%c256_145, %c0_146], %181 {strides = array<i32>} : memref<968x192xf32, #tpu.memory_space<vmem>>, vector<64x3xf32>,
    %183 = vector.extract_strided_slice %163 {offsets = [0, 0], sizes = [64, 29], strides = [1, 1]} : vector<64x32xf32> to vector<64x29xf32>
    %c256_147 = arith.constant 256 : index
    %c3_148 = arith.constant 3 : index
    %184 = vector.load %arg7[%c256_147, %c3_148] : memref<968x192xf32, #tpu.memory_space<vmem>>, vector<64x29xf32>
    tpu.vector_store %arg7[%c256_147, %c3_148], %183 {strides = array<i32>} : memref<968x192xf32, #tpu.memory_space<vmem>>, vector<64x29xf32>,
    %cst_149 = arith.constant 0.000000e+00 : f32
    %185 = vector.broadcast %cst_149 : f32 to vector<64x2xf32>
    %c320_150 = arith.constant 320 : index
    %c0_151 = arith.constant 0 : index
    %186 = vector.load %arg7[%c320_150, %c0_151] : memref<968x192xf32, #tpu.memory_space<vmem>>, vector<64x2xf32>
    tpu.vector_store %arg7[%c320_150, %c0_151], %185 {strides = array<i32>} : memref<968x192xf32, #tpu.memory_space<vmem>>, vector<64x2xf32>,
    %187 = vector.extract_strided_slice %163 {offsets = [0, 0], sizes = [64, 30], strides = [1, 1]} : vector<64x32xf32> to vector<64x30xf32>
    %c320_152 = arith.constant 320 : index
    %c2_153 = arith.constant 2 : index
    %188 = vector.load %arg7[%c320_152, %c2_153] : memref<968x192xf32, #tpu.memory_space<vmem>>, vector<64x30xf32>
    tpu.vector_store %arg7[%c320_152, %c2_153], %187 {strides = array<i32>} : memref<968x192xf32, #tpu.memory_space<vmem>>, vector<64x30xf32>,
    %cst_154 = arith.constant 0.000000e+00 : f32
    %189 = vector.broadcast %cst_154 : f32 to vector<64x1xf32>
    %c384_155 = arith.constant 384 : index
    %c0_156 = arith.constant 0 : index
    %190 = vector.load %arg7[%c384_155, %c0_156] : memref<968x192xf32, #tpu.memory_space<vmem>>, vector<64x1xf32>
    tpu.vector_store %arg7[%c384_155, %c0_156], %189 {strides = array<i32>} : memref<968x192xf32, #tpu.memory_space<vmem>>, vector<64x1xf32>,
    %191 = vector.extract_strided_slice %163 {offsets = [0, 0], sizes = [64, 31], strides = [1, 1]} : vector<64x32xf32> to vector<64x31xf32>
    %c384_157 = arith.constant 384 : index
    %c1_158 = arith.constant 1 : index
    %192 = vector.load %arg7[%c384_157, %c1_158] : memref<968x192xf32, #tpu.memory_space<vmem>>, vector<64x31xf32>
    tpu.vector_store %arg7[%c384_157, %c1_158], %191 {strides = array<i32>} : memref<968x192xf32, #tpu.memory_space<vmem>>, vector<64x31xf32>,
    %c448_159 = arith.constant 448 : index
    %c0_160 = arith.constant 0 : index
    %193 = vector.load %arg7[%c448_159, %c0_160] : memref<968x192xf32, #tpu.memory_space<vmem>>, vector<64x32xf32>
    tpu.vector_store %arg7[%c448_159, %c0_160], %163 {strides = array<i32>} : memref<968x192xf32, #tpu.memory_space<vmem>>, vector<64x32xf32>,
    %cst_161 = arith.constant 0.000000e+00 : f32
    %194 = vector.broadcast %cst_161 : f32 to vector<64x1xf32>
    %c512 = arith.constant 512 : index
    %c31 = arith.constant 31 : index
    %195 = vector.load %arg7[%c512, %c31] : memref<968x192xf32, #tpu.memory_space<vmem>>, vector<64x1xf32>
    tpu.vector_store %arg7[%c512, %c31], %194 {strides = array<i32>} : memref<968x192xf32, #tpu.memory_space<vmem>>, vector<64x1xf32>,
    %196 = vector.extract_strided_slice %163 {offsets = [0, 1], sizes = [64, 31], strides = [1, 1]} : vector<64x32xf32> to vector<64x31xf32>
    %c512_162 = arith.constant 512 : index
    %c0_163 = arith.constant 0 : index
    %197 = vector.load %arg7[%c512_162, %c0_163] : memref<968x192xf32, #tpu.memory_space<vmem>>, vector<64x31xf32>
    tpu.vector_store %arg7[%c512_162, %c0_163], %196 {strides = array<i32>} : memref<968x192xf32, #tpu.memory_space<vmem>>, vector<64x31xf32>,
    %cst_164 = arith.constant 0.000000e+00 : f32
    %198 = vector.broadcast %cst_164 : f32 to vector<64x2xf32>
    %c576 = arith.constant 576 : index
    %c30_165 = arith.constant 30 : index
    %199 = vector.load %arg7[%c576, %c30_165] : memref<968x192xf32, #tpu.memory_space<vmem>>, vector<64x2xf32>
    tpu.vector_store %arg7[%c576, %c30_165], %198 {strides = array<i32>} : memref<968x192xf32, #tpu.memory_space<vmem>>, vector<64x2xf32>,
    %200 = vector.extract_strided_slice %163 {offsets = [0, 2], sizes = [64, 30], strides = [1, 1]} : vector<64x32xf32> to vector<64x30xf32>
    %c576_166 = arith.constant 576 : index
    %c0_167 = arith.constant 0 : index
    %201 = vector.load %arg7[%c576_166, %c0_167] : memref<968x192xf32, #tpu.memory_space<vmem>>, vector<64x30xf32>
    tpu.vector_store %arg7[%c576_166, %c0_167], %200 {strides = array<i32>} : memref<968x192xf32, #tpu.memory_space<vmem>>, vector<64x30xf32>,
    %cst_168 = arith.constant 0.000000e+00 : f32
    %202 = vector.broadcast %cst_168 : f32 to vector<64x3xf32>
    %c640 = arith.constant 640 : index
    %c29 = arith.constant 29 : index
    %203 = vector.load %arg7[%c640, %c29] : memref<968x192xf32, #tpu.memory_space<vmem>>, vector<64x3xf32>
    tpu.vector_store %arg7[%c640, %c29], %202 {strides = array<i32>} : memref<968x192xf32, #tpu.memory_space<vmem>>, vector<64x3xf32>,
    %204 = vector.extract_strided_slice %163 {offsets = [0, 3], sizes = [64, 29], strides = [1, 1]} : vector<64x32xf32> to vector<64x29xf32>
    %c640_169 = arith.constant 640 : index
    %c0_170 = arith.constant 0 : index
    %205 = vector.load %arg7[%c640_169, %c0_170] : memref<968x192xf32, #tpu.memory_space<vmem>>, vector<64x29xf32>
    tpu.vector_store %arg7[%c640_169, %c0_170], %204 {strides = array<i32>} : memref<968x192xf32, #tpu.memory_space<vmem>>, vector<64x29xf32>,
    %cst_171 = arith.constant 0.000000e+00 : f32
    %206 = vector.broadcast %cst_171 : f32 to vector<64x4xf32>
    %c704 = arith.constant 704 : index
    %c28_172 = arith.constant 28 : index
    %207 = vector.load %arg7[%c704, %c28_172] : memref<968x192xf32, #tpu.memory_space<vmem>>, vector<64x4xf32>
    tpu.vector_store %arg7[%c704, %c28_172], %206 {strides = array<i32>} : memref<968x192xf32, #tpu.memory_space<vmem>>, vector<64x4xf32>,
    %208 = vector.extract_strided_slice %163 {offsets = [0, 4], sizes = [64, 28], strides = [1, 1]} : vector<64x32xf32> to vector<64x28xf32>
    %c704_173 = arith.constant 704 : index
    %c0_174 = arith.constant 0 : index
    %209 = vector.load %arg7[%c704_173, %c0_174] : memref<968x192xf32, #tpu.memory_space<vmem>>, vector<64x28xf32>
    tpu.vector_store %arg7[%c704_173, %c0_174], %208 {strides = array<i32>} : memref<968x192xf32, #tpu.memory_space<vmem>>, vector<64x28xf32>,
    %cst_175 = arith.constant 0.000000e+00 : f32
    %210 = vector.broadcast %cst_175 : f32 to vector<64x5xf32>
    %c768 = arith.constant 768 : index
    %c27 = arith.constant 27 : index
    %211 = vector.load %arg7[%c768, %c27] : memref<968x192xf32, #tpu.memory_space<vmem>>, vector<64x5xf32>
    tpu.vector_store %arg7[%c768, %c27], %210 {strides = array<i32>} : memref<968x192xf32, #tpu.memory_space<vmem>>, vector<64x5xf32>,
    %212 = vector.extract_strided_slice %163 {offsets = [0, 5], sizes = [64, 27], strides = [1, 1]} : vector<64x32xf32> to vector<64x27xf32>
    %c768_176 = arith.constant 768 : index
    %c0_177 = arith.constant 0 : index
    %213 = vector.load %arg7[%c768_176, %c0_177] : memref<968x192xf32, #tpu.memory_space<vmem>>, vector<64x27xf32>
    tpu.vector_store %arg7[%c768_176, %c0_177], %212 {strides = array<i32>} : memref<968x192xf32, #tpu.memory_space<vmem>>, vector<64x27xf32>,
    %cst_178 = arith.constant 0.000000e+00 : f32
    %214 = vector.broadcast %cst_178 : f32 to vector<64x6xf32>
    %c832 = arith.constant 832 : index
    %c26_179 = arith.constant 26 : index
    %215 = vector.load %arg7[%c832, %c26_179] : memref<968x192xf32, #tpu.memory_space<vmem>>, vector<64x6xf32>
    tpu.vector_store %arg7[%c832, %c26_179], %214 {strides = array<i32>} : memref<968x192xf32, #tpu.memory_space<vmem>>, vector<64x6xf32>,
    %216 = vector.extract_strided_slice %163 {offsets = [0, 6], sizes = [64, 26], strides = [1, 1]} : vector<64x32xf32> to vector<64x26xf32>
    %c832_180 = arith.constant 832 : index
    %c0_181 = arith.constant 0 : index
    %217 = vector.load %arg7[%c832_180, %c0_181] : memref<968x192xf32, #tpu.memory_space<vmem>>, vector<64x26xf32>
    tpu.vector_store %arg7[%c832_180, %c0_181], %216 {strides = array<i32>} : memref<968x192xf32, #tpu.memory_space<vmem>>, vector<64x26xf32>,
    %cst_182 = arith.constant 0.000000e+00 : f32
    %218 = vector.broadcast %cst_182 : f32 to vector<64x7xf32>
    %c896 = arith.constant 896 : index
    %c25 = arith.constant 25 : index
    %219 = vector.load %arg7[%c896, %c25] : memref<968x192xf32, #tpu.memory_space<vmem>>, vector<64x7xf32>
    tpu.vector_store %arg7[%c896, %c25], %218 {strides = array<i32>} : memref<968x192xf32, #tpu.memory_space<vmem>>, vector<64x7xf32>,
    %220 = vector.extract_strided_slice %163 {offsets = [0, 7], sizes = [64, 25], strides = [1, 1]} : vector<64x32xf32> to vector<64x25xf32>
    %c896_183 = arith.constant 896 : index
    %c0_184 = arith.constant 0 : index
    %221 = vector.load %arg7[%c896_183, %c0_184] : memref<968x192xf32, #tpu.memory_space<vmem>>, vector<64x25xf32>
    tpu.vector_store %arg7[%c896_183, %c0_184], %220 {strides = array<i32>} : memref<968x192xf32, #tpu.memory_space<vmem>>, vector<64x25xf32>,
    %cst_185 = arith.constant 1.000000e+00 : f32
    %222 = vector.broadcast %cst_185 : f32 to vector<1x32xf32>
    %c960 = arith.constant 960 : index
    %c0_186 = arith.constant 0 : index
    %223 = vector.load %arg7[%c960, %c0_186] : memref<968x192xf32, #tpu.memory_space<vmem>>, vector<1x32xf32>
    tpu.vector_store %arg7[%c960, %c0_186], %222 {strides = array<i32>} : memref<968x192xf32, #tpu.memory_space<vmem>>, vector<1x32xf32>,
    %c0_187 = arith.constant 0 : index
    %c0_188 = arith.constant 0 : index
    %224 = vector.load %arg7[%c0_187, %c0_188] : memref<968x192xf32, #tpu.memory_space<vmem>>, vector<961x32xf32>
    %cst_189 = arith.constant dense<0.000000e+00> : vector<32x32xf32>
    %225 = tpu.matmul %164, %224, %cst_189 {dimension_numbers = #tpu.dot_dimension_numbers<[1], [0], [0], [1], [0, 0, 1, 1], [], []>} : vector<32x961xf32>, vector<961x32xf32>, vector<32x32xf32> -> vector<32x32xf32>
    %c504 = arith.constant 504 : index
    %c0_190 = arith.constant 0 : index
    %226 = vector.load %arg3[%c504, %c0_190] : memref<536x257xf32, #tpu.memory_space<vmem>>, vector<1x1xf32>
    %cst_191 = arith.constant 0.000000e+00 : f32
    %227 = vector.broadcast %cst_191 : f32 to vector<32x32xf32>
    %228 = arith.cmpf oge, %225, %227 : vector<32x32xf32>
    %229 = vector.broadcast %226 : vector<1x1xf32> to vector<32x32xf32>
    %230 = arith.mulf %229, %225 : vector<32x32xf32>
    %231 = arith.select %228, %225, %230 : vector<32x32xi1>, vector<32x32xf32>
    %c32_192 = arith.constant 32 : index
    %c0_193 = arith.constant 0 : index
    %232 = vector.load %arg3[%c32_192, %c0_193] : memref<536x257xf32, #tpu.memory_space<vmem>>, vector<1x32xf32>
    %cst_194 = arith.constant dense<0.000000e+00> : vector<1x32xf32>
    %233 = tpu.matmul %232, %231, %cst_194 {dimension_numbers = #tpu.dot_dimension_numbers<[1], [0], [0], [1], [0, 0, 1, 1], [], []>} : vector<1x32xf32>, vector<32x32xf32>, vector<1x32xf32> -> vector<1x32xf32>
    %c40 = arith.constant 40 : index
    %c0_195 = arith.constant 0 : index
    %234 = vector.load %arg3[%c40, %c0_195] : memref<536x257xf32, #tpu.memory_space<vmem>>, vector<32x64xf32>
    %cst_196 = arith.constant dense<0.000000e+00> : vector<1x64xf32>
    %235 = tpu.matmul %233, %234, %cst_196 {dimension_numbers = #tpu.dot_dimension_numbers<[1], [0], [0], [1], [0, 0, 1, 1], [], []>} : vector<1x32xf32>, vector<32x64xf32>, vector<1x64xf32> -> vector<1x64xf32>
    %c72 = arith.constant 72 : index
    %c0_197 = arith.constant 0 : index
    %236 = vector.load %arg3[%c72, %c0_197] : memref<536x257xf32, #tpu.memory_space<vmem>>, vector<1x64xf32>
    %237 = arith.addf %235, %236 : vector<1x64xf32>
    %238 = arith.addf %237, %3 : vector<1x64xf32>
    %c80 = arith.constant 80 : index
    %c0_198 = arith.constant 0 : index
    %239 = vector.load %arg3[%c80, %c0_198] : memref<536x257xf32, #tpu.memory_space<vmem>>, vector<64x64xf32>
    %cst_199 = arith.constant dense<0.000000e+00> : vector<1x64xf32>
    %240 = tpu.matmul %238, %239, %cst_199 {dimension_numbers = #tpu.dot_dimension_numbers<[1], [0], [0], [1], [0, 0, 1, 1], [], []>} : vector<1x64xf32>, vector<64x64xf32>, vector<1x64xf32> -> vector<1x64xf32>
    %c144 = arith.constant 144 : index
    %c0_200 = arith.constant 0 : index
    %241 = vector.load %arg3[%c144, %c0_200] : memref<536x257xf32, #tpu.memory_space<vmem>>, vector<1x64xf32>
    %242 = arith.addf %240, %241 : vector<1x64xf32>
    %243 = vector.extract_strided_slice %242 {offsets = [0, 23], sizes = [1, 18], strides = [1, 1]} : vector<1x64xf32> to vector<1x18xf32>
    %c152 = arith.constant 152 : index
    %c0_201 = arith.constant 0 : index
    %244 = vector.load %arg3[%c152, %c0_201] : memref<536x257xf32, #tpu.memory_space<vmem>>, vector<32x5xf32>
    %c184 = arith.constant 184 : index
    %c0_202 = arith.constant 0 : index
    %245 = vector.load %arg3[%c184, %c0_202] : memref<536x257xf32, #tpu.memory_space<vmem>>, vector<32x4xf32>
    %c512_203 = arith.constant 512 : index
    %c0_204 = arith.constant 0 : index
    %246 = vector.load %arg3[%c512_203, %c0_204] : memref<536x257xf32, #tpu.memory_space<vmem>>, vector<1x1xf32>
    %247 = vector.extract_strided_slice %243 {offsets = [0, 3], sizes = [1, 15], strides = [1, 1]} : vector<1x18xf32> to vector<1x15xf32>
    %c0_205 = arith.constant 0 : index
    %c0_206 = arith.constant 0 : index
    %248 = vector.load %arg7[%c0_205, %c0_206] : memref<968x192xf32, #tpu.memory_space<vmem>>, vector<1x15xf32>
    tpu.vector_store %arg7[%c0_205, %c0_206], %247 {strides = array<i32>} : memref<968x192xf32, #tpu.memory_space<vmem>>, vector<1x15xf32>,
    %249 = vector.extract_strided_slice %243 {offsets = [0, 2], sizes = [1, 15], strides = [1, 1]} : vector<1x18xf32> to vector<1x15xf32>
    %c1_207 = arith.constant 1 : index
    %c0_208 = arith.constant 0 : index
    %250 = vector.load %arg7[%c1_207, %c0_208] : memref<968x192xf32, #tpu.memory_space<vmem>>, vector<1x15xf32>
    tpu.vector_store %arg7[%c1_207, %c0_208], %249 {strides = array<i32>} : memref<968x192xf32, #tpu.memory_space<vmem>>, vector<1x15xf32>,
    %251 = vector.extract_strided_slice %243 {offsets = [0, 1], sizes = [1, 15], strides = [1, 1]} : vector<1x18xf32> to vector<1x15xf32>
    %c2_209 = arith.constant 2 : index
    %c0_210 = arith.constant 0 : index
    %252 = vector.load %arg7[%c2_209, %c0_210] : memref<968x192xf32, #tpu.memory_space<vmem>>, vector<1x15xf32>
    tpu.vector_store %arg7[%c2_209, %c0_210], %251 {strides = array<i32>} : memref<968x192xf32, #tpu.memory_space<vmem>>, vector<1x15xf32>,
    %253 = vector.extract_strided_slice %243 {offsets = [0, 0], sizes = [1, 15], strides = [1, 1]} : vector<1x18xf32> to vector<1x15xf32>
    %c3_211 = arith.constant 3 : index
    %c0_212 = arith.constant 0 : index
    %254 = vector.load %arg7[%c3_211, %c0_212] : memref<968x192xf32, #tpu.memory_space<vmem>>, vector<1x15xf32>
    tpu.vector_store %arg7[%c3_211, %c0_212], %253 {strides = array<i32>} : memref<968x192xf32, #tpu.memory_space<vmem>>, vector<1x15xf32>,
    %cst_213 = arith.constant 1.000000e+00 : f32
    %255 = vector.broadcast %cst_213 : f32 to vector<1x15xf32>
    %c4_214 = arith.constant 4 : index
    %c0_215 = arith.constant 0 : index
    %256 = vector.load %arg7[%c4_214, %c0_215] : memref<968x192xf32, #tpu.memory_space<vmem>>, vector<1x15xf32>
    tpu.vector_store %arg7[%c4_214, %c0_215], %255 {strides = array<i32>} : memref<968x192xf32, #tpu.memory_space<vmem>>, vector<1x15xf32>,
    %c0_216 = arith.constant 0 : index
    %c0_217 = arith.constant 0 : index
    %257 = vector.load %arg7[%c0_216, %c0_217] : memref<968x192xf32, #tpu.memory_space<vmem>>, vector<5x15xf32>
    %cst_218 = arith.constant dense<0.000000e+00> : vector<32x15xf32>
    %258 = tpu.matmul %244, %257, %cst_218 {dimension_numbers = #tpu.dot_dimension_numbers<[1], [0], [0], [1], [0, 0, 1, 1], [], []>} : vector<32x5xf32>, vector<5x15xf32>, vector<32x15xf32> -> vector<32x15xf32>
    %259 = vector.extract_strided_slice %243 {offsets = [0, 3], sizes = [1, 14], strides = [1, 1]} : vector<1x18xf32> to vector<1x14xf32>
    %c264 = arith.constant 264 : index
    %c0_219 = arith.constant 0 : index
    %260 = vector.load %arg7[%c264, %c0_219] : memref<968x192xf32, #tpu.memory_space<vmem>>, vector<1x14xf32>
    tpu.vector_store %arg7[%c264, %c0_219], %259 {strides = array<i32>} : memref<968x192xf32, #tpu.memory_space<vmem>>, vector<1x14xf32>,
    %261 = vector.extract_strided_slice %243 {offsets = [0, 2], sizes = [1, 14], strides = [1, 1]} : vector<1x18xf32> to vector<1x14xf32>
    %c265 = arith.constant 265 : index
    %c0_220 = arith.constant 0 : index
    %262 = vector.load %arg7[%c265, %c0_220] : memref<968x192xf32, #tpu.memory_space<vmem>>, vector<1x14xf32>
    tpu.vector_store %arg7[%c265, %c0_220], %261 {strides = array<i32>} : memref<968x192xf32, #tpu.memory_space<vmem>>, vector<1x14xf32>,
    %263 = vector.extract_strided_slice %243 {offsets = [0, 1], sizes = [1, 14], strides = [1, 1]} : vector<1x18xf32> to vector<1x14xf32>
    %c266 = arith.constant 266 : index
    %c0_221 = arith.constant 0 : index
    %264 = vector.load %arg7[%c266, %c0_221] : memref<968x192xf32, #tpu.memory_space<vmem>>, vector<1x14xf32>
    tpu.vector_store %arg7[%c266, %c0_221], %263 {strides = array<i32>} : memref<968x192xf32, #tpu.memory_space<vmem>>, vector<1x14xf32>,
    %cst_222 = arith.constant 1.000000e+00 : f32
    %265 = vector.broadcast %cst_222 : f32 to vector<1x14xf32>
    %c267 = arith.constant 267 : index
    %c0_223 = arith.constant 0 : index
    %266 = vector.load %arg7[%c267, %c0_223] : memref<968x192xf32, #tpu.memory_space<vmem>>, vector<1x14xf32>
    tpu.vector_store %arg7[%c267, %c0_223], %265 {strides = array<i32>} : memref<968x192xf32, #tpu.memory_space<vmem>>, vector<1x14xf32>,
    %c264_224 = arith.constant 264 : index
    %c0_225 = arith.constant 0 : index
    %267 = vector.load %arg7[%c264_224, %c0_225] : memref<968x192xf32, #tpu.memory_space<vmem>>, vector<4x14xf32>
    %cst_226 = arith.constant dense<0.000000e+00> : vector<32x14xf32>
    %268 = tpu.matmul %245, %267, %cst_226 {dimension_numbers = #tpu.dot_dimension_numbers<[1], [0], [0], [1], [0, 0, 1, 1], [], []>} : vector<32x4xf32>, vector<4x14xf32>, vector<32x14xf32> -> vector<32x14xf32>
    %269 = tpu.iota {dimensions = array<i32: 0>} : vector<15x29xi32>
    %270 = tpu.iota {dimensions = array<i32: 1>} : vector<15x29xi32>
    %c2_i32_227 = arith.constant 2 : i32
    %271 = vector.broadcast %c2_i32_227 : i32 to vector<15x29xi32>
    %272 = arith.muli %271, %269 : vector<15x29xi32>
    %c0_i32 = arith.constant 0 : i32
    %273 = vector.broadcast %c0_i32 : i32 to vector<15x29xi32>
    %274 = arith.addi %272, %273 : vector<15x29xi32>
    %275 = arith.cmpi eq, %270, %274 : vector<15x29xi32>
    %276 = arith.extui %275 : vector<15x29xi1> to vector<15x29xi32>
    %277 = arith.sitofp %276 : vector<15x29xi32> to vector<15x29xf32>
    %278 = tpu.iota {dimensions = array<i32: 0>} : vector<14x29xi32>
    %279 = tpu.iota {dimensions = array<i32: 1>} : vector<14x29xi32>
    %c2_i32_228 = arith.constant 2 : i32
    %280 = vector.broadcast %c2_i32_228 : i32 to vector<14x29xi32>
    %281 = arith.muli %280, %278 : vector<14x29xi32>
    %c1_i32 = arith.constant 1 : i32
    %282 = vector.broadcast %c1_i32 : i32 to vector<14x29xi32>
    %283 = arith.addi %281, %282 : vector<14x29xi32>
    %284 = arith.cmpi eq, %279, %283 : vector<14x29xi32>
    %285 = arith.extui %284 : vector<14x29xi1> to vector<14x29xi32>
    %286 = arith.sitofp %285 : vector<14x29xi32> to vector<14x29xf32>
    %cst_229 = arith.constant dense<0.000000e+00> : vector<32x29xf32>
    %287 = tpu.matmul %258, %277, %cst_229 {dimension_numbers = #tpu.dot_dimension_numbers<[1], [0], [0], [1], [0, 0, 1, 1], [], []>} : vector<32x15xf32>, vector<15x29xf32>, vector<32x29xf32> -> vector<32x29xf32>
    %cst_230 = arith.constant dense<0.000000e+00> : vector<32x29xf32>
    %288 = tpu.matmul %268, %286, %cst_230 {dimension_numbers = #tpu.dot_dimension_numbers<[1], [0], [0], [1], [0, 0, 1, 1], [], []>} : vector<32x14xf32>, vector<14x29xf32>, vector<32x29xf32> -> vector<32x29xf32>
    %289 = arith.addf %287, %288 : vector<32x29xf32>
    %cst_231 = arith.constant 0.000000e+00 : f32
    %290 = vector.broadcast %cst_231 : f32 to vector<32x29xf32>
    %291 = arith.cmpf oge, %289, %290 : vector<32x29xf32>
    %292 = vector.broadcast %246 : vector<1x1xf32> to vector<32x29xf32>
    %293 = arith.mulf %292, %289 : vector<32x29xf32>
    %294 = arith.select %291, %289, %293 : vector<32x29xi1>, vector<32x29xf32>
    %c216 = arith.constant 216 : index
    %c0_232 = arith.constant 0 : index
    %295 = vector.load %arg3[%c216, %c0_232] : memref<536x257xf32, #tpu.memory_space<vmem>>, vector<64x129xf32>
    %c280 = arith.constant 280 : index
    %c0_233 = arith.constant 0 : index
    %296 = vector.load %arg3[%c280, %c0_233] : memref<536x257xf32, #tpu.memory_space<vmem>>, vector<64x97xf32>
    %c520 = arith.constant 520 : index
    %c0_234 = arith.constant 0 : index
    %297 = vector.load %arg3[%c520, %c0_234] : memref<536x257xf32, #tpu.memory_space<vmem>>, vector<1x1xf32>
    %298 = vector.extract_strided_slice %294 {offsets = [0, 3], sizes = [32, 26], strides = [1, 1]} : vector<32x29xf32> to vector<32x26xf32>
    %c0_235 = arith.constant 0 : index
    %c0_236 = arith.constant 0 : index
    %299 = vector.load %arg7[%c0_235, %c0_236] : memref<968x192xf32, #tpu.memory_space<vmem>>, vector<32x26xf32>
    tpu.vector_store %arg7[%c0_235, %c0_236], %298 {strides = array<i32>} : memref<968x192xf32, #tpu.memory_space<vmem>>, vector<32x26xf32>,
    %300 = vector.extract_strided_slice %294 {offsets = [0, 2], sizes = [32, 26], strides = [1, 1]} : vector<32x29xf32> to vector<32x26xf32>
    %c32_237 = arith.constant 32 : index
    %c0_238 = arith.constant 0 : index
    %301 = vector.load %arg7[%c32_237, %c0_238] : memref<968x192xf32, #tpu.memory_space<vmem>>, vector<32x26xf32>
    tpu.vector_store %arg7[%c32_237, %c0_238], %300 {strides = array<i32>} : memref<968x192xf32, #tpu.memory_space<vmem>>, vector<32x26xf32>,
    %302 = vector.extract_strided_slice %294 {offsets = [0, 1], sizes = [32, 26], strides = [1, 1]} : vector<32x29xf32> to vector<32x26xf32>
    %c64_239 = arith.constant 64 : index
    %c0_240 = arith.constant 0 : index
    %303 = vector.load %arg7[%c64_239, %c0_240] : memref<968x192xf32, #tpu.memory_space<vmem>>, vector<32x26xf32>
    tpu.vector_store %arg7[%c64_239, %c0_240], %302 {strides = array<i32>} : memref<968x192xf32, #tpu.memory_space<vmem>>, vector<32x26xf32>,
    %304 = vector.extract_strided_slice %294 {offsets = [0, 0], sizes = [32, 26], strides = [1, 1]} : vector<32x29xf32> to vector<32x26xf32>
    %c96_241 = arith.constant 96 : index
    %c0_242 = arith.constant 0 : index
    %305 = vector.load %arg7[%c96_241, %c0_242] : memref<968x192xf32, #tpu.memory_space<vmem>>, vector<32x26xf32>
    tpu.vector_store %arg7[%c96_241, %c0_242], %304 {strides = array<i32>} : memref<968x192xf32, #tpu.memory_space<vmem>>, vector<32x26xf32>,
    %cst_243 = arith.constant 1.000000e+00 : f32
    %306 = vector.broadcast %cst_243 : f32 to vector<1x26xf32>
    %c128_244 = arith.constant 128 : index
    %c0_245 = arith.constant 0 : index
    %307 = vector.load %arg7[%c128_244, %c0_245] : memref<968x192xf32, #tpu.memory_space<vmem>>, vector<1x26xf32>
    tpu.vector_store %arg7[%c128_244, %c0_245], %306 {strides = array<i32>} : memref<968x192xf32, #tpu.memory_space<vmem>>, vector<1x26xf32>,
    %c0_246 = arith.constant 0 : index
    %c0_247 = arith.constant 0 : index
    %308 = vector.load %arg7[%c0_246, %c0_247] : memref<968x192xf32, #tpu.memory_space<vmem>>, vector<129x26xf32>
    %cst_248 = arith.constant dense<0.000000e+00> : vector<64x26xf32>
    %309 = tpu.matmul %295, %308, %cst_248 {dimension_numbers = #tpu.dot_dimension_numbers<[1], [0], [0], [1], [0, 0, 1, 1], [], []>} : vector<64x129xf32>, vector<129x26xf32>, vector<64x26xf32> -> vector<64x26xf32>
    %310 = vector.extract_strided_slice %294 {offsets = [0, 2], sizes = [32, 27], strides = [1, 1]} : vector<32x29xf32> to vector<32x27xf32>
    %c264_249 = arith.constant 264 : index
    %c0_250 = arith.constant 0 : index
    %311 = vector.load %arg7[%c264_249, %c0_250] : memref<968x192xf32, #tpu.memory_space<vmem>>, vector<32x27xf32>
    tpu.vector_store %arg7[%c264_249, %c0_250], %310 {strides = array<i32>} : memref<968x192xf32, #tpu.memory_space<vmem>>, vector<32x27xf32>,
    %312 = vector.extract_strided_slice %294 {offsets = [0, 1], sizes = [32, 27], strides = [1, 1]} : vector<32x29xf32> to vector<32x27xf32>
    %c296 = arith.constant 296 : index
    %c0_251 = arith.constant 0 : index
    %313 = vector.load %arg7[%c296, %c0_251] : memref<968x192xf32, #tpu.memory_space<vmem>>, vector<32x27xf32>
    tpu.vector_store %arg7[%c296, %c0_251], %312 {strides = array<i32>} : memref<968x192xf32, #tpu.memory_space<vmem>>, vector<32x27xf32>,
    %314 = vector.extract_strided_slice %294 {offsets = [0, 0], sizes = [32, 27], strides = [1, 1]} : vector<32x29xf32> to vector<32x27xf32>
    %c328 = arith.constant 328 : index
    %c0_252 = arith.constant 0 : index
    %315 = vector.load %arg7[%c328, %c0_252] : memref<968x192xf32, #tpu.memory_space<vmem>>, vector<32x27xf32>
    tpu.vector_store %arg7[%c328, %c0_252], %314 {strides = array<i32>} : memref<968x192xf32, #tpu.memory_space<vmem>>, vector<32x27xf32>,
    %cst_253 = arith.constant 1.000000e+00 : f32
    %316 = vector.broadcast %cst_253 : f32 to vector<1x27xf32>
    %c360 = arith.constant 360 : index
    %c0_254 = arith.constant 0 : index
    %317 = vector.load %arg7[%c360, %c0_254] : memref<968x192xf32, #tpu.memory_space<vmem>>, vector<1x27xf32>
    tpu.vector_store %arg7[%c360, %c0_254], %316 {strides = array<i32>} : memref<968x192xf32, #tpu.memory_space<vmem>>, vector<1x27xf32>,
    %c264_255 = arith.constant 264 : index
    %c0_256 = arith.constant 0 : index
    %318 = vector.load %arg7[%c264_255, %c0_256] : memref<968x192xf32, #tpu.memory_space<vmem>>, vector<97x27xf32>
    %cst_257 = arith.constant dense<0.000000e+00> : vector<64x27xf32>
    %319 = tpu.matmul %296, %318, %cst_257 {dimension_numbers = #tpu.dot_dimension_numbers<[1], [0], [0], [1], [0, 0, 1, 1], [], []>} : vector<64x97xf32>, vector<97x27xf32>, vector<64x27xf32> -> vector<64x27xf32>
    %320 = tpu.iota {dimensions = array<i32: 0>} : vector<26x53xi32>
    %321 = tpu.iota {dimensions = array<i32: 1>} : vector<26x53xi32>
    %c2_i32_258 = arith.constant 2 : i32
    %322 = vector.broadcast %c2_i32_258 : i32 to vector<26x53xi32>
    %323 = arith.muli %322, %320 : vector<26x53xi32>
    %c1_i32_259 = arith.constant 1 : i32
    %324 = vector.broadcast %c1_i32_259 : i32 to vector<26x53xi32>
    %325 = arith.addi %323, %324 : vector<26x53xi32>
    %326 = arith.cmpi eq, %321, %325 : vector<26x53xi32>
    %327 = arith.extui %326 : vector<26x53xi1> to vector<26x53xi32>
    %328 = arith.sitofp %327 : vector<26x53xi32> to vector<26x53xf32>
    %329 = tpu.iota {dimensions = array<i32: 0>} : vector<27x53xi32>
    %330 = tpu.iota {dimensions = array<i32: 1>} : vector<27x53xi32>
    %c2_i32_260 = arith.constant 2 : i32
    %331 = vector.broadcast %c2_i32_260 : i32 to vector<27x53xi32>
    %332 = arith.muli %331, %329 : vector<27x53xi32>
    %c0_i32_261 = arith.constant 0 : i32
    %333 = vector.broadcast %c0_i32_261 : i32 to vector<27x53xi32>
    %334 = arith.addi %332, %333 : vector<27x53xi32>
    %335 = arith.cmpi eq, %330, %334 : vector<27x53xi32>
    %336 = arith.extui %335 : vector<27x53xi1> to vector<27x53xi32>
    %337 = arith.sitofp %336 : vector<27x53xi32> to vector<27x53xf32>
    %cst_262 = arith.constant dense<0.000000e+00> : vector<64x53xf32>
    %338 = tpu.matmul %309, %328, %cst_262 {dimension_numbers = #tpu.dot_dimension_numbers<[1], [0], [0], [1], [0, 0, 1, 1], [], []>} : vector<64x26xf32>, vector<26x53xf32>, vector<64x53xf32> -> vector<64x53xf32>
    %cst_263 = arith.constant dense<0.000000e+00> : vector<64x53xf32>
    %339 = tpu.matmul %319, %337, %cst_263 {dimension_numbers = #tpu.dot_dimension_numbers<[1], [0], [0], [1], [0, 0, 1, 1], [], []>} : vector<64x27xf32>, vector<27x53xf32>, vector<64x53xf32> -> vector<64x53xf32>
    %340 = arith.addf %338, %339 : vector<64x53xf32>
    %cst_264 = arith.constant 0.000000e+00 : f32
    %341 = vector.broadcast %cst_264 : f32 to vector<64x53xf32>
    %342 = arith.cmpf oge, %340, %341 : vector<64x53xf32>
    %343 = vector.broadcast %297 : vector<1x1xf32> to vector<64x53xf32>
    %344 = arith.mulf %343, %340 : vector<64x53xf32>
    %345 = arith.select %342, %340, %344 : vector<64x53xi1>, vector<64x53xf32>
    %c344 = arith.constant 344 : index
    %c0_265 = arith.constant 0 : index
    %346 = vector.load %arg3[%c344, %c0_265] : memref<536x257xf32, #tpu.memory_space<vmem>>, vector<64x257xf32>
    %c408 = arith.constant 408 : index
    %c0_266 = arith.constant 0 : index
    %347 = vector.load %arg3[%c408, %c0_266] : memref<536x257xf32, #tpu.memory_space<vmem>>, vector<64x193xf32>
    %c528 = arith.constant 528 : index
    %c0_267 = arith.constant 0 : index
    %348 = vector.load %arg3[%c528, %c0_267] : memref<536x257xf32, #tpu.memory_space<vmem>>, vector<1x1xf32>
    %349 = vector.extract_strided_slice %345 {offsets = [0, 3], sizes = [64, 50], strides = [1, 1]} : vector<64x53xf32> to vector<64x50xf32>
    %c0_268 = arith.constant 0 : index
    %c0_269 = arith.constant 0 : index
    %350 = vector.load %arg7[%c0_268, %c0_269] : memref<968x192xf32, #tpu.memory_space<vmem>>, vector<64x50xf32>
    tpu.vector_store %arg7[%c0_268, %c0_269], %349 {strides = array<i32>} : memref<968x192xf32, #tpu.memory_space<vmem>>, vector<64x50xf32>,
    %351 = vector.extract_strided_slice %345 {offsets = [0, 2], sizes = [64, 50], strides = [1, 1]} : vector<64x53xf32> to vector<64x50xf32>
    %c64_270 = arith.constant 64 : index
    %c0_271 = arith.constant 0 : index
    %352 = vector.load %arg7[%c64_270, %c0_271] : memref<968x192xf32, #tpu.memory_space<vmem>>, vector<64x50xf32>
    tpu.vector_store %arg7[%c64_270, %c0_271], %351 {strides = array<i32>} : memref<968x192xf32, #tpu.memory_space<vmem>>, vector<64x50xf32>,
    %353 = vector.extract_strided_slice %345 {offsets = [0, 1], sizes = [64, 50], strides = [1, 1]} : vector<64x53xf32> to vector<64x50xf32>
    %c128_272 = arith.constant 128 : index
    %c0_273 = arith.constant 0 : index
    %354 = vector.load %arg7[%c128_272, %c0_273] : memref<968x192xf32, #tpu.memory_space<vmem>>, vector<64x50xf32>
    tpu.vector_store %arg7[%c128_272, %c0_273], %353 {strides = array<i32>} : memref<968x192xf32, #tpu.memory_space<vmem>>, vector<64x50xf32>,
    %355 = vector.extract_strided_slice %345 {offsets = [0, 0], sizes = [64, 50], strides = [1, 1]} : vector<64x53xf32> to vector<64x50xf32>
    %c192_274 = arith.constant 192 : index
    %c0_275 = arith.constant 0 : index
    %356 = vector.load %arg7[%c192_274, %c0_275] : memref<968x192xf32, #tpu.memory_space<vmem>>, vector<64x50xf32>
    tpu.vector_store %arg7[%c192_274, %c0_275], %355 {strides = array<i32>} : memref<968x192xf32, #tpu.memory_space<vmem>>, vector<64x50xf32>,
    %cst_276 = arith.constant 1.000000e+00 : f32
    %357 = vector.broadcast %cst_276 : f32 to vector<1x50xf32>
    %c256_277 = arith.constant 256 : index
    %c0_278 = arith.constant 0 : index
    %358 = vector.load %arg7[%c256_277, %c0_278] : memref<968x192xf32, #tpu.memory_space<vmem>>, vector<1x50xf32>
    tpu.vector_store %arg7[%c256_277, %c0_278], %357 {strides = array<i32>} : memref<968x192xf32, #tpu.memory_space<vmem>>, vector<1x50xf32>,
    %c0_279 = arith.constant 0 : index
    %c0_280 = arith.constant 0 : index
    %359 = vector.load %arg7[%c0_279, %c0_280] : memref<968x192xf32, #tpu.memory_space<vmem>>, vector<257x50xf32>
    %cst_281 = arith.constant dense<0.000000e+00> : vector<64x50xf32>
    %360 = tpu.matmul %346, %359, %cst_281 {dimension_numbers = #tpu.dot_dimension_numbers<[1], [0], [0], [1], [0, 0, 1, 1], [], []>} : vector<64x257xf32>, vector<257x50xf32>, vector<64x50xf32> -> vector<64x50xf32>
    %361 = vector.extract_strided_slice %345 {offsets = [0, 3], sizes = [64, 49], strides = [1, 1]} : vector<64x53xf32> to vector<64x49xf32>
    %c264_282 = arith.constant 264 : index
    %c0_283 = arith.constant 0 : index
    %362 = vector.load %arg7[%c264_282, %c0_283] : memref<968x192xf32, #tpu.memory_space<vmem>>, vector<64x49xf32>
    tpu.vector_store %arg7[%c264_282, %c0_283], %361 {strides = array<i32>} : memref<968x192xf32, #tpu.memory_space<vmem>>, vector<64x49xf32>,
    %363 = vector.extract_strided_slice %345 {offsets = [0, 2], sizes = [64, 49], strides = [1, 1]} : vector<64x53xf32> to vector<64x49xf32>
    %c328_284 = arith.constant 328 : index
    %c0_285 = arith.constant 0 : index
    %364 = vector.load %arg7[%c328_284, %c0_285] : memref<968x192xf32, #tpu.memory_space<vmem>>, vector<64x49xf32>
    tpu.vector_store %arg7[%c328_284, %c0_285], %363 {strides = array<i32>} : memref<968x192xf32, #tpu.memory_space<vmem>>, vector<64x49xf32>,
    %365 = vector.extract_strided_slice %345 {offsets = [0, 1], sizes = [64, 49], strides = [1, 1]} : vector<64x53xf32> to vector<64x49xf32>
    %c392 = arith.constant 392 : index
    %c0_286 = arith.constant 0 : index
    %366 = vector.load %arg7[%c392, %c0_286] : memref<968x192xf32, #tpu.memory_space<vmem>>, vector<64x49xf32>
    tpu.vector_store %arg7[%c392, %c0_286], %365 {strides = array<i32>} : memref<968x192xf32, #tpu.memory_space<vmem>>, vector<64x49xf32>,
    %cst_287 = arith.constant 1.000000e+00 : f32
    %367 = vector.broadcast %cst_287 : f32 to vector<1x49xf32>
    %c456 = arith.constant 456 : index
    %c0_288 = arith.constant 0 : index
    %368 = vector.load %arg7[%c456, %c0_288] : memref<968x192xf32, #tpu.memory_space<vmem>>, vector<1x49xf32>
    tpu.vector_store %arg7[%c456, %c0_288], %367 {strides = array<i32>} : memref<968x192xf32, #tpu.memory_space<vmem>>, vector<1x49xf32>,
    %c264_289 = arith.constant 264 : index
    %c0_290 = arith.constant 0 : index
    %369 = vector.load %arg7[%c264_289, %c0_290] : memref<968x192xf32, #tpu.memory_space<vmem>>, vector<193x49xf32>
    %cst_291 = arith.constant dense<0.000000e+00> : vector<64x49xf32>
    %370 = tpu.matmul %347, %369, %cst_291 {dimension_numbers = #tpu.dot_dimension_numbers<[1], [0], [0], [1], [0, 0, 1, 1], [], []>} : vector<64x193xf32>, vector<193x49xf32>, vector<64x49xf32> -> vector<64x49xf32>
    %371 = tpu.iota {dimensions = array<i32: 0>} : vector<50x99xi32>
    %372 = tpu.iota {dimensions = array<i32: 1>} : vector<50x99xi32>
    %c2_i32_292 = arith.constant 2 : i32
    %373 = vector.broadcast %c2_i32_292 : i32 to vector<50x99xi32>
    %374 = arith.muli %373, %371 : vector<50x99xi32>
    %c0_i32_293 = arith.constant 0 : i32
    %375 = vector.broadcast %c0_i32_293 : i32 to vector<50x99xi32>
    %376 = arith.addi %374, %375 : vector<50x99xi32>
    %377 = arith.cmpi eq, %372, %376 : vector<50x99xi32>
    %378 = arith.extui %377 : vector<50x99xi1> to vector<50x99xi32>
    %379 = arith.sitofp %378 : vector<50x99xi32> to vector<50x99xf32>
    %380 = tpu.iota {dimensions = array<i32: 0>} : vector<49x99xi32>
    %381 = tpu.iota {dimensions = array<i32: 1>} : vector<49x99xi32>
    %c2_i32_294 = arith.constant 2 : i32
    %382 = vector.broadcast %c2_i32_294 : i32 to vector<49x99xi32>
    %383 = arith.muli %382, %380 : vector<49x99xi32>
    %c1_i32_295 = arith.constant 1 : i32
    %384 = vector.broadcast %c1_i32_295 : i32 to vector<49x99xi32>
    %385 = arith.addi %383, %384 : vector<49x99xi32>
    %386 = arith.cmpi eq, %381, %385 : vector<49x99xi32>
    %387 = arith.extui %386 : vector<49x99xi1> to vector<49x99xi32>
    %388 = arith.sitofp %387 : vector<49x99xi32> to vector<49x99xf32>
    %cst_296 = arith.constant dense<0.000000e+00> : vector<64x99xf32>
    %389 = tpu.matmul %360, %379, %cst_296 {dimension_numbers = #tpu.dot_dimension_numbers<[1], [0], [0], [1], [0, 0, 1, 1], [], []>} : vector<64x50xf32>, vector<50x99xf32>, vector<64x99xf32> -> vector<64x99xf32>
    %cst_297 = arith.constant dense<0.000000e+00> : vector<64x99xf32>
    %390 = tpu.matmul %370, %388, %cst_297 {dimension_numbers = #tpu.dot_dimension_numbers<[1], [0], [0], [1], [0, 0, 1, 1], [], []>} : vector<64x49xf32>, vector<49x99xf32>, vector<64x99xf32> -> vector<64x99xf32>
    %391 = arith.addf %389, %390 : vector<64x99xf32>
    %cst_298 = arith.constant 0.000000e+00 : f32
    %392 = vector.broadcast %cst_298 : f32 to vector<64x99xf32>
    %393 = arith.cmpf oge, %391, %392 : vector<64x99xf32>
    %394 = vector.broadcast %348 : vector<1x1xf32> to vector<64x99xf32>
    %395 = arith.mulf %394, %391 : vector<64x99xf32>
    %396 = arith.select %393, %391, %395 : vector<64x99xi1>, vector<64x99xf32>
    %c472 = arith.constant 472 : index
    %c0_299 = arith.constant 0 : index
    %397 = vector.load %arg3[%c472, %c0_299] : memref<536x257xf32, #tpu.memory_space<vmem>>, vector<4x257xf32>
    %c480_300 = arith.constant 480 : index
    %c0_301 = arith.constant 0 : index
    %398 = vector.load %arg3[%c480_300, %c0_301] : memref<536x257xf32, #tpu.memory_space<vmem>>, vector<4x193xf32>
    %399 = vector.extract_strided_slice %396 {offsets = [0, 3], sizes = [64, 96], strides = [1, 1]} : vector<64x99xf32> to vector<64x96xf32>
    %c0_302 = arith.constant 0 : index
    %c0_303 = arith.constant 0 : index
    %400 = vector.load %arg7[%c0_302, %c0_303] : memref<968x192xf32, #tpu.memory_space<vmem>>, vector<64x96xf32>
    tpu.vector_store %arg7[%c0_302, %c0_303], %399 {strides = array<i32>} : memref<968x192xf32, #tpu.memory_space<vmem>>, vector<64x96xf32>,
    %401 = vector.extract_strided_slice %396 {offsets = [0, 2], sizes = [64, 96], strides = [1, 1]} : vector<64x99xf32> to vector<64x96xf32>
    %c64_304 = arith.constant 64 : index
    %c0_305 = arith.constant 0 : index
    %402 = vector.load %arg7[%c64_304, %c0_305] : memref<968x192xf32, #tpu.memory_space<vmem>>, vector<64x96xf32>
    tpu.vector_store %arg7[%c64_304, %c0_305], %401 {strides = array<i32>} : memref<968x192xf32, #tpu.memory_space<vmem>>, vector<64x96xf32>,
    %403 = vector.extract_strided_slice %396 {offsets = [0, 1], sizes = [64, 96], strides = [1, 1]} : vector<64x99xf32> to vector<64x96xf32>
    %c128_306 = arith.constant 128 : index
    %c0_307 = arith.constant 0 : index
    %404 = vector.load %arg7[%c128_306, %c0_307] : memref<968x192xf32, #tpu.memory_space<vmem>>, vector<64x96xf32>
    tpu.vector_store %arg7[%c128_306, %c0_307], %403 {strides = array<i32>} : memref<968x192xf32, #tpu.memory_space<vmem>>, vector<64x96xf32>,
    %405 = vector.extract_strided_slice %396 {offsets = [0, 0], sizes = [64, 96], strides = [1, 1]} : vector<64x99xf32> to vector<64x96xf32>
    %c192_308 = arith.constant 192 : index
    %c0_309 = arith.constant 0 : index
    %406 = vector.load %arg7[%c192_308, %c0_309] : memref<968x192xf32, #tpu.memory_space<vmem>>, vector<64x96xf32>
    tpu.vector_store %arg7[%c192_308, %c0_309], %405 {strides = array<i32>} : memref<968x192xf32, #tpu.memory_space<vmem>>, vector<64x96xf32>,
    %cst_310 = arith.constant 1.000000e+00 : f32
    %407 = vector.broadcast %cst_310 : f32 to vector<1x96xf32>
    %c256_311 = arith.constant 256 : index
    %c0_312 = arith.constant 0 : index
    %408 = vector.load %arg7[%c256_311, %c0_312] : memref<968x192xf32, #tpu.memory_space<vmem>>, vector<1x96xf32>
    tpu.vector_store %arg7[%c256_311, %c0_312], %407 {strides = array<i32>} : memref<968x192xf32, #tpu.memory_space<vmem>>, vector<1x96xf32>,
    %c0_313 = arith.constant 0 : index
    %c0_314 = arith.constant 0 : index
    %409 = vector.load %arg7[%c0_313, %c0_314] : memref<968x192xf32, #tpu.memory_space<vmem>>, vector<257x96xf32>
    %cst_315 = arith.constant dense<0.000000e+00> : vector<4x96xf32>
    %410 = tpu.matmul %397, %409, %cst_315 {dimension_numbers = #tpu.dot_dimension_numbers<[1], [0], [0], [1], [0, 0, 1, 1], [], []>} : vector<4x257xf32>, vector<257x96xf32>, vector<4x96xf32> -> vector<4x96xf32>
    %411 = vector.extract_strided_slice %396 {offsets = [0, 2], sizes = [64, 96], strides = [1, 1]} : vector<64x99xf32> to vector<64x96xf32>
    %c264_316 = arith.constant 264 : index
    %c0_317 = arith.constant 0 : index
    %412 = vector.load %arg7[%c264_316, %c0_317] : memref<968x192xf32, #tpu.memory_space<vmem>>, vector<64x96xf32>
    tpu.vector_store %arg7[%c264_316, %c0_317], %411 {strides = array<i32>} : memref<968x192xf32, #tpu.memory_space<vmem>>, vector<64x96xf32>,
    %413 = vector.extract_strided_slice %396 {offsets = [0, 1], sizes = [64, 96], strides = [1, 1]} : vector<64x99xf32> to vector<64x96xf32>
    %c328_318 = arith.constant 328 : index
    %c0_319 = arith.constant 0 : index
    %414 = vector.load %arg7[%c328_318, %c0_319] : memref<968x192xf32, #tpu.memory_space<vmem>>, vector<64x96xf32>
    tpu.vector_store %arg7[%c328_318, %c0_319], %413 {strides = array<i32>} : memref<968x192xf32, #tpu.memory_space<vmem>>, vector<64x96xf32>,
    %415 = vector.extract_strided_slice %396 {offsets = [0, 0], sizes = [64, 96], strides = [1, 1]} : vector<64x99xf32> to vector<64x96xf32>
    %c392_320 = arith.constant 392 : index
    %c0_321 = arith.constant 0 : index
    %416 = vector.load %arg7[%c392_320, %c0_321] : memref<968x192xf32, #tpu.memory_space<vmem>>, vector<64x96xf32>
    tpu.vector_store %arg7[%c392_320, %c0_321], %415 {strides = array<i32>} : memref<968x192xf32, #tpu.memory_space<vmem>>, vector<64x96xf32>,
    %cst_322 = arith.constant 1.000000e+00 : f32
    %417 = vector.broadcast %cst_322 : f32 to vector<1x96xf32>
    %c456_323 = arith.constant 456 : index
    %c0_324 = arith.constant 0 : index
    %418 = vector.load %arg7[%c456_323, %c0_324] : memref<968x192xf32, #tpu.memory_space<vmem>>, vector<1x96xf32>
    tpu.vector_store %arg7[%c456_323, %c0_324], %417 {strides = array<i32>} : memref<968x192xf32, #tpu.memory_space<vmem>>, vector<1x96xf32>,
    %c264_325 = arith.constant 264 : index
    %c0_326 = arith.constant 0 : index
    %419 = vector.load %arg7[%c264_325, %c0_326] : memref<968x192xf32, #tpu.memory_space<vmem>>, vector<193x96xf32>
    %cst_327 = arith.constant dense<0.000000e+00> : vector<4x96xf32>
    %420 = tpu.matmul %398, %419, %cst_327 {dimension_numbers = #tpu.dot_dimension_numbers<[1], [0], [0], [1], [0, 0, 1, 1], [], []>} : vector<4x193xf32>, vector<193x96xf32>, vector<4x96xf32> -> vector<4x96xf32>
    %421 = tpu.iota {dimensions = array<i32: 0>} : vector<96x192xi32>
    %422 = tpu.iota {dimensions = array<i32: 1>} : vector<96x192xi32>
    %c2_i32_328 = arith.constant 2 : i32
    %423 = vector.broadcast %c2_i32_328 : i32 to vector<96x192xi32>
    %424 = arith.muli %423, %421 : vector<96x192xi32>
    %c1_i32_329 = arith.constant 1 : i32
    %425 = vector.broadcast %c1_i32_329 : i32 to vector<96x192xi32>
    %426 = arith.addi %424, %425 : vector<96x192xi32>
    %427 = arith.cmpi eq, %422, %426 : vector<96x192xi32>
    %428 = arith.extui %427 : vector<96x192xi1> to vector<96x192xi32>
    %429 = arith.sitofp %428 : vector<96x192xi32> to vector<96x192xf32>
    %430 = tpu.iota {dimensions = array<i32: 0>} : vector<96x192xi32>
    %431 = tpu.iota {dimensions = array<i32: 1>} : vector<96x192xi32>
    %c2_i32_330 = arith.constant 2 : i32
    %432 = vector.broadcast %c2_i32_330 : i32 to vector<96x192xi32>
    %433 = arith.muli %432, %430 : vector<96x192xi32>
    %c0_i32_331 = arith.constant 0 : i32
    %434 = vector.broadcast %c0_i32_331 : i32 to vector<96x192xi32>
    %435 = arith.addi %433, %434 : vector<96x192xi32>
    %436 = arith.cmpi eq, %431, %435 : vector<96x192xi32>
    %437 = arith.extui %436 : vector<96x192xi1> to vector<96x192xi32>
    %438 = arith.sitofp %437 : vector<96x192xi32> to vector<96x192xf32>
    %cst_332 = arith.constant dense<0.000000e+00> : vector<4x192xf32>
    %439 = tpu.matmul %410, %429, %cst_332 {dimension_numbers = #tpu.dot_dimension_numbers<[1], [0], [0], [1], [0, 0, 1, 1], [], []>} : vector<4x96xf32>, vector<96x192xf32>, vector<4x192xf32> -> vector<4x192xf32>
    %cst_333 = arith.constant dense<0.000000e+00> : vector<4x192xf32>
    %440 = tpu.matmul %420, %438, %cst_333 {dimension_numbers = #tpu.dot_dimension_numbers<[1], [0], [0], [1], [0, 0, 1, 1], [], []>} : vector<4x96xf32>, vector<96x192xf32>, vector<4x192xf32> -> vector<4x192xf32>
    %441 = arith.addf %439, %440 : vector<4x192xf32>
    %c0_334 = arith.constant 0 : index
    %c0_335 = arith.constant 0 : index
    %c0_336 = arith.constant 0 : index
    %442 = vector.load %arg6[%c0_334, %c0_335, %c0_336] : memref<1x4x192xf32, #tpu.memory_space<vmem>>, vector<1x4x192xf32>
    %443 = vector.shape_cast %442 : vector<1x4x192xf32> to vector<4x192xf32>
    %444 = vector.shape_cast %441 : vector<4x192xf32> to vector<1x4x192xf32>
    tpu.vector_store %arg6[%c0_334, %c0_335, %c0_336], %444 {strides = array<i32>} : memref<1x4x192xf32, #tpu.memory_space<vmem>>, vector<1x4x192xf32>,
    return
  }
  func.func @transform_0(%arg0: i32) -> (i32, i32, i32) {
    %c0_i32 = arith.constant 0 : i32
    %c0_i32_0 = arith.constant 0 : i32
    %c0_i32_1 = arith.constant 0 : i32
    return %arg0, %c0_i32, %c0_i32_0 : i32, i32, i32
  }
  func.func @transform_1(%arg0: i32) -> (i32, i32, i32) {
    %c0_i32 = arith.constant 0 : i32
    %c0_i32_0 = arith.constant 0 : i32
    %c0_i32_1 = arith.constant 0 : i32
    return %arg0, %c0_i32, %c0_i32_0 : i32, i32, i32
  }
  func.func @transform_2(%arg0: i32) -> (i32, i32) {
    %c0_i32 = arith.constant 0 : i32
    %c0_i32_0 = arith.constant 0 : i32
    %c0_i32_1 = arith.constant 0 : i32
    return %c0_i32, %c0_i32_0 : i32, i32
  }
  func.func @transform_3(%arg0: i32) -> (i32, i32) {
    %c0_i32 = arith.constant 0 : i32
    %c0_i32_0 = arith.constant 0 : i32
    %c0_i32_1 = arith.constant 0 : i32
    return %c0_i32, %c0_i32_0 : i32, i32
  }
  func.func @transform_4(%arg0: i32) -> (i32, i32) {
    %c0_i32 = arith.constant 0 : i32
    %c0_i32_0 = arith.constant 0 : i32
    %c0_i32_1 = arith.constant 0 : i32
    return %c0_i32, %c0_i32_0 : i32, i32
  }
  func.func @transform_5(%arg0: i32) -> (i32, i32, i32) {
    %c0_i32 = arith.constant 0 : i32
    %c0_i32_0 = arith.constant 0 : i32
    %c0_i32_1 = arith.constant 0 : i32
    return %arg0, %c0_i32, %c0_i32_0 : i32, i32, i32
  }
}

</mosaic_0001>

<bundles_post_ra>
// kernel: forward.1
= control target key start
LH: loop header
LB: loop body
LE: loop exit
PB: predicated region body
PF: predicated region fallthrough
CT: control target
= control target key end

     0   :  { %10 = vsyncpa [#allocation4], 0  ;;  %s9881_s0 = inlined_call_operand.vmem [shape: f32[2,2,192], index: 0, kind: input, shape index: {}]   ;;  %s9882_s1 = inlined_call_operand.vmem [shape: f32[2,1,64], index: 1, kind: input, shape index: {}]   ;;  %s9883_s2 = inlined_call_operand.vmem [shape: f32[536,257], index: 2, kind: input, shape index: {}]   ;;  %s9884_s3 = inlined_call_operand.vmem [shape: f32[64,481], index: 3, kind: input, shape index: {}]   ;;  %s9885_s4 = inlined_call_operand.vmem [shape: f32[32,961], index: 4, kind: input, shape index: {}]   ;;  %s9886_s5 = inlined_call_operand.hbm [shape: f32[2,4,192], index: 5, kind: output, shape index: {}]  }
   0x1   :  { %12 = vsyncpa [#allocation4 + $0x1], 0  ;;  %s7196_s18 = smov 0   ;;  %s7198_s19 = smov 0  }
   0x2   :  { %s7200_s20 = smov 0   ;;  %s7202_s21 = smov 0  }
   0x3 LB: > { %s7217_s22 = sadd.s32 4294967295, %s7140_s21   ;;  %s5997_s23 = sadd.s32 4294967294, %s7140_s21   ;;  %s7140_s21 = sphi %s7202_s21, %s9998_s21   ;;  %s7136_s20 = sphi %s7200_s20, %s9997_s20   ;;  %s7132_s19 = sphi %s7198_s19, %s9996_s19   ;;  %s7128_s18 = sphi %s7196_s18, %s9995_s18  }
   0x4   : > { %s7221_s24 = sadd.s32 1, %s7140_s21   ;;  %s140_s25 = sadd.s32 1, %s7136_s20 }
   0x5   : > { %s137_s26 = ssub.s32 %s7140_s21, %s7221_s24  ;;  %p150_p0 = scmp.ne.s32.totalorder %s7136_s20, %s7132_s19 }
   0x6   : > { %p138_p1 = scmp.eq.s32.totalorder %s137_s26, 0  ;;  %p151_p2 = scmp.eq.s32.totalorder %s7217_s22, 1 }
   0x7   : > { %p156_p3 = scmp.ne.s32.totalorder %s7132_s19, %s7128_s18  ;;  %p157_p4 = scmp.eq.s32.totalorder %s5997_s23, 1 }
   0x8   : > { %s7232_s27 = scalar_select %p138_p1, %s7136_s20, %s140_s25  }
   0x9   : > { %p7234_p5 = por %p151_p2, %p150_p0  ;;  %p7238_p6 = por %p157_p4, %p156_p3 }
   0xa   : > { %p6000_p7 = scmp.ge.s32.totalorder %s7140_s21, 1  ;;  %p198_p8 = scmp.lt.s32.totalorder %s7140_s21, 3 }
   0xc   : > { %p199_p9 = pnand %p6000_p7, %p198_p8 }
   0xd   : > { %p229_p10 = scmp.lt.s32.totalorder (!%p199_p9), %s7217_s22, 1  ;;  %s9892_s10 = smov (!%p199_p9), 121  }
   0xe   : > { %202 = sbr.rel (%p199_p9) target bundleno = 4949 (0x1355), region = 40  ;;  %s9887_s11 = smov (!%p199_p9), 123  }
   0xf   : > { %s9890_s12 = smov (!%p199_p9), 122   ;;  %s7148_s13 = smov (!%p199_p9), 127  }
  0x10   : > { %s9898_s14 = smov (!%p199_p9), 126   ;;  %s9894_s15 = smov (!%p199_p9), 125  }
  0x11   : > { %s9896_s16 = smov (!%p199_p9), 124   ;;  %s9904_s17 = smov (!%p199_p9), 3  }
  0x12   : > { %s9902_s23 = smov (!%p199_p9), 2   ;;  %s9900_s25 = smov (!%p199_p9), 1  }
  0x13   : > { %v249_v0 = vlaneseq  ;;  %vm440_vm0 = vcmask 521676   ;;  %v7142_v1 = vmov 1983009808   ;;  %v7143_v3 = vmov 0.0   ;;  %s7249_s30 = scalar_select %p229_p10, %s7217_s22, 1 }
  0x14   : > { %v247_v2 = vunpack.c.l.s4 %v7142_v1  ;;  %441 = vst.msk [vmem:[#allocation2 + $0x38] sm:$0x30] %vm440_vm0, %v7143_v3  ;;  %vm414_vm1 = vcmask 517592   ;;  %552 = vmatprep.mubr.f32.mxu0 %v7143_v3  ;;  %804 = vmatprep.subr.mxu1 %v7143_v3  ;;  %vm362_vm2 = vcmask 517624   ;;  %vm427_vm3 = vcmask 519634   ;;  %s9908_s26 = smov 7  }
  0x15   : > { %v7252_v4 = vshrl.u32 %v249_v0, 7  ;;  %415 = vst.msk [vmem:[#allocation2 + $0x38] sm:$0x3] %vm414_vm1, %v7143_v3  ;;  %s6322_s6 = sshll.u32 %s7249_s30, 2  ;;  %vm455_vm4 = vcmp.lt.s32.totalorder %v249_v0, 192  ;;  %vm375_vm5 = vcmask 519666  }
  0x16   : > { %v248_v5 = vunpack.c.0.s8 %v247_v2  ;;  %363 = vst.msk [vmem:[#allocation2 + $0x28] sm:$0x3] %vm362_vm2, %v7143_v3  ;;  %s233_s9 = scalar_lea.vmem %s9881_s0, %s6322_s6  ;;  %v7146_v12 = vmov 1.0   ;;  %vm388_vm6 = vcmask 521708   ;;  %vm401_vm7 = vcmask 523750   ;;  %s7156_s6 = smov 6  }
  0x17   : > { %v237_v7 = vld [vmem:[%s233_s9] sm:$0xf]  ;;  %428 = vst.msk [vmem:[#allocation2 + $0x38] sm:$0xc] %vm427_vm3, %v7143_v3  ;;  %vm319_vm8 = vcmask 17408   ;;  %vm325_vm9 = vcmask 23552  }
  0x18   : > { %v251_v6 = vsub.s32 %v248_v5, %v7252_v4  ;;  %v268_v9 = vcombine.low %v237_v7, %v237_v7  ;;  %458 = vst.msk [vmem:[#allocation2 + $0x36] ss:$8 sm:$0x3] %vm455_vm4, %v7146_v12  ;;  %vm332_vm10 = vcmask 11266   ;;  %vm338_vm11 = vcmask 15360   ;;  %s9906_s7 = smov 5  }
  0x19   : > { %376 = vst.msk [vmem:[#allocation2 + $0x28] sm:$0xc] %vm375_vm5, %v7143_v3  ;;  %vm345_vm12 = vcmask 5124   ;;  %vm9912_vm13 = vcmask 7168   ;;  %vm317_vm14 = vcmask 523270   ;;  %vm243_vm15 = vcmask 50176  }
  0x1a   : > { %v7262_v8 = vrot.slane %v237_v7, %v251_v6  ;;  %v7269_v10 = vrot.slane %v268_v9, %v251_v6  ;;  %389 = vst.msk [vmem:[#allocation2 + $0x28] sm:$0x30] %vm388_vm6, %v7143_v3  ;;  %vm266_vm0 = vcmask 44034   ;;  %vm281_vm1 = vcmask 48128   ;;  %s9910_s8 = smov 4   ;;  %v239_v7 = vld [vmem:[%s9883_s2] sm:$0xff] }
  0x1b   : > { %402 = vst.msk [vmem:[#allocation2 + $0x28] sm:$0xc0] %vm401_vm7, %v7143_v3  ;;  %vm289_vm2 = vcmask 37892   ;;  %vm296_vm3 = vcmask 39936   ;;  %vm304_vm4 = vcmask 31750   ;;  %vm311_vm5 = vcmask 31744  }
  0x1c   : > { %444 = vrot.lane.b32.xlu1 %v7262_v8, %s9892_s10  ;;  %416 = vrot.lane.b32.xlu0 %v7262_v8, %s9887_s11  ;;  %v7273_v11 = vcombine.high %v7262_v8, %v7262_v8  ;;  %v7279_v13 = vcombine.low %v7269_v10, %v7269_v10  ;;  %v7287_v14 = vcombine.low %v7262_v8, %v7262_v8  ;;  %v577_v16 = vld [vmem:[%s9883_s2 + $0x5b8] ss:$0 sm:$0xff]  ;;  %v7159_v17 = vmov 0   ;;  %v241_v9 = vld [vmem:[%s9883_s2 + $0x30] sm:$0xff]  ;;  %s9931_s9 = smov 122  }
  0x1d   : > { %v7297_v15 = vcombine.high %v7269_v10, %v7269_v10  ;;  %320 = vst.msk [vmem:[#allocation2 + $0x10] sm:$0x3] %vm319_vm8, %v7143_v3  ;;  %7062 = vset.pattern.permute.xlu0 %v7159_v17  ;;  %7078 = vset.pattern.permute.xlu1 %v7159_v17  ;;  %vm451_vm6 = vcmask 463876   ;;  %vm420_vm7 = vcmask 1006592   ;;  %vm425_vm8 = vcmask 476160  }
  0x1e   : > { %360 = vst [vmem:[#allocation2 + $0x10] sm:$0xc0] %v7279_v13  ;;  %1009 = vst.msk [vmem:[#allocation2 + $0x100] sm:$0xff] %vm325_vm9, %v7143_v3  ;;  %v700_v17 = vadd.s32 96, %v7252_v4 }
  0x1f   : > { %1010 = vst.msk [vmem:[#allocation2 + $0x110] sm:$0xff] %vm325_vm9, %v7143_v3  ;;  %1011 = vst.msk [vmem:[#allocation2 + $0x120] sm:$0xff] %vm325_vm9, %v7143_v3 }
  0x20   : > { %429 = vrot.lane.b32.xlu1 %v7269_v10, %s9890_s12  ;;  %418 = vrot.lane.b32.xlu0 %v7273_v11, %s9887_s11  ;;  %1012 = vst.msk [vmem:[#allocation2 + $0x130] sm:$0xff] %vm325_vm9, %v7143_v3  ;;  %s9930_s11 = smov 121  }
  0x21   : > { %333 = vst.msk [vmem:[#allocation2 + $0x10] sm:$0xc] %vm332_vm10, %v7143_v3  ;;  %vm373_vm10 = vcmask 508928  }
  0x22   : > { %1030 = vst.msk [vmem:[#allocation2 + $0x140] sm:$0xff] %vm338_vm11, %v7143_v3  ;;  %1031 = vst.msk [vmem:[#allocation2 + $0x150] sm:$0xff] %vm338_vm11, %v7143_v3 }
  0x23   : > { %1032 = vst.msk [vmem:[#allocation2 + $0x160] sm:$0xff] %vm338_vm11, %v7143_v3  ;;  %1033 = vst.msk [vmem:[#allocation2 + $0x170] sm:$0xff] %vm338_vm11, %v7143_v3 }
  0x24   : > { %366 = vrot.lane.b32.xlu1 %v7273_v11, %s7148_s13  ;;  %442 = vrot.lane.b32.xlu0 %v7287_v14, %s9892_s10  ;;  %346 = vst.msk [vmem:[#allocation2 + $0x10] sm:$0x30] %vm345_vm12, %v7143_v3  ;;  %vm446_vm12 = vcmask 990208   ;;  %s9932_s10 = smov 123  }
  0x25   : > { %1051 = vst.msk [vmem:[#allocation2 + $0x180] sm:$0xff] %vm9912_vm13, %v7143_v3  ;;  %1052 = vst.msk [vmem:[#allocation2 + $0x190] sm:$0xff] %vm9912_vm13, %v7143_v3 }
  0x26   : > { %1053 = vst.msk [vmem:[#allocation2 + $0x1a0] sm:$0xff] %vm9912_vm13, %v7143_v3  ;;  %1054 = vst.msk [vmem:[#allocation2 + $0x1b0] sm:$0xff] %vm9912_vm13, %v7143_v3 }
  0x27   : > { %361 = vst.msk [vmem:[#allocation2 + $0x18] sm:$0xc0] %vm317_vm14, %v7269_v10 }
  0x28   : > { %431 = vrot.lane.b32.xlu1 %v7297_v15, %s9890_s12  ;;  %364 = vrot.lane.b32.xlu0 %v7262_v8, %s7148_s13  ;;  %244 = vst.msk [vmem:[#allocation2] sm:$0x3] %vm243_vm15, %v7143_v3  ;;  %vm433_vm15 = vcmask 998400   ;;  %s9940_s12 = smov 1  }
  0x29   : > { %267 = vst.msk [vmem:[#allocation2] sm:$0xc] %vm266_vm0, %v7143_v3  ;;  %vm438_vm0 = vcmask 470018  }
  0x2a   : > { %946 = vst.msk [vmem:[#allocation2 + $0x40] sm:$0xff] %vm281_vm1, %v7143_v3  ;;  %947 = vst.msk [vmem:[#allocation2 + $0x50] sm:$0xff] %vm281_vm1, %v7143_v3 }
  0x2b   : > { %948 = vst.msk [vmem:[#allocation2 + $0x60] sm:$0xff] %vm281_vm1, %v7143_v3  ;;  %949 = vst.msk [vmem:[#allocation2 + $0x70] sm:$0xff] %vm281_vm1, %v7143_v3 }
  0x2c   : > { %379 = vrot.lane.b32.xlu1 %v7297_v15, %s9898_s14  ;;  %377 = vrot.lane.b32.xlu0 %v7269_v10, %s9898_s14  ;;  %290 = vst.msk [vmem:[#allocation2] sm:$0x30] %vm289_vm2, %v7143_v3  ;;  %vm368_vm2 = vcmask 1039360  }
  0x2d   : > { %967 = vst.msk [vmem:[#allocation2 + $0x80] sm:$0xff] %vm296_vm3, %v7143_v3  ;;  %968 = vst.msk [vmem:[#allocation2 + $0x90] sm:$0xff] %vm296_vm3, %v7143_v3 }
  0x2e   : > { %969 = vst.msk [vmem:[#allocation2 + $0xa0] sm:$0xff] %vm296_vm3, %v7143_v3  ;;  %970 = vst.msk [vmem:[#allocation2 + $0xb0] sm:$0xff] %vm296_vm3, %v7143_v3 }
  0x2f   : > { %305 = vst.msk [vmem:[#allocation2] sm:$0xc0] %vm304_vm4, %v7143_v3  ;;  %vm386_vm4 = vcmask 502786  }
  0x30   : > { %392 = vrot.lane.b32.xlu1 %v7262_v8, %s9894_s15  ;;  %390 = vrot.lane.b32.xlu0 %v7287_v14, %s9894_s15  ;;  %988 = vst.msk [vmem:[#allocation2 + $0xc0] sm:$0xff] %vm311_vm5, %v7143_v3  ;;  %989 = vst.msk [vmem:[#allocation2 + $0xd0] sm:$0xff] %vm311_vm5, %v7143_v3  ;;  %s9928_s15 = smov 124  }
  0x31   : > { %990 = vst.msk [vmem:[#allocation2 + $0xe0] sm:$0xff] %vm311_vm5, %v7143_v3  ;;  %991 = vst.msk [vmem:[#allocation2 + $0xf0] sm:$0xff] %vm311_vm5, %v7143_v3 }
  0x34   : > { %405 = vrot.lane.b32.xlu1 %v7269_v10, %s9896_s16  ;;  %403 = vrot.lane.b32.xlu0 %v7279_v13, %s9896_s16  ;;  %s9929_s16 = smov 125  }
  0x38   : > { %323 = vrot.lane.b32.xlu1 %v7273_v11, %s9904_s17  ;;  %321 = vrot.lane.b32.xlu0 %v7262_v8, %s9904_s17 }
  0x3c   : > { %336 = vrot.lane.b32.xlu1 %v7297_v15, %s9902_s23  ;;  %334 = vrot.lane.b32.xlu0 %v7269_v10, %s9902_s23 }
  0x40   : > { %349 = vrot.lane.b32.xlu1 %v7262_v8, %s9900_s25  ;;  %347 = vrot.lane.b32.xlu0 %v7287_v14, %s9900_s25 }
  0x44   : > { %256 = vrot.lane.b32.xlu1 %v7273_v11, %s9908_s26  ;;  %254 = vrot.lane.b32.xlu0 %v7262_v8, %s9908_s26  ;;  %v7450_v11 = vand.u32 127, %v249_v0  ;;  %v7465_v0 = vadd.s32 88, %v7252_v4 }
  0x48   : > { %279 = vrot.lane.b32.xlu1 %v7297_v15, %s7156_s6  ;;  %277 = vrot.lane.b32.xlu0 %v7269_v10, %s7156_s6  ;;  %v702_v15 = vadd.s32 112, %v7252_v4 }
  0x4c   : > { %294 = vrot.lane.b32.xlu1 %v7262_v8, %s9906_s7  ;;  %292 = vrot.lane.b32.xlu0 %v7287_v14, %s9906_s7  ;;  %v240_v8 = vld [vmem:[%s9883_s2 + $0x18] sm:$0xff]  ;;  %v7454_v14 = vmul.u32 3, %v7450_v11 }
  0x50   : > { %309 = vrot.lane.b32.xlu1 %v7269_v10, %s9910_s8  ;;  %307 = vrot.lane.b32.xlu0 %v7279_v13, %s9910_s8  ;;  %v242_v10 = vld [vmem:[%s9883_s2 + $0x48] sm:$0xff]  ;;  %v703_v13 = vadd.s32 120, %v7252_v4 }
  0x54   : > { %588 = vperm.xlu0 %7062, %v577_v16   ;;  %v701_v16 = vadd.s32 104, %v7252_v4 }
  0x8e   : > { %v445_v18 = vpop.permute.xlu1 %444  ;;  %v417_v19 = vpop.permute.xlu0 %416 }
  0x8f   : > { %452 = vst.msk [vmem:[#allocation2 + $0x38] sm:$0x30] %vm451_vm6, %v445_v18  ;;  %vm381_vm6 = vcmask 1031168  }
  0x92   : > { %v430_v20 = vpop.permute.xlu1 %429  ;;  %v419_v21 = vpop.permute.xlu0 %418 }
  0x93   : > { %v421_v22 = vsel %vm420_vm7, %v417_v19, %v419_v21  ;;  %426 = vst.msk [vmem:[#allocation2 + $0x38] sm:$0x3] %vm425_vm8, %v419_v21  ;;  %vm399_vm7 = vcmask 496644   ;;  %vm394_vm8 = vcmask 1022976   ;;  %v7478_v19 = vadd.s32 72, %v7252_v4 }
  0x94   : > { %424 = vst [vmem:[#allocation2 + $0x30] sm:$0x3] %v421_v22  ;;  %v7492_v21 = vadd.s32 56, %v7252_v4  ;;  %v7499_v22 = vadd.s32 48, %v7252_v4 }
  0x96   : > { %v367_v23 = vpop.permute.xlu1 %366  ;;  %v443_v24 = vpop.permute.xlu0 %442 }
  0x97   : > { %374 = vst.msk [vmem:[#allocation2 + $0x28] sm:$0x3] %vm373_vm10, %v367_v23  ;;  %v447_v25 = vsel %vm446_vm12, %v443_v24, %v445_v18  ;;  %vm9889_vm10 = vcmask 1046528   ;;  %vm258_vm12 = vcmask 56320   ;;  %v7471_v18 = vadd.s32 80, %v7252_v4 }
  0x98   : > { %450 = vst [vmem:[#allocation2 + $0x30] sm:$0x30] %v447_v25  ;;  %v7513_v24 = vadd.s32 32, %v7252_v4  ;;  %v7520_v25 = vadd.s32 24, %v7252_v4 }
  0x9a   : > { %v432_v26 = vpop.permute.xlu1 %431  ;;  %v365_v27 = vpop.permute.xlu0 %364 }
  0x9b   : > { %v434_v28 = vsel %vm433_vm15, %v430_v20, %v432_v26  ;;  %439 = vst.msk [vmem:[#allocation2 + $0x38] sm:$0xc] %vm438_vm0, %v432_v26  ;;  %v369_v29 = vsel %vm368_vm2, %v365_v27, %v367_v23  ;;  %vm412_vm15 = vcmask 490502   ;;  %vm407_vm0 = vcmask 1014784  }
  0x9c   : > { %437 = vst [vmem:[#allocation2 + $0x30] sm:$0xc] %v434_v28  ;;  %372 = vst [vmem:[#allocation2 + $0x20] sm:$0x3] %v369_v29  ;;  %v7485_v20 = vadd.s32 64, %v7252_v4  ;;  %v7506_v23 = vadd.s32 40, %v7252_v4 }
  0x9d   : > { %v7527_v26 = vadd.s32 16, %v7252_v4  ;;  %v7534_v27 = vadd.s32 8, %v7252_v4  ;;  %v711_v28 = vadd.s32 184, %v7252_v4 }
  0x9e   : > { %v380_v30 = vpop.permute.xlu1 %379  ;;  %v378_v31 = vpop.permute.xlu0 %377 }
  0x9f   : > { %387 = vst.msk [vmem:[#allocation2 + $0x28] sm:$0xc] %vm386_vm4, %v380_v30  ;;  %v382_v32 = vsel %vm381_vm6, %v378_v31, %v380_v30  ;;  %vm329_vm4 = vcmask 1041432   ;;  %v710_v30 = vadd.s32 176, %v7252_v4  ;;  %v709_v31 = vadd.s32 168, %v7252_v4 }
  0xa0   : > { %385 = vst [vmem:[#allocation2 + $0x20] sm:$0xc] %v382_v32  ;;  %v708_v32 = vadd.s32 160, %v7252_v4 }
  0xa2   : > { %v393_v33 = vpop.permute.xlu1 %392  ;;  %v391_v34 = vpop.permute.xlu0 %390  ;;  %v467_v35 = vld [vmem:[#allocation2 + $0x38] sm:$0x7f] }
  0xa3   : > { %400 = vst.msk [vmem:[#allocation2 + $0x28] sm:$0x30] %vm399_vm7, %v393_v33  ;;  %v395_v36 = vsel %vm394_vm8, %v391_v34, %v393_v33  ;;  %6004 = vmatprep.subr.msk.mxu0 %vm9889_vm10, %v467_v35  ;;  %v466_v37 = vld [vmem:[#allocation2 + $0x30] sm:$0x7f]  ;;  %vm264_vm7 = vcmask 517120   ;;  %vm342_vm8 = vcmask 1043474  }
  0xa4   : > { %398 = vst [vmem:[#allocation2 + $0x20] sm:$0x30] %v395_v36  ;;  %6005 = vmatpush1.msk.msra.mxu0 %vm9889_vm10, %v466_v37  ;;  %924 = vst.msk [vmem:[#allocation2 + $0x30] sm:$0xff] %vm258_vm12, %v7143_v3  ;;  %vm287_vm10 = vcmask 519170   ;;  %v707_v33 = vadd.s32 152, %v7252_v4  ;;  %v706_v36 = vadd.s32 144, %v7252_v4 }
  0xa6   : > { %v406_v38 = vpop.permute.xlu1 %405  ;;  %v404_v39 = vpop.permute.xlu0 %403 }
  0xa7   : > { %413 = vst.msk [vmem:[#allocation2 + $0x28] sm:$0xc0] %vm412_vm15, %v406_v38  ;;  %v408_v40 = vsel %vm407_vm0, %v404_v39, %v406_v38  ;;  %vm355_vm15 = vcmask 1045516   ;;  %vm302_vm0 = vcmask 521220   ;;  %v705_v38 = vadd.s32 136, %v7252_v4 }
  0xa8   : > { %411 = vst [vmem:[#allocation2 + $0x20] sm:$0xc0] %v408_v40 }
  0xaa   : > { %v324_v41 = vpop.permute.xlu1 %323  ;;  %v322_v42 = vpop.permute.xlu0 %321 }
  0xab   : > { %v326_v43 = vsel %vm325_vm9, %v322_v42, %v324_v41  ;;  %330 = vst.msk [vmem:[#allocation2 + $0x10] sm:$0x3] %vm329_vm4, %v322_v42  ;;  %vm262_vm4 = vcmask 1041464   ;;  %v704_v42 = vadd.s32 128, %v7252_v4 }
  0xac   : > { %331 = vst.msk [vmem:[#allocation2 + $0x18] sm:$0x3] %vm264_vm7, %v326_v43 }
  0xae   : > { %v337_v44 = vpop.permute.xlu1 %336  ;;  %v335_v45 = vpop.permute.xlu0 %334  ;;  %v465_v46 = vld [vmem:[#allocation2 + $0x28] sm:$0xff] }
  0xaf   : > { %v339_v47 = vsel %vm338_vm11, %v335_v45, %v337_v44  ;;  %343 = vst.msk [vmem:[#allocation2 + $0x10] sm:$0xc] %vm342_vm8, %v335_v45  ;;  %514 = vmatprep.subr.mxu0 %v465_v46  ;;  %v464_v48 = vld [vmem:[#allocation2 + $0x20] sm:$0xff]  ;;  %vm285_vm8 = vcmask 1043506  }
  0xb0   : > { %344 = vst.msk [vmem:[#allocation2 + $0x18] sm:$0xc] %vm287_vm10, %v339_v47  ;;  %515 = vmatpush1.msra.mxu0 %v464_v48 }
  0xb1   : > { %923 = vst.msk [vmem:[#allocation2 + $0x20] sm:$0xff] %vm258_vm12, %v7143_v3 }
  0xb2   : > { %v350_v49 = vpop.permute.xlu1 %349  ;;  %v348_v50 = vpop.permute.xlu0 %347 }
  0xb3   : > { %v352_v51 = vsel %vm9912_vm13, %v348_v50, %v350_v49  ;;  %356 = vst.msk [vmem:[#allocation2 + $0x10] sm:$0x30] %vm355_vm15, %v348_v50  ;;  %vm300_vm15 = vcmask 1045548  }
  0xb4   : > { %357 = vst.msk [vmem:[#allocation2 + $0x18] sm:$0x30] %vm302_vm0, %v352_v51 }
  0xb6   : > { %v257_v52 = vpop.permute.xlu1 %256  ;;  %v255_v53 = vpop.permute.xlu0 %254 }
  0xb7   : > { %v259_v54 = vsel %vm258_vm12, %v255_v53, %v257_v52  ;;  %263 = vst.msk [vmem:[#allocation2] sm:$0x3] %vm262_vm4, %v255_v53  ;;  %vm728_vm4 = vcmp.eq.s32.totalorder %v701_v16, %v7454_v14 }
  0xb8   : > { %265 = vst.msk [vmem:[#allocation2 + $0x8] sm:$0x3] %vm264_vm7, %v259_v54  ;;  %vm315_vm7 = vcmask 1047590  }
  0xba   : > { %v280_v55 = vpop.permute.xlu1 %279  ;;  %v278_v56 = vpop.permute.xlu0 %277  ;;  %v462_v57 = vld [vmem:[#allocation2 + $0x10] sm:$0xff] }
  0xbb   : > { %v282_v58 = vsel %vm281_vm1, %v278_v56, %v280_v55  ;;  %286 = vst.msk [vmem:[#allocation2] sm:$0xc] %vm285_vm8, %v278_v56  ;;  %v463_v59 = vld [vmem:[#allocation2 + $0x18] sm:$0xff]  ;;  %vm727_vm8 = vcmp.eq.s32.totalorder %v700_v17, %v7454_v14 }
  0xbc   : > { %922 = vst.msk [vmem:[#allocation2 + $0x10] sm:$0xff] %vm258_vm12, %v7143_v3  ;;  %516 = vmatprep.subr.mxu0 %v463_v59 }
  0xbd   : > { %288 = vst.msk [vmem:[#allocation2 + $0x8] sm:$0xc] %vm287_vm10, %v282_v58  ;;  %517 = vmatpush1.msra.mxu0 %v462_v57  ;;  %vm468_vm10 = vcmask 252928  }
  0xbe   : > { %v295_v60 = vpop.permute.xlu1 %294  ;;  %v293_v61 = vpop.permute.xlu0 %292 }
  0xbf   : > { %v297_v62 = vsel %vm296_vm3, %v293_v61, %v295_v60  ;;  %301 = vst.msk [vmem:[#allocation2] sm:$0x30] %vm300_vm15, %v293_v61  ;;  %vm726_vm15 = vcmp.eq.s32.totalorder %v7465_v0, %v7454_v14 }
  0xc0   : > { %303 = vst.msk [vmem:[#allocation2 + $0x8] sm:$0x30] %vm302_vm0, %v297_v62  ;;  %vm729_vm0 = vcmp.eq.s32.totalorder %v702_v15, %v7454_v14 }
  0xc2   : > { %v310_v63 = vpop.permute.xlu1 %309  ;;  %v308_v1 = vpop.permute.xlu0 %307 }
  0xc3   : > { %v312_v2 = vsel %vm311_vm5, %v308_v1, %v310_v63  ;;  %316 = vst.msk [vmem:[#allocation2] sm:$0xc0] %vm315_vm7, %v308_v1  ;;  %vm725_vm7 = vcmp.eq.s32.totalorder %v7471_v18, %v7454_v14 }
  0xc4   : > { %318 = vst.msk [vmem:[#allocation2 + $0x8] sm:$0xc0] %vm317_vm14, %v312_v2  ;;  %vm730_vm14 = vcmp.eq.s32.totalorder %v703_v13, %v7454_v14 }
  0xc5   : > { %6034 = vmatpush1.msk.msra.mxu1 %vm730_vm14, %v7146_v12  ;;  %vm724_vm14 = vcmp.eq.s32.totalorder %v7478_v19, %v7454_v14 }
  0xc6   : > { %806 = vmatprep.subr.mxu1 %v7143_v3 }
  0xc7   : > { %6035 = vmatpush1.msk.msra.mxu1 %vm729_vm0, %v7146_v12  ;;  %vm723_vm0 = vcmp.eq.s32.totalorder %v7485_v20, %v7454_v14 }
  0xc8   : > { %808 = vmatprep.subr.mxu1 %v7143_v3 }
  0xc9   : > { %6036 = vmatpush1.msk.msra.mxu1 %vm728_vm4, %v7146_v12  ;;  %vm722_vm4 = vcmp.eq.s32.totalorder %v7492_v21, %v7454_v14 }
  0xca   : > { %v460_v5 = vld [vmem:[#allocation2] sm:$0xff]  ;;  %810 = vmatprep.subr.mxu1 %v7143_v3 }
  0xcb   : > { %v461_v6 = vld [vmem:[#allocation2 + $0x8] sm:$0xff]  ;;  %921 = vst.msk [vmem:[#allocation2] sm:$0xff] %vm258_vm12, %v7143_v3  ;;  %6037 = vmatpush1.msk.msra.mxu1 %vm727_vm8, %v7146_v12  ;;  %vm721_vm8 = vcmp.eq.s32.totalorder %v7499_v22, %v7454_v14 }
  0xcc   : > { %518 = vmatprep.subr.mxu0 %v461_v6  ;;  %812 = vmatprep.subr.mxu1 %v7143_v3 }
  0xcd   : > { %519 = vmatpush1.msra.mxu0 %v460_v5  ;;  %6038 = vmatpush1.msk.msra.mxu1 %vm726_vm15, %v7146_v12  ;;  %vm720_vm15 = vcmp.eq.s32.totalorder %v7506_v23, %v7454_v14 }
  0xce   : > { %6006 = vmatmul.mubr.msk.f32.vlgmr.msra.gmra.mxu0 %vm468_vm10, %v239_v7  ;;  %814 = vmatprep.subr.mxu1 %v7143_v3 }
  0xcf   : > { %558 = vmatprep.mubr.f32.mxu0 %v7143_v3  ;;  %6039 = vmatpush1.msk.msra.mxu1 %vm725_vm7, %v7146_v12  ;;  %vm719_vm7 = vcmp.eq.s32.totalorder %v7513_v24, %v7454_v14  ;;  %v589_v35 = vpop.permute.xlu0 %588 }
  0xd0   : > { %816 = vmatprep.subr.mxu1 %v7143_v3 }
  0xd1   : > { %6040 = vmatpush1.msk.msra.mxu1 %vm724_vm14, %v7146_v12  ;;  %vm718_vm14 = vcmp.eq.s32.totalorder %v7520_v25, %v7454_v14 }
  0xd2   : > { %6007 = vmatmul.mubr.msk.f32.gmra.mxu0 %vm468_vm10, %v240_v8  ;;  %818 = vmatprep.subr.mxu1 %v7143_v3 }
  0xd3   : > { %564 = vmatprep.mubr.f32.mxu0 %v7143_v3  ;;  %6041 = vmatpush1.msk.msra.mxu1 %vm723_vm0, %v7146_v12  ;;  %vm717_vm0 = vcmp.eq.s32.totalorder %v7527_v26, %v7454_v14 }
  0xd4   : > { %820 = vmatprep.subr.mxu1 %v7143_v3 }
  0xd5   : > { %6042 = vmatpush1.msk.msra.mxu1 %vm722_vm4, %v7146_v12  ;;  %vm716_vm4 = vcmp.eq.s32.totalorder %v7534_v27, %v7454_v14 }
  0xd6   : > { %6008 = vmatmul.mubr.msk.f32.gmra.mxu0 %vm468_vm10, %v241_v9  ;;  %822 = vmatprep.subr.mxu1 %v7143_v3 }
  0xd7   : > { %570 = vmatprep.mubr.f32.mxu0 %v7143_v3  ;;  %6043 = vmatpush1.msk.msra.mxu1 %vm721_vm8, %v7146_v12  ;;  %vm715_vm8 = vcmp.eq.s32.totalorder %v7252_v4, %v7454_v14 }
  0xd8   : > { %824 = vmatprep.subr.mxu1 %v7143_v3 }
  0xd9   : > { %6044 = vmatpush1.msk.msra.mxu1 %vm720_vm15, %v7146_v12  ;;  %vm738_vm15 = vcmp.eq.s32.totalorder %v711_v28, %v7454_v14 }
  0xda   : > { %6009 = vmatmul.mubr.msk.f32.gmra.mxu0 %vm468_vm10, %v242_v10  ;;  %826 = vmatprep.subr.mxu1 %v7143_v3  ;;  %v6033_v29 = vsel %vm738_vm15, 1.0, %v7143_v3  ;;  %vm733_vm15 = vcmp.eq.s32.totalorder %v706_v36, %v7454_v14 }
  0xdb   : > { %6045 = vmatpush1.msk.msra.mxu1 %vm719_vm7, %v7146_v12  ;;  %vm9914_vm7 = vcmask 1045504  }
  0xdc   : > { %828 = vmatprep.subr.mxu1 %v7143_v3 }
  0xdd   : > { %6046 = vmatpush1.msk.msra.mxu1 %vm718_vm14, %v7146_v12  ;;  %vm737_vm14 = vcmp.eq.s32.totalorder %v710_v30, %v7454_v14 }
  0xde   : > { %830 = vmatprep.subr.mxu1 %v7143_v3 }
  0xdf   : > { %6047 = vmatpush1.msk.msra.mxu1 %vm717_vm0, %v7146_v12  ;;  %vm736_vm0 = vcmp.eq.s32.totalorder %v709_v31, %v7454_v14 }
  0xe0   : > { %832 = vmatprep.subr.mxu1 %v7143_v3 }
  0xe1   : > { %6048 = vmatpush1.msk.msra.mxu1 %vm716_vm4, %v7146_v12  ;;  %vm735_vm4 = vcmp.eq.s32.totalorder %v708_v32, %v7454_v14 }
  0xe2   : > { %834 = vmatprep.subr.mxu1 %v7143_v3 }
  0xe3   : > { %6049 = vmatpush1.msk.msra.mxu1 %vm715_vm8, %v7146_v12  ;;  %vm734_vm8 = vcmp.eq.s32.totalorder %v707_v33, %v7454_v14 }
  0xe4   : > { %852 = vmatprep.subr.mxu1 %v7143_v3 }
  0xe5   : > { %6050 = vmatpush2.msk.msra.mxu1 %vm9914_vm7, %v6033_v29  ;;  %vm2095_vm7 = vcmask 261368  }
  0xe6   : > { %854 = vmatprep.subr.mxu1 %v7143_v3  ;;  %2103 = vst.msk [vmem:[#allocation2 + $0x470] sm:$0xff] %vm2095_vm7, %v7143_v3  ;;  %2096 = vst.msk [vmem:[#allocation2 + $0x400] sm:$0xff] %vm2095_vm7, %v7143_v3 }
  0xe7   : > { %6051 = vmatpush2.msk.msra.mxu1 %vm737_vm14, %v7146_v12  ;;  %2097 = vst.msk [vmem:[#allocation2 + $0x410] sm:$0xff] %vm2095_vm7, %v7143_v3  ;;  %2098 = vst.msk [vmem:[#allocation2 + $0x420] sm:$0xff] %vm2095_vm7, %v7143_v3 }
  0xe8   : > { %856 = vmatprep.subr.mxu1 %v7143_v3  ;;  %2099 = vst.msk [vmem:[#allocation2 + $0x430] sm:$0xff] %vm2095_vm7, %v7143_v3  ;;  %2100 = vst.msk [vmem:[#allocation2 + $0x440] sm:$0xff] %vm2095_vm7, %v7143_v3 }
  0xe9   : > { %6052 = vmatpush2.msk.msra.mxu1 %vm736_vm0, %v7146_v12  ;;  %2101 = vst.msk [vmem:[#allocation2 + $0x450] sm:$0xff] %vm2095_vm7, %v7143_v3  ;;  %2102 = vst.msk [vmem:[#allocation2 + $0x460] sm:$0xff] %vm2095_vm7, %v7143_v3  ;;  %vm4448_vm7 = vcmask 401408  }
  0xea   : > { %858 = vmatprep.subr.mxu1 %v7143_v3 }
  0xeb   : > { %6053 = vmatpush2.msk.msra.mxu1 %vm735_vm4, %v7146_v12  ;;  %vm732_vm4 = vcmp.eq.s32.totalorder %v705_v38, %v7454_v14 }
  0xec   : > { %860 = vmatprep.subr.mxu1 %v7143_v3 }
  0xed   : > { %6054 = vmatpush2.msk.msra.mxu1 %vm734_vm8, %v7146_v12 }
  0xee   : > { %862 = vmatprep.subr.mxu1 %v7143_v3 }
  0xef   : > { %6055 = vmatpush2.msk.msra.mxu1 %vm733_vm15, %v7146_v12  ;;  %vm731_vm15 = vcmp.eq.s32.totalorder %v704_v42, %v7454_v14 }
  0xf0   : > { %864 = vmatprep.subr.mxu1 %v7143_v3 }
  0xf1   : > { %6056 = vmatpush2.msk.msra.mxu1 %vm732_vm4, %v7146_v12 }
  0xf2   : > { %866 = vmatprep.subr.mxu1 %v7143_v3 }
  0xf3   : > { %6057 = vmatpush2.msk.msra.mxu1 %vm731_vm15, %v7146_v12 }
 0x18e   : > { %v554_v34 = vpop.f32.mrf.mxu0 }
 0x18f   : > { %v591_v40 = vmul.f32 %v589_v35, %v554_v34  ;;  %vm578_vm0 = vcmp.ge.f32.partialorder %v554_v34, 0.0 }
 0x190   : > { %v556_v37 = vpop.f32.mrf.mxu0 }
 0x191   : > { %v592_v39 = vmul.f32 %v589_v35, %v556_v37  ;;  %vm579_vm14 = vcmp.ge.f32.partialorder %v556_v37, 0.0  ;;  %v599_v47 = vsel %vm578_vm0, %v554_v34, %v591_v40 }
 0x192   : > { %v560_v41 = vpop.f32.mrf.mxu0 }
 0x193   : > { %vm580_vm8 = vcmp.ge.f32.partialorder %v560_v41, 0.0  ;;  %v593_v43 = vmul.f32 %v589_v35, %v560_v41  ;;  %v600_v44 = vsel %vm579_vm14, %v556_v37, %v592_v39 }
 0x194   : > { %v562_v45 = vpop.f32.mrf.mxu0  ;;  %617 = vrot.lane.b32.xlu1 %v600_v44, %s7148_s13 }
 0x195   : > { %v7584_v46 = vsel %vm580_vm8, %v560_v41, %v593_v43  ;;  %v594_v50 = vmul.f32 %v589_v35, %v562_v45  ;;  %vm581_vm14 = vcmp.ge.f32.partialorder %v562_v45, 0.0 }
 0x196   : > { %v566_v48 = vpop.f32.mrf.mxu0  ;;  %v7068_v49 = vpack.i.bf16 %v7584_v46, %v599_v47 }
 0x197   : > { %v595_v53 = vmul.f32 %v589_v35, %v566_v48  ;;  %v602_v55 = vsel %vm581_vm14, %v562_v45, %v594_v50  ;;  %vm582_vm4 = vcmp.ge.f32.partialorder %v566_v48, 0.0  ;;  %vm787_vm14 = vcmask 506880  }
 0x198   : > { %v568_v51 = vpop.f32.mrf.mxu0  ;;  %653 = vrot.lane.b32.xlu1 %v600_v44, %s9898_s14  ;;  %7069 = vrot.lane.b32.xlu0 %v7068_v49, %s9898_s14 }
 0x199   : > { %v596_v56 = vmul.f32 %v589_v35, %v568_v51  ;;  %v603_v58 = vsel %vm582_vm4, %v566_v48, %v595_v53  ;;  %vm583_vm0 = vcmp.ge.f32.partialorder %v568_v51, 0.0  ;;  %vm1120_vm4 = vcmask 523752  }
 0x19a   : > { %v572_v52 = vpop.f32.mrf.mxu0  ;;  %1123 = vst.msk [vmem:[#allocation2 + $0x2a0] sm:$0xff] %vm1120_vm4, %v7143_v3  ;;  %1121 = vst.msk [vmem:[#allocation2 + $0x280] sm:$0xff] %vm1120_vm4, %v7143_v3 }
 0x19b   : > { %v597_v54 = vmul.f32 %v589_v35, %v572_v52  ;;  %vm584_vm8 = vcmp.ge.f32.partialorder %v572_v52, 0.0  ;;  %v604_v62 = vsel %vm583_vm0, %v568_v51, %v596_v56  ;;  %1122 = vst.msk [vmem:[#allocation2 + $0x290] sm:$0xff] %vm1120_vm4, %v7143_v3  ;;  %1124 = vst.msk [vmem:[#allocation2 + $0x2b0] sm:$0xff] %vm1120_vm4, %v7143_v3  ;;  %vm1077_vm0 = vcmask 523768  }
 0x19c   : > { %621 = vrot.lane.b32.xlu0 %v602_v55, %s7148_s13  ;;  %7064 = vrot.lane.b32.xlu1 %v7068_v49, %s7148_s13  ;;  %v574_v59 = vpop.f32.mrf.mxu0  ;;  %1080 = vst.msk [vmem:[#allocation2 + $0x220] sm:$0xff] %vm1077_vm0, %v7143_v3  ;;  %1078 = vst.msk [vmem:[#allocation2 + $0x200] sm:$0xff] %vm1077_vm0, %v7143_v3  ;;  %vm1186_vm4 = vcmask 523728  }
 0x19d   : > { %v7592_v57 = vsel %vm584_vm8, %v572_v52, %v597_v54  ;;  %v598_v61 = vmul.f32 %v589_v35, %v574_v59  ;;  %vm585_vm15 = vcmp.ge.f32.partialorder %v574_v59, 0.0  ;;  %vm1099_vm8 = vcmask 523760   ;;  %1079 = vst.msk [vmem:[#allocation2 + $0x210] sm:$0xff] %vm1077_vm0, %v7143_v3  ;;  %1081 = vst.msk [vmem:[#allocation2 + $0x230] sm:$0xff] %vm1077_vm0, %v7143_v3 }
 0x19e   : > { %v7073_v60 = vpack.i.bf16 %v7592_v57, %v603_v58  ;;  %1102 = vst.msk [vmem:[#allocation2 + $0x260] sm:$0xff] %vm1099_vm8, %v7143_v3  ;;  %1100 = vst.msk [vmem:[#allocation2 + $0x240] sm:$0xff] %vm1099_vm8, %v7143_v3  ;;  %vm1067_vm0 = vcmask 523272  }
 0x19f   : > { %v606_v63 = vsel %vm585_vm15, %v574_v59, %v598_v61  ;;  %1101 = vst.msk [vmem:[#allocation2 + $0x250] sm:$0xff] %vm1099_vm8, %v7143_v3  ;;  %1103 = vst.msk [vmem:[#allocation2 + $0x270] sm:$0xff] %vm1099_vm8, %v7143_v3  ;;  %vm1208_vm15 = vcmask 523720   ;;  %vm1164_vm8 = vcmask 523736  }
 0x1a0   : > { %659 = vrot.lane.b32.xlu0 %v603_v58, %s9898_s14  ;;  %657 = vrot.lane.b32.xlu1 %v602_v55, %s9898_s14  ;;  %1211 = vst.msk [vmem:[#allocation2 + $0x3a0] sm:$0xff] %vm1208_vm15, %v7143_v3  ;;  %1209 = vst.msk [vmem:[#allocation2 + $0x380] sm:$0xff] %vm1208_vm15, %v7143_v3 }
 0x1a1   : > { %1210 = vst.msk [vmem:[#allocation2 + $0x390] sm:$0xff] %vm1208_vm15, %v7143_v3  ;;  %1212 = vst.msk [vmem:[#allocation2 + $0x3b0] sm:$0xff] %vm1208_vm15, %v7143_v3  ;;  %vm1004_vm15 = vcmask 523296  }
 0x1a2   : > { %1189 = vst.msk [vmem:[#allocation2 + $0x360] sm:$0xff] %vm1186_vm4, %v7143_v3  ;;  %1187 = vst.msk [vmem:[#allocation2 + $0x340] sm:$0xff] %vm1186_vm4, %v7143_v3 }
 0x1a3   : > { %1188 = vst.msk [vmem:[#allocation2 + $0x350] sm:$0xff] %vm1186_vm4, %v7143_v3  ;;  %1190 = vst.msk [vmem:[#allocation2 + $0x370] sm:$0xff] %vm1186_vm4, %v7143_v3  ;;  %vm962_vm4 = vcmask 523312  }
 0x1a4   : > { %7074 = vrot.lane.b32.xlu0 %v7073_v60, %s7148_s13  ;;  %625 = vrot.lane.b32.xlu1 %v604_v62, %s7148_s13  ;;  %1167 = vst.msk [vmem:[#allocation2 + $0x320] sm:$0xff] %vm1164_vm8, %v7143_v3  ;;  %1165 = vst.msk [vmem:[#allocation2 + $0x300] sm:$0xff] %vm1164_vm8, %v7143_v3 }
 0x1a5   : > { %1166 = vst.msk [vmem:[#allocation2 + $0x310] sm:$0xff] %vm1164_vm8, %v7143_v3  ;;  %1168 = vst.msk [vmem:[#allocation2 + $0x330] sm:$0xff] %vm1164_vm8, %v7143_v3  ;;  %vm1046_vm8 = vcmask 523280  }
 0x1a8   : > { %629 = vrot.lane.b32.xlu0 %v606_v63, %s7148_s13  ;;  %661 = vrot.lane.b32.xlu1 %v604_v62, %s9898_s14 }
 0x1ac   : > { %665 = vrot.lane.b32.xlu0 %v606_v63, %s9898_s14  ;;  %663 = vrot.lane.b32.xlu1 %v7592_v57, %s9898_s14 }
 0x206   : > { %v618_v1 = vpop.permute.xlu1 %617 }
 0x207   : > { %v644_v2 = vmax.f32 %v600_v44, %v618_v1 }
 0x20a   : > { %v654_v5 = vpop.permute.xlu1 %653  ;;  %v7070_v6 = vpop.permute.xlu0 %7069 }
 0x20b   : > { %v680_v7 = vmax.f32 %v644_v2, %v654_v5  ;;  %v7071_v10 = vunpack.i.l.bf16 %v7070_v6  ;;  %v7072_v30 = vunpack.i.h.bf16 %v7070_v6 }
 0x20d   : > { %6058 = vmatprep.mubr.msk.f32.mxu1 %vm787_vm14, %v680_v7  ;;  %v667_v32 = vsel %vm381_vm6, %v7071_v10, %v654_v5 }
 0x20e   : > { %v622_v8 = vpop.permute.xlu0 %621  ;;  %v7065_v9 = vpop.permute.xlu1 %7064 }
 0x20f   : > { %v7067_v13 = vunpack.i.h.bf16 %v7065_v9  ;;  %v7066_v14 = vunpack.i.l.bf16 %v7065_v9  ;;  %v646_v31 = vmax.f32 %v602_v55, %v622_v8  ;;  %v890_v9 = vld [vmem:[%s9884_s3 + $0x8] sm:$0xff] }
 0x210   : > { %1386 = vmatprep.mubr.f32.mxu0 %v890_v9 }
 0x211   : > { %v631_v15 = vsel %vm368_vm2, %v7066_v14, %v618_v1  ;;  %v632_v16 = vsel %vm368_vm2, %v7067_v13, %v622_v8 }
 0x212   : > { %v660_v17 = vpop.permute.xlu0 %659  ;;  %v658_v28 = vpop.permute.xlu1 %657  ;;  %v643_v29 = vmax.f32 %v599_v47, %v631_v15  ;;  %v645_v34 = vmax.f32 %v7584_v46, %v632_v16 }
 0x213   : > { %v668_v35 = vsel %vm381_vm6, %v7072_v30, %v658_v28  ;;  %v682_v36 = vmax.f32 %v646_v31, %v658_v28 }
 0x214   : > { %v679_v33 = vmax.f32 %v643_v29, %v667_v32  ;;  %v681_v40 = vmax.f32 %v645_v34, %v668_v35 }
 0x216   : > { %v7075_v37 = vpop.permute.xlu0 %7074  ;;  %v626_v38 = vpop.permute.xlu1 %625  ;;  %869 = vmatmul.mubr.f32.vlgmr.msra.gmra.mxu1 %v679_v33 }
 0x217   : > { %v7076_v39 = vunpack.i.l.bf16 %v7075_v37  ;;  %6059 = vmatprep.mubr.msk.f32.mxu1 %vm787_vm14, %v682_v36  ;;  %v7077_v41 = vunpack.i.h.bf16 %v7075_v37  ;;  %v648_v43 = vmax.f32 %v604_v62, %v626_v38 }
 0x219   : > { %v633_v42 = vsel %vm368_vm2, %v7076_v39, %v626_v38 }
 0x21a   : > { %v647_v44 = vmax.f32 %v603_v58, %v633_v42  ;;  %v630_v45 = vpop.permute.xlu0 %629  ;;  %v662_v47 = vpop.permute.xlu1 %661  ;;  %874 = vmatmul.mubr.f32.gmra.mxu1 %v681_v40  ;;  %v1532_v42 = vld [vmem:[%s9883_s2 + $0x5d0] ss:$0 sm:$0xff] }
 0x21b   : > { %v634_v46 = vsel %vm368_vm2, %v7077_v41, %v630_v45  ;;  %v669_v48 = vsel %vm381_vm6, %v660_v17, %v662_v47  ;;  %v684_v49 = vmax.f32 %v648_v43, %v662_v47  ;;  %v650_v51 = vmax.f32 %v606_v63, %v630_v45 }
 0x21c   : > { %v683_v50 = vmax.f32 %v647_v44, %v669_v48  ;;  %v649_v52 = vmax.f32 %v7592_v57, %v634_v46  ;;  %vm1072_vm2 = vcmask 523264  }
 0x21d   : > { %6060 = vmatprep.mubr.msk.f32.mxu1 %vm787_vm14, %v684_v49 }
 0x21e   : > { %v666_v53 = vpop.permute.xlu0 %665  ;;  %v664_v54 = vpop.permute.xlu1 %663  ;;  %879 = vmatmul.mubr.f32.gmra.mxu1 %v683_v50 }
 0x21f   : > { %v686_v55 = vmax.f32 %v650_v51, %v666_v53  ;;  %v670_v56 = vsel %vm381_vm6, %v664_v54, %v666_v53  ;;  %vm1142_vm6 = vcmask 523744  }
 0x220   : > { %v685_v58 = vmax.f32 %v649_v52, %v670_v56  ;;  %1145 = vst.msk [vmem:[#allocation2 + $0x2e0] sm:$0xff] %vm1142_vm6, %v7143_v3  ;;  %1143 = vst.msk [vmem:[#allocation2 + $0x2c0] sm:$0xff] %vm1142_vm6, %v7143_v3 }
 0x221   : > { %6061 = vmatprep.mubr.msk.f32.mxu1 %vm787_vm14, %v686_v55  ;;  %1144 = vst.msk [vmem:[#allocation2 + $0x2d0] sm:$0xff] %vm1142_vm6, %v7143_v3  ;;  %1146 = vst.msk [vmem:[#allocation2 + $0x2f0] sm:$0xff] %vm1142_vm6, %v7143_v3  ;;  %vm1230_vm6 = vcmask 516096  }
 0x222   : > { %884 = vmatmul.mubr.f32.gmra.mxu1 %v685_v58  ;;  %1231 = vst.msk [vmem:[#allocation2 + $0x3c0] sm:$0x1] %vm1230_vm6, %v7146_v12  ;;  %vm983_vm6 = vcmask 523304  }
 0x2d6   : > { %v7618_v59 = vpop.f32.mrf.mxu1 }
 0x2d7   : > { %1055 = vrot.lane.b32.xlu1 %v7618_v59, %s9900_s25  ;;  %992 = vrot.lane.b32.xlu0 %v7618_v59, %s9910_s8  ;;  %1073 = vst.msk [vmem:[#allocation2 + $0x1c0] sm:$0xff] %vm1072_vm2, %v7618_v59 }
 0x2d8   : > { %v872_v57 = vpop.f32.mrf.mxu1 }
 0x2da   : > { %v7626_v60 = vpop.f32.mrf.mxu1 }
 0x2db   : > { %971 = vrot.lane.b32.xlu0 %v7618_v59, %s9906_s7  ;;  %994 = vrot.lane.b32.xlu1 %v7626_v60, %s9910_s8  ;;  %1074 = vst.msk [vmem:[#allocation2 + $0x1d0] sm:$0xff] %vm1072_vm2, %v7626_v60 }
 0x2dc   : > { %v877_v61 = vpop.f32.mrf.mxu1 }
 0x2de   : > { %v7634_v62 = vpop.f32.mrf.mxu1  ;;  %v7636_v63 = vld [vmem:[#allocation2 + $0x1c0] sm:$0xff] }
 0x2df   : > { %973 = vrot.lane.b32.xlu0 %v7626_v60, %s9906_s7  ;;  %1057 = vrot.lane.b32.xlu1 %v7626_v60, %s9900_s25  ;;  %1075 = vst.msk [vmem:[#allocation2 + $0x1e0] sm:$0xff] %vm1072_vm2, %v7634_v62 }
 0x2e0   : > { %1926 = vst.msk [vmem:[#allocation2 + $0x1c0] sm:$0xff] %vm311_vm5, %v7143_v3  ;;  %v882_v1 = vpop.f32.mrf.mxu1 }
 0x2e2   : > { %v7646_v2 = vpop.f32.mrf.mxu1  ;;  %v7648_v5 = vld [vmem:[#allocation2 + $0x1d0] sm:$0xff] }
 0x2e3   : > { %952 = vrot.lane.b32.xlu0 %v7626_v60, %s7156_s6  ;;  %1036 = vrot.lane.b32.xlu1 %v7626_v60, %s9902_s23  ;;  %1076 = vst.msk [vmem:[#allocation2 + $0x1f0] sm:$0xff] %vm1072_vm2, %v7646_v2 }
 0x2e4   : > { %1927 = vst.msk [vmem:[#allocation2 + $0x1d0] sm:$0xff] %vm311_vm5, %v7143_v3  ;;  %v887_v6 = vpop.f32.mrf.mxu1 }
 0x2e6   : > { %v7658_v7 = vld [vmem:[#allocation2 + $0x1e0] sm:$0xff] }
 0x2e7   : > { %1059 = vrot.lane.b32.xlu1 %v7634_v62, %s9900_s25  ;;  %996 = vrot.lane.b32.xlu0 %v7634_v62, %s9910_s8  ;;  %1928 = vst.msk [vmem:[#allocation2 + $0x1e0] sm:$0xff] %vm311_vm5, %v7143_v3 }
 0x2ea   : > { %v1263_v8 = vld [vmem:[#allocation2 + $0x1f0] sm:$0xff] }
 0x2eb   : > { %1038 = vrot.lane.b32.xlu1 %v7634_v62, %s9902_s23  ;;  %975 = vrot.lane.b32.xlu0 %v7634_v62, %s9906_s7  ;;  %1929 = vst.msk [vmem:[#allocation2 + $0x1f0] sm:$0xff] %vm311_vm5, %v7143_v3 }
 0x2ec   : > { %6324 = vmatprep.subr.mxu0 %v1263_v8 }
 0x2ef   : > { %954 = vrot.lane.b32.xlu0 %v7634_v62, %s7156_s6  ;;  %998 = vrot.lane.b32.xlu1 %v7646_v2, %s9910_s8  ;;  %s9936_s8 = smov 7  }
 0x2f3   : > { %977 = vrot.lane.b32.xlu0 %v7646_v2, %s9906_s7  ;;  %1061 = vrot.lane.b32.xlu1 %v7646_v2, %s9900_s25  ;;  %s9938_s25 = smov 3  }
 0x2f7   : > { %950 = vrot.lane.b32.xlu0 %v7618_v59, %s7156_s6  ;;  %1034 = vrot.lane.b32.xlu1 %v7618_v59, %s9902_s23 }
 0x2fb   : > { %956 = vrot.lane.b32.xlu0 %v7646_v2, %s7156_s6  ;;  %1040 = vrot.lane.b32.xlu1 %v7646_v2, %s9902_s23  ;;  %s9937_s23 = smov 5  }
 0x2ff   : > { %933 = vrot.lane.b32.xlu0 %v7634_v62, %s9908_s26  ;;  %1017 = vrot.lane.b32.xlu1 %v7634_v62, %s9904_s17 }
 0x303   : > { %935 = vrot.lane.b32.xlu0 %v7646_v2, %s9908_s26  ;;  %1019 = vrot.lane.b32.xlu1 %v7646_v2, %s9904_s17 }
 0x307   : > { %931 = vrot.lane.b32.xlu0 %v7626_v60, %s9908_s26  ;;  %1015 = vrot.lane.b32.xlu1 %v7626_v60, %s9904_s17 }
 0x30b   : > { %929 = vrot.lane.b32.xlu0 %v7618_v59, %s9908_s26  ;;  %1013 = vrot.lane.b32.xlu1 %v7618_v59, %s9904_s17  ;;  %s9935_s26 = smov 4   ;;  %s9941_s17 = smov 126  }
 0x30f   : > { %1151 = vrot.lane.b32.xlu0 %v7634_v62, %s9928_s15  ;;  %1153 = vrot.lane.b32.xlu1 %v7646_v2, %s9928_s15 }
 0x313   : > { %1147 = vrot.lane.b32.xlu0 %v7618_v59, %s9928_s15  ;;  %1149 = vrot.lane.b32.xlu1 %v7626_v60, %s9928_s15 }
 0x317   : > { %1129 = vrot.lane.b32.xlu0 %v7634_v62, %s9929_s16  ;;  %1131 = vrot.lane.b32.xlu1 %v7646_v2, %s9929_s16 }
 0x31b   : > { %1125 = vrot.lane.b32.xlu0 %v7618_v59, %s9929_s16  ;;  %1127 = vrot.lane.b32.xlu1 %v7626_v60, %s9929_s16 }
 0x31f   : > { %1108 = vrot.lane.b32.xlu0 %v7634_v62, %s9898_s14  ;;  %1110 = vrot.lane.b32.xlu1 %v7646_v2, %s9898_s14 }
 0x323   : > { %1104 = vrot.lane.b32.xlu0 %v7618_v59, %s9898_s14  ;;  %1106 = vrot.lane.b32.xlu1 %v7626_v60, %s9898_s14  ;;  %s9939_s14 = smov 2  }
 0x327   : > { %1086 = vrot.lane.b32.xlu0 %v7634_v62, %s7148_s13  ;;  %1088 = vrot.lane.b32.xlu1 %v7646_v2, %s7148_s13 }
 0x32b   : > { %1082 = vrot.lane.b32.xlu0 %v7618_v59, %s7148_s13  ;;  %1084 = vrot.lane.b32.xlu1 %v7626_v60, %s7148_s13 }
 0x32f   : > { %1217 = vrot.lane.b32.xlu0 %v7634_v62, %s9930_s11  ;;  %1219 = vrot.lane.b32.xlu1 %v7646_v2, %s9930_s11 }
 0x333   : > { %1213 = vrot.lane.b32.xlu0 %v7618_v59, %s9930_s11  ;;  %1215 = vrot.lane.b32.xlu1 %v7626_v60, %s9930_s11 }
 0x337   : > { %1195 = vrot.lane.b32.xlu0 %v7634_v62, %s9931_s9  ;;  %1197 = vrot.lane.b32.xlu1 %v7646_v2, %s9931_s9 }
 0x33b   : > { %1191 = vrot.lane.b32.xlu0 %v7618_v59, %s9931_s9  ;;  %1193 = vrot.lane.b32.xlu1 %v7626_v60, %s9931_s9 }
 0x33f   : > { %1173 = vrot.lane.b32.xlu0 %v7634_v62, %s9932_s10  ;;  %1175 = vrot.lane.b32.xlu1 %v7646_v2, %s9932_s10 }
 0x343   : > { %1169 = vrot.lane.b32.xlu0 %v7618_v59, %s9932_s10  ;;  %1171 = vrot.lane.b32.xlu1 %v7626_v60, %s9932_s10 }
 0x347   : > { %1543 = vperm.xlu1 %7078, %v1532_v42  }
 0x349   : > { %v1056_v10 = vpop.permute.xlu1 %1055  ;;  %v993_v13 = vpop.permute.xlu0 %992 }
 0x34a   : > { %1068 = vst.msk [vmem:[#allocation2 + $0x180] sm:$0xff] %vm1067_vm0, %v1056_v10 }
 0x34b   : > { %1005 = vst.msk [vmem:[#allocation2 + $0xc0] sm:$0xff] %vm1004_vm15, %v993_v13 }
 0x34d   : > { %v972_v14 = vpop.permute.xlu0 %971  ;;  %v995_v15 = vpop.permute.xlu1 %994 }
 0x34e   : > { %984 = vst.msk [vmem:[#allocation2 + $0x80] sm:$0xff] %vm983_vm6, %v972_v14 }
 0x34f   : > { %1006 = vst.msk [vmem:[#allocation2 + $0xd0] sm:$0xff] %vm1004_vm15, %v995_v15 }
 0x351   : > { %v974_v16 = vpop.permute.xlu0 %973  ;;  %v1058_v17 = vpop.permute.xlu1 %1057  ;;  %v7798_v29 = vld [vmem:[#allocation2 + $0x180] sm:$0xff] }
 0x352   : > { %v7796_v28 = vld [vmem:[#allocation2 + $0xc0] sm:$0xff]  ;;  %985 = vst.msk [vmem:[#allocation2 + $0x90] sm:$0xff] %vm983_vm6, %v974_v16 }
 0x353   : > { %1069 = vst.msk [vmem:[#allocation2 + $0x190] sm:$0xff] %vm1067_vm0, %v1058_v17 }
 0x354   : > { %1844 = vst.msk [vmem:[#allocation2 + $0xc0] sm:$0xff] %vm281_vm1, %v7143_v3 }
 0x355   : > { %1922 = vst.msk [vmem:[#allocation2 + $0x180] sm:$0xff] %vm311_vm5, %v7143_v3  ;;  %v953_v30 = vpop.permute.xlu0 %952  ;;  %v1037_v31 = vpop.permute.xlu1 %1036  ;;  %v7806_v33 = vld [vmem:[#allocation2 + $0x80] sm:$0xff] }
 0x356   : > { %v1245_v32 = vld [vmem:[#allocation2 + $0xd0] sm:$0xff]  ;;  %964 = vst.msk [vmem:[#allocation2 + $0x50] sm:$0xff] %vm962_vm4, %v953_v30 }
 0x357   : > { %1048 = vst.msk [vmem:[#allocation2 + $0x150] sm:$0xff] %vm1046_vm8, %v1037_v31 }
 0x358   : > { %1845 = vst.msk [vmem:[#allocation2 + $0xd0] sm:$0xff] %vm281_vm1, %v7143_v3  ;;  %1840 = vst.msk [vmem:[#allocation2 + $0x80] sm:$0xff] %vm281_vm1, %v7143_v3 }
 0x359   : > { %v1060_v34 = vpop.permute.xlu1 %1059  ;;  %v997_v35 = vpop.permute.xlu0 %996  ;;  %v7816_v37 = vld [vmem:[#allocation2 + $0x90] sm:$0xff] }
 0x35a   : > { %v7814_v36 = vld [vmem:[#allocation2 + $0x190] sm:$0xff]  ;;  %1070 = vst.msk [vmem:[#allocation2 + $0x1a0] sm:$0xff] %vm1067_vm0, %v1060_v34  ;;  %v889_v34 = vld [vmem:[%s9884_s3] sm:$0xff] }
 0x35b   : > { %1007 = vst.msk [vmem:[#allocation2 + $0xe0] sm:$0xff] %vm1004_vm15, %v997_v35  ;;  %v894_v35 = vld [vmem:[%s9884_s3 + $0x28] sm:$0xff] }
 0x35c   : > { %1923 = vst.msk [vmem:[#allocation2 + $0x190] sm:$0xff] %vm311_vm5, %v7143_v3 }
 0x35d   : > { %1841 = vst.msk [vmem:[#allocation2 + $0x90] sm:$0xff] %vm281_vm1, %v7143_v3  ;;  %v1039_v38 = vpop.permute.xlu1 %1038  ;;  %v976_v39 = vpop.permute.xlu0 %975  ;;  %v7826_v41 = vld [vmem:[#allocation2 + $0x50] sm:$0xff] }
 0x35e   : > { %v7824_v40 = vld [vmem:[#allocation2 + $0x150] sm:$0xff]  ;;  %1049 = vst.msk [vmem:[#allocation2 + $0x160] sm:$0xff] %vm1046_vm8, %v1039_v38 }
 0x35f   : > { %986 = vst.msk [vmem:[#allocation2 + $0xa0] sm:$0xff] %vm983_vm6, %v976_v39 }
 0x360   : > { %1886 = vst.msk [vmem:[#allocation2 + $0x150] sm:$0xff] %vm296_vm3, %v7143_v3 }
 0x361   : > { %1796 = vst.msk [vmem:[#allocation2 + $0x50] sm:$0xff] %vm258_vm12, %v7143_v3  ;;  %v955_v43 = vpop.permute.xlu0 %954  ;;  %v999_v44 = vpop.permute.xlu1 %998  ;;  %v1258_v47 = vld [vmem:[#allocation2 + $0x1a0] sm:$0xff] }
 0x362   : > { %v1246_v45 = vld [vmem:[#allocation2 + $0xe0] sm:$0xff]  ;;  %965 = vst.msk [vmem:[#allocation2 + $0x60] sm:$0xff] %vm962_vm4, %v955_v43 }
 0x363   : > { %1008 = vst.msk [vmem:[#allocation2 + $0xf0] sm:$0xff] %vm1004_vm15, %v999_v44  ;;  %vm1025_vm15 = vcmask 523288  }
 0x364   : > { %1846 = vst.msk [vmem:[#allocation2 + $0xe0] sm:$0xff] %vm281_vm1, %v7143_v3 }
 0x365   : > { %1924 = vst.msk [vmem:[#allocation2 + $0x1a0] sm:$0xff] %vm311_vm5, %v7143_v3  ;;  %v978_v46 = vpop.permute.xlu0 %977  ;;  %v1062_v48 = vpop.permute.xlu1 %1061  ;;  %v7843_v50 = vld [vmem:[#allocation2 + $0x160] sm:$0xff] }
 0x366   : > { %v1242_v49 = vld [vmem:[#allocation2 + $0xa0] sm:$0xff]  ;;  %987 = vst.msk [vmem:[#allocation2 + $0xb0] sm:$0xff] %vm983_vm6, %v978_v46  ;;  %vm1137_vm6 = vcmask 498688   ;;  %v902_v46 = vld [vmem:[%s9884_s3 + $0x68] sm:$0xff] }
 0x367   : > { %1071 = vst.msk [vmem:[#allocation2 + $0x1b0] sm:$0xff] %vm1067_vm0, %v1062_v48  ;;  %vm941_vm0 = vcmask 523320  }
 0x368   : > { %1842 = vst.msk [vmem:[#allocation2 + $0xa0] sm:$0xff] %vm281_vm1, %v7143_v3 }
 0x369   : > { %1887 = vst.msk [vmem:[#allocation2 + $0x160] sm:$0xff] %vm296_vm3, %v7143_v3  ;;  %v951_v51 = vpop.permute.xlu0 %950  ;;  %v1035_v52 = vpop.permute.xlu1 %1034  ;;  %v1238_v54 = vld [vmem:[#allocation2 + $0x60] sm:$0xff] }
 0x36a   : > { %v1247_v53 = vld [vmem:[#allocation2 + $0xf0] sm:$0xff]  ;;  %963 = vst.msk [vmem:[#allocation2 + $0x40] sm:$0xff] %vm962_vm4, %v951_v51 }
 0x36b   : > { %1047 = vst.msk [vmem:[#allocation2 + $0x140] sm:$0xff] %vm1046_vm8, %v1035_v52  ;;  %6325 = vmatpush3.msra.mxu0 %v1247_v53  ;;  %v901_v52 = vld [vmem:[%s9884_s3 + $0x60] sm:$0xff]  ;;  %v906_v53 = vld [vmem:[%s9884_s3 + $0x88] sm:$0xff] }
 0x36c   : > { %1847 = vst.msk [vmem:[#allocation2 + $0xf0] sm:$0xff] %vm281_vm1, %v7143_v3  ;;  %6326 = vmatprep.subr.mxu0 %v7658_v7 }
 0x36d   : > { %1797 = vst.msk [vmem:[#allocation2 + $0x60] sm:$0xff] %vm258_vm12, %v7143_v3  ;;  %6327 = vmatpush3.msra.mxu0 %v1246_v45  ;;  %v957_v55 = vpop.permute.xlu0 %956  ;;  %v1041_v56 = vpop.permute.xlu1 %1040  ;;  %v1243_v59 = vld [vmem:[#allocation2 + $0xb0] sm:$0xff] }
 0x36e   : > { %6328 = vmatprep.subr.mxu0 %v7648_v5  ;;  %v1259_v58 = vld [vmem:[#allocation2 + $0x1b0] sm:$0xff]  ;;  %966 = vst.msk [vmem:[#allocation2 + $0x70] sm:$0xff] %vm962_vm4, %v957_v55  ;;  %vm1203_vm4 = vcmask 474112  }
 0x36f   : > { %1050 = vst.msk [vmem:[#allocation2 + $0x170] sm:$0xff] %vm1046_vm8, %v1041_v56  ;;  %6329 = vmatpush3.msra.mxu0 %v1245_v32  ;;  %vm1318_vm8 = vcmask 1040384  }
 0x370   : > { %1925 = vst.msk [vmem:[#allocation2 + $0x1b0] sm:$0xff] %vm311_vm5, %v7143_v3  ;;  %6330 = vmatprep.subr.mxu0 %v7636_v63 }
 0x371   : > { %1843 = vst.msk [vmem:[#allocation2 + $0xb0] sm:$0xff] %vm281_vm1, %v7143_v3  ;;  %6331 = vmatpush3.msra.mxu0 %v7796_v28  ;;  %v934_v57 = vpop.permute.xlu0 %933  ;;  %v1018_v60 = vpop.permute.xlu1 %1017  ;;  %v1236_v62 = vld [vmem:[#allocation2 + $0x40] sm:$0xff]  ;;  %vm1159_vm1 = vcmask 490496  }
 0x372   : > { %6332 = vmatprep.subr.mxu0 %v1259_v58  ;;  %v1252_v61 = vld [vmem:[#allocation2 + $0x140] sm:$0xff]  ;;  %944 = vst.msk [vmem:[#allocation2 + $0x20] sm:$0xff] %vm941_vm0, %v934_v57  ;;  %v910_v57 = vld [vmem:[%s9884_s3 + $0xa8] sm:$0xff] }
 0x373   : > { %1028 = vst.msk [vmem:[#allocation2 + $0x120] sm:$0xff] %vm1025_vm15, %v1018_v60  ;;  %6333 = vmatpush3.msra.mxu0 %v1243_v59  ;;  %v905_v59 = vld [vmem:[%s9884_s3 + $0x80] sm:$0xff] }
 0x374   : > { %1885 = vst.msk [vmem:[#allocation2 + $0x140] sm:$0xff] %vm296_vm3, %v7143_v3  ;;  %6334 = vmatprep.subr.mxu0 %v1258_v47  ;;  %v897_v47 = vld [vmem:[%s9884_s3 + $0x40] sm:$0xff] }
 0x375   : > { %1795 = vst.msk [vmem:[#allocation2 + $0x40] sm:$0xff] %vm258_vm12, %v7143_v3  ;;  %6335 = vmatpush3.msra.mxu0 %v1242_v49  ;;  %v936_v63 = vpop.permute.xlu0 %935  ;;  %v1020_v1 = vpop.permute.xlu1 %1019  ;;  %v1239_v5 = vld [vmem:[#allocation2 + $0x70] sm:$0xff] }
 0x376   : > { %6336 = vmatprep.subr.mxu0 %v7814_v36  ;;  %v1255_v2 = vld [vmem:[#allocation2 + $0x170] sm:$0xff]  ;;  %945 = vst.msk [vmem:[#allocation2 + $0x30] sm:$0xff] %vm941_vm0, %v936_v63 }
 0x377   : > { %1029 = vst.msk [vmem:[#allocation2 + $0x130] sm:$0xff] %vm1025_vm15, %v1020_v1  ;;  %6337 = vmatpush3.msra.mxu0 %v7816_v37  ;;  %v909_v1 = vld [vmem:[%s9884_s3 + $0xa0] sm:$0xff] }
 0x378   : > { %1888 = vst.msk [vmem:[#allocation2 + $0x170] sm:$0xff] %vm296_vm3, %v7143_v3  ;;  %6338 = vmatprep.subr.mxu0 %v7798_v29 }
 0x379   : > { %1798 = vst.msk [vmem:[#allocation2 + $0x70] sm:$0xff] %vm258_vm12, %v7143_v3  ;;  %6339 = vmatpush3.msra.mxu0 %v7806_v33  ;;  %v932_v6 = vpop.permute.xlu0 %931  ;;  %v1016_v7 = vpop.permute.xlu1 %1015  ;;  %v1234_v9 = vld [vmem:[#allocation2 + $0x20] sm:$0xff] }
 0x37a   : > { %6340 = vmatprep.subr.mxu0 %v1255_v2  ;;  %v1250_v8 = vld [vmem:[#allocation2 + $0x120] sm:$0xff]  ;;  %943 = vst.msk [vmem:[#allocation2 + $0x10] sm:$0xff] %vm941_vm0, %v932_v6  ;;  %v914_v2 = vld [vmem:[%s9884_s3 + $0xc8] sm:$0xff] }
 0x37b   : > { %1027 = vst.msk [vmem:[#allocation2 + $0x110] sm:$0xff] %vm1025_vm15, %v1016_v7  ;;  %6341 = vmatpush3.msra.mxu0 %v1239_v5 }
 0x37c   : > { %1883 = vst.msk [vmem:[#allocation2 + $0x120] sm:$0xff] %vm296_vm3, %v7143_v3  ;;  %6342 = vmatprep.subr.mxu0 %v7843_v50 }
 0x37d   : > { %1793 = vst.msk [vmem:[#allocation2 + $0x20] sm:$0xff] %vm258_vm12, %v7143_v3  ;;  %6343 = vmatpush3.msra.mxu0 %v1238_v54  ;;  %v930_v10 = vpop.permute.xlu0 %929  ;;  %v1014_v13 = vpop.permute.xlu1 %1013  ;;  %v1235_v15 = vld [vmem:[#allocation2 + $0x30] sm:$0xff] }
 0x37e   : > { %6344 = vmatprep.subr.mxu0 %v7824_v40  ;;  %v1251_v14 = vld [vmem:[#allocation2 + $0x130] sm:$0xff]  ;;  %942 = vst.msk [vmem:[#allocation2] sm:$0xff] %vm941_vm0, %v930_v10  ;;  %v893_v40 = vld [vmem:[%s9884_s3 + $0x20] sm:$0xff]  ;;  %v918_v10 = vld [vmem:[%s9884_s3 + $0xe8] sm:$0xff] }
 0x37f   : > { %1026 = vst.msk [vmem:[#allocation2 + $0x100] sm:$0xff] %vm1025_vm15, %v1014_v13  ;;  %6345 = vmatpush3.msra.mxu0 %v7826_v41  ;;  %v898_v41 = vld [vmem:[%s9884_s3 + $0x48] sm:$0xff] }
 0x380   : > { %1884 = vst.msk [vmem:[#allocation2 + $0x130] sm:$0xff] %vm296_vm3, %v7143_v3  ;;  %6346 = vmatprep.subr.mxu0 %v1252_v61 }
 0x381   : > { %1794 = vst.msk [vmem:[#allocation2 + $0x30] sm:$0xff] %vm258_vm12, %v7143_v3  ;;  %6347 = vmatpush3.msra.mxu0 %v1236_v62  ;;  %v1152_v16 = vpop.permute.xlu0 %1151  ;;  %v1154_v17 = vpop.permute.xlu1 %1153  ;;  %v1233_v29 = vld [vmem:[#allocation2 + $0x10] sm:$0xff] }
 0x382   : > { %6348 = vmatprep.subr.mxu0 %v1251_v14  ;;  %v1249_v28 = vld [vmem:[#allocation2 + $0x110] sm:$0xff]  ;;  %1162 = vst.msk [vmem:[#allocation2 + $0x2e0] sm:$0xff] %vm1159_vm1, %v1152_v16  ;;  %1163 = vst.msk [vmem:[#allocation2 + $0x2f0] sm:$0xff] %vm1159_vm1, %v1154_v17  ;;  %v917_v17 = vld [vmem:[%s9884_s3 + $0xe0] sm:$0xff] }
 0x383   : > { %6349 = vmatpush3.msra.mxu0 %v1235_v15  ;;  %1882 = vst.msk [vmem:[#allocation2 + $0x110] sm:$0xff] %vm296_vm3, %v7143_v3 }
 0x384   : > { %1792 = vst.msk [vmem:[#allocation2 + $0x10] sm:$0xff] %vm258_vm12, %v7143_v3  ;;  %6350 = vmatprep.subr.mxu0 %v1250_v8 }
 0x385   : > { %6351 = vmatpush3.msra.mxu0 %v1234_v9  ;;  %v1148_v30 = vpop.permute.xlu0 %1147  ;;  %v1150_v31 = vpop.permute.xlu1 %1149  ;;  %v1232_v33 = vld [vmem:[#allocation2] sm:$0xff] }
 0x386   : > { %6352 = vmatprep.subr.mxu0 %v1249_v28  ;;  %v1248_v32 = vld [vmem:[#allocation2 + $0x100] sm:$0xff]  ;;  %1160 = vst.msk [vmem:[#allocation2 + $0x2c0] sm:$0xff] %vm1159_vm1, %v1148_v30  ;;  %1161 = vst.msk [vmem:[#allocation2 + $0x2d0] sm:$0xff] %vm1159_vm1, %v1150_v31  ;;  %v892_v28 = vld [vmem:[%s9884_s3 + $0x18] sm:$0xff]  ;;  %vm9933_vm1 = vcmask 1046528  }
 0x387   : > { %6353 = vmatpush3.msra.mxu0 %v1233_v29  ;;  %1881 = vst.msk [vmem:[#allocation2 + $0x100] sm:$0xff] %vm296_vm3, %v7143_v3  ;;  %v913_v9 = vld [vmem:[%s9884_s3 + $0xc0] sm:$0xff] }
 0x388   : > { %1791 = vst.msk [vmem:[#allocation2] sm:$0xff] %vm258_vm12, %v7143_v3  ;;  %6354 = vmatprep.subr.mxu0 %v1248_v32  ;;  %vm1094_vm12 = vcmask 515072  }
 0x389   : > { %6355 = vmatpush3.msra.mxu0 %v1232_v33  ;;  %v1130_v36 = vpop.permute.xlu0 %1129  ;;  %v1132_v37 = vpop.permute.xlu1 %1131  ;;  %v1279_v38 = vld [vmem:[#allocation2 + $0x2f0] sm:$0xff]  ;;  %v1278_v39 = vld [vmem:[#allocation2 + $0x2e0] sm:$0xff] }
 0x38a   : > { %1387 = vmatmul.mubr.f32.vlgmr.msra.gmra.mxu0 %v889_v34  ;;  %1427 = vmatprep.subr.mxu0 %v7143_v3  ;;  %1140 = vst.msk [vmem:[#allocation2 + $0x2a0] sm:$0xff] %vm1137_vm6, %v1130_v36  ;;  %1141 = vst.msk [vmem:[#allocation2 + $0x2b0] sm:$0xff] %vm1137_vm6, %v1132_v37  ;;  %v1292_v33 = vld [vmem:[#allocation2 + $0x3c0] sm:$0x1] }
 0x38b   : > { %1428 = vmatpush1.msra.mxu0 %v1279_v38  ;;  %2011 = vst.msk [vmem:[#allocation2 + $0x2f0] sm:$0xff] %vm338_vm11, %v7143_v3  ;;  %2010 = vst.msk [vmem:[#allocation2 + $0x2e0] sm:$0xff] %vm338_vm11, %v7143_v3  ;;  %1391 = vmatprep.mubr.f32.mxu0 %v894_v35 }
 0x38c   : > { %1429 = vmatprep.subr.mxu0 %v7143_v3 }
 0x38d   : > { %1430 = vmatpush1.msra.mxu0 %v1278_v39  ;;  %v1126_v42 = vpop.permute.xlu0 %1125  ;;  %v1128_v43 = vpop.permute.xlu1 %1127  ;;  %v1277_v44 = vld [vmem:[#allocation2 + $0x2d0] sm:$0xff]  ;;  %v1276_v45 = vld [vmem:[#allocation2 + $0x2c0] sm:$0xff] }
 0x38e   : > { %1431 = vmatprep.subr.mxu0 %v7143_v3  ;;  %1392 = vmatmul.mubr.f32.gmra.mxu0 %v893_v40  ;;  %1138 = vst.msk [vmem:[#allocation2 + $0x280] sm:$0xff] %vm1137_vm6, %v1126_v42  ;;  %1139 = vst.msk [vmem:[#allocation2 + $0x290] sm:$0xff] %vm1137_vm6, %v1128_v43 }
 0x38f   : > { %1432 = vmatpush1.msra.mxu0 %v1277_v44  ;;  %2009 = vst.msk [vmem:[#allocation2 + $0x2d0] sm:$0xff] %vm338_vm11, %v7143_v3  ;;  %2008 = vst.msk [vmem:[#allocation2 + $0x2c0] sm:$0xff] %vm338_vm11, %v7143_v3  ;;  %1396 = vmatprep.mubr.f32.mxu0 %v898_v41 }
 0x390   : > { %1433 = vmatprep.subr.mxu0 %v7143_v3  ;;  %vm9934_vm6 = vmmov %vm9933_vm1 }
 0x391   : > { %1434 = vmatpush1.msra.mxu0 %v1276_v45  ;;  %v1109_v48 = vpop.permute.xlu0 %1108  ;;  %v1111_v49 = vpop.permute.xlu1 %1110  ;;  %v1275_v50 = vld [vmem:[#allocation2 + $0x2b0] sm:$0xff]  ;;  %v1274_v51 = vld [vmem:[#allocation2 + $0x2a0] sm:$0xff] }
 0x392   : > { %1435 = vmatprep.subr.mxu0 %v7143_v3  ;;  %1397 = vmatmul.mubr.f32.gmra.mxu0 %v897_v47  ;;  %1118 = vst.msk [vmem:[#allocation2 + $0x260] sm:$0xff] %vm787_vm14, %v1109_v48  ;;  %1119 = vst.msk [vmem:[#allocation2 + $0x270] sm:$0xff] %vm787_vm14, %v1111_v49 }
 0x393   : > { %1436 = vmatpush1.msra.mxu0 %v1275_v50  ;;  %2007 = vst.msk [vmem:[#allocation2 + $0x2b0] sm:$0xff] %vm338_vm11, %v7143_v3  ;;  %2006 = vst.msk [vmem:[#allocation2 + $0x2a0] sm:$0xff] %vm338_vm11, %v7143_v3  ;;  %1401 = vmatprep.mubr.f32.mxu0 %v902_v46 }
 0x394   : > { %1437 = vmatprep.subr.mxu0 %v7143_v3 }
 0x395   : > { %1438 = vmatpush1.msra.mxu0 %v1274_v51  ;;  %v1105_v54 = vpop.permute.xlu0 %1104  ;;  %v1107_v55 = vpop.permute.xlu1 %1106  ;;  %v1273_v56 = vld [vmem:[#allocation2 + $0x290] sm:$0xff]  ;;  %v1272_v58 = vld [vmem:[#allocation2 + $0x280] sm:$0xff] }
 0x396   : > { %1439 = vmatprep.subr.mxu0 %v7143_v3  ;;  %1402 = vmatmul.mubr.f32.gmra.mxu0 %v901_v52  ;;  %1116 = vst.msk [vmem:[#allocation2 + $0x240] sm:$0xff] %vm787_vm14, %v1105_v54  ;;  %1117 = vst.msk [vmem:[#allocation2 + $0x250] sm:$0xff] %vm787_vm14, %v1107_v55  ;;  %vm9913_vm14 = vcmask 793600   ;;  %v891_v54 = vld [vmem:[%s9884_s3 + $0x10] sm:$0xff]  ;;  %v896_v55 = vld [vmem:[%s9884_s3 + $0x38] sm:$0xff] }
 0x397   : > { %1440 = vmatpush1.msra.mxu0 %v1273_v56  ;;  %2005 = vst.msk [vmem:[#allocation2 + $0x290] sm:$0xff] %vm338_vm11, %v7143_v3  ;;  %2004 = vst.msk [vmem:[#allocation2 + $0x280] sm:$0xff] %vm338_vm11, %v7143_v3  ;;  %1406 = vmatprep.mubr.f32.mxu0 %v906_v53  ;;  %vm1225_vm11 = vcmask 465920   ;;  %v895_v56 = vld [vmem:[%s9884_s3 + $0x30] sm:$0xff] }
 0x398   : > { %1441 = vmatprep.subr.mxu0 %v7143_v3 }
 0x399   : > { %1442 = vmatpush1.msra.mxu0 %v1272_v58  ;;  %v1087_v60 = vpop.permute.xlu0 %1086  ;;  %v1089_v61 = vpop.permute.xlu1 %1088  ;;  %v1271_v62 = vld [vmem:[#allocation2 + $0x270] sm:$0xff]  ;;  %v1270_v63 = vld [vmem:[#allocation2 + $0x260] sm:$0xff]  ;;  %v900_v58 = vld [vmem:[%s9884_s3 + $0x58] sm:$0xff] }
 0x39a   : > { %1443 = vmatprep.subr.mxu0 %v7143_v3  ;;  %1407 = vmatmul.mubr.f32.gmra.mxu0 %v905_v59  ;;  %1097 = vst.msk [vmem:[#allocation2 + $0x220] sm:$0xff] %vm1094_vm12, %v1087_v60  ;;  %1098 = vst.msk [vmem:[#allocation2 + $0x230] sm:$0xff] %vm1094_vm12, %v1089_v61  ;;  %v899_v59 = vld [vmem:[%s9884_s3 + $0x50] sm:$0xff]  ;;  %v908_v61 = vld [vmem:[%s9884_s3 + $0x98] sm:$0xff] }
 0x39b   : > { %1444 = vmatpush1.msra.mxu0 %v1271_v62  ;;  %1970 = vst.msk [vmem:[#allocation2 + $0x270] sm:$0xff] %vm325_vm9, %v7143_v3  ;;  %1969 = vst.msk [vmem:[#allocation2 + $0x260] sm:$0xff] %vm325_vm9, %v7143_v3  ;;  %1411 = vmatprep.mubr.f32.mxu0 %v910_v57  ;;  %v904_v57 = vld [vmem:[%s9884_s3 + $0x78] sm:$0xff]  ;;  %v903_v60 = vld [vmem:[%s9884_s3 + $0x70] sm:$0xff] }
 0x39c   : > { %1445 = vmatprep.subr.mxu0 %v7143_v3  ;;  %v907_v62 = vld [vmem:[%s9884_s3 + $0x90] sm:$0xff] }
 0x39d   : > { %1446 = vmatpush1.msra.mxu0 %v1270_v63  ;;  %v1083_v5 = vpop.permute.xlu0 %1082  ;;  %v1085_v6 = vpop.permute.xlu1 %1084  ;;  %v1269_v7 = vld [vmem:[#allocation2 + $0x250] sm:$0xff]  ;;  %v1268_v8 = vld [vmem:[#allocation2 + $0x240] sm:$0xff]  ;;  %v912_v63 = vld [vmem:[%s9884_s3 + $0xb8] sm:$0xff] }
 0x39e   : > { %1447 = vmatprep.subr.mxu0 %v7143_v3  ;;  %1412 = vmatmul.mubr.f32.gmra.mxu0 %v909_v1  ;;  %1095 = vst.msk [vmem:[#allocation2 + $0x200] sm:$0xff] %vm1094_vm12, %v1083_v5  ;;  %1096 = vst.msk [vmem:[#allocation2 + $0x210] sm:$0xff] %vm1094_vm12, %v1085_v6  ;;  %v911_v1 = vld [vmem:[%s9884_s3 + $0xb0] sm:$0xff]  ;;  %v920_v6 = vld [vmem:[%s9884_s3 + $0xf8] sm:$0xff] }
 0x39f   : > { %1448 = vmatpush1.msra.mxu0 %v1269_v7  ;;  %1968 = vst.msk [vmem:[#allocation2 + $0x250] sm:$0xff] %vm325_vm9, %v7143_v3  ;;  %1967 = vst.msk [vmem:[#allocation2 + $0x240] sm:$0xff] %vm325_vm9, %v7143_v3  ;;  %1416 = vmatprep.mubr.f32.mxu0 %v914_v2  ;;  %v916_v2 = vld [vmem:[%s9884_s3 + $0xd8] sm:$0xff]  ;;  %v915_v5 = vld [vmem:[%s9884_s3 + $0xd0] sm:$0xff] }
 0x3a0   : > { %1449 = vmatprep.subr.mxu0 %v7143_v3  ;;  %v919_v7 = vld [vmem:[%s9884_s3 + $0xf0] sm:$0xff] }
 0x3a1   : > { %1450 = vmatpush1.msra.mxu0 %v1268_v8  ;;  %v1218_v13 = vpop.permute.xlu0 %1217  ;;  %v1220_v14 = vpop.permute.xlu1 %1219  ;;  %v1267_v15 = vld [vmem:[#allocation2 + $0x230] sm:$0xff]  ;;  %v1266_v16 = vld [vmem:[#allocation2 + $0x220] sm:$0xff]  ;;  %v1602_v8 = vmul.u32 2, %v7450_v11 }
 0x3a2   : > { %1451 = vmatprep.subr.mxu0 %v7143_v3  ;;  %1417 = vmatmul.mubr.f32.gmra.mxu0 %v913_v9  ;;  %1228 = vst.msk [vmem:[#allocation2 + $0x3a0] sm:$0xff] %vm1225_vm11, %v1218_v13  ;;  %1229 = vst.msk [vmem:[#allocation2 + $0x3b0] sm:$0xff] %vm1225_vm11, %v1220_v14 }
 0x3a3   : > { %1452 = vmatpush1.msra.mxu0 %v1267_v15  ;;  %1966 = vst.msk [vmem:[#allocation2 + $0x230] sm:$0xff] %vm325_vm9, %v7143_v3  ;;  %1965 = vst.msk [vmem:[#allocation2 + $0x220] sm:$0xff] %vm325_vm9, %v7143_v3  ;;  %1421 = vmatprep.mubr.f32.mxu0 %v918_v10  ;;  %vm1610_vm0 = vcmp.eq.s32.totalorder %v7492_v21, %v1602_v8  ;;  %vm1609_vm15 = vcmp.eq.s32.totalorder %v7499_v22, %v1602_v8 }
 0x3a4   : > { %1453 = vmatprep.subr.mxu0 %v7143_v3  ;;  %v6078_v9 = vsel %vm1610_vm0, 1.0, %v7143_v3  ;;  %vm1605_vm0 = vcmp.eq.s32.totalorder %v7527_v26, %v1602_v8 }
 0x3a5   : > { %1454 = vmatpush1.msra.mxu0 %v1266_v16  ;;  %v1214_v29 = vpop.permute.xlu0 %1213  ;;  %v1216_v30 = vpop.permute.xlu1 %1215  ;;  %v1265_v31 = vld [vmem:[#allocation2 + $0x210] sm:$0xff]  ;;  %v1264_v32 = vld [vmem:[#allocation2 + $0x200] sm:$0xff]  ;;  %6746 = vmatprep.subr.msk.mxu1 %vm9933_vm1, %v6078_v9  ;;  %vm1603_vm1 = vcmp.eq.s32.totalorder %v7252_v4, %v1602_v8 }
 0x3a6   : > { %1455 = vmatprep.subr.mxu0 %v7143_v3  ;;  %1422 = vmatmul.mubr.f32.gmra.mxu0 %v917_v17  ;;  %1226 = vst.msk [vmem:[#allocation2 + $0x380] sm:$0xff] %vm1225_vm11, %v1214_v29  ;;  %1227 = vst.msk [vmem:[#allocation2 + $0x390] sm:$0xff] %vm1225_vm11, %v1216_v30  ;;  %vm1608_vm11 = vcmp.eq.s32.totalorder %v7506_v23, %v1602_v8 }
 0x3a7   : > { %1456 = vmatpush1.msra.mxu0 %v1265_v31  ;;  %1964 = vst.msk [vmem:[#allocation2 + $0x210] sm:$0xff] %vm325_vm9, %v7143_v3  ;;  %1963 = vst.msk [vmem:[#allocation2 + $0x200] sm:$0xff] %vm325_vm9, %v7143_v3  ;;  %6063 = vmatprep.mubr.msk.f32.mxu0 %vm9913_vm14, %v892_v28  ;;  %vm1181_vm9 = vcmask 482304  }
 0x3a8   : > { %1457 = vmatprep.subr.mxu0 %v7143_v3  ;;  %6747 = vmatpush3.msk.msra.mxu1 %vm9934_vm6, %v6078_v9 }
 0x3a9   : > { %1458 = vmatpush1.msra.mxu0 %v1264_v32  ;;  %v1196_v34 = vpop.permute.xlu0 %1195  ;;  %v1198_v35 = vpop.permute.xlu1 %1197  ;;  %v1291_v36 = vld [vmem:[#allocation2 + $0x3b0] sm:$0xff]  ;;  %v1290_v39 = vld [vmem:[#allocation2 + $0x3a0] sm:$0xff]  ;;  %6748 = vmatprep.subr.msk.mxu1 %vm1609_vm15, %v7146_v12 }
 0x3aa   : > { %1465 = vmatprep.subr.mxu0 %v7143_v3  ;;  %1206 = vst.msk [vmem:[#allocation2 + $0x360] sm:$0xff] %vm1203_vm4, %v1196_v34  ;;  %1207 = vst.msk [vmem:[#allocation2 + $0x370] sm:$0xff] %vm1203_vm4, %v1198_v35  ;;  %6749 = vmatpush3.msk.msra.mxu1 %vm1609_vm15, %v7146_v12  ;;  %vm1604_vm15 = vcmp.eq.s32.totalorder %v7534_v27, %v1602_v8 }
 0x3ab   : > { %6062 = vmatpush2.msk.msra.mxu0 %vm1318_vm8, %v1292_v33  ;;  %6750 = vmatprep.subr.msk.mxu1 %vm1608_vm11, %v7146_v12 }
 0x3ac   : > { %1467 = vmatprep.subr.mxu0 %v7143_v3  ;;  %6751 = vmatpush3.msk.msra.mxu1 %vm1608_vm11, %v7146_v12 }
 0x3ad   : > { %1468 = vmatpush2.msra.mxu0 %v1291_v36  ;;  %v1192_v37 = vpop.permute.xlu0 %1191  ;;  %v1194_v38 = vpop.permute.xlu1 %1193  ;;  %v1289_v40 = vld [vmem:[#allocation2 + $0x390] sm:$0xff]  ;;  %v1288_v43 = vld [vmem:[#allocation2 + $0x380] sm:$0xff] }
 0x3ae   : > { %1469 = vmatprep.subr.mxu0 %v7143_v3  ;;  %1204 = vst.msk [vmem:[#allocation2 + $0x340] sm:$0xff] %vm1203_vm4, %v1192_v37  ;;  %1205 = vst.msk [vmem:[#allocation2 + $0x350] sm:$0xff] %vm1203_vm4, %v1194_v38  ;;  %vm1607_vm4 = vcmp.eq.s32.totalorder %v7513_v24, %v1602_v8 }
 0x3af   : > { %1470 = vmatpush2.msra.mxu0 %v1290_v39  ;;  %6752 = vmatprep.subr.msk.mxu1 %vm1607_vm4, %v7146_v12 }
 0x3b0   : > { %1471 = vmatprep.subr.mxu0 %v7143_v3  ;;  %6753 = vmatpush3.msk.msra.mxu1 %vm1607_vm4, %v7146_v12 }
 0x3b1   : > { %1472 = vmatpush2.msra.mxu0 %v1289_v40  ;;  %v1174_v41 = vpop.permute.xlu0 %1173  ;;  %v1176_v42 = vpop.permute.xlu1 %1175  ;;  %v1287_v44 = vld [vmem:[#allocation2 + $0x370] sm:$0xff]  ;;  %v1286_v45 = vld [vmem:[#allocation2 + $0x360] sm:$0xff] }
 0x3b2   : > { %1473 = vmatprep.subr.mxu0 %v7143_v3  ;;  %1184 = vst.msk [vmem:[#allocation2 + $0x320] sm:$0xff] %vm1181_vm9, %v1174_v41  ;;  %1185 = vst.msk [vmem:[#allocation2 + $0x330] sm:$0xff] %vm1181_vm9, %v1176_v42 }
 0x3b3   : > { %1474 = vmatpush2.msra.mxu0 %v1288_v43  ;;  %2052 = vst.msk [vmem:[#allocation2 + $0x370] sm:$0xff] %vm9912_vm13, %v7143_v3  ;;  %2051 = vst.msk [vmem:[#allocation2 + $0x360] sm:$0xff] %vm9912_vm13, %v7143_v3 }
 0x3b4   : > { %1475 = vmatprep.subr.mxu0 %v7143_v3 }
 0x3b5   : > { %1476 = vmatpush2.msra.mxu0 %v1287_v44  ;;  %v1170_v47 = vpop.permute.xlu0 %1169  ;;  %v1172_v46 = vpop.permute.xlu1 %1171  ;;  %v1285_v48 = vld [vmem:[#allocation2 + $0x350] sm:$0xff]  ;;  %v1284_v49 = vld [vmem:[#allocation2 + $0x340] sm:$0xff] }
 0x3b6   : > { %1477 = vmatprep.subr.mxu0 %v7143_v3  ;;  %1182 = vst.msk [vmem:[#allocation2 + $0x300] sm:$0xff] %vm1181_vm9, %v1170_v47  ;;  %1183 = vst.msk [vmem:[#allocation2 + $0x310] sm:$0xff] %vm1181_vm9, %v1172_v46  ;;  %vm1606_vm9 = vcmp.eq.s32.totalorder %v7520_v25, %v1602_v8 }
 0x3b7   : > { %1478 = vmatpush2.msra.mxu0 %v1286_v45  ;;  %2050 = vst.msk [vmem:[#allocation2 + $0x350] sm:$0xff] %vm9912_vm13, %v7143_v3  ;;  %2049 = vst.msk [vmem:[#allocation2 + $0x340] sm:$0xff] %vm9912_vm13, %v7143_v3  ;;  %6754 = vmatprep.subr.msk.mxu1 %vm1606_vm9, %v7146_v12 }
 0x3b8   : > { %1479 = vmatprep.subr.mxu0 %v7143_v3  ;;  %6755 = vmatpush3.msk.msra.mxu1 %vm1606_vm9, %v7146_v12 }
 0x3b9   : > { %1480 = vmatpush2.msra.mxu0 %v1285_v48  ;;  %v1283_v50 = vld [vmem:[#allocation2 + $0x330] sm:$0xff]  ;;  %v1282_v51 = vld [vmem:[#allocation2 + $0x320] sm:$0xff]  ;;  %6756 = vmatprep.subr.msk.mxu1 %vm1605_vm0, %v7146_v12 }
 0x3ba   : > { %1481 = vmatprep.subr.mxu0 %v7143_v3  ;;  %2048 = vst.msk [vmem:[#allocation2 + $0x330] sm:$0xff] %vm9912_vm13, %v7143_v3  ;;  %2047 = vst.msk [vmem:[#allocation2 + $0x320] sm:$0xff] %vm9912_vm13, %v7143_v3  ;;  %6757 = vmatpush3.msk.msra.mxu1 %vm1605_vm0, %v7146_v12 }
 0x3bb   : > { %1482 = vmatpush2.msra.mxu0 %v1284_v49  ;;  %6758 = vmatprep.subr.msk.mxu1 %vm1604_vm15, %v7146_v12 }
 0x3bc   : > { %1483 = vmatprep.subr.mxu0 %v7143_v3  ;;  %6759 = vmatpush3.msk.msra.mxu1 %vm1604_vm15, %v7146_v12 }
 0x3bd   : > { %1484 = vmatpush2.msra.mxu0 %v1283_v50  ;;  %v1281_v52 = vld [vmem:[#allocation2 + $0x310] sm:$0xff]  ;;  %v1280_v53 = vld [vmem:[#allocation2 + $0x300] sm:$0xff]  ;;  %6760 = vmatprep.subr.msk.mxu1 %vm1603_vm1, %v7146_v12 }
 0x3be   : > { %1485 = vmatprep.subr.mxu0 %v7143_v3  ;;  %2046 = vst.msk [vmem:[#allocation2 + $0x310] sm:$0xff] %vm9912_vm13, %v7143_v3  ;;  %2045 = vst.msk [vmem:[#allocation2 + $0x300] sm:$0xff] %vm9912_vm13, %v7143_v3  ;;  %6761 = vmatpush3.msk.msra.mxu1 %vm1603_vm1, %v7146_v12  ;;  %vm3673_vm13 = vcmask 204800  }
 0x3bf   : > { %1486 = vmatpush2.msra.mxu0 %v1282_v51 }
 0x3c0   : > { %1487 = vmatprep.subr.mxu0 %v7143_v3 }
 0x3c1   : > { %1488 = vmatpush2.msra.mxu0 %v1281_v52 }
 0x3c2   : > { %1489 = vmatprep.subr.mxu0 %v7143_v3  ;;  %v1544_v40 = vpop.permute.xlu1 %1543 }
 0x3c3   : > { %1490 = vmatpush2.msra.mxu0 %v1280_v53 }
 0x3c4   : > { %1492 = vmatmul.mubr.f32.vlgmr.msra.gmra.mxu0 %v891_v54 }
 0x3c5   : > { %6064 = vmatprep.mubr.msk.f32.mxu0 %vm9913_vm14, %v896_v55 }
 0x3c8   : > { %1497 = vmatmul.mubr.f32.gmra.mxu0 %v895_v56 }
 0x3c9   : > { %6065 = vmatprep.mubr.msk.f32.mxu0 %vm9913_vm14, %v900_v58 }
 0x3cc   : > { %1502 = vmatmul.mubr.f32.gmra.mxu0 %v899_v59 }
 0x3cd   : > { %6066 = vmatprep.mubr.msk.f32.mxu0 %vm9913_vm14, %v904_v57 }
 0x3d0   : > { %1507 = vmatmul.mubr.f32.gmra.mxu0 %v903_v60 }
 0x3d1   : > { %6067 = vmatprep.mubr.msk.f32.mxu0 %vm9913_vm14, %v908_v61 }
 0x3d4   : > { %1512 = vmatmul.mubr.f32.gmra.mxu0 %v907_v62 }
 0x3d5   : > { %6068 = vmatprep.mubr.msk.f32.mxu0 %vm9913_vm14, %v912_v63 }
 0x3d8   : > { %1517 = vmatmul.mubr.f32.gmra.mxu0 %v911_v1 }
 0x3d9   : > { %6069 = vmatprep.mubr.msk.f32.mxu0 %vm9913_vm14, %v916_v2 }
 0x3dc   : > { %1522 = vmatmul.mubr.f32.gmra.mxu0 %v915_v5 }
 0x3dd   : > { %6070 = vmatprep.mubr.msk.f32.mxu0 %vm9913_vm14, %v920_v6  ;;  %vm4745_vm14 = vcmask 393216  }
 0x3e0   : > { %1527 = vmatmul.mubr.f32.gmra.mxu0 %v919_v7 }
 0x44a   : > { %v6356_v10 = vpop.f32.mrf.mxu0 }
 0x44c   : > { %v6357_v13 = vpop.f32.mrf.mxu0 }
 0x44d   : > { %v6358_v38 = vadd.f32 %v6357_v13, %v6356_v10 }
 0x44e   : > { %v6359_v14 = vpop.f32.mrf.mxu0 }
 0x450   : > { %v6360_v15 = vpop.f32.mrf.mxu0 }
 0x451   : > { %v6361_v43 = vadd.f32 %v6360_v15, %v6359_v14 }
 0x452   : > { %v6362_v16 = vpop.f32.mrf.mxu0 }
 0x454   : > { %v6363_v17 = vpop.f32.mrf.mxu0 }
 0x455   : > { %v6364_v49 = vadd.f32 %v6363_v17, %v6362_v16 }
 0x456   : > { %v6365_v28 = vpop.f32.mrf.mxu0 }
 0x458   : > { %v6366_v29 = vpop.f32.mrf.mxu0 }
 0x459   : > { %v6367_v55 = vadd.f32 %v6366_v29, %v6365_v28 }
 0x45a   : > { %v6368_v30 = vpop.f32.mrf.mxu0 }
 0x45c   : > { %v6369_v31 = vpop.f32.mrf.mxu0 }
 0x45d   : > { %v6370_v61 = vadd.f32 %v6369_v31, %v6368_v30 }
 0x45e   : > { %v6371_v32 = vpop.f32.mrf.mxu0 }
 0x460   : > { %v6372_v33 = vpop.f32.mrf.mxu0 }
 0x461   : > { %v6373_v6 = vadd.f32 %v6372_v33, %v6371_v32 }
 0x462   : > { %v6374_v34 = vpop.f32.mrf.mxu0 }
 0x464   : > { %v6375_v35 = vpop.f32.mrf.mxu0 }
 0x465   : > { %v6376_v14 = vadd.f32 %v6375_v35, %v6374_v34 }
 0x466   : > { %v6377_v36 = vpop.f32.mrf.mxu0 }
 0x468   : > { %v6378_v37 = vpop.f32.mrf.mxu0 }
 0x469   : > { %v6379_v30 = vadd.f32 %v6378_v37, %v6377_v36 }
 0x484   : > { %v1493_v39 = vpop.f32.mrf.mxu0 }
 0x485   : > { %v1494_v41 = vadd.f32 %v6358_v38, %v1493_v39 }
 0x486   : > { %v1495_v42 = vpop.f32.mrf.mxu0 }
 0x487   : > { %vm1533_vm6 = vcmp.ge.f32.partialorder %v1494_v41, 0.0  ;;  %v1546_v44 = vmul.f32 %v1544_v40, %v1494_v41 }
 0x488   : > { %v1498_v45 = vpop.f32.mrf.mxu0 }
 0x489   : > { %v1499_v47 = vadd.f32 %v6361_v43, %v1498_v45  ;;  %v1554_v46 = vsel %vm1533_vm6, %v1494_v41, %v1546_v44 }
 0x48a   : > { %v1500_v48 = vpop.f32.mrf.mxu0  ;;  %1570 = vrot.lane.b32.xlu0 %v1554_v46, %s7148_s13 }
 0x48b   : > { %vm1534_vm11 = vcmp.ge.f32.partialorder %v1499_v47, 0.0  ;;  %v1547_v50 = vmul.f32 %v1544_v40, %v1499_v47 }
 0x48c   : > { %v1503_v51 = vpop.f32.mrf.mxu0 }
 0x48d   : > { %v1504_v52 = vadd.f32 %v6364_v49, %v1503_v51  ;;  %v1555_v53 = vsel %vm1534_vm11, %v1499_v47, %v1547_v50  ;;  %vm2086_vm11 = vcmask 261120  }
 0x48e   : > { %v1505_v54 = vpop.f32.mrf.mxu0  ;;  %1572 = vrot.lane.b32.xlu1 %v1555_v53, %s7148_s13 }
 0x48f   : > { %vm1535_vm4 = vcmp.ge.f32.partialorder %v1504_v52, 0.0  ;;  %v1548_v56 = vmul.f32 %v1544_v40, %v1504_v52 }
 0x490   : > { %v1508_v58 = vpop.f32.mrf.mxu0 }
 0x491   : > { %v1509_v59 = vadd.f32 %v6367_v55, %v1508_v58  ;;  %v1556_v57 = vsel %vm1535_vm4, %v1504_v52, %v1548_v56  ;;  %vm2136_vm4 = vcmask 261360  }
 0x492   : > { %v1510_v60 = vpop.f32.mrf.mxu0  ;;  %1574 = vrot.lane.b32.xlu0 %v1556_v57, %s7148_s13  ;;  %2144 = vst.msk [vmem:[#allocation2 + $0x4f0] sm:$0xff] %vm2136_vm4, %v7143_v3  ;;  %2137 = vst.msk [vmem:[#allocation2 + $0x480] sm:$0xff] %vm2136_vm4, %v7143_v3 }
 0x493   : > { %vm1536_vm9 = vcmp.ge.f32.partialorder %v1509_v59, 0.0  ;;  %v1549_v62 = vmul.f32 %v1544_v40, %v1509_v59  ;;  %2138 = vst.msk [vmem:[#allocation2 + $0x490] sm:$0xff] %vm2136_vm4, %v7143_v3  ;;  %2139 = vst.msk [vmem:[#allocation2 + $0x4a0] sm:$0xff] %vm2136_vm4, %v7143_v3 }
 0x494   : > { %v1513_v63 = vpop.f32.mrf.mxu0  ;;  %2140 = vst.msk [vmem:[#allocation2 + $0x4b0] sm:$0xff] %vm2136_vm4, %v7143_v3  ;;  %2141 = vst.msk [vmem:[#allocation2 + $0x4c0] sm:$0xff] %vm2136_vm4, %v7143_v3 }
 0x495   : > { %v1514_v1 = vadd.f32 %v6370_v61, %v1513_v63  ;;  %v1557_v2 = vsel %vm1536_vm9, %v1509_v59, %v1549_v62  ;;  %2142 = vst.msk [vmem:[#allocation2 + $0x4d0] sm:$0xff] %vm2136_vm4, %v7143_v3  ;;  %2143 = vst.msk [vmem:[#allocation2 + $0x4e0] sm:$0xff] %vm2136_vm4, %v7143_v3  ;;  %vm2220_vm9 = vcmask 261344   ;;  %vm1995_vm4 = vcmask 261144  }
 0x496   : > { %v1515_v5 = vpop.f32.mrf.mxu0  ;;  %1576 = vrot.lane.b32.xlu1 %v1557_v2, %s7148_s13  ;;  %2228 = vst.msk [vmem:[#allocation2 + $0x5f0] sm:$0xff] %vm2220_vm9, %v7143_v3  ;;  %2221 = vst.msk [vmem:[#allocation2 + $0x580] sm:$0xff] %vm2220_vm9, %v7143_v3 }
 0x497   : > { %vm1537_vm0 = vcmp.ge.f32.partialorder %v1514_v1, 0.0  ;;  %v1550_v7 = vmul.f32 %v1544_v40, %v1514_v1  ;;  %2222 = vst.msk [vmem:[#allocation2 + $0x590] sm:$0xff] %vm2220_vm9, %v7143_v3  ;;  %2223 = vst.msk [vmem:[#allocation2 + $0x5a0] sm:$0xff] %vm2220_vm9, %v7143_v3 }
 0x498   : > { %v1518_v8 = vpop.f32.mrf.mxu0  ;;  %2224 = vst.msk [vmem:[#allocation2 + $0x5b0] sm:$0xff] %vm2220_vm9, %v7143_v3  ;;  %2225 = vst.msk [vmem:[#allocation2 + $0x5c0] sm:$0xff] %vm2220_vm9, %v7143_v3 }
 0x499   : > { %v1519_v9 = vadd.f32 %v6373_v6, %v1518_v8  ;;  %v1558_v10 = vsel %vm1537_vm0, %v1514_v1, %v1550_v7  ;;  %2226 = vst.msk [vmem:[#allocation2 + $0x5d0] sm:$0xff] %vm2220_vm9, %v7143_v3  ;;  %2227 = vst.msk [vmem:[#allocation2 + $0x5e0] sm:$0xff] %vm2220_vm9, %v7143_v3  ;;  %vm1872_vm0 = vcmask 261168   ;;  %vm2036_vm9 = vcmask 261136  }
 0x49a   : > { %v1520_v13 = vpop.f32.mrf.mxu0  ;;  %1578 = vrot.lane.b32.xlu0 %v1558_v10, %s7148_s13 }
 0x49b   : > { %vm1538_vm15 = vcmp.ge.f32.partialorder %v1519_v9, 0.0  ;;  %v1551_v15 = vmul.f32 %v1544_v40, %v1519_v9  ;;  %v1760_v13 = vld [vmem:[%s9885_s4 + $0x8] sm:$0xff] }
 0x49c   : > { %v1523_v16 = vpop.f32.mrf.mxu0 }
 0x49d   : > { %v1524_v17 = vadd.f32 %v6376_v14, %v1523_v16  ;;  %v1559_v28 = vsel %vm1538_vm15, %v1519_v9, %v1551_v15  ;;  %vm1954_vm15 = vcmask 261152  }
 0x49e   : > { %v1525_v29 = vpop.f32.mrf.mxu0  ;;  %1580 = vrot.lane.b32.xlu1 %v1559_v28, %s7148_s13 }
 0x49f   : > { %vm1539_vm1 = vcmp.ge.f32.partialorder %v1524_v17, 0.0  ;;  %v1552_v31 = vmul.f32 %v1544_v40, %v1524_v17 }
 0x4a0   : > { %v1528_v32 = vpop.f32.mrf.mxu0 }
 0x4a1   : > { %v1529_v33 = vadd.f32 %v6379_v30, %v1528_v32  ;;  %v1560_v38 = vsel %vm1539_vm1, %v1524_v17, %v1552_v31  ;;  %vm1831_vm1 = vcmask 261176  }
 0x4a2   : > { %1582 = vrot.lane.b32.xlu0 %v1560_v38, %s7148_s13  ;;  %v1530_v39 = vpop.f32.mrf.mxu0 }
 0x4a3   : > { %vm1540_vm6 = vcmp.ge.f32.partialorder %v1529_v33, 0.0  ;;  %v1553_v41 = vmul.f32 %v1544_v40, %v1529_v33 }
 0x4a5   : > { %v1561_v34 = vsel %vm1540_vm6, %v1529_v33, %v1553_v41  ;;  %vm1913_vm6 = vcmask 261160  }
 0x4a6   : > { %1584 = vrot.lane.b32.xlu1 %v1561_v34, %s7148_s13 }
 0x4fc   : > { %v1571_v35 = vpop.permute.xlu0 %1570 }
 0x4fd   : > { %v1594_v42 = vmax.f32 %v1554_v46, %v1571_v35 }
 0x4ff   : > { %6762 = vmatprep.mubr.msk.f32.mxu1 %vm1094_vm12, %v1594_v42 }
 0x500   : > { %v1573_v43 = vpop.permute.xlu1 %1572 }
 0x501   : > { %v1595_v44 = vmax.f32 %v1555_v53, %v1573_v43 }
 0x503   : > { %6763 = vmatmul.mubr.msk.f32.vlgmr.msra.gmra.mxu1 %vm1094_vm12, %v1595_v44 }
 0x504   : > { %v1575_v36 = vpop.permute.xlu0 %1574 }
 0x505   : > { %v1596_v37 = vmax.f32 %v1556_v57, %v1575_v36 }
 0x507   : > { %6765 = vmatprep.mubr.msk.f32.mxu1 %vm1094_vm12, %v1596_v37 }
 0x508   : > { %v1577_v45 = vpop.permute.xlu1 %1576 }
 0x509   : > { %v1597_v47 = vmax.f32 %v1557_v2, %v1577_v45 }
 0x50b   : > { %6766 = vmatmul.mubr.msk.f32.gmra.mxu1 %vm1094_vm12, %v1597_v47 }
 0x50c   : > { %v1579_v40 = vpop.permute.xlu0 %1578 }
 0x50d   : > { %v1598_v48 = vmax.f32 %v1558_v10, %v1579_v40 }
 0x50f   : > { %6768 = vmatprep.mubr.msk.f32.mxu1 %vm1094_vm12, %v1598_v48 }
 0x510   : > { %v1581_v49 = vpop.permute.xlu1 %1580 }
 0x511   : > { %v1599_v46 = vmax.f32 %v1559_v28, %v1581_v49 }
 0x513   : > { %6769 = vmatmul.mubr.msk.f32.gmra.mxu1 %vm1094_vm12, %v1599_v46 }
 0x514   : > { %v1583_v50 = vpop.permute.xlu0 %1582 }
 0x515   : > { %v1600_v51 = vmax.f32 %v1560_v38, %v1583_v50 }
 0x517   : > { %6771 = vmatprep.mubr.msk.f32.mxu1 %vm1094_vm12, %v1600_v51 }
 0x518   : > { %v1585_v52 = vpop.permute.xlu1 %1584 }
 0x519   : > { %v1601_v53 = vmax.f32 %v1561_v34, %v1585_v52 }
 0x51b   : > { %6772 = vmatmul.mubr.msk.f32.gmra.mxu1 %vm1094_vm12, %v1601_v53  ;;  %vm2304_vm12 = vcmask 261328  }
 0x51c   : > { %2310 = vst.msk [vmem:[#allocation2 + $0x6d0] sm:$0xff] %vm2304_vm12, %v7143_v3  ;;  %2305 = vst.msk [vmem:[#allocation2 + $0x680] sm:$0xff] %vm2304_vm12, %v7143_v3  ;;  %2591 = vmatprep.mubr.f32.mxu1 %v1760_v13 }
 0x51d   : > { %2306 = vst.msk [vmem:[#allocation2 + $0x690] sm:$0xff] %vm2304_vm12, %v7143_v3  ;;  %2307 = vst.msk [vmem:[#allocation2 + $0x6a0] sm:$0xff] %vm2304_vm12, %v7143_v3 }
 0x51e   : > { %2308 = vst.msk [vmem:[#allocation2 + $0x6b0] sm:$0xff] %vm2304_vm12, %v7143_v3  ;;  %2309 = vst.msk [vmem:[#allocation2 + $0x6c0] sm:$0xff] %vm2304_vm12, %v7143_v3 }
 0x51f   : > { %2311 = vst.msk [vmem:[#allocation2 + $0x6e0] sm:$0xff] %vm2304_vm12, %v7143_v3  ;;  %2312 = vst.msk [vmem:[#allocation2 + $0x6f0] sm:$0xff] %vm2304_vm12, %v7143_v3  ;;  %vm2262_vm12 = vcmask 261336  }
 0x520   : > { %2270 = vst.msk [vmem:[#allocation2 + $0x670] sm:$0xff] %vm2262_vm12, %v7143_v3  ;;  %2263 = vst.msk [vmem:[#allocation2 + $0x600] sm:$0xff] %vm2262_vm12, %v7143_v3 }
 0x521   : > { %2264 = vst.msk [vmem:[#allocation2 + $0x610] sm:$0xff] %vm2262_vm12, %v7143_v3  ;;  %2265 = vst.msk [vmem:[#allocation2 + $0x620] sm:$0xff] %vm2262_vm12, %v7143_v3 }
 0x522   : > { %2266 = vst.msk [vmem:[#allocation2 + $0x630] sm:$0xff] %vm2262_vm12, %v7143_v3  ;;  %2267 = vst.msk [vmem:[#allocation2 + $0x640] sm:$0xff] %vm2262_vm12, %v7143_v3 }
 0x523   : > { %2268 = vst.msk [vmem:[#allocation2 + $0x650] sm:$0xff] %vm2262_vm12, %v7143_v3  ;;  %2269 = vst.msk [vmem:[#allocation2 + $0x660] sm:$0xff] %vm2262_vm12, %v7143_v3  ;;  %vm2077_vm12 = vcmask 261128  }
 0x5c3   : > { %v8155_v54 = vpop.f32.mrf.mxu1 }
 0x5c4   : > { %1850 = vrot.lane.b32.xlu1 %v8155_v54, %s7156_s6  ;;  %1932 = vrot.lane.b32.xlu0 %v8155_v54, %s9935_s26  ;;  %2088 = vst.msk [vmem:[#allocation2 + $0x390] sm:$0xff] %vm2086_vm11, %v8155_v54 }
 0x5c5   : > { %v8163_v55 = vpop.f32.mrf.mxu1 }
 0x5c6   : > { %2087 = vst.msk [vmem:[#allocation2 + $0x380] sm:$0xff] %vm2086_vm11, %v8163_v55 }
 0x5c8   : > { %1809 = vrot.lane.b32.xlu1 %v8155_v54, %s9936_s8  ;;  %1891 = vrot.lane.b32.xlu0 %v8155_v54, %s9937_s23 }
 0x5cb   : > { %v8171_v56 = vpop.f32.mrf.mxu1  ;;  %v8389_v31 = vld [vmem:[#allocation2 + $0x390] sm:$0xff] }
 0x5cc   : > { %1973 = vrot.lane.b32.xlu1 %v8155_v54, %s9938_s25  ;;  %2014 = vrot.lane.b32.xlu0 %v8155_v54, %s9939_s14  ;;  %2090 = vst.msk [vmem:[#allocation2 + $0x3b0] sm:$0xff] %vm2086_vm11, %v8171_v56 }
 0x5cd   : > { %v8179_v58 = vpop.f32.mrf.mxu1  ;;  %4746 = vst.msk [vmem:[#allocation2 + $0x390] sm:$0x1] %vm4745_vm14, %v7146_v12  ;;  %vm2346_vm14 = vcmask 261320  }
 0x5ce   : > { %2089 = vst.msk [vmem:[#allocation2 + $0x3a0] sm:$0xff] %vm2086_vm11, %v8179_v58 }
 0x5cf   : > { %2354 = vst.msk [vmem:[#allocation2 + $0x770] sm:$0xff] %vm2346_vm14, %v7143_v3  ;;  %2347 = vst.msk [vmem:[#allocation2 + $0x700] sm:$0xff] %vm2346_vm14, %v7143_v3 }
 0x5d0   : > { %2055 = vrot.lane.b32.xlu0 %v8155_v54, %s9940_s12  ;;  %1848 = vrot.lane.b32.xlu1 %v8163_v55, %s7156_s6  ;;  %2348 = vst.msk [vmem:[#allocation2 + $0x710] sm:$0xff] %vm2346_vm14, %v7143_v3  ;;  %2349 = vst.msk [vmem:[#allocation2 + $0x720] sm:$0xff] %vm2346_vm14, %v7143_v3 }
 0x5d1   : > { %2350 = vst.msk [vmem:[#allocation2 + $0x730] sm:$0xff] %vm2346_vm14, %v7143_v3  ;;  %2351 = vst.msk [vmem:[#allocation2 + $0x740] sm:$0xff] %vm2346_vm14, %v7143_v3 }
 0x5d2   : > { %2352 = vst.msk [vmem:[#allocation2 + $0x750] sm:$0xff] %vm2346_vm14, %v7143_v3  ;;  %2353 = vst.msk [vmem:[#allocation2 + $0x760] sm:$0xff] %vm2346_vm14, %v7143_v3  ;;  %vm2388_vm14 = vcmask 253952  }
 0x5d3   : > { %v8187_v59 = vpop.f32.mrf.mxu1  ;;  %2389 = vst.msk [vmem:[#allocation2 + $0x780] sm:$0x1] %vm2388_vm14, %v7146_v12  ;;  %vm2253_vm14 = vcmask 228352  }
 0x5d4   : > { %1807 = vrot.lane.b32.xlu1 %v8163_v55, %s9936_s8  ;;  %1930 = vrot.lane.b32.xlu0 %v8163_v55, %s9935_s26  ;;  %2092 = vst.msk [vmem:[#allocation2 + $0x3d0] sm:$0xff] %vm2086_vm11, %v8187_v59 }
 0x5d5   : > { %v8195_v57 = vpop.f32.mrf.mxu1 }
 0x5d6   : > { %2091 = vst.msk [vmem:[#allocation2 + $0x3c0] sm:$0xff] %vm2086_vm11, %v8195_v57 }
 0x5d8   : > { %2012 = vrot.lane.b32.xlu1 %v8163_v55, %s9939_s14  ;;  %1889 = vrot.lane.b32.xlu0 %v8163_v55, %s9937_s23 }
 0x5db   : > { %v8203_v60 = vpop.f32.mrf.mxu1 }
 0x5dc   : > { %1971 = vrot.lane.b32.xlu1 %v8163_v55, %s9938_s25  ;;  %2053 = vrot.lane.b32.xlu0 %v8163_v55, %s9940_s12  ;;  %2094 = vst.msk [vmem:[#allocation2 + $0x3f0] sm:$0xff] %vm2086_vm11, %v8203_v60 }
 0x5dd   : > { %v8211_v61 = vpop.f32.mrf.mxu1 }
 0x5de   : > { %2093 = vst.msk [vmem:[#allocation2 + $0x3e0] sm:$0xff] %vm2086_vm11, %v8211_v61 }
 0x5e0   : > { %1854 = vrot.lane.b32.xlu1 %v8171_v56, %s7156_s6  ;;  %1936 = vrot.lane.b32.xlu0 %v8171_v56, %s9935_s26 }
 0x5e4   : > { %1813 = vrot.lane.b32.xlu1 %v8171_v56, %s9936_s8  ;;  %1895 = vrot.lane.b32.xlu0 %v8171_v56, %s9937_s23 }
 0x5e8   : > { %1977 = vrot.lane.b32.xlu1 %v8171_v56, %s9938_s25  ;;  %2018 = vrot.lane.b32.xlu0 %v8171_v56, %s9939_s14 }
 0x5ec   : > { %2059 = vrot.lane.b32.xlu0 %v8171_v56, %s9940_s12  ;;  %1852 = vrot.lane.b32.xlu1 %v8179_v58, %s7156_s6 }
 0x5f0   : > { %1811 = vrot.lane.b32.xlu1 %v8179_v58, %s9936_s8  ;;  %1934 = vrot.lane.b32.xlu0 %v8179_v58, %s9935_s26 }
 0x5f4   : > { %2016 = vrot.lane.b32.xlu1 %v8179_v58, %s9939_s14  ;;  %1893 = vrot.lane.b32.xlu0 %v8179_v58, %s9937_s23 }
 0x5f8   : > { %1975 = vrot.lane.b32.xlu1 %v8179_v58, %s9938_s25  ;;  %2057 = vrot.lane.b32.xlu0 %v8179_v58, %s9940_s12 }
 0x5fc   : > { %1858 = vrot.lane.b32.xlu1 %v8187_v59, %s7156_s6  ;;  %1940 = vrot.lane.b32.xlu0 %v8187_v59, %s9935_s26 }
 0x600   : > { %1817 = vrot.lane.b32.xlu1 %v8187_v59, %s9936_s8  ;;  %1899 = vrot.lane.b32.xlu0 %v8187_v59, %s9937_s23 }
 0x604   : > { %1981 = vrot.lane.b32.xlu1 %v8187_v59, %s9938_s25  ;;  %2022 = vrot.lane.b32.xlu0 %v8187_v59, %s9939_s14 }
 0x608   : > { %2063 = vrot.lane.b32.xlu0 %v8187_v59, %s9940_s12  ;;  %1856 = vrot.lane.b32.xlu1 %v8195_v57, %s7156_s6 }
 0x60c   : > { %2323 = vrot.lane.b32.xlu0 %v8187_v59, %s9931_s9  ;;  %1815 = vrot.lane.b32.xlu1 %v8195_v57, %s9936_s8 }
 0x610   : > { %2020 = vrot.lane.b32.xlu1 %v8195_v57, %s9939_s14  ;;  %1938 = vrot.lane.b32.xlu0 %v8195_v57, %s9935_s26 }
 0x614   : > { %1979 = vrot.lane.b32.xlu1 %v8195_v57, %s9938_s25  ;;  %1897 = vrot.lane.b32.xlu0 %v8195_v57, %s9937_s23 }
 0x618   : > { %2321 = vrot.lane.b32.xlu1 %v8195_v57, %s9931_s9  ;;  %2061 = vrot.lane.b32.xlu0 %v8195_v57, %s9940_s12 }
 0x61c   : > { %1862 = vrot.lane.b32.xlu1 %v8203_v60, %s7156_s6  ;;  %1944 = vrot.lane.b32.xlu0 %v8203_v60, %s9935_s26 }
 0x620   : > { %1821 = vrot.lane.b32.xlu1 %v8203_v60, %s9936_s8  ;;  %1903 = vrot.lane.b32.xlu0 %v8203_v60, %s9937_s23 }
 0x624   : > { %1985 = vrot.lane.b32.xlu1 %v8203_v60, %s9938_s25  ;;  %2026 = vrot.lane.b32.xlu0 %v8203_v60, %s9939_s14 }
 0x628   : > { %2317 = vrot.lane.b32.xlu1 %v8179_v58, %s9931_s9  ;;  %2067 = vrot.lane.b32.xlu0 %v8203_v60, %s9940_s12 }
 0x62c   : > { %2159 = vrot.lane.b32.xlu1 %v8203_v60, %s9941_s17  ;;  %2327 = vrot.lane.b32.xlu0 %v8203_v60, %s9931_s9 }
 0x630   : > { %1860 = vrot.lane.b32.xlu1 %v8211_v61, %s7156_s6  ;;  %1942 = vrot.lane.b32.xlu0 %v8211_v61, %s9935_s26  ;;  %s7162_s26 = smov 102  }
 0x634   : > { %2313 = vrot.lane.b32.xlu1 %v8163_v55, %s9931_s9  ;;  %2319 = vrot.lane.b32.xlu0 %v8171_v56, %s9931_s9 }
 0x636   : > { %v1851_v62 = vpop.permute.xlu1 %1850  ;;  %v1933_v63 = vpop.permute.xlu0 %1932 }
 0x637   : > { %1874 = vst.msk [vmem:[#allocation2 + $0x90] sm:$0xff] %vm1872_vm0, %v1851_v62 }
 0x638   : > { %1956 = vst.msk [vmem:[#allocation2 + $0x190] sm:$0xff] %vm1954_vm15, %v1933_v63  ;;  %2155 = vrot.lane.b32.xlu1 %v8187_v59, %s9941_s17  ;;  %2243 = vrot.lane.b32.xlu0 %v8203_v60, %s9928_s15 }
 0x63a   : > { %v1810_v1 = vpop.permute.xlu1 %1809  ;;  %v1892_v2 = vpop.permute.xlu0 %1891 }
 0x63b   : > { %1833 = vst.msk [vmem:[#allocation2 + $0x10] sm:$0xff] %vm1831_vm1, %v1810_v1 }
 0x63c   : > { %1915 = vst.msk [vmem:[#allocation2 + $0x110] sm:$0xff] %vm1913_vm6, %v1892_v2  ;;  %2237 = vrot.lane.b32.xlu1 %v8195_v57, %s9928_s15  ;;  %2315 = vrot.lane.b32.xlu0 %v8155_v54, %s9931_s9 }
 0x63e   : > { %v1974_v5 = vpop.permute.xlu1 %1973  ;;  %v2015_v6 = vpop.permute.xlu0 %2014 }
 0x63f   : > { %1997 = vst.msk [vmem:[#allocation2 + $0x210] sm:$0xff] %vm1995_vm4, %v1974_v5 }
 0x640   : > { %2038 = vst.msk [vmem:[#allocation2 + $0x290] sm:$0xff] %vm2036_vm9, %v2015_v6  ;;  %1819 = vrot.lane.b32.xlu1 %v8211_v61, %s9936_s8  ;;  %1901 = vrot.lane.b32.xlu0 %v8211_v61, %s9937_s23  ;;  %s7164_s8 = smov 104  }
 0x642   : > { %v2056_v7 = vpop.permute.xlu0 %2055  ;;  %v1849_v8 = vpop.permute.xlu1 %1848 }
 0x643   : > { %2079 = vst.msk [vmem:[#allocation2 + $0x310] sm:$0xff] %vm2077_vm12, %v2056_v7 }
 0x644   : > { %1873 = vst.msk [vmem:[#allocation2 + $0x80] sm:$0xff] %vm1872_vm0, %v1849_v8  ;;  %2151 = vrot.lane.b32.xlu1 %v8171_v56, %s9941_s17  ;;  %2239 = vrot.lane.b32.xlu0 %v8187_v59, %s9928_s15 }
 0x646   : > { %v1808_v9 = vpop.permute.xlu1 %1807  ;;  %v1931_v10 = vpop.permute.xlu0 %1930 }
 0x647   : > { %1832 = vst.msk [vmem:[#allocation2] sm:$0xff] %vm1831_vm1, %v1808_v9 }
 0x648   : > { %1955 = vst.msk [vmem:[#allocation2 + $0x180] sm:$0xff] %vm1954_vm15, %v1931_v10  ;;  %2233 = vrot.lane.b32.xlu1 %v8179_v58, %s9928_s15  ;;  %2285 = vrot.lane.b32.xlu0 %v8203_v60, %s9932_s10 }
 0x64a   : > { %v2013_v14 = vpop.permute.xlu1 %2012  ;;  %v1890_v15 = vpop.permute.xlu0 %1889 }
 0x64b   : > { %2037 = vst.msk [vmem:[#allocation2 + $0x280] sm:$0xff] %vm2036_vm9, %v2013_v14 }
 0x64c   : > { %1914 = vst.msk [vmem:[#allocation2 + $0x100] sm:$0xff] %vm1913_vm6, %v1890_v15  ;;  %2279 = vrot.lane.b32.xlu1 %v8195_v57, %s9932_s10  ;;  %2153 = vrot.lane.b32.xlu0 %v8195_v57, %s9941_s17 }
 0x64e   : > { %v1972_v16 = vpop.permute.xlu1 %1971  ;;  %v2054_v17 = vpop.permute.xlu0 %2053 }
 0x64f   : > { %1996 = vst.msk [vmem:[#allocation2 + $0x200] sm:$0xff] %vm1995_vm4, %v1972_v16 }
 0x650   : > { %2078 = vst.msk [vmem:[#allocation2 + $0x300] sm:$0xff] %vm2077_vm12, %v2054_v17  ;;  %2024 = vrot.lane.b32.xlu1 %v8211_v61, %s9939_s14  ;;  %2235 = vrot.lane.b32.xlu0 %v8171_v56, %s9928_s15  ;;  %s236_s14 = scalar_lea.vmem %s9882_s1, %s7249_s30 }
 0x652   : > { %v1855_v28 = vpop.permute.xlu1 %1854  ;;  %v1937_v29 = vpop.permute.xlu0 %1936 }
 0x653   : > { %v8380_v30 = vld [vmem:[#allocation2 + $0x100] sm:$0xff]  ;;  %1876 = vst.msk [vmem:[#allocation2 + $0xb0] sm:$0xff] %vm1872_vm0, %v1855_v28 }
 0x654   : > { %1958 = vst.msk [vmem:[#allocation2 + $0x1b0] sm:$0xff] %vm1954_vm15, %v1937_v29  ;;  %2147 = vrot.lane.b32.xlu1 %v8155_v54, %s9941_s17  ;;  %2281 = vrot.lane.b32.xlu0 %v8187_v59, %s9932_s10 }
 0x655   : > { %3674 = vst.msk [vmem:[#allocation2 + $0x100] sm:$0x1] %vm3673_vm13, %v7146_v12  ;;  %vm2178_vm13 = vcmask 261352  }
 0x656   : > { %v1814_v32 = vpop.permute.xlu1 %1813  ;;  %v1896_v33 = vpop.permute.xlu0 %1895  ;;  %2186 = vst.msk [vmem:[#allocation2 + $0x570] sm:$0xff] %vm2178_vm13, %v7143_v3  ;;  %2179 = vst.msk [vmem:[#allocation2 + $0x500] sm:$0xff] %vm2178_vm13, %v7143_v3  ;;  %v8438_v36 = vld [vmem:[#allocation2 + $0x200] sm:$0xff] }
 0x657   : > { %1835 = vst.msk [vmem:[#allocation2 + $0x30] sm:$0xff] %vm1831_vm1, %v1814_v32 }
 0x658   : > { %1917 = vst.msk [vmem:[#allocation2 + $0x130] sm:$0xff] %vm1913_vm6, %v1896_v33  ;;  %2229 = vrot.lane.b32.xlu1 %v8163_v55, %s9928_s15  ;;  %2149 = vrot.lane.b32.xlu0 %v8179_v58, %s9941_s17 }
 0x659   : > { %2180 = vst.msk [vmem:[#allocation2 + $0x510] sm:$0xff] %vm2178_vm13, %v7143_v3  ;;  %2181 = vst.msk [vmem:[#allocation2 + $0x520] sm:$0xff] %vm2178_vm13, %v7143_v3 }
 0x65a   : > { %v1978_v38 = vpop.permute.xlu1 %1977  ;;  %v2019_v39 = vpop.permute.xlu0 %2018  ;;  %2182 = vst.msk [vmem:[#allocation2 + $0x530] sm:$0xff] %vm2178_vm13, %v7143_v3  ;;  %2183 = vst.msk [vmem:[#allocation2 + $0x540] sm:$0xff] %vm2178_vm13, %v7143_v3 }
 0x65b   : > { %1999 = vst.msk [vmem:[#allocation2 + $0x230] sm:$0xff] %vm1995_vm4, %v1978_v38 }
 0x65c   : > { %2040 = vst.msk [vmem:[#allocation2 + $0x2b0] sm:$0xff] %vm2036_vm9, %v2019_v39  ;;  %2275 = vrot.lane.b32.xlu1 %v8179_v58, %s9932_s10  ;;  %2231 = vrot.lane.b32.xlu0 %v8155_v54, %s9928_s15 }
 0x65d   : > { %2184 = vst.msk [vmem:[#allocation2 + $0x550] sm:$0xff] %vm2178_vm13, %v7143_v3  ;;  %2185 = vst.msk [vmem:[#allocation2 + $0x560] sm:$0xff] %vm2178_vm13, %v7143_v3  ;;  %vm2337_vm13 = vcmask 211968  }
 0x65e   : > { %v2060_v41 = vpop.permute.xlu0 %2059  ;;  %v1853_v34 = vpop.permute.xlu1 %1852  ;;  %4449 = vst.msk [vmem:[#allocation2 + $0x200] sm:$0x1] %vm4448_vm7, %v7146_v12  ;;  %vm3836_vm7 = vcmask 212992  }
 0x65f   : > { %2081 = vst.msk [vmem:[#allocation2 + $0x330] sm:$0xff] %vm2077_vm12, %v2060_v41 }
 0x660   : > { %1875 = vst.msk [vmem:[#allocation2 + $0xa0] sm:$0xff] %vm1872_vm0, %v1853_v34  ;;  %1983 = vrot.lane.b32.xlu1 %v8211_v61, %s9938_s25  ;;  %2065 = vrot.lane.b32.xlu0 %v8211_v61, %s9940_s12  ;;  %s6323_s25 = sshll.u32 %s7217_s22, 7  ;;  %s7165_s22 = smov [#allocation3]  }
 0x661   : > { %s5927_s30 = scalar_lea.hbm %s9886_s5, %s6323_s25 }
 0x662   : > { %v1812_v35 = vpop.permute.xlu1 %1811  ;;  %v1935_v42 = vpop.permute.xlu0 %1934 }
 0x663   : > { %1834 = vst.msk [vmem:[#allocation2 + $0x20] sm:$0xff] %vm1831_vm1, %v1812_v35 }
 0x664   : > { %1957 = vst.msk [vmem:[#allocation2 + $0x1a0] sm:$0xff] %vm1954_vm15, %v1935_v42  ;;  %2118 = vrot.lane.b32.xlu1 %v8203_v60, %s7148_s13  ;;  %2277 = vrot.lane.b32.xlu0 %v8171_v56, %s9932_s10 }
 0x666   : > { %v2017_v43 = vpop.permute.xlu1 %2016  ;;  %v1894_v44 = vpop.permute.xlu0 %1893 }
 0x667   : > { %2039 = vst.msk [vmem:[#allocation2 + $0x2a0] sm:$0xff] %vm2036_vm9, %v2017_v43 }
 0x668   : > { %1916 = vst.msk [vmem:[#allocation2 + $0x120] sm:$0xff] %vm1913_vm6, %v1894_v44  ;;  %2271 = vrot.lane.b32.xlu1 %v8163_v55, %s9932_s10  ;;  %2145 = vrot.lane.b32.xlu0 %v8163_v55, %s9941_s17 }
 0x66a   : > { %v1976_v37 = vpop.permute.xlu1 %1975  ;;  %v2058_v45 = vpop.permute.xlu0 %2057 }
 0x66b   : > { %1998 = vst.msk [vmem:[#allocation2 + $0x220] sm:$0xff] %vm1995_vm4, %v1976_v37 }
 0x66c   : > { %2080 = vst.msk [vmem:[#allocation2 + $0x320] sm:$0xff] %vm2077_vm12, %v2058_v45  ;;  %2114 = vrot.lane.b32.xlu1 %v8187_v59, %s7148_s13  ;;  %2201 = vrot.lane.b32.xlu0 %v8203_v60, %s9929_s16  ;;  %v2417_v45 = vld [vmem:[#allocation2 + $0x1b0] sm:$0xff] }
 0x66e   : > { %v1859_v47 = vpop.permute.xlu1 %1858  ;;  %v1941_v40 = vpop.permute.xlu0 %1940 }
 0x66f   : > { %1878 = vst.msk [vmem:[#allocation2 + $0xd0] sm:$0xff] %vm1872_vm0, %v1859_v47  ;;  %v2401_v47 = vld [vmem:[#allocation2 + $0xb0] sm:$0xff] }
 0x670   : > { %1960 = vst.msk [vmem:[#allocation2 + $0x1d0] sm:$0xff] %vm1954_vm15, %v1941_v40  ;;  %2325 = vrot.lane.b32.xlu1 %v8211_v61, %s9931_s9  ;;  %2273 = vrot.lane.b32.xlu0 %v8155_v54, %s9932_s10 }
 0x672   : > { %v1818_v48 = vpop.permute.xlu1 %1817  ;;  %v1900_v49 = vpop.permute.xlu0 %1899 }
 0x673   : > { %1837 = vst.msk [vmem:[#allocation2 + $0x50] sm:$0xff] %vm1831_vm1, %v1818_v48 }
 0x674   : > { %1919 = vst.msk [vmem:[#allocation2 + $0x150] sm:$0xff] %vm1913_vm6, %v1900_v49  ;;  %2112 = vrot.lane.b32.xlu1 %v8195_v57, %s7148_s13  ;;  %2197 = vrot.lane.b32.xlu0 %v8187_v59, %s9929_s16  ;;  %v2416_v49 = vld [vmem:[#allocation2 + $0x1a0] sm:$0xff] }
 0x676   : > { %v1982_v46 = vpop.permute.xlu1 %1981  ;;  %v2023_v50 = vpop.permute.xlu0 %2022  ;;  %v2403_v35 = vld [vmem:[#allocation2 + $0xd0] sm:$0xff] }
 0x677   : > { %2001 = vst.msk [vmem:[#allocation2 + $0x250] sm:$0xff] %vm1995_vm4, %v1982_v46  ;;  %v2419_v34 = vld [vmem:[#allocation2 + $0x1d0] sm:$0xff] }
 0x678   : > { %2042 = vst.msk [vmem:[#allocation2 + $0x2d0] sm:$0xff] %vm2036_vm9, %v2023_v50  ;;  %2193 = vrot.lane.b32.xlu1 %v8171_v56, %s9929_s16  ;;  %2195 = vrot.lane.b32.xlu0 %v8195_v57, %s9929_s16  ;;  %v2400_v50 = vld [vmem:[#allocation2 + $0xa0] sm:$0xff] }
 0x67a   : > { %v2064_v51 = vpop.permute.xlu0 %2063  ;;  %v1857_v52 = vpop.permute.xlu1 %1856 }
 0x67b   : > { %2083 = vst.msk [vmem:[#allocation2 + $0x350] sm:$0xff] %vm2077_vm12, %v2064_v51 }
 0x67c   : > { %1877 = vst.msk [vmem:[#allocation2 + $0xc0] sm:$0xff] %vm1872_vm0, %v1857_v52  ;;  %2241 = vrot.lane.b32.xlu1 %v8211_v61, %s9928_s15  ;;  %2369 = vrot.lane.b32.xlu0 %v8203_v60, %s9930_s11  ;;  %v2415_v52 = vld [vmem:[#allocation2 + $0x190] sm:$0xff] }
 0x67e   : > { %v2324_v53 = vpop.permute.xlu0 %2323  ;;  %v1816_v62 = vpop.permute.xlu1 %1815 }
 0x67f   : > { %v8479_v63 = vld [vmem:[#allocation2 + $0x2d0] sm:$0xff]  ;;  %2343 = vst.msk [vmem:[#allocation2 + $0x6d0] sm:$0xff] %vm2337_vm13, %v2324_v53 }
 0x680   : > { %1836 = vst.msk [vmem:[#allocation2 + $0x40] sm:$0xff] %vm1831_vm1, %v1816_v62  ;;  %2283 = vrot.lane.b32.xlu1 %v8211_v61, %s9932_s10  ;;  %2157 = vrot.lane.b32.xlu0 %v8211_v61, %s9941_s17  ;;  %v2399_v53 = vld [vmem:[#allocation2 + $0x90] sm:$0xff]  ;;  %s7161_s10 = smov 103  }
 0x681   : > { %3837 = vst.msk [vmem:[#allocation2 + $0x2d0] sm:$0x1] %vm3836_vm7, %v7146_v12  ;;  %vm2169_vm7 = vcmask 244736  }
 0x682   : > { %v2021_v1 = vpop.permute.xlu1 %2020  ;;  %v1939_v60 = vpop.permute.xlu0 %1938 }
 0x683   : > { %2041 = vst.msk [vmem:[#allocation2 + $0x2c0] sm:$0xff] %vm2036_vm9, %v2021_v1  ;;  %v2402_v37 = vld [vmem:[#allocation2 + $0xc0] sm:$0xff] }
 0x684   : > { %1959 = vst.msk [vmem:[#allocation2 + $0x1c0] sm:$0xff] %vm1954_vm15, %v1939_v60  ;;  %2108 = vrot.lane.b32.xlu1 %v8179_v58, %s7148_s13  ;;  %2110 = vrot.lane.b32.xlu0 %v8171_v56, %s7148_s13  ;;  %v2414_v60 = vld [vmem:[#allocation2 + $0x180] sm:$0xff] }
 0x686   : > { %v1980_v2 = vpop.permute.xlu1 %1979  ;;  %v1898_v5 = vpop.permute.xlu0 %1897 }
 0x687   : > { %2000 = vst.msk [vmem:[#allocation2 + $0x240] sm:$0xff] %vm1995_vm4, %v1980_v2  ;;  %v2398_v2 = vld [vmem:[#allocation2 + $0x80] sm:$0xff] }
 0x688   : > { %1918 = vst.msk [vmem:[#allocation2 + $0x140] sm:$0xff] %vm1913_vm6, %v1898_v5  ;;  %2189 = vrot.lane.b32.xlu1 %v8155_v54, %s9929_s16  ;;  %2191 = vrot.lane.b32.xlu0 %v8179_v58, %s9929_s16 }
 0x68a   : > { %v2322_v6 = vpop.permute.xlu1 %2321  ;;  %v2062_v7 = vpop.permute.xlu0 %2061 }
 0x68b   : > { %2342 = vst.msk [vmem:[#allocation2 + $0x6c0] sm:$0xff] %vm2337_vm13, %v2322_v6  ;;  %v2418_v44 = vld [vmem:[#allocation2 + $0x1c0] sm:$0xff] }
 0x68c   : > { %2082 = vst.msk [vmem:[#allocation2 + $0x340] sm:$0xff] %vm2077_vm12, %v2062_v7  ;;  %2199 = vrot.lane.b32.xlu1 %v8211_v61, %s9929_s16  ;;  %2365 = vrot.lane.b32.xlu0 %v8187_v59, %s9930_s11 }
 0x68e   : > { %v1863_v8 = vpop.permute.xlu1 %1862  ;;  %v1945_v9 = vpop.permute.xlu0 %1944 }
 0x68f   : > { %1880 = vst.msk [vmem:[#allocation2 + $0xf0] sm:$0xff] %vm1872_vm0, %v1863_v8 }
 0x690   : > { %1962 = vst.msk [vmem:[#allocation2 + $0x1f0] sm:$0xff] %vm1954_vm15, %v1945_v9  ;;  %2363 = vrot.lane.b32.xlu1 %v8195_v57, %s9930_s11  ;;  %2116 = vrot.lane.b32.xlu0 %v8211_v61, %s7148_s13  ;;  %v1764_v57 = vld [vmem:[%s9885_s4 + $0x28] sm:$0xff] }
 0x691   : > { %2761 = vmatprep.mubr.f32.mxu0 %v1764_v57  ;;  %v2394_v57 = vld [vmem:[#allocation2 + $0x40] sm:$0xff] }
 0x692   : > { %v1822_v10 = vpop.permute.xlu1 %1821  ;;  %v1904_v13 = vpop.permute.xlu0 %1903 }
 0x693   : > { %1839 = vst.msk [vmem:[#allocation2 + $0x70] sm:$0xff] %vm1831_vm1, %v1822_v10 }
 0x694   : > { %1921 = vst.msk [vmem:[#allocation2 + $0x170] sm:$0xff] %vm1913_vm6, %v1904_v13  ;;  %2367 = vrot.lane.b32.xlu1 %v8211_v61, %s9930_s11  ;;  %2106 = vrot.lane.b32.xlu0 %v8155_v54, %s7148_s13  ;;  %v2411_v13 = vld [vmem:[#allocation2 + $0x150] sm:$0xff] }
 0x696   : > { %v1986_v59 = vpop.permute.xlu1 %1985  ;;  %v2027_v14 = vpop.permute.xlu0 %2026  ;;  %v2405_v16 = vld [vmem:[#allocation2 + $0xf0] sm:$0xff] }
 0x697   : > { %v2421_v15 = vld [vmem:[#allocation2 + $0x1f0] sm:$0xff]  ;;  %2003 = vst.msk [vmem:[#allocation2 + $0x270] sm:$0xff] %vm1995_vm4, %v1986_v59 }
 0x698   : > { %2044 = vst.msk [vmem:[#allocation2 + $0x2f0] sm:$0xff] %vm2036_vm9, %v2027_v14  ;;  %6396 = vmatprep.subr.mxu1 %v2421_v15  ;;  %2104 = vrot.lane.b32.xlu1 %v8163_v55, %s7148_s13  ;;  %v2395_v59 = vld [vmem:[#allocation2 + $0x50] sm:$0xff] }
 0x699   : > { %6397 = vmatpush3.msra.mxu1 %v2405_v16  ;;  %2187 = vrot.lane.b32.xlu0 %v8163_v55, %s9929_s16  ;;  %v2410_v16 = vld [vmem:[#allocation2 + $0x140] sm:$0xff] }
 0x69a   : > { %v2318_v61 = vpop.permute.xlu1 %2317  ;;  %v2068_v17 = vpop.permute.xlu0 %2067  ;;  %v2397_v6 = vld [vmem:[#allocation2 + $0x70] sm:$0xff] }
 0x69b   : > { %2340 = vst.msk [vmem:[#allocation2 + $0x6a0] sm:$0xff] %vm2337_vm13, %v2318_v61  ;;  %v2413_v5 = vld [vmem:[#allocation2 + $0x170] sm:$0xff] }
 0x69c   : > { %2085 = vst.msk [vmem:[#allocation2 + $0x370] sm:$0xff] %vm2077_vm12, %v2068_v17  ;;  %2359 = vrot.lane.b32.xlu1 %v8179_v58, %s9930_s11  ;;  %v2867_v58 = vld [vmem:[%s9883_s2 + $0x5e8] ss:$0 sm:$0xff]  ;;  %v2409_v61 = vld [vmem:[#allocation2 + $0x130] sm:$0xff] }
 0x69d   : > { %2361 = vrot.lane.b32.xlu0 %v8171_v56, %s9930_s11  ;;  %v2393_v17 = vld [vmem:[#allocation2 + $0x30] sm:$0xff] }
 0x69e   : > { %v2160_v28 = vpop.permute.xlu1 %2159  ;;  %v2328_v29 = vpop.permute.xlu0 %2327 }
 0x69f   : > { %2177 = vst.msk [vmem:[#allocation2 + $0x4f0] sm:$0xff] %vm2169_vm7, %v2160_v28 }
 0x6a0   : > { %2345 = vst.msk [vmem:[#allocation2 + $0x6f0] sm:$0xff] %vm2337_vm13, %v2328_v29  ;;  %2355 = vrot.lane.b32.xlu1 %v8163_v55, %s9930_s11 }
 0x6a1   : > { %2357 = vrot.lane.b32.xlu0 %v8155_v54, %s9930_s11  ;;  %s7163_s11 = smov 105  }
 0x6a2   : > { %v1861_v32 = vpop.permute.xlu1 %1860  ;;  %v1943_v33 = vpop.permute.xlu0 %1942 }
 0x6a3   : > { %1879 = vst.msk [vmem:[#allocation2 + $0xe0] sm:$0xff] %vm1872_vm0, %v1861_v32  ;;  %vm2295_vm0 = vcmask 220160   ;;  %v2408_v32 = vld [vmem:[#allocation2 + $0x120] sm:$0xff] }
 0x6a4   : > { %1961 = vst.msk [vmem:[#allocation2 + $0x1e0] sm:$0xff] %vm1954_vm15, %v1943_v33  ;;  %v2392_v33 = vld [vmem:[#allocation2 + $0x20] sm:$0xff]  ;;  %vm2211_vm15 = vcmask 236544  }
 0x6a5   : > { %2874 = vperm.xlu0 %7062, %v2867_v58   ;;  %v2407_v58 = vld [vmem:[#allocation2 + $0x110] sm:$0xff] }
 0x6a6   : > { %v2314_v56 = vpop.permute.xlu1 %2313  ;;  %v2320_v38 = vpop.permute.xlu0 %2319  ;;  %v2469_v51 = vld [vmem:[#allocation2 + $0x4f0] sm:$0xff] }
 0x6a7   : > { %2338 = vst.msk [vmem:[#allocation2 + $0x680] sm:$0xff] %vm2337_vm13, %v2314_v56  ;;  %2341 = vst.msk [vmem:[#allocation2 + $0x6b0] sm:$0xff] %vm2337_vm13, %v2320_v38  ;;  %v2391_v56 = vld [vmem:[#allocation2 + $0x10] sm:$0xff] }
 0x6aa   : > { %v2156_v55 = vpop.permute.xlu1 %2155  ;;  %v2244_v54 = vpop.permute.xlu0 %2243  ;;  %v2404_v41 = vld [vmem:[#allocation2 + $0xe0] sm:$0xff] }
 0x6ab   : > { %v2420_v39 = vld [vmem:[#allocation2 + $0x1e0] sm:$0xff]  ;;  %2175 = vst.msk [vmem:[#allocation2 + $0x4d0] sm:$0xff] %vm2169_vm7, %v2156_v55 }
 0x6ac   : > { %2261 = vst.msk [vmem:[#allocation2 + $0x5f0] sm:$0xff] %vm2253_vm14, %v2244_v54  ;;  %6398 = vmatprep.subr.mxu1 %v2420_v39  ;;  %v1759_v54 = vld [vmem:[%s9885_s4] sm:$0xff] }
 0x6ad   : > { %6399 = vmatpush3.msra.mxu1 %v2404_v41  ;;  %v2390_v39 = vld [vmem:[#allocation2] sm:$0xff]  ;;  %v1768_v41 = vld [vmem:[%s9885_s4 + $0x48] sm:$0xff] }
 0x6ae   : > { %6400 = vmatprep.subr.mxu1 %v2419_v34  ;;  %v2238_v42 = vpop.permute.xlu1 %2237  ;;  %v2316_v43 = vpop.permute.xlu0 %2315  ;;  %v2453_v34 = vld [vmem:[#allocation2 + $0x3f0] sm:$0xff] }
 0x6af   : > { %6401 = vmatpush3.msra.mxu1 %v2403_v35  ;;  %2258 = vst.msk [vmem:[#allocation2 + $0x5c0] sm:$0xff] %vm2253_vm14, %v2238_v42  ;;  %v2437_v35 = vld [vmem:[#allocation2 + $0x2f0] sm:$0xff] }
 0x6b0   : > { %2339 = vst.msk [vmem:[#allocation2 + $0x690] sm:$0xff] %vm2337_vm13, %v2316_v43  ;;  %6402 = vmatprep.subr.mxu1 %v2418_v44  ;;  %v2452_v44 = vld [vmem:[#allocation2 + $0x3e0] sm:$0xff] }
 0x6b1   : > { %6403 = vmatpush3.msra.mxu1 %v2402_v37 }
 0x6b2   : > { %6404 = vmatprep.subr.mxu1 %v2417_v45  ;;  %v1820_v40 = vpop.permute.xlu1 %1819  ;;  %v1902_v48 = vpop.permute.xlu0 %1901  ;;  %v1776_v45 = vld [vmem:[%s9885_s4 + $0x88] sm:$0xff] }
 0x6b3   : > { %6405 = vmatpush3.msra.mxu1 %v2401_v47  ;;  %v2485_v46 = vld [vmem:[#allocation2 + $0x5f0] sm:$0xff]  ;;  %1838 = vst.msk [vmem:[#allocation2 + $0x60] sm:$0xff] %vm1831_vm1, %v1820_v40  ;;  %vm2379_vm1 = vcmask 203776  }
 0x6b4   : > { %1920 = vst.msk [vmem:[#allocation2 + $0x160] sm:$0xff] %vm1913_vm6, %v1902_v48  ;;  %6406 = vmatprep.subr.mxu1 %v2416_v49  ;;  %6484 = vmatprep.subr.mxu0 %v2485_v46  ;;  %v2451_v47 = vld [vmem:[#allocation2 + $0x3d0] sm:$0xff]  ;;  %v2450_v49 = vld [vmem:[#allocation2 + $0x3c0] sm:$0xff]  ;;  %vm2511_vm6 = vcmask 531456  }
 0x6b5   : > { %6407 = vmatpush3.msra.mxu1 %v2400_v50  ;;  %6485 = vmatpush3.msra.mxu0 %v2469_v51  ;;  %v1775_v46 = vld [vmem:[%s9885_s4 + $0x80] sm:$0xff]  ;;  %v1784_v51 = vld [vmem:[%s9885_s4 + $0xc8] sm:$0xff] }
 0x6b6   : > { %6408 = vmatprep.subr.mxu1 %v2415_v52  ;;  %v2152_v62 = vpop.permute.xlu1 %2151  ;;  %v2240_v1 = vpop.permute.xlu0 %2239  ;;  %v2434_v50 = vld [vmem:[#allocation2 + $0x2c0] sm:$0xff]  ;;  %v2449_v52 = vld [vmem:[#allocation2 + $0x3b0] sm:$0xff] }
 0x6b7   : > { %6409 = vmatpush3.msra.mxu1 %v2399_v53  ;;  %2173 = vst.msk [vmem:[#allocation2 + $0x4b0] sm:$0xff] %vm2169_vm7, %v2152_v62 }
 0x6b8   : > { %2259 = vst.msk [vmem:[#allocation2 + $0x5d0] sm:$0xff] %vm2253_vm14, %v2240_v1  ;;  %6410 = vmatprep.subr.mxu1 %v2414_v60  ;;  %v2448_v1 = vld [vmem:[#allocation2 + $0x3a0] sm:$0xff] }
 0x6b9   : > { %6411 = vmatpush3.msra.mxu1 %v2398_v2  ;;  %v1783_v60 = vld [vmem:[%s9885_s4 + $0xc0] sm:$0xff] }
 0x6ba   : > { %6412 = vmatprep.subr.mxu1 %v2413_v5  ;;  %v2234_v7 = vpop.permute.xlu1 %2233  ;;  %v2286_v8 = vpop.permute.xlu0 %2285  ;;  %v2396_v10 = vld [vmem:[#allocation2 + $0x60] sm:$0xff]  ;;  %v1762_v5 = vld [vmem:[%s9885_s4 + $0x18] sm:$0xff] }
 0x6bb   : > { %6413 = vmatpush3.msra.mxu1 %v2397_v6  ;;  %v2412_v9 = vld [vmem:[#allocation2 + $0x160] sm:$0xff]  ;;  %2256 = vst.msk [vmem:[#allocation2 + $0x5a0] sm:$0xff] %vm2253_vm14, %v2234_v7  ;;  %v2431_v6 = vld [vmem:[#allocation2 + $0x290] sm:$0xff] }
 0x6bc   : > { %2303 = vst.msk [vmem:[#allocation2 + $0x670] sm:$0xff] %vm2295_vm0, %v2286_v8  ;;  %6414 = vmatprep.subr.mxu1 %v2412_v9  ;;  %v2432_v2 = vld [vmem:[#allocation2 + $0x2a0] sm:$0xff] }
 0x6bd   : > { %6415 = vmatpush3.msra.mxu1 %v2396_v10  ;;  %v2446_v9 = vld [vmem:[#allocation2 + $0x380] sm:$0xff] }
 0x6be   : > { %6416 = vmatprep.subr.mxu1 %v2411_v13  ;;  %v2280_v14 = vpop.permute.xlu1 %2279  ;;  %v2154_v15 = vpop.permute.xlu0 %2153  ;;  %v2430_v10 = vld [vmem:[#allocation2 + $0x280] sm:$0xff]  ;;  %v2445_v13 = vld [vmem:[#allocation2 + $0x370] sm:$0xff] }
 0x6bf   : > { %6417 = vmatpush3.msra.mxu1 %v2395_v59  ;;  %2300 = vst.msk [vmem:[#allocation2 + $0x640] sm:$0xff] %vm2295_vm0, %v2280_v14  ;;  %v2429_v59 = vld [vmem:[#allocation2 + $0x270] sm:$0xff] }
 0x6c0   : > { %2174 = vst.msk [vmem:[#allocation2 + $0x4c0] sm:$0xff] %vm2169_vm7, %v2154_v15  ;;  %6418 = vmatprep.subr.mxu1 %v2410_v16 }
 0x6c1   : > { %6419 = vmatpush3.msra.mxu1 %v2394_v57  ;;  %v2443_v57 = vld [vmem:[#allocation2 + $0x350] sm:$0xff] }
 0x6c2   : > { %6420 = vmatprep.subr.mxu1 %v2409_v61  ;;  %v2025_v28 = vpop.permute.xlu1 %2024  ;;  %v2236_v29 = vpop.permute.xlu0 %2235  ;;  %v2427_v61 = vld [vmem:[#allocation2 + $0x250] sm:$0xff] }
 0x6c3   : > { %6421 = vmatpush3.msra.mxu1 %v2393_v17  ;;  %2043 = vst.msk [vmem:[#allocation2 + $0x2e0] sm:$0xff] %vm2036_vm9, %v2025_v28 }
 0x6c4   : > { %2257 = vst.msk [vmem:[#allocation2 + $0x5b0] sm:$0xff] %vm2253_vm14, %v2236_v29  ;;  %6422 = vmatprep.subr.mxu1 %v2408_v32  ;;  %v2442_v29 = vld [vmem:[#allocation2 + $0x340] sm:$0xff] }
 0x6c5   : > { %6423 = vmatpush3.msra.mxu1 %v2392_v33  ;;  %v2426_v32 = vld [vmem:[#allocation2 + $0x240] sm:$0xff]  ;;  %v2441_v33 = vld [vmem:[#allocation2 + $0x330] sm:$0xff] }
 0x6c6   : > { %6424 = vmatprep.subr.mxu1 %v2407_v58  ;;  %v2148_v38 = vpop.permute.xlu1 %2147  ;;  %v2282_v55 = vpop.permute.xlu0 %2281  ;;  %v2425_v58 = vld [vmem:[#allocation2 + $0x230] sm:$0xff] }
 0x6c7   : > { %6425 = vmatpush3.msra.mxu1 %v2391_v56  ;;  %2171 = vst.msk [vmem:[#allocation2 + $0x490] sm:$0xff] %vm2169_vm7, %v2148_v38 }
 0x6c8   : > { %2301 = vst.msk [vmem:[#allocation2 + $0x650] sm:$0xff] %vm2295_vm0, %v2282_v55  ;;  %6426 = vmatprep.subr.mxu1 %v8380_v30  ;;  %v1767_v30 = vld [vmem:[%s9885_s4 + $0x40] sm:$0xff] }
 0x6c9   : > { %6427 = vmatpush3.msra.mxu1 %v2390_v39  ;;  %v2440_v55 = vld [vmem:[#allocation2 + $0x320] sm:$0xff]  ;;  %v2439_v39 = vld [vmem:[#allocation2 + $0x310] sm:$0xff] }
 0x6ca   : > { %6440 = vmatprep.subr.mxu1 %v2453_v34  ;;  %2592 = vmatmul.mubr.f32.vlgmr.msra.gmra.mxu1 %v1759_v54  ;;  %v2230_v42 = vpop.permute.xlu1 %2229  ;;  %v2150_v43 = vpop.permute.xlu0 %2149  ;;  %v2436_v37 = vld [vmem:[#allocation2 + $0x2e0] sm:$0xff] }
 0x6cb   : > { %6441 = vmatpush3.msra.mxu1 %v2437_v35  ;;  %2596 = vmatprep.mubr.f32.mxu1 %v1768_v41  ;;  %2254 = vst.msk [vmem:[#allocation2 + $0x580] sm:$0xff] %vm2253_vm14, %v2230_v42  ;;  %v2424_v54 = vld [vmem:[#allocation2 + $0x220] sm:$0xff]  ;;  %v2423_v41 = vld [vmem:[#allocation2 + $0x210] sm:$0xff] }
 0x6cc   : > { %2172 = vst.msk [vmem:[#allocation2 + $0x4a0] sm:$0xff] %vm2169_vm7, %v2150_v43  ;;  %6442 = vmatprep.subr.mxu1 %v2452_v44  ;;  %v2438_v42 = vld [vmem:[#allocation2 + $0x300] sm:$0xff]  ;;  %v1761_v43 = vld [vmem:[%s9885_s4 + $0x10] sm:$0xff]  ;;  %v1770_v44 = vld [vmem:[%s9885_s4 + $0x58] sm:$0xff] }
 0x6cd   : > { %6443 = vmatpush3.msra.mxu1 %v2436_v37  ;;  %v2501_v37 = vld [vmem:[#allocation2 + $0x6f0] sm:$0xff] }
 0x6ce   : > { %6444 = vmatprep.subr.mxu1 %v2451_v47  ;;  %2597 = vmatmul.mubr.f32.gmra.mxu1 %v1767_v30  ;;  %v2276_v40 = vpop.permute.xlu1 %2275  ;;  %v2232_v48 = vpop.permute.xlu0 %2231 }
 0x6cf   : > { %6445 = vmatpush3.msra.mxu1 %v8479_v63  ;;  %2601 = vmatprep.mubr.f32.mxu1 %v1776_v45  ;;  %2298 = vst.msk [vmem:[#allocation2 + $0x620] sm:$0xff] %vm2295_vm0, %v2276_v40  ;;  %v2433_v63 = vld [vmem:[#allocation2 + $0x2b0] sm:$0xff] }
 0x6d0   : > { %2255 = vst.msk [vmem:[#allocation2 + $0x590] sm:$0xff] %vm2253_vm14, %v2232_v48  ;;  %6446 = vmatprep.subr.mxu1 %v2450_v49  ;;  %v1769_v40 = vld [vmem:[%s9885_s4 + $0x50] sm:$0xff] }
 0x6d1   : > { %6447 = vmatpush3.msra.mxu1 %v2434_v50  ;;  %v2499_v48 = vld [vmem:[#allocation2 + $0x6d0] sm:$0xff] }
 0x6d2   : > { %6448 = vmatprep.subr.mxu1 %v2449_v52  ;;  %2602 = vmatmul.mubr.f32.gmra.mxu1 %v1775_v46  ;;  %v1984_v53 = vpop.permute.xlu1 %1983  ;;  %v2066_v62 = vpop.permute.xlu0 %2065  ;;  %v1777_v50 = vld [vmem:[%s9885_s4 + $0x90] sm:$0xff]  ;;  %v1786_v52 = vld [vmem:[%s9885_s4 + $0xd8] sm:$0xff] }
 0x6d3   : > { %6449 = vmatpush3.msra.mxu1 %v2433_v63  ;;  %2606 = vmatprep.mubr.f32.mxu1 %v1784_v51  ;;  %2002 = vst.msk [vmem:[#allocation2 + $0x260] sm:$0xff] %vm1995_vm4, %v1984_v53  ;;  %v2498_v51 = vld [vmem:[#allocation2 + $0x6c0] sm:$0xff]  ;;  %v2497_v63 = vld [vmem:[#allocation2 + $0x6b0] sm:$0xff] }
 0x6d4   : > { %2084 = vst.msk [vmem:[#allocation2 + $0x360] sm:$0xff] %vm2077_vm12, %v2066_v62  ;;  %6450 = vmatprep.subr.mxu1 %v2448_v1  ;;  %v1785_v1 = vld [vmem:[%s9885_s4 + $0xd0] sm:$0xff] }
 0x6d5   : > { %6451 = vmatpush3.msra.mxu1 %v2432_v2  ;;  %v1766_v2 = vld [vmem:[%s9885_s4 + $0x38] sm:$0xff] }
 0x6d6   : > { %6452 = vmatprep.subr.mxu1 %v8389_v31  ;;  %2607 = vmatmul.mubr.f32.gmra.mxu1 %v1783_v60  ;;  %v2119_v7 = vpop.permute.xlu1 %2118  ;;  %v2278_v8 = vpop.permute.xlu0 %2277  ;;  %v2496_v60 = vld [vmem:[#allocation2 + $0x6a0] sm:$0xff] }
 0x6d7   : > { %6453 = vmatpush3.msra.mxu1 %v2431_v6  ;;  %2676 = vmatprep.mubr.f32.mxu1 %v1762_v5  ;;  %2135 = vst.msk [vmem:[#allocation2 + $0x470] sm:$0xff] %vm468_vm10, %v2119_v7  ;;  %v2495_v5 = vld [vmem:[#allocation2 + $0x690] sm:$0xff] }
 0x6d8   : > { %2299 = vst.msk [vmem:[#allocation2 + $0x630] sm:$0xff] %vm2295_vm0, %v2278_v8  ;;  %6454 = vmatprep.subr.mxu1 %v2446_v9  ;;  %v2494_v9 = vld [vmem:[#allocation2 + $0x680] sm:$0xff] }
 0x6d9   : > { %6455 = vmatpush3.msra.mxu1 %v2430_v10  ;;  %v2493_v10 = vld [vmem:[#allocation2 + $0x670] sm:$0xff] }
 0x6da   : > { %6456 = vmatprep.subr.mxu1 %v2445_v13  ;;  %v2272_v14 = vpop.permute.xlu1 %2271  ;;  %v2146_v15 = vpop.permute.xlu0 %2145  ;;  %v2428_v16 = vld [vmem:[#allocation2 + $0x260] sm:$0xff] }
 0x6db   : > { %6457 = vmatpush3.msra.mxu1 %v2429_v59  ;;  %v2444_v31 = vld [vmem:[#allocation2 + $0x360] sm:$0xff]  ;;  %2296 = vst.msk [vmem:[#allocation2 + $0x600] sm:$0xff] %vm2295_vm0, %v2272_v14 }
 0x6dc   : > { %2170 = vst.msk [vmem:[#allocation2 + $0x480] sm:$0xff] %vm2169_vm7, %v2146_v15  ;;  %6458 = vmatprep.subr.mxu1 %v2444_v31  ;;  %v2483_v31 = vld [vmem:[#allocation2 + $0x5d0] sm:$0xff] }
 0x6dd   : > { %6459 = vmatpush3.msra.mxu1 %v2428_v16  ;;  %v2467_v16 = vld [vmem:[#allocation2 + $0x4d0] sm:$0xff] }
 0x6de   : > { %6460 = vmatprep.subr.mxu1 %v2443_v57  ;;  %v2115_v17 = vpop.permute.xlu1 %2114  ;;  %v2202_v28 = vpop.permute.xlu0 %2201  ;;  %v2482_v57 = vld [vmem:[#allocation2 + $0x5c0] sm:$0xff] }
 0x6df   : > { %6461 = vmatpush3.msra.mxu1 %v2427_v61  ;;  %2133 = vst.msk [vmem:[#allocation2 + $0x450] sm:$0xff] %vm468_vm10, %v2115_v17  ;;  %v2491_v61 = vld [vmem:[#allocation2 + $0x650] sm:$0xff] }
 0x6e0   : > { %2219 = vst.msk [vmem:[#allocation2 + $0x570] sm:$0xff] %vm2211_vm15, %v2202_v28  ;;  %6462 = vmatprep.subr.mxu1 %v2442_v29  ;;  %v2466_v29 = vld [vmem:[#allocation2 + $0x4c0] sm:$0xff] }
 0x6e1   : > { %6463 = vmatpush3.msra.mxu1 %v2426_v32  ;;  %v2481_v32 = vld [vmem:[#allocation2 + $0x5b0] sm:$0xff] }
 0x6e2   : > { %6464 = vmatprep.subr.mxu1 %v2441_v33  ;;  %v2326_v56 = vpop.permute.xlu1 %2325  ;;  %v2274_v38 = vpop.permute.xlu0 %2273  ;;  %v2490_v33 = vld [vmem:[#allocation2 + $0x640] sm:$0xff] }
 0x6e3   : > { %6465 = vmatpush3.msra.mxu1 %v2425_v58  ;;  %2344 = vst.msk [vmem:[#allocation2 + $0x6e0] sm:$0xff] %vm2337_vm13, %v2326_v56  ;;  %v2465_v58 = vld [vmem:[#allocation2 + $0x4b0] sm:$0xff]  ;;  %v2480_v56 = vld [vmem:[#allocation2 + $0x5a0] sm:$0xff] }
 0x6e4   : > { %2297 = vst.msk [vmem:[#allocation2 + $0x610] sm:$0xff] %vm2295_vm0, %v2274_v38  ;;  %6466 = vmatprep.subr.mxu1 %v2440_v55  ;;  %v2489_v38 = vld [vmem:[#allocation2 + $0x630] sm:$0xff] }
 0x6e5   : > { %6467 = vmatpush3.msra.mxu1 %v2424_v54 }
 0x6e6   : > { %6468 = vmatprep.subr.mxu1 %v2439_v39  ;;  %v2113_v34 = vpop.permute.xlu1 %2112  ;;  %v2198_v35 = vpop.permute.xlu0 %2197  ;;  %v2464_v39 = vld [vmem:[#allocation2 + $0x4a0] sm:$0xff] }
 0x6e7   : > { %6469 = vmatpush3.msra.mxu1 %v2423_v41  ;;  %2132 = vst.msk [vmem:[#allocation2 + $0x440] sm:$0xff] %vm468_vm10, %v2113_v34  ;;  %v2479_v41 = vld [vmem:[#allocation2 + $0x590] sm:$0xff]  ;;  %v2488_v34 = vld [vmem:[#allocation2 + $0x620] sm:$0xff] }
 0x6e8   : > { %2217 = vst.msk [vmem:[#allocation2 + $0x550] sm:$0xff] %vm2211_vm15, %v2198_v35  ;;  %6470 = vmatprep.subr.mxu1 %v2438_v42  ;;  %v2463_v35 = vld [vmem:[#allocation2 + $0x490] sm:$0xff]  ;;  %v2478_v42 = vld [vmem:[#allocation2 + $0x580] sm:$0xff] }
 0x6e9   : > { %6471 = vmatpush3.msra.mxu1 %v8438_v36  ;;  %v1778_v36 = vld [vmem:[%s9885_s4 + $0x98] sm:$0xff] }
 0x6ea   : > { %2677 = vmatmul.mubr.f32.vlgmr.msra.gmra.mxu1 %v1761_v43  ;;  %2782 = vmatprep.subr.mxu1 %v7143_v3  ;;  %v2194_v30 = vpop.permute.xlu1 %2193  ;;  %v2196_v45 = vpop.permute.xlu0 %2195  ;;  %v2500_v47 = vld [vmem:[#allocation2 + $0x6e0] sm:$0xff] }
 0x6eb   : > { %2783 = vmatpush1.msra.mxu1 %v2501_v37  ;;  %2681 = vmatprep.mubr.f32.mxu1 %v1770_v44  ;;  %2215 = vst.msk [vmem:[#allocation2 + $0x530] sm:$0xff] %vm2211_vm15, %v2194_v30  ;;  %2216 = vst.msk [vmem:[#allocation2 + $0x540] sm:$0xff] %vm2211_vm15, %v2196_v45  ;;  %v2487_v43 = vld [vmem:[#allocation2 + $0x610] sm:$0xff]  ;;  %v2462_v30 = vld [vmem:[#allocation2 + $0x480] sm:$0xff] }
 0x6ec   : > { %2784 = vmatprep.subr.mxu1 %v7143_v3  ;;  %v2477_v45 = vld [vmem:[#allocation2 + $0x570] sm:$0xff] }
 0x6ed   : > { %2785 = vmatpush1.msra.mxu1 %v2500_v47  ;;  %v2486_v47 = vld [vmem:[#allocation2 + $0x600] sm:$0xff] }
 0x6ee   : > { %2682 = vmatmul.mubr.f32.gmra.mxu1 %v1769_v40  ;;  %2786 = vmatprep.subr.mxu1 %v7143_v3  ;;  %v2242_v49 = vpop.permute.xlu1 %2241  ;;  %v2370_v46 = vpop.permute.xlu0 %2369  ;;  %v2510_v40 = vld [vmem:[#allocation2 + $0x780] sm:$0x1] }
 0x6ef   : > { %2787 = vmatpush1.msra.mxu1 %v2499_v48  ;;  %2686 = vmatprep.mubr.f32.mxu1 %v1778_v36  ;;  %2260 = vst.msk [vmem:[#allocation2 + $0x5e0] sm:$0xff] %vm2253_vm14, %v2242_v49  ;;  %v2461_v36 = vld [vmem:[#allocation2 + $0x470] sm:$0xff]  ;;  %vm3250_vm14 = vcmask 106496  }
 0x6f0   : > { %2387 = vst.msk [vmem:[#allocation2 + $0x770] sm:$0xff] %vm2379_vm1, %v2370_v46  ;;  %2788 = vmatprep.subr.mxu1 %v7143_v3 }
 0x6f1   : > { %2789 = vmatpush1.msra.mxu1 %v2498_v51  ;;  %v2475_v51 = vld [vmem:[#allocation2 + $0x550] sm:$0xff]  ;;  %3254 = vst.msk [vmem:[#allocation2 + $0x213] sm:$0x1] %vm3250_vm14, %v7146_v12 }
 0x6f2   : > { %2687 = vmatmul.mubr.f32.gmra.mxu1 %v1777_v50  ;;  %2790 = vmatprep.subr.mxu1 %v7143_v3  ;;  %v2284_v53 = vpop.permute.xlu1 %2283  ;;  %v2158_v62 = vpop.permute.xlu0 %2157 }
 0x6f3   : > { %2791 = vmatpush1.msra.mxu1 %v2497_v63  ;;  %2691 = vmatprep.mubr.f32.mxu1 %v1786_v52  ;;  %2302 = vst.msk [vmem:[#allocation2 + $0x660] sm:$0xff] %vm2295_vm0, %v2284_v53  ;;  %v2459_v63 = vld [vmem:[#allocation2 + $0x450] sm:$0xff]  ;;  %v2474_v53 = vld [vmem:[#allocation2 + $0x540] sm:$0xff] }
 0x6f4   : > { %2176 = vst.msk [vmem:[#allocation2 + $0x4e0] sm:$0xff] %vm2169_vm7, %v2158_v62  ;;  %2792 = vmatprep.subr.mxu1 %v7143_v3 }
 0x6f5   : > { %2793 = vmatpush1.msra.mxu1 %v2496_v60 }
 0x6f6   : > { %2692 = vmatmul.mubr.f32.gmra.mxu1 %v1785_v1  ;;  %2794 = vmatprep.subr.mxu1 %v7143_v3  ;;  %v2109_v6 = vpop.permute.xlu1 %2108  ;;  %v2111_v7 = vpop.permute.xlu0 %2110  ;;  %v2484_v8 = vld [vmem:[#allocation2 + $0x5e0] sm:$0xff] }
 0x6f7   : > { %2795 = vmatpush1.msra.mxu1 %v2495_v5  ;;  %6096 = vmatprep.mubr.msk.f32.mxu1 %vm2511_vm6, %v1766_v2  ;;  %2130 = vst.msk [vmem:[#allocation2 + $0x420] sm:$0xff] %vm468_vm10, %v2109_v6  ;;  %2131 = vst.msk [vmem:[#allocation2 + $0x430] sm:$0xff] %vm468_vm10, %v2111_v7  ;;  %v2509_v52 = vld [vmem:[#allocation2 + $0x770] sm:$0xff]  ;;  %v2458_v1 = vld [vmem:[#allocation2 + $0x440] sm:$0xff] }
 0x6f8   : > { %6486 = vmatprep.subr.mxu0 %v2484_v8  ;;  %2796 = vmatprep.subr.mxu1 %v7143_v3  ;;  %v2473_v5 = vld [vmem:[#allocation2 + $0x530] sm:$0xff] }
 0x6f9   : > { %2797 = vmatpush1.msra.mxu1 %v2494_v9 }
 0x6fa   : > { %2798 = vmatprep.subr.mxu1 %v7143_v3  ;;  %v2190_v13 = vpop.permute.xlu1 %2189  ;;  %v2192_v59 = vpop.permute.xlu0 %2191  ;;  %v2492_v15 = vld [vmem:[#allocation2 + $0x660] sm:$0xff] }
 0x6fb   : > { %2799 = vmatpush1.msra.mxu1 %v2493_v10  ;;  %v2468_v14 = vld [vmem:[#allocation2 + $0x4e0] sm:$0xff]  ;;  %2213 = vst.msk [vmem:[#allocation2 + $0x510] sm:$0xff] %vm2211_vm15, %v2190_v13  ;;  %2214 = vst.msk [vmem:[#allocation2 + $0x520] sm:$0xff] %vm2211_vm15, %v2192_v59 }
 0x6fc   : > { %6487 = vmatpush3.msra.mxu0 %v2468_v14  ;;  %2800 = vmatprep.subr.mxu1 %v7143_v3 }
 0x6fd   : > { %6488 = vmatprep.subr.mxu0 %v2483_v31  ;;  %2801 = vmatpush1.msra.mxu1 %v2492_v15 }
 0x6fe   : > { %6489 = vmatpush3.msra.mxu0 %v2467_v16  ;;  %2802 = vmatprep.subr.mxu1 %v7143_v3  ;;  %v2200_v17 = vpop.permute.xlu1 %2199  ;;  %v2366_v28 = vpop.permute.xlu0 %2365  ;;  %v2457_v6 = vld [vmem:[#allocation2 + $0x430] sm:$0xff]  ;;  %v2456_v10 = vld [vmem:[#allocation2 + $0x420] sm:$0xff] }
 0x6ff   : > { %6490 = vmatprep.subr.mxu0 %v2482_v57  ;;  %2803 = vmatpush1.msra.mxu1 %v2491_v61  ;;  %2218 = vst.msk [vmem:[#allocation2 + $0x560] sm:$0xff] %vm2211_vm15, %v2200_v17  ;;  %v1763_v16 = vld [vmem:[%s9885_s4 + $0x20] sm:$0xff]  ;;  %v1772_v61 = vld [vmem:[%s9885_s4 + $0x68] sm:$0xff] }
 0x700   : > { %2385 = vst.msk [vmem:[#allocation2 + $0x750] sm:$0xff] %vm2379_vm1, %v2366_v28  ;;  %6491 = vmatpush3.msra.mxu0 %v2466_v29  ;;  %2804 = vmatprep.subr.mxu1 %v7143_v3  ;;  %v1771_v29 = vld [vmem:[%s9885_s4 + $0x60] sm:$0xff] }
 0x701   : > { %6492 = vmatprep.subr.mxu0 %v2481_v32  ;;  %2805 = vmatpush1.msra.mxu1 %v2490_v33  ;;  %v1780_v32 = vld [vmem:[%s9885_s4 + $0xa8] sm:$0xff] }
 0x702   : > { %6493 = vmatpush3.msra.mxu0 %v2465_v58  ;;  %2806 = vmatprep.subr.mxu1 %v7143_v3  ;;  %v2364_v55 = vpop.permute.xlu1 %2363  ;;  %v2117_v54 = vpop.permute.xlu0 %2116  ;;  %v2472_v8 = vld [vmem:[#allocation2 + $0x520] sm:$0xff]  ;;  %v2471_v14 = vld [vmem:[#allocation2 + $0x510] sm:$0xff] }
 0x703   : > { %6494 = vmatprep.subr.mxu0 %v2480_v56  ;;  %2807 = vmatpush1.msra.mxu1 %v2489_v38  ;;  %2384 = vst.msk [vmem:[#allocation2 + $0x740] sm:$0xff] %vm2379_vm1, %v2364_v55  ;;  %v1765_v58 = vld [vmem:[%s9885_s4 + $0x30] sm:$0xff]  ;;  %v1779_v38 = vld [vmem:[%s9885_s4 + $0xa0] sm:$0xff]  ;;  %v1774_v55 = vld [vmem:[%s9885_s4 + $0x78] sm:$0xff] }
 0x704   : > { %2134 = vst.msk [vmem:[#allocation2 + $0x460] sm:$0xff] %vm468_vm10, %v2117_v54  ;;  %6495 = vmatpush3.msra.mxu0 %v2464_v39  ;;  %2808 = vmatprep.subr.mxu1 %v7143_v3  ;;  %v1788_v54 = vld [vmem:[%s9885_s4 + $0xe8] sm:$0xff]  ;;  %v1773_v39 = vld [vmem:[%s9885_s4 + $0x70] sm:$0xff] }
 0x705   : > { %6496 = vmatprep.subr.mxu0 %v2479_v41  ;;  %2809 = vmatpush1.msra.mxu1 %v2488_v34  ;;  %v1787_v41 = vld [vmem:[%s9885_s4 + $0xe0] sm:$0xff]  ;;  %v1782_v34 = vld [vmem:[%s9885_s4 + $0xb8] sm:$0xff] }
 0x706   : > { %6497 = vmatpush3.msra.mxu0 %v2463_v35  ;;  %2810 = vmatprep.subr.mxu1 %v7143_v3  ;;  %v2368_v44 = vpop.permute.xlu1 %2367  ;;  %v2107_v37 = vpop.permute.xlu0 %2106  ;;  %v2476_v48 = vld [vmem:[#allocation2 + $0x560] sm:$0xff]  ;;  %v1781_v35 = vld [vmem:[%s9885_s4 + $0xb0] sm:$0xff] }
 0x707   : > { %6498 = vmatprep.subr.mxu0 %v2478_v42  ;;  %2811 = vmatpush1.msra.mxu1 %v2487_v43  ;;  %2386 = vst.msk [vmem:[#allocation2 + $0x760] sm:$0xff] %vm2379_vm1, %v2368_v44  ;;  %v2507_v7 = vld [vmem:[#allocation2 + $0x750] sm:$0xff]  ;;  %v1790_v42 = vld [vmem:[%s9885_s4 + $0xf8] sm:$0xff] }
 0x708   : > { %2129 = vst.msk [vmem:[#allocation2 + $0x410] sm:$0xff] %vm468_vm10, %v2107_v37  ;;  %6499 = vmatpush3.msra.mxu0 %v2462_v30  ;;  %2812 = vmatprep.subr.mxu1 %v7143_v3  ;;  %v1789_v43 = vld [vmem:[%s9885_s4 + $0xf0] sm:$0xff] }
 0x709   : > { %6500 = vmatprep.subr.mxu0 %v2477_v45  ;;  %2813 = vmatpush1.msra.mxu1 %v2486_v47 }
 0x70a   : > { %6501 = vmatpush3.msra.mxu0 %v2461_v36  ;;  %2828 = vmatprep.subr.mxu1 %v7143_v3  ;;  %v2105_v49 = vpop.permute.xlu1 %2104  ;;  %v2506_v13 = vld [vmem:[#allocation2 + $0x740] sm:$0xff] }
 0x70b   : > { %6502 = vmatprep.subr.mxu0 %v2476_v48  ;;  %6095 = vmatpush2.msk.msra.mxu1 %vm1318_vm8, %v2510_v40  ;;  %v2460_v46 = vld [vmem:[#allocation2 + $0x460] sm:$0xff]  ;;  %2128 = vst.msk [vmem:[#allocation2 + $0x400] sm:$0xff] %vm468_vm10, %v2105_v49  ;;  %v2188_v50 = vpop.permute.xlu0 %2187  ;;  %vm9916_vm10 = vmmov 0  }
 0x70c   : > { %6503 = vmatpush3.msra.mxu0 %v2460_v46  ;;  %2830 = vmatprep.subr.mxu1 %v7143_v3  ;;  %2212 = vst.msk [vmem:[#allocation2 + $0x500] sm:$0xff] %vm2211_vm15, %v2188_v50  ;;  %vm9915_vm15 = vcmask 1043456  }
 0x70d   : > { %6504 = vmatprep.subr.mxu0 %v2475_v51  ;;  %2831 = vmatpush2.msra.mxu1 %v2509_v52 }
 0x70e   : > { %6505 = vmatpush3.msra.mxu0 %v2459_v63  ;;  %2832 = vmatprep.subr.mxu1 %v7143_v3  ;;  %v2360_v62 = vpop.permute.xlu1 %2359  ;;  %v2508_v60 = vld [vmem:[#allocation2 + $0x760] sm:$0xff] }
 0x70f   : > { %6506 = vmatprep.subr.mxu0 %v2474_v53  ;;  %2382 = vst.msk [vmem:[#allocation2 + $0x720] sm:$0xff] %vm2379_vm1, %v2360_v62  ;;  %v2362_v2 = vpop.permute.xlu0 %2361  ;;  %2833 = vmatpush2.msra.mxu1 %v2508_v60  ;;  %v2455_v15 = vld [vmem:[#allocation2 + $0x410] sm:$0xff] }
 0x710   : > { %6507 = vmatpush3.msra.mxu0 %v2458_v1  ;;  %2383 = vst.msk [vmem:[#allocation2 + $0x730] sm:$0xff] %vm2379_vm1, %v2362_v2  ;;  %2834 = vmatprep.subr.mxu1 %v7143_v3 }
 0x711   : > { %6508 = vmatprep.subr.mxu0 %v2473_v5  ;;  %2835 = vmatpush2.msra.mxu1 %v2507_v7 }
 0x712   : > { %6509 = vmatpush3.msra.mxu0 %v2457_v6  ;;  %v2356_v9 = vpop.permute.xlu1 %2355  ;;  %2836 = vmatprep.subr.mxu1 %v7143_v3  ;;  %v2454_v57 = vld [vmem:[#allocation2 + $0x400] sm:$0xff] }
 0x713   : > { %6510 = vmatprep.subr.mxu0 %v2472_v8  ;;  %2380 = vst.msk [vmem:[#allocation2 + $0x700] sm:$0xff] %vm2379_vm1, %v2356_v9  ;;  %v2358_v59 = vpop.permute.xlu0 %2357  ;;  %2837 = vmatpush2.msra.mxu1 %v2506_v13  ;;  %v2470_v31 = vld [vmem:[#allocation2 + $0x500] sm:$0xff] }
 0x714   : > { %6511 = vmatpush3.msra.mxu0 %v2456_v10  ;;  %2381 = vst.msk [vmem:[#allocation2 + $0x710] sm:$0xff] %vm2379_vm1, %v2358_v59  ;;  %2838 = vmatprep.subr.mxu1 %v7143_v3  ;;  %vm9944_vm1 = vcmask 1046528  }
 0x715   : > { %6512 = vmatprep.subr.mxu0 %v2471_v14 }
 0x716   : > { %6513 = vmatpush3.msra.mxu0 %v2455_v15  ;;  %v2504_v28 = vld [vmem:[#allocation2 + $0x720] sm:$0xff] }
 0x717   : > { %6514 = vmatprep.subr.mxu0 %v2470_v31  ;;  %v2505_v17 = vld [vmem:[#allocation2 + $0x730] sm:$0xff] }
 0x718   : > { %6515 = vmatpush3.msra.mxu0 %v2454_v57  ;;  %2839 = vmatpush2.msra.mxu1 %v2505_v17 }
 0x719   : > { %2762 = vmatmul.mubr.f32.vlgmr.msra.gmra.mxu0 %v1763_v16  ;;  %2840 = vmatprep.subr.mxu1 %v7143_v3 }
 0x71a   : > { %2766 = vmatprep.mubr.f32.mxu0 %v1772_v61  ;;  %2841 = vmatpush2.msra.mxu1 %v2504_v28  ;;  %v2502_v56 = vld [vmem:[#allocation2 + $0x700] sm:$0xff] }
 0x71b   : > { %6774 = vmatprep.subr.mxu0 %v7143_v3  ;;  %2842 = vmatprep.subr.mxu1 %v7143_v3  ;;  %v2503_v33 = vld [vmem:[#allocation2 + $0x710] sm:$0xff] }
 0x71c   : > { %2843 = vmatpush2.msra.mxu1 %v2503_v33 }
 0x71d   : > { %2767 = vmatmul.mubr.f32.gmra.mxu0 %v1771_v29  ;;  %2844 = vmatprep.subr.mxu1 %v7143_v3 }
 0x71e   : > { %2771 = vmatprep.mubr.f32.mxu0 %v1780_v32  ;;  %2845 = vmatpush2.msra.mxu1 %v2502_v56 }
 0x71f   : > { %2847 = vmatmul.mubr.f32.vlgmr.msra.gmra.mxu1 %v1765_v58  ;;  %6796 = vmatprep.subr.mxu1 %v7143_v3 }
 0x720   : > { %6097 = vmatprep.mubr.msk.f32.mxu1 %vm2511_vm6, %v1774_v55 }
 0x721   : > { %2772 = vmatmul.mubr.f32.gmra.mxu0 %v1779_v38 }
 0x722   : > { %2776 = vmatprep.mubr.f32.mxu0 %v1788_v54 }
 0x723   : > { %2852 = vmatmul.mubr.f32.gmra.mxu1 %v1773_v39 }
 0x724   : > { %6098 = vmatprep.mubr.msk.f32.mxu1 %vm2511_vm6, %v1782_v34 }
 0x725   : > { %2777 = vmatmul.mubr.f32.gmra.mxu0 %v1787_v41 }
 0x726   : > { %6782 = vmatprep.mubr.msk.f32.mxu0 %vm9916_vm10, %v7143_v3 }
 0x727   : > { %2857 = vmatmul.mubr.f32.gmra.mxu1 %v1781_v35 }
 0x728   : > { %6099 = vmatprep.mubr.msk.f32.mxu1 %vm2511_vm6, %v1790_v42 }
 0x72b   : > { %2862 = vmatmul.mubr.f32.gmra.mxu1 %v1789_v43 }
 0x72c   : > { %6812 = vmatprep.mubr.msk.f32.mxu1 %vm9916_vm10, %v7143_v3 }
 0x78a   : > { %v6428_v44 = vpop.f32.mrf.mxu1 }
 0x78c   : > { %v6429_v37 = vpop.f32.mrf.mxu1 }
 0x78d   : > { %v6430_v33 = vadd.f32 %v6429_v37, %v6428_v44 }
 0x78e   : > { %v6431_v30 = vpop.f32.mrf.mxu1 }
 0x790   : > { %v6432_v45 = vpop.f32.mrf.mxu1 }
 0x791   : > { %v6433_v16 = vadd.f32 %v6432_v45, %v6431_v30 }
 0x792   : > { %v6434_v47 = vpop.f32.mrf.mxu1 }
 0x794   : > { %v6435_v40 = vpop.f32.mrf.mxu1 }
 0x795   : > { %v6436_v10 = vadd.f32 %v6435_v40, %v6434_v47 }
 0x796   : > { %v6437_v36 = vpop.f32.mrf.mxu1 }
 0x798   : > { %v6438_v48 = vpop.f32.mrf.mxu1 }
 0x799   : > { %v6439_v29 = vadd.f32 %v6438_v48, %v6437_v36 }
 0x7aa   : > { %v6472_v49 = vpop.f32.mrf.mxu1 }
 0x7ac   : > { %v6473_v46 = vpop.f32.mrf.mxu1 }
 0x7ad   : > { %v6474_v57 = vadd.f32 %v6473_v46, %v6472_v49  ;;  %v2875_v46 = vpop.permute.xlu0 %2874 }
 0x7ae   : > { %v6475_v50 = vpop.f32.mrf.mxu1 }
 0x7af   : > { %v2679_v34 = vadd.f32 %v6474_v57, %v6430_v33  ;;  %v2963_v57 = vld [vmem:[%s9883_s2 + $0xd8] ss:$0 sm:$0xff]  ;;  %v3046_v33 = vld [vmem:[%s9883_s2 + $0x1b0] ss:$0 sm:$0xff] }
 0x7b0   : > { %v6476_v51 = vpop.f32.mrf.mxu1 }
 0x7b1   : > { %v6477_v13 = vadd.f32 %v6476_v51, %v6475_v50 }
 0x7b2   : > { %v6478_v52 = vpop.f32.mrf.mxu1 }
 0x7b3   : > { %v2684_v58 = vadd.f32 %v6477_v13, %v6433_v16  ;;  %v3041_v13 = vld [vmem:[%s9883_s2 + $0x138] sm:$0xff]  ;;  %v3038_v16 = vld [vmem:[%s9883_s2 + $0xf0] sm:$0xff] }
 0x7b4   : > { %v6479_v63 = vpop.f32.mrf.mxu1 }
 0x7b5   : > { %v6480_v7 = vadd.f32 %v6479_v63, %v6478_v52 }
 0x7b6   : > { %v6481_v62 = vpop.f32.mrf.mxu1 }
 0x7b7   : > { %v2689_v61 = vadd.f32 %v6480_v7, %v6436_v10  ;;  %v3045_v7 = vld [vmem:[%s9883_s2 + $0x198] sm:$0xff]  ;;  %v3042_v10 = vld [vmem:[%s9883_s2 + $0x150] sm:$0xff] }
 0x7b8   : > { %v6482_v2 = vpop.f32.mrf.mxu1  ;;  %6797 = vmatpush3.msra.mxu1 %v3045_v7 }
 0x7b9   : > { %v6483_v14 = vadd.f32 %v6482_v2, %v6481_v62  ;;  %v2885_v62 = vld [vmem:[%s9883_s2 + $0x60] ss:$0 sm:$0xff]  ;;  %v2961_v2 = vld [vmem:[%s9883_s2 + $0xa8] sm:$0xff]  ;;  %6798 = vmatprep.subr.mxu1 %v7143_v3 }
 0x7bb   : > { %v2694_v54 = vadd.f32 %v6483_v14, %v6439_v29 }
 0x7d9   : > { %v6516_v53 = vpop.f32.mrf.mxu0 }
 0x7db   : > { %v6517_v1 = vpop.f32.mrf.mxu0 }
 0x7dc   : > { %v6518_v56 = vadd.f32 %v6517_v1, %v6516_v53 }
 0x7dd   : > { %v6519_v60 = vpop.f32.mrf.mxu0 }
 0x7de   : > { %v2764_v47 = vadd.f32 %v6518_v56, %v2679_v34 }
 0x7df   : > { %v6520_v5 = vpop.f32.mrf.mxu0  ;;  %v2848_v6 = vpop.f32.mrf.mxu1 }
 0x7e0   : > { %v6521_v17 = vadd.f32 %v6520_v5, %v6519_v60  ;;  %v2849_v48 = vadd.f32 %v2848_v6, %v2764_v47  ;;  %v2962_v60 = vld [vmem:[%s9883_s2 + $0xc0] sm:$0xff]  ;;  %v2960_v5 = vld [vmem:[%s9883_s2 + $0x90] sm:$0xff]  ;;  %v2959_v6 = vld [vmem:[%s9883_s2 + $0x78] sm:$0xff] }
 0x7e1   : > { %v6522_v8 = vpop.f32.mrf.mxu0  ;;  %v2850_v9 = vpop.f32.mrf.mxu1  ;;  %v3122_v47 = vld [vmem:[%s9883_s2 + $0x1f8] sm:$0xff] }
 0x7e2   : > { %v2769_v35 = vadd.f32 %v6521_v17, %v2684_v58  ;;  %v2877_v52 = vmul.f32 %v2875_v46, %v2849_v48  ;;  %vm2868_vm7 = vcmp.ge.f32.partialorder %v2849_v48, 0.0  ;;  %v3043_v9 = vld [vmem:[%s9883_s2 + $0x168] sm:$0xff] }
 0x7e3   : > { %v6523_v59 = vpop.f32.mrf.mxu0  ;;  %v2853_v31 = vpop.f32.mrf.mxu1 }
 0x7e4   : > { %v6524_v15 = vadd.f32 %v6523_v59, %v6522_v8  ;;  %v2854_v40 = vadd.f32 %v2853_v31, %v2769_v35  ;;  %v2881_v1 = vsel %vm2868_vm7, %v2849_v48, %v2877_v52  ;;  %v3044_v8 = vld [vmem:[%s9883_s2 + $0x180] sm:$0xff]  ;;  %v3039_v31 = vld [vmem:[%s9883_s2 + $0x108] sm:$0xff]  ;;  %v8848_v48 = vmul.u32 2, %v7534_v27 }
 0x7e5   : > { %v6525_v28 = vpop.f32.mrf.mxu0  ;;  %v2855_v32 = vpop.f32.mrf.mxu1  ;;  %6799 = vmatpush3.msra.mxu1 %v3044_v8 }
 0x7e6   : > { %v2774_v55 = vadd.f32 %v6524_v15, %v2689_v61  ;;  %v2878_v50 = vmul.f32 %v2875_v46, %v2854_v40  ;;  %vm2869_vm12 = vcmp.ge.f32.partialorder %v2854_v40, 0.0  ;;  %6800 = vmatprep.subr.mxu1 %v7143_v3  ;;  %v3040_v15 = vld [vmem:[%s9883_s2 + $0x120] sm:$0xff] }
 0x7e7   : > { %v6526_v38 = vpop.f32.mrf.mxu0  ;;  %v2858_v41 = vpop.f32.mrf.mxu1  ;;  %6801 = vmatpush3.msra.mxu1 %v3043_v9  ;;  %v238_v61 = vld [vmem:[%s236_s14] sm:$0x1]  ;;  %v3850_v9 = vld [vmem:[#allocation2 + $0x2d0] sm:$0x1] }
 0x7e8   : > { %v6527_v39 = vadd.f32 %v6526_v38, %v6525_v28  ;;  %v2859_v30 = vadd.f32 %v2858_v41, %v2774_v55  ;;  %v2882_v53 = vsel %vm2869_vm12, %v2854_v40, %v2878_v50  ;;  %6802 = vmatprep.subr.mxu1 %v7143_v3  ;;  %v3120_v55 = vld [vmem:[%s9883_s2 + $0x1c8] sm:$0xff]  ;;  %v8860_v50 = vmul.u32 2, %v7252_v4 }
 0x7e9   : > { %v2860_v42 = vpop.f32.mrf.mxu1  ;;  %6803 = vmatpush3.msra.mxu1 %v3042_v10  ;;  %v3124_v40 = vld [vmem:[%s9883_s2 + $0x228] sm:$0xff]  ;;  %v8877_v4 = vadd.s32 1, %v8848_v48  ;;  %vm9950_vm12 = vcmask 1045504  }
 0x7ea   : > { %v2779_v43 = vadd.f32 %v6527_v39, %v2694_v54  ;;  %v2879_v44 = vmul.f32 %v2875_v46, %v2859_v30  ;;  %vm2870_vm9 = vcmp.ge.f32.partialorder %v2859_v30, 0.0  ;;  %6804 = vmatprep.subr.mxu1 %v7143_v3  ;;  %v3128_v54 = vld [vmem:[%s9883_s2 + $0x600] ss:$0 sm:$0xff]  ;;  %vm9951_vm7 = vmmov %vm9950_vm12 }
 0x7eb   : > { %v2863_v45 = vpop.f32.mrf.mxu1  ;;  %6805 = vmatpush3.msra.mxu1 %v3041_v13 }
 0x7ec   : > { %v2864_v49 = vadd.f32 %v2863_v45, %v2779_v43  ;;  %v2883_v63 = vsel %vm2870_vm9, %v2859_v30, %v2879_v44  ;;  %6806 = vmatprep.subr.mxu1 %v7143_v3  ;;  %v3121_v43 = vld [vmem:[%s9883_s2 + $0x1e0] sm:$0xff]  ;;  %v3123_v45 = vld [vmem:[%s9883_s2 + $0x210] sm:$0xff]  ;;  %vm8881_vm9 = vcmp.eq.s32.totalorder %v7450_v11, %v8877_v4 }
 0x7ed   : > { %v2865_v36 = vpop.f32.mrf.mxu1  ;;  %6807 = vmatpush3.msra.mxu1 %v3040_v15  ;;  %v6116_v52 = vsel %vm8881_vm9, 1.0, %v7143_v3 }
 0x7ee   : > { %vm2871_vm4 = vcmp.ge.f32.partialorder %v2864_v49, 0.0  ;;  %v2880_v37 = vmul.f32 %v2875_v46, %v2864_v49  ;;  %6808 = vmatprep.subr.mxu1 %v7143_v3  ;;  %v3126_v46 = vld [vmem:[%s9883_s2 + $0x258] sm:$0xff]  ;;  %v3127_v36 = vld [vmem:[%s9883_s2 + $0x270] sm:$0xff] }
 0x7ef   : > { %6809 = vmatpush3.msra.mxu1 %v3039_v31 }
 0x7f0   : > { %v2884_v51 = vsel %vm2871_vm4, %v2864_v49, %v2880_v37  ;;  %6810 = vmatprep.subr.mxu1 %v7143_v3  ;;  %v3125_v49 = vld [vmem:[%s9883_s2 + $0x240] sm:$0xff]  ;;  %vm9945_vm4 = vmmov %vm9944_vm1 }
 0x7f1   : > { %6775 = vmatpush3.msra.mxu0 %v2884_v51  ;;  %6811 = vmatpush3.msra.mxu1 %v3038_v16 }
 0x7f2   : > { %6776 = vmatprep.subr.mxu0 %v7143_v3 }
 0x7f3   : > { %6777 = vmatpush3.msra.mxu0 %v2883_v63  ;;  %v8889_v63 = vadd.s32 1, %v8860_v50 }
 0x7f4   : > { %6778 = vmatprep.subr.mxu0 %v7143_v3 }
 0x7f5   : > { %6779 = vmatpush3.msra.mxu0 %v2882_v53 }
 0x7f6   : > { %6780 = vmatprep.subr.mxu0 %v7143_v3 }
 0x7f7   : > { %6781 = vmatpush3.msra.mxu0 %v2881_v1 }
 0x7f8   : > { %6783 = vmatmul.mubr.msk.f32.vlgmr.msra.gmra.mxu0 %vm2086_vm11, %v2885_v62  ;;  %6785 = vmatprep.subr.mxu0 %v7143_v3 }
 0x7f9   : > { %6786 = vmatpush3.msra.mxu0 %v2962_v60  ;;  %6793 = vmatprep.mubr.msk.f32.mxu0 %vm9916_vm10, %v7143_v3 }
 0x7fa   : > { %6787 = vmatprep.subr.mxu0 %v7143_v3 }
 0x7fb   : > { %6788 = vmatpush3.msra.mxu0 %v2961_v2 }
 0x7fc   : > { %6789 = vmatprep.subr.mxu0 %v7143_v3 }
 0x7fd   : > { %6790 = vmatpush3.msra.mxu0 %v2960_v5 }
 0x7fe   : > { %6791 = vmatprep.subr.mxu0 %v7143_v3 }
 0x7ff   : > { %6792 = vmatpush3.msra.mxu0 %v2959_v6 }
 0x8b8   : > { %v2955_v59 = vpop.f32.mrf.mxu0 }
 0x8b9   : > { %6794 = vmatmul.mubr.msk.f32.vlgmr.msra.gmra.mxu0 %vm2086_vm11, %v2955_v59  ;;  %vm3133_vm11 = vcmask 114688  }
 0x8ba   : > { %v6784_v14 = vpop.f32.mrf.mxu0  ;;  %3147 = vst.msk [vmem:[#allocation2 + $0x4] sm:$0x1] %vm3133_vm11, %v7146_v12  ;;  %6817 = vmatprep.mubr.msk.f32.mxu0 %vm296_vm3, %v3120_v55 }
 0x979   : > { %v3033_v17 = vpop.f32.mrf.mxu0 }
 0x97a   : > { %v3034_v28 = vadd.f32 %v3033_v17, %v2963_v57 }
 0x97b   : > { %v6795_v29 = vpop.f32.mrf.mxu0 }
 0x97c   : > { %v3037_v32 = vadd.f32 %v3034_v28, %v238_v61 }
 0x97e   : > { %6813 = vmatmul.mubr.msk.f32.vlgmr.msra.gmra.mxu1 %vm1072_vm2, %v3037_v32  ;;  %vm3161_vm2 = vcmask 1044480  }
 0xa3e   : > { %v3116_v58 = vpop.f32.mrf.mxu1 }
 0xa3f   : > { %v3117_v56 = vadd.f32 %v3116_v58, %v3046_v33 }
 0xa40   : > { %v6814_v38 = vpop.f32.mrf.mxu1 }
 0xa41   : > { %3135 = vrot.lane.b32.xlu0 %v3117_v56, %s7161_s10  ;;  %3130 = vrot.lane.b32.xlu1 %v3117_v56, %s7162_s26 }
 0xa45   : > { %3143 = vrot.lane.b32.xlu0 %v3117_v56, %s7163_s11  ;;  %3139 = vrot.lane.b32.xlu1 %v3117_v56, %s7164_s8  ;;  %s226_s8 = sand.u32 1, %s7132_s19  }
 0xa46   : > { %s6001_s23 = sshll.u32 %s226_s8, 3 }
 0xa47   : > { %s228_s14 = scalar_lea.vmem [#allocation3], %s6001_s23 }
 0xa48   : > { %s5929_s12 = sshll.u32 %s228_s14, 4  ;;  %s5930_s12 = int_to_ptr.vmem [resolvable:$true] %s5929_s12 }
 0xa49   : > { %3581 = vperm.xlu1 %7078, %v3128_v54   ;;  %s7080_s7 = scalar_lea.vmem %s5930_s12, 128 }
 0xa4a   : > { %p7081_p11 = scmp.ne.s32.totalorder %s5930_s12, %s7080_s7 }
 0xa4c   : > { %p7082_p12 = pnand %p7081_p11, %p7234_p5 }
 0xa4e   : > { %p7083_p13 = pneg %p7082_p12 }
 0xab3   : > { %v3136_v39 = vpop.permute.xlu0 %3135  ;;  %v3131_v41 = vpop.permute.xlu1 %3130 }
 0xab4   : > { %3138 = vst.msk [vmem:[#allocation2 + $0x1] sm:$0x1] %vm3133_vm11, %v3136_v39  ;;  %3134 = vst.msk [vmem:[#allocation2] sm:$0x1] %vm3133_vm11, %v3131_v41 }
 0xab5   : > { %3252 = vst.msk [vmem:[#allocation2 + $0x211] sm:$0x1] %vm3250_vm14, %v3136_v39  ;;  %3251 = vst.msk [vmem:[#allocation2 + $0x210] sm:$0x1] %vm3250_vm14, %v3131_v41 }
 0xab7   : > { %v3144_v34 = vpop.permute.xlu0 %3143  ;;  %v3140_v35 = vpop.permute.xlu1 %3139 }
 0xab8   : > { %3146 = vst.msk [vmem:[#allocation2 + $0x3] sm:$0x1] %vm3133_vm11, %v3144_v34  ;;  %3142 = vst.msk [vmem:[#allocation2 + $0x2] sm:$0x1] %vm3133_vm11, %v3140_v35  ;;  %vm8895_vm11 = vcmp.eq.s32.totalorder %v7450_v11, %v8889_v63 }
 0xab9   : > { %3253 = vst.msk [vmem:[#allocation2 + $0x212] sm:$0x1] %vm3250_vm14, %v3140_v35  ;;  %vm3474_vm14 = vcmask 121856  }
 0xabf   : > { %v3148_v42 = vld [vmem:[#allocation2] sm:$0x1f] }
 0xac0   : > { %6815 = vmatprep.subr.msk.mxu0 %vm3161_vm2, %v3148_v42  ;;  %v3255_v30 = vld [vmem:[#allocation2 + $0x210] sm:$0xf] }
 0xac1   : > { %6816 = vmatpush3.msk.msra.mxu0 %vm3161_vm2, %v3148_v42  ;;  %vm3373_vm2 = vcmask 113664  }
 0xac2   : > { %6818 = vmatmul.mubr.msk.f32.vlgmr.msra.gmra.mxu0 %vm296_vm3, %v3121_v43  ;;  %6823 = vmatprep.subr.msk.mxu0 %vm9915_vm15, %v3255_v30 }
 0xac3   : > { %6824 = vmatpush3.msk.msra.mxu0 %vm9915_vm15, %v3255_v30  ;;  %6820 = vmatprep.mubr.msk.f32.mxu0 %vm296_vm3, %v3122_v47 }
 0xac4   : > { %6831 = vmatprep.subr.msk.mxu0 %vm9950_vm12, %v6116_v52  ;;  %v3582_v14 = vpop.permute.xlu1 %3581 }
 0xac6   : > { %6821 = vmatmul.mubr.msk.f32.gmra.mxu0 %vm296_vm3, %v3123_v45  ;;  %vm8852_vm3 = vcmp.eq.s32.totalorder %v7450_v11, %v8848_v48 }
 0xac7   : > { %6825 = vmatprep.mubr.msk.f32.mxu0 %vm311_vm5, %v3124_v40  ;;  %v6114_v37 = vsel %vm8852_vm3, 1.0, %v7143_v3 }
 0xac8   : > { %6841 = vmatprep.subr.msk.mxu1 %vm9944_vm1, %v6114_v37 }
 0xac9   : > { %6842 = vmatpush3.msk.msra.mxu1 %vm9945_vm4, %v6114_v37 }
 0xaca   : > { %6826 = vmatmul.mubr.msk.f32.vlgmr.msra.gmra.mxu0 %vm311_vm5, %v3125_v49  ;;  %v3608_v49 = vld [vmem:[%s9883_s2 + $0x348] sm:$0xff] }
 0xacb   : > { %6828 = vmatprep.mubr.msk.f32.mxu0 %vm311_vm5, %v3126_v46  ;;  %6832 = vmatpush3.msk.msra.mxu0 %vm9951_vm7, %v6116_v52  ;;  %v3593_v46 = vld [vmem:[%s9883_s2 + $0x290] sm:$0xff] }
 0xacc   : > { %6833 = vmatprep.subr.msk.mxu0 %vm8895_vm11, %v7146_v12 }
 0xacd   : > { %6834 = vmatpush3.msk.msra.mxu0 %vm8895_vm11, %v7146_v12 }
 0xace   : > { %6829 = vmatmul.mubr.msk.f32.gmra.mxu0 %vm311_vm5, %v3127_v36  ;;  %vm8866_vm5 = vcmp.eq.s32.totalorder %v7450_v11, %v8860_v50  ;;  %3719 = vmatprep.subr.mxu0 %v7143_v3  ;;  %v3616_v36 = vld [vmem:[%s9883_s2 + $0x618] ss:$0 sm:$0xff] }
 0xacf   : > { %6843 = vmatprep.subr.msk.mxu1 %vm8866_vm5, %v7146_v12 }
 0xad0   : > { %6844 = vmatpush3.msk.msra.mxu1 %vm8866_vm5, %v7146_v12 }
 0xad1   : > { %6851 = vmatprep.subr.msk.mxu1 %vm1318_vm8, %v3850_v9 }
 0xb82   : > { %v6819_v62 = vpop.f32.mrf.mxu0 }
 0xb84   : > { %v3231_v1 = vpop.f32.mrf.mxu0 }
 0xb85   : > { %6845 = vmatprep.mubr.msk.f32.mxu1 %vm3474_vm14, %v3231_v1 }
 0xb86   : > { %v6822_v60 = vpop.f32.mrf.mxu0  ;;  %6846 = vmatmul.mubr.msk.f32.vlgmr.msra.gmra.mxu1 %vm3474_vm14, %v6819_v62 }
 0xb87   : > { %6852 = vmatpush3.msk.msra.mxu1 %vm1318_vm8, %v3850_v9 }
 0xb88   : > { %v3241_v2 = vpop.f32.mrf.mxu0 }
 0xb89   : > { %6848 = vmatprep.mubr.msk.f32.mxu1 %vm3474_vm14, %v3241_v2 }
 0xb8a   : > { %v6827_v5 = vpop.f32.mrf.mxu0  ;;  %6849 = vmatmul.mubr.msk.f32.gmra.mxu1 %vm3474_vm14, %v6822_v60  ;;  %vm9954_vm14 = vcmask 793600  }
 0xb8b   : > { %6877 = vmatprep.mubr.msk.f32.mxu1 %vm9954_vm14, %v3608_v49  ;;  %v3592_v49 = vld [vmem:[%s9883_s2 + $0x288] sm:$0xff] }
 0xb8c   : > { %v3338_v6 = vpop.f32.mrf.mxu0 }
 0xb8d   : > { %6835 = vmatprep.mubr.msk.f32.mxu0 %vm3373_vm2, %v3338_v6 }
 0xb8e   : > { %v6830_v7 = vpop.f32.mrf.mxu0  ;;  %6836 = vmatmul.mubr.msk.f32.vlgmr.msra.gmra.mxu0 %vm3373_vm2, %v6827_v5 }
 0xb90   : > { %v3348_v8 = vpop.f32.mrf.mxu0 }
 0xb91   : > { %6838 = vmatprep.mubr.msk.f32.mxu0 %vm3373_vm2, %v3348_v8 }
 0xb92   : > { %6839 = vmatmul.mubr.msk.f32.gmra.mxu0 %vm3373_vm2, %v6830_v7  ;;  %vm9955_vm2 = vcmask 7168  }
 0xb93   : > { %6130 = vmatprep.mubr.msk.f32.mxu0 %vm9955_vm2, %v3593_v46  ;;  %v3614_v46 = vld [vmem:[%s9883_s2 + $0x3d8] sm:$0xff] }
 0xc46   : > { %v6847_v10 = vpop.f32.mrf.mxu1 }
 0xc48   : > { %v3556_v13 = vpop.f32.mrf.mxu1 }
 0xc4a   : > { %v6850_v31 = vpop.f32.mrf.mxu1 }
 0xc4c   : > { %v3566_v33 = vpop.f32.mrf.mxu1 }
 0xc4e   : > { %v6837_v59 = vpop.f32.mrf.mxu0 }
 0xc4f   : > { %v3562_v15 = vadd.f32 %v6847_v10, %v6837_v59 }
 0xc50   : > { %v3455_v16 = vpop.f32.mrf.mxu0 }
 0xc51   : > { %vm3576_vm1 = vcmp.ge.f32.partialorder %v3562_v15, 0.0  ;;  %v3585_v57 = vmul.f32 %v3582_v14, %v3562_v15  ;;  %v3557_v61 = vadd.f32 %v3556_v13, %v3455_v16 }
 0xc52   : > { %v6840_v17 = vpop.f32.mrf.mxu0 }
 0xc53   : > { %v3589_v28 = vsel %vm3576_vm1, %v3562_v15, %v3585_v57  ;;  %vm3575_vm4 = vcmp.ge.f32.partialorder %v3557_v61, 0.0  ;;  %v3584_v29 = vmul.f32 %v3582_v14, %v3557_v61  ;;  %v3572_v32 = vadd.f32 %v6850_v31, %v6840_v17 }
 0xc54   : > { %3670 = vst.msk [vmem:[#allocation2 + $0xd0] sm:$0xff] %vm2337_vm13, %v3589_v28  ;;  %v3465_v58 = vpop.f32.mrf.mxu0 }
 0xc55   : > { %3833 = vst.msk [vmem:[#allocation2 + $0x2a0] sm:$0xff] %vm2295_vm0, %v3589_v28  ;;  %v3588_v56 = vsel %vm3575_vm4, %v3557_v61, %v3584_v29  ;;  %vm3578_vm12 = vcmp.ge.f32.partialorder %v3572_v32, 0.0  ;;  %v3587_v38 = vmul.f32 %v3582_v14, %v3572_v32  ;;  %v3567_v55 = vadd.f32 %v3566_v33, %v3465_v58 }
 0xc56   : > { %3669 = vst.msk [vmem:[#allocation2 + $0xc0] sm:$0xff] %vm2337_vm13, %v3588_v56  ;;  %vm4023_vm4 = vcmask 1042432  }
 0xc57   : > { %3832 = vst.msk [vmem:[#allocation2 + $0x290] sm:$0xff] %vm2295_vm0, %v3588_v56  ;;  %v3591_v54 = vsel %vm3578_vm12, %v3572_v32, %v3587_v38  ;;  %vm3577_vm7 = vcmp.ge.f32.partialorder %v3567_v55, 0.0  ;;  %v3586_v39 = vmul.f32 %v3582_v14, %v3567_v55  ;;  %vm9956_vm12 = vmmov %vm9954_vm14 }
 0xc58   : > { %3672 = vst.msk [vmem:[#allocation2 + $0xf0] sm:$0xff] %vm2337_vm13, %v3591_v54  ;;  %3659 = vrot.lane.b32.xlu0 %v3591_v54, %s7148_s13 }
 0xc59   : > { %3835 = vst.msk [vmem:[#allocation2 + $0x2c0] sm:$0xff] %vm2295_vm0, %v3591_v54  ;;  %v3590_v41 = vsel %vm3577_vm7, %v3567_v55, %v3586_v39  ;;  %v3609_v55 = vld [vmem:[%s9883_s2 + $0x360] sm:$0xff]  ;;  %vm9957_vm7 = vmmov %vm9956_vm12 }
 0xc5a   : > { %3671 = vst.msk [vmem:[#allocation2 + $0xe0] sm:$0xff] %vm2337_vm13, %v3590_v41  ;;  %3657 = vrot.lane.b32.xlu1 %v3590_v41, %s7148_s13  ;;  %vm9960_vm2 = vmmov %vm9957_vm7 }
 0xc5b   : > { %3834 = vst.msk [vmem:[#allocation2 + $0x2b0] sm:$0xff] %vm2295_vm0, %v3590_v41  ;;  %v3688_v47 = vld [vmem:[#allocation2 + $0xd0] sm:$0xff] }
 0xc5c   : > { %3655 = vrot.lane.b32.xlu0 %v3589_v28, %s7148_s13  ;;  %v3847_v30 = vld [vmem:[#allocation2 + $0x2a0] sm:$0xff] }
 0xc5d   : > { %v3687_v45 = vld [vmem:[#allocation2 + $0xc0] sm:$0xff] }
 0xc5e   : > { %3653 = vrot.lane.b32.xlu1 %v3588_v56, %s7148_s13  ;;  %v3846_v40 = vld [vmem:[#allocation2 + $0x290] sm:$0xff] }
 0xc5f   : > { %v3690_v34 = vld [vmem:[#allocation2 + $0xf0] sm:$0xff] }
 0xc60   : > { %v3849_v35 = vld [vmem:[#allocation2 + $0x2c0] sm:$0xff]  ;;  %3643 = vrot.lane.b32.xlu0 %v3591_v54, %s9941_s17  ;;  %3720 = vmatpush1.msra.mxu0 %v3690_v34  ;;  %v8987_v34 = vmul.u32 2, %v7527_v26 }
 0xc61   : > { %6853 = vmatprep.subr.mxu1 %v3849_v35  ;;  %3721 = vmatprep.subr.mxu0 %v7143_v3  ;;  %v3689_v42 = vld [vmem:[#allocation2 + $0xe0] sm:$0xff] }
 0xc62   : > { %v3848_v43 = vld [vmem:[#allocation2 + $0x2b0] sm:$0xff]  ;;  %6854 = vmatpush3.msra.mxu1 %v3849_v35  ;;  %3641 = vrot.lane.b32.xlu1 %v3590_v41, %s9941_s17  ;;  %vm9001_vm14 = vcmp.eq.s32.totalorder %v7450_v11, %v8987_v34 }
 0xc63   : > { %3722 = vmatpush1.msra.mxu0 %v3689_v42  ;;  %6855 = vmatprep.subr.mxu1 %v3848_v43  ;;  %v3611_v42 = vld [vmem:[%s9883_s2 + $0x390] sm:$0xff] }
 0xc64   : > { %3723 = vmatprep.subr.mxu0 %v7143_v3  ;;  %6856 = vmatpush3.msra.mxu1 %v3848_v43  ;;  %v3612_v43 = vld [vmem:[%s9883_s2 + $0x3a8] sm:$0xff] }
 0xc65   : > { %3639 = vrot.lane.b32.xlu0 %v3589_v28, %s9941_s17  ;;  %3724 = vmatpush1.msra.mxu0 %v3688_v47 }
 0xc66   : > { %6857 = vmatprep.subr.mxu1 %v3847_v30  ;;  %3725 = vmatprep.subr.mxu0 %v7143_v3 }
 0xc67   : > { %6858 = vmatpush3.msra.mxu1 %v3847_v30  ;;  %3637 = vrot.lane.b32.xlu1 %v3588_v56, %s9941_s17 }
 0xc68   : > { %3726 = vmatpush1.msra.mxu0 %v3687_v45  ;;  %6859 = vmatprep.subr.mxu1 %v3846_v40  ;;  %v3691_v45 = vld [vmem:[#allocation2 + $0x100] sm:$0x1] }
 0xc69   : > { %6860 = vmatpush3.msra.mxu1 %v3846_v40  ;;  %3627 = vrot.lane.b32.xlu0 %v3591_v54, %s9929_s16  ;;  %v3610_v54 = vld [vmem:[%s9883_s2 + $0x378] sm:$0xff]  ;;  %v3613_v40 = vld [vmem:[%s9883_s2 + $0x3c0] sm:$0xff] }
 0xc6a   : > { %3727 = vmatprep.subr.mxu0 %v7143_v3 }
 0xc6b   : > { %3625 = vrot.lane.b32.xlu1 %v3590_v41, %s9929_s16 }
 0xc6d   : > { %3623 = vrot.lane.b32.xlu0 %v3589_v28, %s9929_s16  ;;  %v8966_v28 = vmul.u32 2, %v7520_v25 }
 0xc6f   : > { %3621 = vrot.lane.b32.xlu1 %v3588_v56, %s9929_s16  ;;  %vm9917_vm1 = vcmp.eq.s32.totalorder %v7450_v11, %v8966_v28 }
 0xc70   : > { %v6150_v41 = vsel %vm9917_vm1, 1.0, %v7143_v3  ;;  %vm4720_vm1 = vcmask 400384  }
 0xc71   : > { %4275 = vperm.xlu0 %7062, %v3616_v36   ;;  %v3595_v36 = vld [vmem:[%s9883_s2 + $0x2a8] sm:$0xff] }
 0xcca   : > { %v3660_v37 = vpop.permute.xlu0 %3659 }
 0xccb   : > { %3668 = vst.msk [vmem:[#allocation2 + $0xb0] sm:$0xff] %vm2337_vm13, %v3660_v37 }
 0xccc   : > { %3831 = vst.msk [vmem:[#allocation2 + $0x280] sm:$0xff] %vm2295_vm0, %v3660_v37  ;;  %v3658_v52 = vpop.permute.xlu1 %3657  ;;  %v3615_v37 = vld [vmem:[%s9883_s2 + $0x3f0] sm:$0xff] }
 0xccd   : > { %3667 = vst.msk [vmem:[#allocation2 + $0xa0] sm:$0xff] %vm2337_vm13, %v3658_v52 }
 0xcce   : > { %3830 = vst.msk [vmem:[#allocation2 + $0x270] sm:$0xff] %vm2295_vm0, %v3658_v52  ;;  %v3656_v62 = vpop.permute.xlu0 %3655  ;;  %v3594_v52 = vld [vmem:[%s9883_s2 + $0x2a0] sm:$0xff] }
 0xccf   : > { %3666 = vst.msk [vmem:[#allocation2 + $0x90] sm:$0xff] %vm2337_vm13, %v3656_v62 }
 0xcd0   : > { %3829 = vst.msk [vmem:[#allocation2 + $0x260] sm:$0xff] %vm2295_vm0, %v3656_v62  ;;  %v3654_v1 = vpop.permute.xlu1 %3653  ;;  %v3597_v62 = vld [vmem:[%s9883_s2 + $0x2c0] sm:$0xff] }
 0xcd1   : > { %3665 = vst.msk [vmem:[#allocation2 + $0x80] sm:$0xff] %vm2337_vm13, %v3654_v1 }
 0xcd2   : > { %3828 = vst.msk [vmem:[#allocation2 + $0x250] sm:$0xff] %vm2295_vm0, %v3654_v1  ;;  %v3644_v60 = vpop.permute.xlu0 %3643  ;;  %v3686_v2 = vld [vmem:[#allocation2 + $0xb0] sm:$0xff]  ;;  %v3596_v1 = vld [vmem:[%s9883_s2 + $0x2b8] sm:$0xff] }
 0xcd3   : > { %v3845_v5 = vld [vmem:[#allocation2 + $0x280] sm:$0xff]  ;;  %3652 = vst.msk [vmem:[#allocation2 + $0x70] sm:$0xff] %vm2337_vm13, %v3644_v60  ;;  %3728 = vmatpush1.msra.mxu0 %v3686_v2  ;;  %v3598_v2 = vld [vmem:[%s9883_s2 + $0x2d0] sm:$0xff] }
 0xcd4   : > { %3827 = vst.msk [vmem:[#allocation2 + $0x240] sm:$0xff] %vm2295_vm0, %v3644_v60  ;;  %6861 = vmatprep.subr.mxu1 %v3845_v5  ;;  %v3642_v6 = vpop.permute.xlu1 %3641  ;;  %3729 = vmatprep.subr.mxu0 %v7143_v3  ;;  %v3685_v7 = vld [vmem:[#allocation2 + $0xa0] sm:$0xff]  ;;  %v3599_v60 = vld [vmem:[%s9883_s2 + $0x2d8] sm:$0xff] }
 0xcd5   : > { %6862 = vmatpush3.msra.mxu1 %v3845_v5  ;;  %v3844_v8 = vld [vmem:[#allocation2 + $0x270] sm:$0xff]  ;;  %3651 = vst.msk [vmem:[#allocation2 + $0x60] sm:$0xff] %vm2337_vm13, %v3642_v6  ;;  %3730 = vmatpush1.msra.mxu0 %v3685_v7  ;;  %v3603_v7 = vld [vmem:[%s9883_s2 + $0x308] sm:$0xff] }
 0xcd6   : > { %3826 = vst.msk [vmem:[#allocation2 + $0x230] sm:$0xff] %vm2295_vm0, %v3642_v6  ;;  %6863 = vmatprep.subr.mxu1 %v3844_v8  ;;  %3731 = vmatprep.subr.mxu0 %v7143_v3  ;;  %v3684_v9 = vld [vmem:[#allocation2 + $0x90] sm:$0xff]  ;;  %v3600_v6 = vld [vmem:[%s9883_s2 + $0x2e8] sm:$0xff] }
 0xcd7   : > { %6864 = vmatpush3.msra.mxu1 %v3844_v8  ;;  %v3843_v10 = vld [vmem:[#allocation2 + $0x260] sm:$0xff]  ;;  %v3640_v13 = vpop.permute.xlu0 %3639  ;;  %3732 = vmatpush1.msra.mxu0 %v3684_v9  ;;  %v3601_v5 = vld [vmem:[%s9883_s2 + $0x2f0] sm:$0xff] }
 0xcd8   : > { %6865 = vmatprep.subr.mxu1 %v3843_v10  ;;  %3650 = vst.msk [vmem:[#allocation2 + $0x50] sm:$0xff] %vm2337_vm13, %v3640_v13  ;;  %3733 = vmatprep.subr.mxu0 %v7143_v3  ;;  %v3683_v59 = vld [vmem:[#allocation2 + $0x80] sm:$0xff] }
 0xcd9   : > { %3825 = vst.msk [vmem:[#allocation2 + $0x220] sm:$0xff] %vm2295_vm0, %v3640_v13  ;;  %6866 = vmatpush3.msra.mxu1 %v3843_v10  ;;  %v3842_v14 = vld [vmem:[#allocation2 + $0x250] sm:$0xff]  ;;  %v3638_v15 = vpop.permute.xlu1 %3637  ;;  %3734 = vmatpush1.msra.mxu0 %v3683_v59  ;;  %v3602_v8 = vld [vmem:[%s9883_s2 + $0x300] sm:$0xff]  ;;  %v3604_v10 = vld [vmem:[%s9883_s2 + $0x318] sm:$0xff] }
 0xcda   : > { %6867 = vmatprep.subr.mxu1 %v3842_v14  ;;  %3649 = vst.msk [vmem:[#allocation2 + $0x40] sm:$0xff] %vm2337_vm13, %v3638_v15  ;;  %3735 = vmatprep.subr.mxu0 %v7143_v3  ;;  %v3682_v31 = vld [vmem:[#allocation2 + $0x70] sm:$0xff]  ;;  %v3605_v9 = vld [vmem:[%s9883_s2 + $0x320] sm:$0xff]  ;;  %v3607_v13 = vld [vmem:[%s9883_s2 + $0x338] sm:$0xff] }
 0xcdb   : > { %3824 = vst.msk [vmem:[#allocation2 + $0x210] sm:$0xff] %vm2295_vm0, %v3638_v15  ;;  %6868 = vmatpush3.msra.mxu1 %v3842_v14  ;;  %v3841_v16 = vld [vmem:[#allocation2 + $0x240] sm:$0xff]  ;;  %v3628_v57 = vpop.permute.xlu0 %3627  ;;  %3736 = vmatpush1.msra.mxu0 %v3682_v31  ;;  %v3606_v59 = vld [vmem:[%s9883_s2 + $0x330] sm:$0xff]  ;;  %v9093_v14 = vadd.s32 1, %v8966_v28  ;;  %v9103_v31 = vadd.s32 1, %v8987_v34 }
 0xcdc   : > { %6869 = vmatprep.subr.mxu1 %v3841_v16  ;;  %3636 = vst.msk [vmem:[#allocation2 + $0x30] sm:$0xff] %vm2337_vm13, %v3628_v57  ;;  %3737 = vmatprep.subr.mxu0 %v7143_v3  ;;  %v3681_v61 = vld [vmem:[#allocation2 + $0x60] sm:$0xff] }
 0xcdd   : > { %6870 = vmatpush3.msra.mxu1 %v3841_v16  ;;  %v3840_v17 = vld [vmem:[#allocation2 + $0x230] sm:$0xff]  ;;  %v3626_v29 = vpop.permute.xlu1 %3625  ;;  %3738 = vmatpush1.msra.mxu0 %v3681_v61 }
 0xcde   : > { %6871 = vmatprep.subr.mxu1 %v3840_v17  ;;  %3635 = vst.msk [vmem:[#allocation2 + $0x20] sm:$0xff] %vm2337_vm13, %v3626_v29  ;;  %3739 = vmatprep.subr.mxu0 %v7143_v3 }
 0xcdf   : > { %6872 = vmatpush3.msra.mxu1 %v3840_v17  ;;  %v3624_v32 = vpop.permute.xlu0 %3623  ;;  %v3680_v33 = vld [vmem:[#allocation2 + $0x50] sm:$0xff] }
 0xce0   : > { %v3839_v58 = vld [vmem:[#allocation2 + $0x220] sm:$0xff]  ;;  %3634 = vst.msk [vmem:[#allocation2 + $0x10] sm:$0xff] %vm2337_vm13, %v3624_v32  ;;  %3740 = vmatpush1.msra.mxu0 %v3680_v33 }
 0xce1   : > { %6873 = vmatprep.subr.mxu1 %v3839_v58  ;;  %v3622_v25 = vpop.permute.xlu1 %3621  ;;  %3741 = vmatprep.subr.mxu0 %v7143_v3  ;;  %v3679_v56 = vld [vmem:[#allocation2 + $0x40] sm:$0xff] }
 0xce2   : > { %6874 = vmatpush3.msra.mxu1 %v3839_v58  ;;  %v3838_v38 = vld [vmem:[#allocation2 + $0x210] sm:$0xff]  ;;  %3633 = vst.msk [vmem:[#allocation2] sm:$0xff] %vm2337_vm13, %v3622_v25  ;;  %3742 = vmatpush1.msra.mxu0 %v3679_v56 }
 0xce3   : > { %6875 = vmatprep.subr.mxu1 %v3838_v38  ;;  %3743 = vmatprep.subr.mxu0 %v7143_v3  ;;  %v3678_v39 = vld [vmem:[#allocation2 + $0x30] sm:$0xff] }
 0xce4   : > { %6876 = vmatpush3.msra.mxu1 %v3838_v38  ;;  %3744 = vmatpush1.msra.mxu0 %v3678_v39 }
 0xce5   : > { %6878 = vmatmul.mubr.msk.f32.vlgmr.msra.gmra.mxu1 %vm9956_vm12, %v3609_v55  ;;  %3745 = vmatprep.subr.mxu0 %v7143_v3  ;;  %v3677_v35 = vld [vmem:[#allocation2 + $0x20] sm:$0xff]  ;;  %vm9961_vm12 = vmmov %vm9960_vm2 }
 0xce6   : > { %6880 = vmatprep.mubr.msk.f32.mxu1 %vm9957_vm7, %v3610_v54  ;;  %3746 = vmatpush1.msra.mxu0 %v3677_v35  ;;  %vm9963_vm7 = vmmov %vm9960_vm2 }
 0xce7   : > { %6889 = vmatprep.subr.msk.mxu1 %vm4023_vm4, %v6150_v41  ;;  %3747 = vmatprep.subr.mxu0 %v7143_v3  ;;  %v3676_v26 = vld [vmem:[#allocation2 + $0x10] sm:$0xff] }
 0xce8   : > { %6890 = vmatpush3.msk.msra.mxu1 %vm4023_vm4, %v6150_v41  ;;  %3748 = vmatpush1.msra.mxu0 %v3676_v26  ;;  %vm9962_vm4 = vmmov %vm9960_vm2 }
 0xce9   : > { %6881 = vmatmul.mubr.msk.f32.gmra.mxu1 %vm9960_vm2, %v3611_v42  ;;  %3749 = vmatprep.subr.mxu0 %v7143_v3  ;;  %v3675_v30 = vld [vmem:[#allocation2] sm:$0xff]  ;;  %vm9964_vm2 = vcmask 7168  }
 0xcea   : > { %6883 = vmatprep.mubr.msk.f32.mxu1 %vm9961_vm12, %v3612_v43  ;;  %3750 = vmatpush1.msra.mxu0 %v3675_v30  ;;  %vm9965_vm12 = vmmov %vm9962_vm4 }
 0xceb   : > { %6891 = vmatprep.subr.msk.mxu1 %vm9001_vm14, %v7146_v12  ;;  %3781 = vmatprep.subr.mxu0 %v7143_v3 }
 0xcec   : > { %6892 = vmatpush3.msk.msra.mxu1 %vm9001_vm14, %v7146_v12  ;;  %6129 = vmatpush2.msk.msra.mxu0 %vm1318_vm8, %v3691_v45 }
 0xced   : > { %6884 = vmatmul.mubr.msk.f32.gmra.mxu1 %vm9962_vm4, %v3613_v40  ;;  %3784 = vmatmul.mubr.f32.vlgmr.msra.gmra.mxu0 %v3592_v49  ;;  %vm9966_vm4 = vmmov %vm9964_vm2 }
 0xcee   : > { %6886 = vmatprep.mubr.msk.f32.mxu1 %vm9963_vm7, %v3614_v46  ;;  %6131 = vmatprep.mubr.msk.f32.mxu0 %vm9964_vm2, %v3595_v36  ;;  %vm9967_vm7 = vmmov %vm9964_vm2 }
 0xcef   : > { %6893 = vmatprep.subr.msk.mxu1 %vm8852_vm3, %v7146_v12 }
 0xcf0   : > { %6894 = vmatpush3.msk.msra.mxu1 %vm8852_vm3, %v7146_v12 }
 0xcf1   : > { %6887 = vmatmul.mubr.msk.f32.gmra.mxu1 %vm9965_vm12, %v3615_v37  ;;  %6895 = vmatprep.subr.msk.mxu1 %vm8866_vm5, %v7146_v12  ;;  %vm9968_vm12 = vmmov %vm9964_vm2 }
 0xcf2   : > { %3789 = vmatmul.mubr.f32.gmra.mxu0 %v3594_v52  ;;  %6896 = vmatpush3.msk.msra.mxu1 %vm8866_vm5, %v7146_v12 }
 0xcf3   : > { %6132 = vmatprep.mubr.msk.f32.mxu0 %vm9966_vm4, %v3597_v62  ;;  %vm9969_vm4 = vmmov %vm9964_vm2 }
 0xcf6   : > { %3794 = vmatmul.mubr.f32.gmra.mxu0 %v3596_v1 }
 0xcf7   : > { %6133 = vmatprep.mubr.msk.f32.mxu0 %vm9967_vm7, %v3599_v60  ;;  %vm9970_vm7 = vmmov %vm9964_vm2 }
 0xcfa   : > { %3799 = vmatmul.mubr.f32.gmra.mxu0 %v3598_v2 }
 0xcfb   : > { %6134 = vmatprep.mubr.msk.f32.mxu0 %vm9964_vm2, %v3601_v5  ;;  %vm9918_vm2 = vcmp.eq.s32.totalorder %v7450_v11, %v9093_v14 }
 0xcfc   : > { %v6148_v15 = vsel %vm9918_vm2, 1.0, %v7143_v3 }
 0xcfe   : > { %3804 = vmatmul.mubr.f32.gmra.mxu0 %v3600_v6 }
 0xcff   : > { %6135 = vmatprep.mubr.msk.f32.mxu0 %vm9968_vm12, %v3603_v7  ;;  %vm4156_vm12 = vcmask 1041408  }
 0xd00   : > { %6909 = vmatprep.subr.msk.mxu1 %vm4156_vm12, %v6148_v15 }
 0xd02   : > { %3809 = vmatmul.mubr.f32.gmra.mxu0 %v3602_v8 }
 0xd03   : > { %6136 = vmatprep.mubr.msk.f32.mxu0 %vm9969_vm4, %v3605_v9  ;;  %vm9108_vm4 = vcmp.eq.s32.totalorder %v7450_v11, %v9103_v31  ;;  %v4276_v9 = vpop.permute.xlu0 %4275 }
 0xd06   : > { %3814 = vmatmul.mubr.f32.gmra.mxu0 %v3604_v10 }
 0xd07   : > { %6137 = vmatprep.mubr.msk.f32.mxu0 %vm9970_vm7, %v3607_v13  ;;  %vm4367_vm7 = vcmask 408576  }
 0xd0a   : > { %3819 = vmatmul.mubr.f32.gmra.mxu0 %v3606_v59 }
 0xda5   : > { %v6879_v16 = vpop.f32.mrf.mxu1 }
 0xda7   : > { %v3944_v57 = vpop.f32.mrf.mxu1 }
 0xda8   : > { %6897 = vmatprep.mubr.msk.f32.mxu1 %vm2295_vm0, %v3944_v57 }
 0xda9   : > { %v6882_v17 = vpop.f32.mrf.mxu1  ;;  %6898 = vmatmul.mubr.msk.f32.vlgmr.msra.gmra.mxu1 %vm2295_vm0, %v6879_v16 }
 0xdaa   : > { %6910 = vmatpush3.msk.msra.mxu1 %vm4156_vm12, %v6148_v15 }
 0xdab   : > { %v3954_v29 = vpop.f32.mrf.mxu1  ;;  %6911 = vmatprep.subr.msk.mxu1 %vm9108_vm4, %v7146_v12 }
 0xdac   : > { %6900 = vmatprep.mubr.msk.f32.mxu1 %vm2295_vm0, %v3954_v29  ;;  %6912 = vmatpush3.msk.msra.mxu1 %vm9108_vm4, %v7146_v12 }
 0xdad   : > { %v6885_v32 = vpop.f32.mrf.mxu1  ;;  %6901 = vmatmul.mubr.msk.f32.gmra.mxu1 %vm2295_vm0, %v6882_v17  ;;  %6913 = vmatprep.subr.msk.mxu1 %vm8881_vm9, %v7146_v12  ;;  %v3785_v33 = vpop.f32.mrf.mxu0 }
 0xdae   : > { %6914 = vmatpush3.msk.msra.mxu1 %vm8881_vm9, %v7146_v12 }
 0xdaf   : > { %v3964_v58 = vpop.f32.mrf.mxu1  ;;  %6915 = vmatprep.subr.msk.mxu1 %vm8895_vm11, %v7146_v12  ;;  %v3787_v25 = vpop.f32.mrf.mxu0 }
 0xdb0   : > { %6903 = vmatprep.mubr.msk.f32.mxu1 %vm2295_vm0, %v3964_v58  ;;  %6916 = vmatpush3.msk.msra.mxu1 %vm8895_vm11, %v7146_v12 }
 0xdb1   : > { %v6888_v56 = vpop.f32.mrf.mxu1  ;;  %6904 = vmatmul.mubr.msk.f32.gmra.mxu1 %vm2295_vm0, %v6885_v32 }
 0xdb2   : > { %v3790_v38 = vpop.f32.mrf.mxu0 }
 0xdb3   : > { %v3974_v55 = vpop.f32.mrf.mxu1 }
 0xdb4   : > { %v3792_v54 = vpop.f32.mrf.mxu0  ;;  %6906 = vmatprep.mubr.msk.f32.mxu1 %vm2295_vm0, %v3974_v55 }
 0xdb5   : > { %6907 = vmatmul.mubr.msk.f32.gmra.mxu1 %vm2295_vm0, %v6888_v56 }
 0xdb6   : > { %v3795_v39 = vpop.f32.mrf.mxu0  ;;  %6917 = vmatprep.mubr.msk.f32.mxu1 %vm2337_vm13, %v3785_v33 }
 0xdb8   : > { %v3797_v41 = vpop.f32.mrf.mxu0 }
 0xdb9   : > { %6918 = vmatmul.mubr.msk.f32.vlgmr.msra.gmra.mxu1 %vm2337_vm13, %v3790_v38 }
 0xdba   : > { %v3800_v35 = vpop.f32.mrf.mxu0  ;;  %6920 = vmatprep.mubr.msk.f32.mxu1 %vm2337_vm13, %v3795_v39 }
 0xdbc   : > { %v3802_v42 = vpop.f32.mrf.mxu0 }
 0xdbd   : > { %6921 = vmatmul.mubr.msk.f32.gmra.mxu1 %vm2337_vm13, %v3800_v35 }
 0xdbe   : > { %v3805_v43 = vpop.f32.mrf.mxu0 }
 0xdbf   : > { %6923 = vmatprep.mubr.msk.f32.mxu1 %vm2337_vm13, %v3805_v43 }
 0xdc0   : > { %v3807_v26 = vpop.f32.mrf.mxu0 }
 0xdc2   : > { %v3810_v30 = vpop.f32.mrf.mxu0 }
 0xdc3   : > { %6924 = vmatmul.mubr.msk.f32.gmra.mxu1 %vm2337_vm13, %v3810_v30 }
 0xdc4   : > { %v3812_v45 = vpop.f32.mrf.mxu0 }
 0xdc6   : > { %v3815_v40 = vpop.f32.mrf.mxu0 }
 0xdc7   : > { %6926 = vmatprep.mubr.msk.f32.mxu1 %vm2337_vm13, %v3815_v40 }
 0xdc8   : > { %v3817_v49 = vpop.f32.mrf.mxu0 }
 0xdca   : > { %v3820_v46 = vpop.f32.mrf.mxu0 }
 0xdcb   : > { %6927 = vmatmul.mubr.msk.f32.gmra.mxu1 %vm2337_vm13, %v3820_v46 }
 0xdcc   : > { %v3822_v36 = vpop.f32.mrf.mxu0 }
 0xe69   : > { %v6899_v37 = vpop.f32.mrf.mxu1 }
 0xe6b   : > { %v4093_v52 = vpop.f32.mrf.mxu1 }
 0xe6d   : > { %v6902_v62 = vpop.f32.mrf.mxu1 }
 0xe6f   : > { %v4103_v1 = vpop.f32.mrf.mxu1 }
 0xe71   : > { %v6905_v60 = vpop.f32.mrf.mxu1 }
 0xe73   : > { %v4113_v2 = vpop.f32.mrf.mxu1 }
 0xe75   : > { %v6908_v5 = vpop.f32.mrf.mxu1 }
 0xe77   : > { %v4123_v6 = vpop.f32.mrf.mxu1 }
 0xe79   : > { %v6919_v7 = vpop.f32.mrf.mxu1 }
 0xe7a   : > { %v4232_v8 = vadd.f32 %v6919_v7, %v6899_v37  ;;  %v4302_v7 = vld [vmem:[%s9883_s2 + $0x448] sm:$0xff] }
 0xe7b   : > { %v4226_v10 = vpop.f32.mrf.mxu1 }
 0xe7c   : > { %vm4266_vm0 = vcmp.ge.f32.partialorder %v4232_v8, 0.0  ;;  %v4279_v13 = vmul.f32 %v4276_v9, %v4232_v8  ;;  %v4227_v59 = vadd.f32 %v4226_v10, %v4093_v52  ;;  %v4308_v10 = vld [vmem:[%s9883_s2 + $0x478] sm:$0xff] }
 0xe7d   : > { %v6922_v15 = vpop.f32.mrf.mxu1 }
 0xe7e   : > { %vm4265_vm15 = vcmp.ge.f32.partialorder %v4227_v59, 0.0  ;;  %v4278_v16 = vmul.f32 %v4276_v9, %v4227_v59  ;;  %v4242_v57 = vadd.f32 %v6922_v15, %v6902_v62  ;;  %v4287_v17 = vsel %vm4266_vm0, %v4232_v8, %v4279_v13  ;;  %v4305_v8 = vld [vmem:[%s9883_s2 + $0x460] sm:$0xff]  ;;  %v4311_v13 = vld [vmem:[%s9883_s2 + $0x490] sm:$0xff] }
 0xe7f   : > { %4378 = vrot.lane.b32.xlu1 %v4287_v17, %s9941_s17  ;;  %4441 = vst.msk [vmem:[#allocation2 + $0x190] sm:$0xff] %vm4367_vm7, %v4287_v17  ;;  %v4236_v29 = vpop.f32.mrf.mxu1  ;;  %v4317_v15 = vld [vmem:[%s9883_s2 + $0x4c0] sm:$0xff] }
 0xe80   : > { %vm4268_vm13 = vcmp.ge.f32.partialorder %v4242_v57, 0.0  ;;  %v4281_v32 = vmul.f32 %v4276_v9, %v4242_v57  ;;  %v4237_v33 = vadd.f32 %v4236_v29, %v4103_v1  ;;  %v9148_v58 = vsel %vm4265_vm15, %v4227_v59, %v4278_v16  ;;  %v4295_v1 = vld [vmem:[%s9883_s2 + $0x410] sm:$0xff]  ;;  %v4314_v59 = vld [vmem:[%s9883_s2 + $0x4a8] sm:$0xff] }
 0xe81   : > { %4376 = vrot.lane.b32.xlu0 %v9148_v58, %s9941_s17  ;;  %4440 = vst.msk [vmem:[#allocation2 + $0x180] sm:$0xff] %vm4367_vm7, %v9148_v58  ;;  %4574 = vmatprep.mubr.f32.mxu0 %v4295_v1 }
 0xe82   : > { %vm4267_vm10 = vcmp.ge.f32.partialorder %v4237_v33, 0.0  ;;  %v4280_v25 = vmul.f32 %v4276_v9, %v4237_v33  ;;  %v4289_v56 = vsel %vm4268_vm13, %v4242_v57, %v4281_v32 }
 0xe83   : > { %4382 = vrot.lane.b32.xlu1 %v4289_v56, %s9941_s17  ;;  %4443 = vst.msk [vmem:[#allocation2 + $0x1b0] sm:$0xff] %vm4367_vm7, %v4289_v56  ;;  %v6925_v38 = vpop.f32.mrf.mxu1 }
 0xe84   : > { %v4252_v55 = vadd.f32 %v6925_v38, %v6905_v60  ;;  %v4288_v54 = vsel %vm4267_vm10, %v4237_v33, %v4280_v25  ;;  %v4482_v60 = vld [vmem:[#allocation2 + $0x200] sm:$0x1] }
 0xe85   : > { %4380 = vrot.lane.b32.xlu0 %v4288_v54, %s9941_s17  ;;  %4442 = vst.msk [vmem:[#allocation2 + $0x1a0] sm:$0xff] %vm4367_vm7, %v4288_v54  ;;  %v4246_v39 = vpop.f32.mrf.mxu1  ;;  %6929 = vmatprep.subr.msk.mxu1 %vm1318_vm8, %v4482_v60 }
 0xe86   : > { %vm4270_vm15 = vcmp.ge.f32.partialorder %v4252_v55, 0.0  ;;  %v4283_v41 = vmul.f32 %v4276_v9, %v4252_v55  ;;  %v4247_v35 = vadd.f32 %v4246_v39, %v4113_v2  ;;  %v4296_v2 = vld [vmem:[%s9883_s2 + $0x418] sm:$0xff]  ;;  %6930 = vmatpush3.msk.msra.mxu1 %vm1318_vm8, %v4482_v60 }
 0xe88   : > { %vm4269_vm0 = vcmp.ge.f32.partialorder %v4247_v35, 0.0  ;;  %v4282_v42 = vmul.f32 %v4276_v9, %v4247_v35  ;;  %v4291_v43 = vsel %vm4270_vm15, %v4252_v55, %v4283_v41  ;;  %vm9973_vm15 = vcmask 7168  }
 0xe89   : > { %4386 = vrot.lane.b32.xlu1 %v4291_v43, %s9941_s17  ;;  %4445 = vst.msk [vmem:[#allocation2 + $0x1d0] sm:$0xff] %vm4367_vm7, %v4291_v43  ;;  %6931 = vmatprep.mubr.msk.f32.mxu1 %vm9973_vm15, %v4296_v2  ;;  %v4475_v2 = vld [vmem:[#allocation2 + $0x190] sm:$0xff] }
 0xe8a   : > { %v4290_v26 = vsel %vm4269_vm0, %v4247_v35, %v4282_v42  ;;  %vm9974_vm0 = vmmov %vm9973_vm15 }
 0xe8b   : > { %4384 = vrot.lane.b32.xlu0 %v4290_v26, %s9941_s17  ;;  %4444 = vst.msk [vmem:[#allocation2 + $0x1c0] sm:$0xff] %vm4367_vm7, %v4290_v26  ;;  %v6928_v30 = vpop.f32.mrf.mxu1  ;;  %vm9976_vm15 = vmmov %vm9974_vm0 }
 0xe8c   : > { %v4262_v45 = vadd.f32 %v6928_v30, %v6908_v5  ;;  %v4299_v5 = vld [vmem:[%s9883_s2 + $0x430] sm:$0xff] }
 0xe8d   : > { %v4256_v40 = vpop.f32.mrf.mxu1  ;;  %6932 = vmatmul.mubr.msk.f32.vlgmr.msra.gmra.mxu1 %vm9974_vm0, %v4299_v5 }
 0xe8e   : > { %vm4272_vm10 = vcmp.ge.f32.partialorder %v4262_v45, 0.0  ;;  %v4285_v49 = vmul.f32 %v4276_v9, %v4262_v45  ;;  %v4257_v46 = vadd.f32 %v4256_v40, %v4123_v6  ;;  %v4334_v6 = vld [vmem:[%s9883_s2 + $0x630] ss:$0 sm:$0xff] }
 0xe90   : > { %vm4271_vm13 = vcmp.ge.f32.partialorder %v4257_v46, 0.0  ;;  %v4284_v36 = vmul.f32 %v4276_v9, %v4257_v46  ;;  %v4293_v37 = vsel %vm4272_vm10, %v4262_v45, %v4285_v49  ;;  %vm5339_vm10 = vcmask 778240   ;;  %v9209_v9 = vld [vmem:[#allocation2 + $0x390] sm:$0x1] }
 0xe91   : > { %4357 = vrot.lane.b32.xlu0 %v4293_v37, %s9929_s16  ;;  %4447 = vst.msk [vmem:[#allocation2 + $0x1f0] sm:$0xff] %vm4367_vm7, %v4293_v37  ;;  %4390 = vrot.lane.b32.xlu1 %v4293_v37, %s9941_s17 }
 0xe92   : > { %v4292_v52 = vsel %vm4271_vm13, %v4257_v46, %v4284_v36  ;;  %5340 = vst.msk [vmem:[#allocation2 + $0x200] sm:$0x1] %vm5339_vm10, %v7146_v12  ;;  %vm9975_vm13 = vmmov %vm9974_vm0  ;;  %v4478_v45 = vld [vmem:[#allocation2 + $0x1c0] sm:$0xff]  ;;  %v4477_v36 = vld [vmem:[#allocation2 + $0x1b0] sm:$0xff] }
 0xe93   : > { %4446 = vst.msk [vmem:[#allocation2 + $0x1e0] sm:$0xff] %vm4367_vm7, %v4292_v52  ;;  %6934 = vmatprep.mubr.msk.f32.mxu1 %vm9975_vm13, %v4302_v7  ;;  %vm9977_vm13 = vmmov %vm9974_vm0 }
 0xe94   : > { %6935 = vmatmul.mubr.msk.f32.gmra.mxu1 %vm9976_vm15, %v4305_v8  ;;  %5544 = vst.msk [vmem:[#allocation2 + $0x390] sm:$0x1] %vm5339_vm10, %v7146_v12  ;;  %vm9978_vm15 = vmmov %vm9974_vm0 }
 0xe95   : > { %4418 = vrot.lane.b32.xlu1 %v4291_v43, %s7148_s13  ;;  %4388 = vrot.lane.b32.xlu0 %v4292_v52, %s9941_s17  ;;  %vm9979_vm10 = vmmov %vm9974_vm0 }
 0xe96   : > { %6937 = vmatprep.mubr.msk.f32.mxu1 %vm9974_vm0, %v4308_v10 }
 0xe98   : > { %v4481_v62 = vld [vmem:[#allocation2 + $0x1f0] sm:$0xff]  ;;  %6938 = vmatmul.mubr.msk.f32.gmra.mxu1 %vm9977_vm13, %v4311_v13 }
 0xe99   : > { %4422 = vrot.lane.b32.xlu1 %v4293_v37, %s7148_s13  ;;  %6614 = vmatprep.subr.mxu0 %v4481_v62 }
 0xe9a   : > { %4353 = vrot.lane.b32.xlu0 %v4291_v43, %s9929_s16  ;;  %6940 = vmatprep.mubr.msk.f32.mxu1 %vm9978_vm15, %v4314_v59  ;;  %v4480_v41 = vld [vmem:[#allocation2 + $0x1e0] sm:$0xff] }
 0xe9c   : > { %6941 = vmatmul.mubr.msk.f32.gmra.mxu1 %vm9979_vm10, %v4317_v15 }
 0xe9d   : > { %4416 = vrot.lane.b32.xlu1 %v4290_v26, %s7148_s13 }
 0xe9e   : > { %4351 = vrot.lane.b32.xlu0 %v4290_v26, %s9929_s16  ;;  %v4479_v26 = vld [vmem:[#allocation2 + $0x1d0] sm:$0xff] }
 0xea1   : > { %4414 = vrot.lane.b32.xlu1 %v4289_v56, %s7148_s13 }
 0xea2   : > { %4349 = vrot.lane.b32.xlu0 %v4289_v56, %s9929_s16 }
 0xea5   : > { %4420 = vrot.lane.b32.xlu1 %v4292_v52, %s7148_s13 }
 0xea6   : > { %4355 = vrot.lane.b32.xlu0 %v4292_v52, %s9929_s16  ;;  %v4476_v52 = vld [vmem:[#allocation2 + $0x1a0] sm:$0xff] }
 0xea9   : > { %4412 = vrot.lane.b32.xlu1 %v4288_v54, %s7148_s13 }
 0xeaa   : > { %4347 = vrot.lane.b32.xlu0 %v4288_v54, %s9929_s16 }
 0xead   : > { %4410 = vrot.lane.b32.xlu1 %v4287_v17, %s7148_s13 }
 0xeae   : > { %4345 = vrot.lane.b32.xlu0 %v4287_v17, %s9929_s16 }
 0xeb1   : > { %4408 = vrot.lane.b32.xlu1 %v9148_v58, %s7148_s13 }
 0xeb2   : > { %4343 = vrot.lane.b32.xlu0 %v9148_v58, %s9929_s16 }
 0xeb5   : > { %5202 = vperm.xlu1 %7078, %v4334_v6   ;;  %v4474_v6 = vld [vmem:[#allocation2 + $0x180] sm:$0xff] }
 0xef1   : > { %v4379_v16 = vpop.permute.xlu1 %4378 }
 0xef2   : > { %4401 = vst.msk [vmem:[#allocation2 + $0x90] sm:$0xff] %vm4367_vm7, %v4379_v16 }
 0xef3   : > { %4730 = vst.msk [vmem:[#allocation2 + $0x2a0] sm:$0xff] %vm4720_vm1, %v4379_v16  ;;  %v4377_v57 = vpop.permute.xlu0 %4376 }
 0xef4   : > { %4400 = vst.msk [vmem:[#allocation2 + $0x80] sm:$0xff] %vm4367_vm7, %v4377_v57 }
 0xef5   : > { %4729 = vst.msk [vmem:[#allocation2 + $0x290] sm:$0xff] %vm4720_vm1, %v4377_v57  ;;  %v4383_v17 = vpop.permute.xlu1 %4382 }
 0xef6   : > { %4403 = vst.msk [vmem:[#allocation2 + $0xb0] sm:$0xff] %vm4367_vm7, %v4383_v17 }
 0xef7   : > { %4732 = vst.msk [vmem:[#allocation2 + $0x2c0] sm:$0xff] %vm4720_vm1, %v4383_v17  ;;  %v4381_v29 = vpop.permute.xlu0 %4380 }
 0xef8   : > { %4402 = vst.msk [vmem:[#allocation2 + $0xa0] sm:$0xff] %vm4367_vm7, %v4381_v29 }
 0xef9   : > { %4731 = vst.msk [vmem:[#allocation2 + $0x2b0] sm:$0xff] %vm4720_vm1, %v4381_v29  ;;  %v4459_v5 = vld [vmem:[#allocation2 + $0x90] sm:$0xff] }
 0xefb   : > { %v4387_v32 = vpop.permute.xlu1 %4386  ;;  %v4458_v8 = vld [vmem:[#allocation2 + $0x80] sm:$0xff] }
 0xefc   : > { %4405 = vst.msk [vmem:[#allocation2 + $0xd0] sm:$0xff] %vm4367_vm7, %v4387_v32 }
 0xefd   : > { %4734 = vst.msk [vmem:[#allocation2 + $0x2e0] sm:$0xff] %vm4720_vm1, %v4387_v32  ;;  %v4385_v33 = vpop.permute.xlu0 %4384  ;;  %v4461_v37 = vld [vmem:[#allocation2 + $0xb0] sm:$0xff] }
 0xefe   : > { %4404 = vst.msk [vmem:[#allocation2 + $0xc0] sm:$0xff] %vm4367_vm7, %v4385_v33 }
 0xeff   : > { %4733 = vst.msk [vmem:[#allocation2 + $0x2d0] sm:$0xff] %vm4720_vm1, %v4385_v33  ;;  %v4460_v1 = vld [vmem:[#allocation2 + $0xa0] sm:$0xff] }
 0xf03   : > { %v4358_v58 = vpop.permute.xlu0 %4357  ;;  %v4391_v25 = vpop.permute.xlu1 %4390  ;;  %v4463_v30 = vld [vmem:[#allocation2 + $0xd0] sm:$0xff] }
 0xf04   : > { %4375 = vst.msk [vmem:[#allocation2 + $0x70] sm:$0xff] %vm4367_vm7, %v4358_v58  ;;  %4407 = vst.msk [vmem:[#allocation2 + $0xf0] sm:$0xff] %vm4367_vm7, %v4391_v25 }
 0xf05   : > { %4728 = vst.msk [vmem:[#allocation2 + $0x280] sm:$0xff] %vm4720_vm1, %v4358_v58  ;;  %4736 = vst.msk [vmem:[#allocation2 + $0x300] sm:$0xff] %vm4720_vm1, %v4391_v25  ;;  %v4462_v49 = vld [vmem:[#allocation2 + $0xc0] sm:$0xff] }
 0xf07   : > { %v4419_v56 = vpop.permute.xlu1 %4418  ;;  %v4389_v38 = vpop.permute.xlu0 %4388 }
 0xf08   : > { %4437 = vst.msk [vmem:[#allocation2 + $0x150] sm:$0xff] %vm4367_vm7, %v4419_v56  ;;  %4406 = vst.msk [vmem:[#allocation2 + $0xe0] sm:$0xff] %vm4367_vm7, %v4389_v38 }
 0xf09   : > { %4742 = vst.msk [vmem:[#allocation2 + $0x360] sm:$0xff] %vm4720_vm1, %v4419_v56  ;;  %4735 = vst.msk [vmem:[#allocation2 + $0x2f0] sm:$0xff] %vm4720_vm1, %v4389_v38 }
 0xf0b   : > { %v4423_v55 = vpop.permute.xlu1 %4422  ;;  %v4465_v54 = vld [vmem:[#allocation2 + $0xf0] sm:$0xff] }
 0xf0c   : > { %4439 = vst.msk [vmem:[#allocation2 + $0x170] sm:$0xff] %vm4367_vm7, %v4423_v55  ;;  %v4354_v39 = vpop.permute.xlu0 %4353  ;;  %6615 = vmatpush3.msra.mxu0 %v4465_v54  ;;  %v4457_v59 = vld [vmem:[#allocation2 + $0x70] sm:$0xff] }
 0xf0d   : > { %4744 = vst.msk [vmem:[#allocation2 + $0x380] sm:$0xff] %vm4720_vm1, %v4423_v55  ;;  %4726 = vst.msk [vmem:[#allocation2 + $0x260] sm:$0xff] %vm4720_vm1, %v4354_v39  ;;  %6616 = vmatprep.subr.mxu0 %v4480_v41 }
 0xf0e   : > { %4373 = vst.msk [vmem:[#allocation2 + $0x50] sm:$0xff] %vm4367_vm7, %v4354_v39 }
 0xf0f   : > { %v4417_v35 = vpop.permute.xlu1 %4416  ;;  %v4464_v42 = vld [vmem:[#allocation2 + $0xe0] sm:$0xff]  ;;  %v4471_v29 = vld [vmem:[#allocation2 + $0x150] sm:$0xff] }
 0xf10   : > { %4436 = vst.msk [vmem:[#allocation2 + $0x140] sm:$0xff] %vm4367_vm7, %v4417_v35  ;;  %v4352_v43 = vpop.permute.xlu0 %4351  ;;  %6617 = vmatpush3.msra.mxu0 %v4464_v42 }
 0xf11   : > { %4741 = vst.msk [vmem:[#allocation2 + $0x350] sm:$0xff] %vm4720_vm1, %v4417_v35  ;;  %4725 = vst.msk [vmem:[#allocation2 + $0x250] sm:$0xff] %vm4720_vm1, %v4352_v43  ;;  %6618 = vmatprep.subr.mxu0 %v4479_v26 }
 0xf12   : > { %4372 = vst.msk [vmem:[#allocation2 + $0x40] sm:$0xff] %vm4367_vm7, %v4352_v43  ;;  %6619 = vmatpush3.msra.mxu0 %v4463_v30  ;;  %v4294_v43 = vld [vmem:[%s9883_s2 + $0x408] sm:$0xff] }
 0xf13   : > { %v4415_v40 = vpop.permute.xlu1 %4414  ;;  %6620 = vmatprep.subr.mxu0 %v4478_v45  ;;  %v4473_v13 = vld [vmem:[#allocation2 + $0x170] sm:$0xff]  ;;  %v4298_v30 = vld [vmem:[%s9883_s2 + $0x428] sm:$0xff]  ;;  %v4762_v45 = vld [vmem:[#allocation2 + $0x300] sm:$0xff] }
 0xf14   : > { %4435 = vst.msk [vmem:[#allocation2 + $0x130] sm:$0xff] %vm4367_vm7, %v4415_v40  ;;  %v4350_v46 = vpop.permute.xlu0 %4349  ;;  %6621 = vmatpush3.msra.mxu0 %v4462_v49  ;;  %v4761_v49 = vld [vmem:[#allocation2 + $0x2f0] sm:$0xff] }
 0xf15   : > { %4740 = vst.msk [vmem:[#allocation2 + $0x340] sm:$0xff] %vm4720_vm1, %v4415_v40  ;;  %4724 = vst.msk [vmem:[#allocation2 + $0x240] sm:$0xff] %vm4720_vm1, %v4350_v46  ;;  %6622 = vmatprep.subr.mxu0 %v4477_v36  ;;  %v4455_v32 = vld [vmem:[#allocation2 + $0x50] sm:$0xff]  ;;  %v4297_v40 = vld [vmem:[%s9883_s2 + $0x420] sm:$0xff] }
 0xf16   : > { %4371 = vst.msk [vmem:[#allocation2 + $0x30] sm:$0xff] %vm4367_vm7, %v4350_v46  ;;  %6623 = vmatpush3.msra.mxu0 %v4461_v37  ;;  %v4301_v46 = vld [vmem:[%s9883_s2 + $0x440] sm:$0xff]  ;;  %v4300_v37 = vld [vmem:[%s9883_s2 + $0x438] sm:$0xff] }
 0xf17   : > { %v4421_v62 = vpop.permute.xlu1 %4420  ;;  %6624 = vmatprep.subr.mxu0 %v4476_v52  ;;  %v4470_v58 = vld [vmem:[#allocation2 + $0x140] sm:$0xff]  ;;  %v4759_v52 = vld [vmem:[#allocation2 + $0x2d0] sm:$0xff] }
 0xf18   : > { %4438 = vst.msk [vmem:[#allocation2 + $0x160] sm:$0xff] %vm4367_vm7, %v4421_v62  ;;  %v4356_v60 = vpop.permute.xlu0 %4355  ;;  %6625 = vmatpush3.msra.mxu0 %v4460_v1  ;;  %v4760_v36 = vld [vmem:[#allocation2 + $0x2e0] sm:$0xff] }
 0xf19   : > { %4743 = vst.msk [vmem:[#allocation2 + $0x370] sm:$0xff] %vm4720_vm1, %v4421_v62  ;;  %4727 = vst.msk [vmem:[#allocation2 + $0x270] sm:$0xff] %vm4720_vm1, %v4356_v60  ;;  %6626 = vmatprep.subr.mxu0 %v4475_v2  ;;  %v4454_v56 = vld [vmem:[#allocation2 + $0x40] sm:$0xff]  ;;  %v4304_v62 = vld [vmem:[%s9883_s2 + $0x458] sm:$0xff] }
 0xf1a   : > { %4374 = vst.msk [vmem:[#allocation2 + $0x60] sm:$0xff] %vm4367_vm7, %v4356_v60  ;;  %6627 = vmatpush3.msra.mxu0 %v4459_v5  ;;  %v4758_v1 = vld [vmem:[#allocation2 + $0x2c0] sm:$0xff]  ;;  %v4303_v60 = vld [vmem:[%s9883_s2 + $0x450] sm:$0xff] }
 0xf1b   : > { %v4413_v7 = vpop.permute.xlu1 %4412  ;;  %6628 = vmatprep.subr.mxu0 %v4474_v6  ;;  %v4469_v38 = vld [vmem:[#allocation2 + $0x130] sm:$0xff]  ;;  %v4756_v6 = vld [vmem:[#allocation2 + $0x2a0] sm:$0xff] }
 0xf1c   : > { %4434 = vst.msk [vmem:[#allocation2 + $0x120] sm:$0xff] %vm4367_vm7, %v4413_v7  ;;  %v4348_v10 = vpop.permute.xlu0 %4347  ;;  %6629 = vmatpush3.msra.mxu0 %v4458_v8  ;;  %v4757_v2 = vld [vmem:[#allocation2 + $0x2b0] sm:$0xff] }
 0xf1d   : > { %4739 = vst.msk [vmem:[#allocation2 + $0x330] sm:$0xff] %vm4720_vm1, %v4413_v7  ;;  %4723 = vst.msk [vmem:[#allocation2 + $0x230] sm:$0xff] %vm4720_vm1, %v4348_v10  ;;  %6630 = vmatprep.subr.mxu0 %v4473_v13  ;;  %v4453_v55 = vld [vmem:[#allocation2 + $0x30] sm:$0xff]  ;;  %v4306_v7 = vld [vmem:[%s9883_s2 + $0x468] sm:$0xff] }
 0xf1e   : > { %4370 = vst.msk [vmem:[#allocation2 + $0x20] sm:$0xff] %vm4367_vm7, %v4348_v10  ;;  %6631 = vmatpush3.msra.mxu0 %v4457_v59  ;;  %v4307_v5 = vld [vmem:[%s9883_s2 + $0x470] sm:$0xff]  ;;  %v4310_v10 = vld [vmem:[%s9883_s2 + $0x488] sm:$0xff]  ;;  %v4754_v13 = vld [vmem:[#allocation2 + $0x280] sm:$0xff] }
 0xf1f   : > { %v4411_v15 = vpop.permute.xlu1 %4410  ;;  %v4472_v16 = vld [vmem:[#allocation2 + $0x160] sm:$0xff]  ;;  %v4755_v8 = vld [vmem:[#allocation2 + $0x290] sm:$0xff] }
 0xf20   : > { %4433 = vst.msk [vmem:[#allocation2 + $0x110] sm:$0xff] %vm4367_vm7, %v4411_v15  ;;  %v4346_v57 = vpop.permute.xlu0 %4345  ;;  %6632 = vmatprep.subr.mxu0 %v4472_v16  ;;  %v4309_v59 = vld [vmem:[%s9883_s2 + $0x480] sm:$0xff] }
 0xf21   : > { %4738 = vst.msk [vmem:[#allocation2 + $0x320] sm:$0xff] %vm4720_vm1, %v4411_v15  ;;  %v4456_v17 = vld [vmem:[#allocation2 + $0x60] sm:$0xff]  ;;  %4722 = vst.msk [vmem:[#allocation2 + $0x220] sm:$0xff] %vm4720_vm1, %v4346_v57  ;;  %v4753_v15 = vld [vmem:[#allocation2 + $0x270] sm:$0xff] }
 0xf22   : > { %4369 = vst.msk [vmem:[#allocation2 + $0x10] sm:$0xff] %vm4367_vm7, %v4346_v57  ;;  %6633 = vmatpush3.msra.mxu0 %v4456_v17  ;;  %v4313_v16 = vld [vmem:[%s9883_s2 + $0x4a0] sm:$0xff]  ;;  %v4312_v17 = vld [vmem:[%s9883_s2 + $0x498] sm:$0xff] }
 0xf23   : > { %6634 = vmatprep.subr.mxu0 %v4471_v29  ;;  %v4409_v33 = vpop.permute.xlu1 %4408  ;;  %v4468_v54 = vld [vmem:[#allocation2 + $0x120] sm:$0xff]  ;;  %v4751_v29 = vld [vmem:[#allocation2 + $0x250] sm:$0xff] }
 0xf24   : > { %6635 = vmatpush3.msra.mxu0 %v4455_v32  ;;  %4432 = vst.msk [vmem:[#allocation2 + $0x100] sm:$0xff] %vm4367_vm7, %v4409_v33  ;;  %v4344_v25 = vpop.permute.xlu0 %4343  ;;  %v4752_v57 = vld [vmem:[#allocation2 + $0x260] sm:$0xff]  ;;  %v4316_v32 = vld [vmem:[%s9883_s2 + $0x4b8] sm:$0xff] }
 0xf25   : > { %4737 = vst.msk [vmem:[#allocation2 + $0x310] sm:$0xff] %vm4720_vm1, %v4409_v33  ;;  %6636 = vmatprep.subr.mxu0 %v4470_v58  ;;  %4721 = vst.msk [vmem:[#allocation2 + $0x210] sm:$0xff] %vm4720_vm1, %v4344_v25  ;;  %v4452_v39 = vld [vmem:[#allocation2 + $0x20] sm:$0xff]  ;;  %v4315_v58 = vld [vmem:[%s9883_s2 + $0x4b0] sm:$0xff] }
 0xf26   : > { %4368 = vst.msk [vmem:[#allocation2] sm:$0xff] %vm4367_vm7, %v4344_v25  ;;  %6637 = vmatpush3.msra.mxu0 %v4454_v56  ;;  %v4750_v33 = vld [vmem:[#allocation2 + $0x240] sm:$0xff]  ;;  %v4749_v25 = vld [vmem:[#allocation2 + $0x230] sm:$0xff] }
 0xf27   : > { %6638 = vmatprep.subr.mxu0 %v4469_v38  ;;  %v4467_v41 = vld [vmem:[#allocation2 + $0x110] sm:$0xff] }
 0xf28   : > { %6639 = vmatpush3.msra.mxu0 %v4453_v55  ;;  %v4319_v56 = vld [vmem:[%s9883_s2 + $0x4d0] sm:$0xff]  ;;  %v4748_v38 = vld [vmem:[#allocation2 + $0x220] sm:$0xff] }
 0xf29   : > { %6640 = vmatprep.subr.mxu0 %v4468_v54  ;;  %v4451_v35 = vld [vmem:[#allocation2 + $0x10] sm:$0xff]  ;;  %v4770_v54 = vld [vmem:[#allocation2 + $0x380] sm:$0xff] }
 0xf2a   : > { %6641 = vmatpush3.msra.mxu0 %v4452_v39  ;;  %v4769_v39 = vld [vmem:[#allocation2 + $0x370] sm:$0xff] }
 0xf2b   : > { %6642 = vmatprep.subr.mxu0 %v4467_v41  ;;  %v4466_v42 = vld [vmem:[#allocation2 + $0x100] sm:$0xff] }
 0xf2c   : > { %6643 = vmatpush3.msra.mxu0 %v4451_v35  ;;  %v4747_v55 = vld [vmem:[#allocation2 + $0x210] sm:$0xff]  ;;  %v4768_v41 = vld [vmem:[#allocation2 + $0x360] sm:$0xff] }
 0xf2d   : > { %6644 = vmatprep.subr.mxu0 %v4466_v42  ;;  %v4450_v26 = vld [vmem:[#allocation2] sm:$0xff]  ;;  %v4767_v35 = vld [vmem:[#allocation2 + $0x350] sm:$0xff] }
 0xf2e   : > { %6645 = vmatpush3.msra.mxu0 %v4450_v26  ;;  %v4766_v42 = vld [vmem:[#allocation2 + $0x340] sm:$0xff]  ;;  %v4318_v26 = vld [vmem:[%s9883_s2 + $0x4c8] sm:$0xff] }
 0xf2f   : > { %4799 = vmatprep.subr.mxu0 %v7143_v3  ;;  %4575 = vmatmul.mubr.f32.vlgmr.msra.gmra.mxu0 %v4294_v43  ;;  %v4764_v43 = vld [vmem:[#allocation2 + $0x320] sm:$0xff] }
 0xf30   : > { %4800 = vmatpush1.msra.mxu0 %v4762_v45  ;;  %4579 = vmatprep.mubr.f32.mxu0 %v4298_v30  ;;  %v4763_v30 = vld [vmem:[#allocation2 + $0x310] sm:$0xff]  ;;  %v4321_v45 = vld [vmem:[%s9883_s2 + $0x4e8] sm:$0xff] }
 0xf31   : > { %4801 = vmatprep.subr.mxu0 %v7143_v3 }
 0xf32   : > { %4802 = vmatpush1.msra.mxu0 %v4761_v49  ;;  %v4323_v49 = vld [vmem:[%s9883_s2 + $0x500] sm:$0xff] }
 0xf33   : > { %4803 = vmatprep.subr.mxu0 %v7143_v3  ;;  %4580 = vmatmul.mubr.f32.gmra.mxu0 %v4297_v40  ;;  %v4320_v40 = vld [vmem:[%s9883_s2 + $0x4e0] sm:$0xff] }
 0xf34   : > { %4804 = vmatpush1.msra.mxu0 %v4760_v36  ;;  %4584 = vmatprep.mubr.f32.mxu0 %v4301_v46  ;;  %v4322_v46 = vld [vmem:[%s9883_s2 + $0x4f8] sm:$0xff] }
 0xf35   : > { %4805 = vmatprep.subr.mxu0 %v7143_v3  ;;  %v4325_v36 = vld [vmem:[%s9883_s2 + $0x518] sm:$0xff] }
 0xf36   : > { %4806 = vmatpush1.msra.mxu0 %v4759_v52  ;;  %v4327_v52 = vld [vmem:[%s9883_s2 + $0x530] sm:$0xff] }
 0xf37   : > { %4807 = vmatprep.subr.mxu0 %v7143_v3  ;;  %4585 = vmatmul.mubr.f32.gmra.mxu0 %v4300_v37  ;;  %v4324_v37 = vld [vmem:[%s9883_s2 + $0x510] sm:$0xff] }
 0xf38   : > { %4808 = vmatpush1.msra.mxu0 %v4758_v1  ;;  %4589 = vmatprep.mubr.f32.mxu0 %v4304_v62  ;;  %v4326_v62 = vld [vmem:[%s9883_s2 + $0x528] sm:$0xff] }
 0xf39   : > { %4809 = vmatprep.subr.mxu0 %v7143_v3  ;;  %v4329_v1 = vld [vmem:[%s9883_s2 + $0x548] sm:$0xff] }
 0xf3a   : > { %4810 = vmatpush1.msra.mxu0 %v4757_v2  ;;  %v4331_v2 = vld [vmem:[%s9883_s2 + $0x560] sm:$0xff] }
 0xf3b   : > { %4811 = vmatprep.subr.mxu0 %v7143_v3  ;;  %4590 = vmatmul.mubr.f32.gmra.mxu0 %v4303_v60  ;;  %v4328_v60 = vld [vmem:[%s9883_s2 + $0x540] sm:$0xff] }
 0xf3c   : > { %4812 = vmatpush1.msra.mxu0 %v4756_v6  ;;  %4594 = vmatprep.mubr.f32.mxu0 %v4307_v5  ;;  %v4330_v5 = vld [vmem:[%s9883_s2 + $0x558] sm:$0xff] }
 0xf3d   : > { %4813 = vmatprep.subr.mxu0 %v7143_v3  ;;  %v4333_v6 = vld [vmem:[%s9883_s2 + $0x578] sm:$0xff] }
 0xf3e   : > { %4814 = vmatpush1.msra.mxu0 %v4755_v8  ;;  %v9406_v8 = vmul.u32 2, %v7499_v22  ;;  %v9436_v22 = vmul.u32 2, %v7513_v24 }
 0xf3f   : > { %4815 = vmatprep.subr.mxu0 %v7143_v3  ;;  %4595 = vmatmul.mubr.f32.gmra.mxu0 %v4306_v7  ;;  %v4332_v7 = vld [vmem:[%s9883_s2 + $0x570] sm:$0xff] }
 0xf40   : > { %4816 = vmatpush1.msra.mxu0 %v4754_v13  ;;  %4599 = vmatprep.mubr.f32.mxu0 %v4310_v10  ;;  %v9409_v10 = vadd.s32 1, %v9406_v8  ;;  %v9412_v13 = vmul.u32 2, %v7506_v23  ;;  %v9439_v23 = vadd.s32 1, %v9436_v22  ;;  %vm9925_vm10 = vcmp.eq.s32.totalorder %v7450_v11, %v9406_v8 }
 0xf41   : > { %4817 = vmatprep.subr.mxu0 %v7143_v3  ;;  %v6195_v24 = vsel %vm9925_vm10, 1.0, %v7143_v3 }
 0xf42   : > { %4818 = vmatpush1.msra.mxu0 %v4753_v15  ;;  %vm9924_vm0 = vcmp.eq.s32.totalorder %v7450_v11, %v9409_v10  ;;  %v9421_v15 = vadd.s32 1, %v9412_v13  ;;  %vm9919_vm15 = vcmp.eq.s32.totalorder %v7450_v11, %v9439_v23 }
 0xf43   : > { %4819 = vmatprep.subr.mxu0 %v7143_v3  ;;  %4600 = vmatmul.mubr.f32.gmra.mxu0 %v4309_v59  ;;  %v6198_v59 = vsel %vm9924_vm0, 1.0, %v7143_v3 }
 0xf44   : > { %4820 = vmatpush1.msra.mxu0 %v4752_v57  ;;  %4604 = vmatprep.mubr.f32.mxu0 %v4313_v16  ;;  %vm9920_vm13 = vcmp.eq.s32.totalorder %v7450_v11, %v9421_v15 }
 0xf45   : > { %4821 = vmatprep.subr.mxu0 %v7143_v3  ;;  %6943 = vmatprep.subr.msk.mxu1 %vm1318_vm8, %v6198_v59 }
 0xf46   : > { %4822 = vmatpush1.msra.mxu0 %v4751_v29  ;;  %6944 = vmatpush3.msk.msra.mxu1 %vm1318_vm8, %v6198_v59 }
 0xf47   : > { %4823 = vmatprep.subr.mxu0 %v7143_v3  ;;  %4605 = vmatmul.mubr.f32.gmra.mxu0 %v4312_v17 }
 0xf48   : > { %4824 = vmatpush1.msra.mxu0 %v4750_v33  ;;  %4609 = vmatprep.mubr.f32.mxu0 %v4316_v32 }
 0xf49   : > { %4825 = vmatprep.subr.mxu0 %v7143_v3  ;;  %6945 = vmatprep.subr.msk.mxu1 %vm9920_vm13, %v7146_v12 }
 0xf4a   : > { %4826 = vmatpush1.msra.mxu0 %v4749_v25  ;;  %6946 = vmatpush3.msk.msra.mxu1 %vm9920_vm13, %v7146_v12 }
 0xf4b   : > { %4827 = vmatprep.subr.mxu0 %v7143_v3  ;;  %4610 = vmatmul.mubr.f32.gmra.mxu0 %v4315_v58 }
 0xf4c   : > { %4828 = vmatpush1.msra.mxu0 %v4748_v38  ;;  %6185 = vmatprep.mubr.msk.f32.mxu0 %vm2511_vm6, %v4319_v56 }
 0xf4d   : > { %4829 = vmatprep.subr.mxu0 %v7143_v3  ;;  %6947 = vmatprep.subr.msk.mxu1 %vm9919_vm15, %v7146_v12 }
 0xf4e   : > { %4830 = vmatpush1.msra.mxu0 %v4747_v55  ;;  %6948 = vmatpush3.msk.msra.mxu1 %vm9919_vm15, %v7146_v12  ;;  %vm9921_vm15 = vcmp.eq.s32.totalorder %v7450_v11, %v9436_v22 }
 0xf4f   : > { %4845 = vmatprep.subr.mxu0 %v7143_v3  ;;  %6949 = vmatprep.subr.msk.mxu1 %vm9918_vm2, %v7146_v12 }
 0xf50   : > { %6184 = vmatpush2.msk.msra.mxu0 %vm1318_vm8, %v9209_v9  ;;  %v4765_v9 = vld [vmem:[#allocation2 + $0x330] sm:$0xff]  ;;  %6950 = vmatpush3.msk.msra.mxu1 %vm9918_vm2, %v7146_v12  ;;  %vm9923_vm2 = vcmp.eq.s32.totalorder %v7450_v11, %v9412_v13 }
 0xf51   : > { %4847 = vmatprep.subr.mxu0 %v7143_v3  ;;  %6951 = vmatprep.subr.msk.mxu1 %vm9108_vm4, %v7146_v12 }
 0xf52   : > { %4848 = vmatpush2.msra.mxu0 %v4770_v54  ;;  %6952 = vmatpush3.msk.msra.mxu1 %vm9108_vm4, %v7146_v12 }
 0xf53   : > { %4849 = vmatprep.subr.mxu0 %v7143_v3  ;;  %6953 = vmatprep.subr.msk.mxu1 %vm8881_vm9, %v7146_v12 }
 0xf54   : > { %4850 = vmatpush2.msra.mxu0 %v4769_v39  ;;  %6954 = vmatpush3.msk.msra.mxu1 %vm8881_vm9, %v7146_v12 }
 0xf55   : > { %4851 = vmatprep.subr.mxu0 %v7143_v3  ;;  %6955 = vmatprep.subr.msk.mxu1 %vm8895_vm11, %v7146_v12 }
 0xf56   : > { %4852 = vmatpush2.msra.mxu0 %v4768_v41  ;;  %6956 = vmatpush3.msk.msra.mxu1 %vm8895_vm11, %v7146_v12 }
 0xf57   : > { %4853 = vmatprep.subr.mxu0 %v7143_v3  ;;  %6969 = vmatprep.subr.msk.mxu1 %vm4156_vm12, %v6195_v24 }
 0xf58   : > { %4854 = vmatpush2.msra.mxu0 %v4767_v35 }
 0xf59   : > { %4855 = vmatprep.subr.mxu0 %v7143_v3 }
 0xf5a   : > { %4856 = vmatpush2.msra.mxu0 %v4766_v42 }
 0xf5b   : > { %4857 = vmatprep.subr.mxu0 %v7143_v3 }
 0xf5c   : > { %4858 = vmatpush2.msra.mxu0 %v4765_v9 }
 0xf5d   : > { %4859 = vmatprep.subr.mxu0 %v7143_v3 }
 0xf5e   : > { %4860 = vmatpush2.msra.mxu0 %v4764_v43 }
 0xf5f   : > { %4861 = vmatprep.subr.mxu0 %v7143_v3 }
 0xf60   : > { %4862 = vmatpush2.msra.mxu0 %v4763_v30 }
 0xf61   : > { %4864 = vmatmul.mubr.f32.vlgmr.msra.gmra.mxu0 %v4318_v26  ;;  %5576 = vmatprep.subr.mxu0 %v7143_v3 }
 0xf62   : > { %6186 = vmatprep.mubr.msk.f32.mxu0 %vm2511_vm6, %v4321_v45 }
 0xf65   : > { %4869 = vmatmul.mubr.f32.gmra.mxu0 %v4320_v40 }
 0xf66   : > { %6187 = vmatprep.mubr.msk.f32.mxu0 %vm2511_vm6, %v4323_v49 }
 0xf69   : > { %4874 = vmatmul.mubr.f32.gmra.mxu0 %v4322_v46 }
 0xf6a   : > { %6188 = vmatprep.mubr.msk.f32.mxu0 %vm2511_vm6, %v4325_v36  ;;  %v6933_v36 = vpop.f32.mrf.mxu1 }
 0xf6d   : > { %4879 = vmatmul.mubr.f32.gmra.mxu0 %v4324_v37 }
 0xf6e   : > { %6189 = vmatprep.mubr.msk.f32.mxu0 %vm2511_vm6, %v4327_v52 }
 0xf71   : > { %4884 = vmatmul.mubr.f32.gmra.mxu0 %v4326_v62  ;;  %v4681_v62 = vpop.f32.mrf.mxu1 }
 0xf72   : > { %6190 = vmatprep.mubr.msk.f32.mxu0 %vm2511_vm6, %v4329_v1 }
 0xf75   : > { %4889 = vmatmul.mubr.f32.gmra.mxu0 %v4328_v60  ;;  %v6936_v60 = vpop.f32.mrf.mxu1 }
 0xf76   : > { %6191 = vmatprep.mubr.msk.f32.mxu0 %vm2511_vm6, %v4331_v2 }
 0xf79   : > { %4894 = vmatmul.mubr.f32.gmra.mxu0 %v4330_v5 }
 0xf7a   : > { %6192 = vmatprep.mubr.msk.f32.mxu0 %vm2511_vm6, %v4333_v6 }
 0xf7d   : > { %4899 = vmatmul.mubr.f32.gmra.mxu0 %v4332_v7  ;;  %v4691_v7 = vpop.f32.mrf.mxu1 }
 0xfef   : > { %v6646_v16 = vpop.f32.mrf.mxu0 }
 0xff1   : > { %v6647_v57 = vpop.f32.mrf.mxu0 }
 0xff2   : > { %v6648_v5 = vadd.f32 %v6647_v57, %v6646_v16 }
 0xff3   : > { %v6649_v17 = vpop.f32.mrf.mxu0 }
 0xff5   : > { %v6650_v29 = vpop.f32.mrf.mxu0 }
 0xff7   : > { %v6652_v32 = vpop.f32.mrf.mxu0 }
 0xff9   : > { %v6653_v33 = vpop.f32.mrf.mxu0 }
 0xffb   : > { %v6655_v58 = vpop.f32.mrf.mxu0 }
 0xffd   : > { %v6656_v25 = vpop.f32.mrf.mxu0 }
 0xfff   : > { %v6658_v56 = vpop.f32.mrf.mxu0 }
0x1001   : > { %v6659_v38 = vpop.f32.mrf.mxu0 }
0x1003   : > { %v9484_v55 = vpop.f32.mrf.mxu0 }
0x1005   : > { %v9486_v54 = vpop.f32.mrf.mxu0 }
0x1007   : > { %v9488_v39 = vpop.f32.mrf.mxu0 }
0x1009   : > { %v6665_v41 = vpop.f32.mrf.mxu0 }
0x100b   : > { %v9490_v35 = vpop.f32.mrf.mxu0 }
0x100d   : > { %v9492_v42 = vpop.f32.mrf.mxu0 }
0x1021   : > { %v4865_v9 = vpop.f32.mrf.mxu0 }
0x1022   : > { %6957 = vmatprep.mubr.msk.f32.mxu1 %vm4720_vm1, %v4865_v9  ;;  %v6939_v9 = vpop.f32.mrf.mxu1 }
0x1023   : > { %v4867_v43 = vpop.f32.mrf.mxu0 }
0x1024   : > { %v4682_v43 = vadd.f32 %v6648_v5, %v4681_v62 }
0x1025   : > { %v4870_v26 = vpop.f32.mrf.mxu0 }
0x1026   : > { %6958 = vmatmul.mubr.msk.f32.vlgmr.msra.gmra.mxu1 %vm4720_vm1, %v4870_v26  ;;  %v6654_v26 = vadd.f32 %v6653_v33, %v6652_v32  ;;  %v6666_v32 = vadd.f32 %v6665_v41, %v9488_v39 }
0x1027   : > { %v4872_v30 = vpop.f32.mrf.mxu0  ;;  %6970 = vmatpush3.msk.msra.mxu1 %vm4156_vm12, %v6195_v24  ;;  %vm9980_vm12 = vcmp.eq.s32.totalorder %v7450_v11, %v8966_v28  ;;  %v6651_v24 = vadd.f32 %v6650_v29, %v6649_v17  ;;  %v6663_v29 = vadd.f32 %v9486_v54, %v9484_v55 }
0x1028   : > { %6971 = vmatprep.subr.msk.mxu1 %vm9923_vm2, %v7146_v12  ;;  %vm9981_vm13 = vmmov %vm9980_vm12  ;;  %v4692_v16 = vadd.f32 %v6654_v26, %v4691_v7 }
0x1029   : > { %v4875_v45 = vpop.f32.mrf.mxu0  ;;  %6972 = vmatpush3.msk.msra.mxu1 %vm9923_vm2, %v7146_v12 }
0x102a   : > { %6960 = vmatprep.mubr.msk.f32.mxu1 %vm4720_vm1, %v4875_v45  ;;  %6973 = vmatprep.subr.msk.mxu1 %vm9921_vm15, %v7146_v12 }
0x102b   : > { %v4877_v40 = vpop.f32.mrf.mxu0  ;;  %6974 = vmatpush3.msk.msra.mxu1 %vm9921_vm15, %v7146_v12 }
0x102c   : > { %6975 = vmatprep.subr.msk.mxu1 %vm9980_vm12, %v7146_v12  ;;  %v4687_v40 = vadd.f32 %v6933_v36, %v6651_v24 }
0x102d   : > { %v4880_v49 = vpop.f32.mrf.mxu0  ;;  %6976 = vmatpush3.msk.msra.mxu1 %vm9981_vm13, %v7146_v12  ;;  %vm9922_vm13 = vcmask 785408  }
0x102e   : > { %6961 = vmatmul.mubr.msk.f32.gmra.mxu1 %vm4720_vm1, %v4880_v49  ;;  %6977 = vmatprep.subr.msk.mxu1 %vm9001_vm14, %v7146_v12  ;;  %v6657_v49 = vadd.f32 %v6656_v25, %v6655_v58  ;;  %v4707_v58 = vadd.f32 %v6939_v9, %v6663_v29  ;;  %v6669_v25 = vadd.f32 %v9492_v42, %v9490_v35 }
0x102f   : > { %v4882_v46 = vpop.f32.mrf.mxu0  ;;  %6978 = vmatpush3.msk.msra.mxu1 %vm9001_vm14, %v7146_v12 }
0x1030   : > { %6979 = vmatprep.subr.msk.mxu1 %vm8852_vm3, %v7146_v12  ;;  %v4701_v46 = vpop.f32.mrf.mxu1  ;;  %v4697_v17 = vadd.f32 %v6936_v60, %v6657_v49 }
0x1031   : > { %v4885_v37 = vpop.f32.mrf.mxu0  ;;  %6980 = vmatpush3.msk.msra.mxu1 %vm8852_vm3, %v7146_v12 }
0x1032   : > { %6963 = vmatprep.mubr.msk.f32.mxu1 %vm4720_vm1, %v4885_v37  ;;  %6981 = vmatprep.subr.msk.mxu1 %vm8866_vm5, %v7146_v12  ;;  %v6660_v37 = vadd.f32 %v6659_v38, %v6658_v56  ;;  %v6942_v57 = vpop.f32.mrf.mxu1 }
0x1033   : > { %v4887_v52 = vpop.f32.mrf.mxu0  ;;  %6982 = vmatpush3.msk.msra.mxu1 %vm8866_vm5, %v7146_v12  ;;  %v4717_v38 = vadd.f32 %v6942_v57, %v6669_v25 }
0x1034   : > { %v4702_v33 = vadd.f32 %v6660_v37, %v4701_v46  ;;  %v4711_v52 = vpop.f32.mrf.mxu1 }
0x1035   : > { %v4890_v1 = vpop.f32.mrf.mxu0  ;;  %v4712_v56 = vadd.f32 %v6666_v32, %v4711_v52 }
0x1036   : > { %6964 = vmatmul.mubr.msk.f32.gmra.mxu1 %vm4720_vm1, %v4890_v1 }
0x1037   : > { %v4892_v2 = vpop.f32.mrf.mxu0 }
0x1039   : > { %v4895_v6 = vpop.f32.mrf.mxu0 }
0x103a   : > { %6966 = vmatprep.mubr.msk.f32.mxu1 %vm4720_vm1, %v4895_v6  ;;  %v5203_v6 = vpop.permute.xlu1 %5202 }
0x103b   : > { %v4897_v59 = vpop.f32.mrf.mxu0 }
0x103d   : > { %v4900_v30 = vpop.f32.mrf.mxu0 }
0x103e   : > { %6967 = vmatmul.mubr.msk.f32.gmra.mxu1 %vm4720_vm1, %v4900_v30 }
0x103f   : > { %6983 = vmatprep.mubr.msk.f32.mxu1 %vm4367_vm7, %v4682_v43  ;;  %v4902_v45 = vpop.f32.mrf.mxu0 }
0x1042   : > { %6984 = vmatmul.mubr.msk.f32.vlgmr.msra.gmra.mxu1 %vm4367_vm7, %v4687_v40 }
0x1043   : > { %6986 = vmatprep.mubr.msk.f32.mxu1 %vm4367_vm7, %v4692_v16 }
0x1046   : > { %6987 = vmatmul.mubr.msk.f32.gmra.mxu1 %vm4367_vm7, %v4697_v17 }
0x1047   : > { %6989 = vmatprep.mubr.msk.f32.mxu1 %vm4367_vm7, %v4702_v33 }
0x104a   : > { %6990 = vmatmul.mubr.msk.f32.gmra.mxu1 %vm4367_vm7, %v4707_v58 }
0x104b   : > { %6992 = vmatprep.mubr.msk.f32.mxu1 %vm4367_vm7, %v4712_v56 }
0x104e   : > { %6993 = vmatmul.mubr.msk.f32.gmra.mxu1 %vm4367_vm7, %v4717_v38 }
0x10e6   : > { %v6959_v55 = vpop.f32.mrf.mxu1 }
0x10e8   : > { %v5021_v54 = vpop.f32.mrf.mxu1 }
0x10ee   : > { %v6962_v39 = vpop.f32.mrf.mxu1 }
0x10f0   : > { %v5031_v41 = vpop.f32.mrf.mxu1 }
0x10f6   : > { %v6965_v36 = vpop.f32.mrf.mxu1 }
0x10f8   : > { %v5041_v62 = vpop.f32.mrf.mxu1 }
0x10fe   : > { %v6968_v1 = vpop.f32.mrf.mxu1 }
0x1100   : > { %v5051_v60 = vpop.f32.mrf.mxu1 }
0x1102   : > { %v6985_v2 = vpop.f32.mrf.mxu1 }
0x1103   : > { %v5159_v5 = vadd.f32 %v6985_v2, %v6959_v55 }
0x1104   : > { %v5153_v35 = vpop.f32.mrf.mxu1 }
0x1105   : > { %vm5193_vm1 = vcmp.ge.f32.partialorder %v5159_v5, 0.0  ;;  %v5206_v42 = vmul.f32 %v5203_v6, %v5159_v5  ;;  %v5154_v7 = vadd.f32 %v5153_v35, %v5021_v54 }
0x1106   : > { %v6988_v59 = vpop.f32.mrf.mxu1 }
0x1107   : > { %v9562_v24 = vsel %vm5193_vm1, %v5159_v5, %v5206_v42  ;;  %vm5192_vm7 = vcmp.ge.f32.partialorder %v5154_v7, 0.0  ;;  %v5205_v9 = vmul.f32 %v5203_v6, %v5154_v7  ;;  %v5169_v43 = vadd.f32 %v6988_v59, %v6962_v39 }
0x1108   : > { %5332 = vst.msk [vmem:[#allocation2 + $0x190] sm:$0xff] %vm9922_vm13, %v9562_v24  ;;  %5537 = vst.msk [vmem:[#allocation2 + $0x320] sm:$0xff] %vm9922_vm13, %v9562_v24  ;;  %v5163_v26 = vpop.f32.mrf.mxu1 }
0x1109   : > { %v9568_v30 = vsel %vm5192_vm7, %v5154_v7, %v5205_v9  ;;  %vm5195_vm12 = vcmp.ge.f32.partialorder %v5169_v43, 0.0  ;;  %v5208_v45 = vmul.f32 %v5203_v6, %v5169_v43  ;;  %v5164_v40 = vadd.f32 %v5163_v26, %v5031_v41 }
0x110a   : > { %5331 = vst.msk [vmem:[#allocation2 + $0x180] sm:$0xff] %vm9922_vm13, %v9568_v30  ;;  %5536 = vst.msk [vmem:[#allocation2 + $0x310] sm:$0xff] %vm9922_vm13, %v9568_v30  ;;  %v6991_v49 = vpop.f32.mrf.mxu1 }
0x110b   : > { %v5216_v46 = vsel %vm5195_vm12, %v5169_v43, %v5208_v45  ;;  %vm5194_vm1 = vcmp.ge.f32.partialorder %v5164_v40, 0.0  ;;  %v5207_v37 = vmul.f32 %v5203_v6, %v5164_v40  ;;  %v5179_v16 = vadd.f32 %v6991_v49, %v6965_v36 }
0x110c   : > { %5334 = vst.msk [vmem:[#allocation2 + $0x1b0] sm:$0xff] %vm9922_vm13, %v5216_v46  ;;  %5539 = vst.msk [vmem:[#allocation2 + $0x340] sm:$0xff] %vm9922_vm13, %v5216_v46  ;;  %v5173_v57 = vpop.f32.mrf.mxu1 }
0x110d   : > { %v5215_v17 = vsel %vm5194_vm1, %v5164_v40, %v5207_v37  ;;  %vm5197_vm7 = vcmp.ge.f32.partialorder %v5179_v16, 0.0  ;;  %v5210_v29 = vmul.f32 %v5203_v6, %v5179_v16  ;;  %v5174_v32 = vadd.f32 %v5173_v57, %v5041_v62 }
0x110e   : > { %5333 = vst.msk [vmem:[#allocation2 + $0x1a0] sm:$0xff] %vm9922_vm13, %v5215_v17  ;;  %5538 = vst.msk [vmem:[#allocation2 + $0x330] sm:$0xff] %vm9922_vm13, %v5215_v17  ;;  %v6994_v33 = vpop.f32.mrf.mxu1 }
0x110f   : > { %v5218_v52 = vsel %vm5197_vm7, %v5179_v16, %v5210_v29  ;;  %vm5196_vm15 = vcmp.ge.f32.partialorder %v5174_v32, 0.0  ;;  %v5209_v58 = vmul.f32 %v5203_v6, %v5174_v32  ;;  %v5189_v25 = vadd.f32 %v6994_v33, %v6968_v1  ;;  %v5222_v1 = vld [vmem:[%s9883_s2 + $0x590] sm:$0xf] }
0x1110   : > { %5336 = vst.msk [vmem:[#allocation2 + $0x1d0] sm:$0xff] %vm9922_vm13, %v5218_v52  ;;  %5541 = vst.msk [vmem:[#allocation2 + $0x360] sm:$0xff] %vm9922_vm13, %v5218_v52  ;;  %5309 = vrot.lane.b32.xlu0 %v5218_v52, %s7148_s13  ;;  %v5183_v56 = vpop.f32.mrf.mxu1  ;;  %5444 = vmatprep.mubr.f32.mxu1 %v5222_v1 }
0x1111   : > { %v5217_v38 = vsel %vm5196_vm15, %v5174_v32, %v5209_v58  ;;  %vm5199_vm12 = vcmp.ge.f32.partialorder %v5189_v25, 0.0  ;;  %v5212_v55 = vmul.f32 %v5203_v6, %v5189_v25  ;;  %v5184_v54 = vadd.f32 %v5183_v56, %v5051_v60  ;;  %v5225_v60 = vld [vmem:[%s9883_s2 + $0x5a8] sm:$0xf] }
0x1112   : > { %5335 = vst.msk [vmem:[#allocation2 + $0x1c0] sm:$0xff] %vm9922_vm13, %v5217_v38  ;;  %5540 = vst.msk [vmem:[#allocation2 + $0x350] sm:$0xff] %vm9922_vm13, %v5217_v38  ;;  %5307 = vrot.lane.b32.xlu1 %v5217_v38, %s7148_s13  ;;  %6232 = vmatprep.mubr.msk.f32.mxu0 %vm2511_vm6, %v5225_v60  ;;  %vm9982_vm15 = vmmov 0  }
0x1113   : > { %v5220_v39 = vsel %vm5199_vm12, %v5189_v25, %v5212_v55  ;;  %vm5198_vm1 = vcmp.ge.f32.partialorder %v5184_v54, 0.0  ;;  %v5211_v41 = vmul.f32 %v5203_v6, %v5184_v54  ;;  %vm9983_vm12 = vcmask 7168  }
0x1114   : > { %5338 = vst.msk [vmem:[#allocation2 + $0x1f0] sm:$0xff] %vm9922_vm13, %v5220_v39  ;;  %5543 = vst.msk [vmem:[#allocation2 + $0x380] sm:$0xff] %vm9922_vm13, %v5220_v39  ;;  %5313 = vrot.lane.b32.xlu0 %v5220_v39, %s7148_s13 }
0x1115   : > { %v5219_v36 = vsel %vm5198_vm1, %v5184_v54, %v5211_v41 }
0x1116   : > { %5337 = vst.msk [vmem:[#allocation2 + $0x1e0] sm:$0xff] %vm9922_vm13, %v5219_v36  ;;  %5542 = vst.msk [vmem:[#allocation2 + $0x370] sm:$0xff] %vm9922_vm13, %v5219_v36  ;;  %5311 = vrot.lane.b32.xlu1 %v5219_v36, %s7148_s13 }
0x1118   : > { %5305 = vrot.lane.b32.xlu0 %v5216_v46, %s7148_s13 }
0x1119   : > { %v5369_v54 = vld [vmem:[#allocation2 + $0x1c0] sm:$0xff] }
0x111a   : > { %5303 = vrot.lane.b32.xlu1 %v5215_v17, %s7148_s13 }
0x111b   : > { %v5372_v62 = vld [vmem:[#allocation2 + $0x1f0] sm:$0xff] }
0x111c   : > { %5281 = vrot.lane.b32.xlu0 %v5220_v39, %s9941_s17  ;;  %6709 = vmatprep.subr.mxu1 %v5372_v62  ;;  %v5368_v62 = vld [vmem:[#allocation2 + $0x1b0] sm:$0xff] }
0x111d   : > { %v5371_v16 = vld [vmem:[#allocation2 + $0x1e0] sm:$0xff] }
0x111e   : > { %5301 = vrot.lane.b32.xlu1 %v9562_v24, %s7148_s13 }
0x1120   : > { %5279 = vrot.lane.b32.xlu0 %v5219_v36, %s9941_s17 }
0x1122   : > { %5299 = vrot.lane.b32.xlu1 %v9568_v30, %s7148_s13 }
0x1124   : > { %5277 = vrot.lane.b32.xlu0 %v5218_v52, %s9941_s17 }
0x1126   : > { %5275 = vrot.lane.b32.xlu1 %v5217_v38, %s9941_s17 }
0x1128   : > { %5273 = vrot.lane.b32.xlu0 %v5216_v46, %s9941_s17 }
0x112a   : > { %5271 = vrot.lane.b32.xlu1 %v5215_v17, %s9941_s17 }
0x112c   : > { %5269 = vrot.lane.b32.xlu0 %v9562_v24, %s9941_s17 }
0x112e   : > { %5267 = vrot.lane.b32.xlu1 %v9568_v30, %s9941_s17  ;;  %s5915_s17 = scalar_lea.sflag [#allocation4], %s226_s8 }
0x1130   : > { %5248 = vrot.lane.b32.xlu0 %v5220_v39, %s9929_s16 }
0x1132   : > { %5246 = vrot.lane.b32.xlu1 %v5219_v36, %s9929_s16 }
0x1134   : > { %5244 = vrot.lane.b32.xlu0 %v5218_v52, %s9929_s16  ;;  %v5370_v52 = vld [vmem:[#allocation2 + $0x1d0] sm:$0xff] }
0x1136   : > { %5242 = vrot.lane.b32.xlu1 %v5217_v38, %s9929_s16 }
0x1138   : > { %5240 = vrot.lane.b32.xlu0 %v5216_v46, %s9929_s16 }
0x113a   : > { %5238 = vrot.lane.b32.xlu1 %v5215_v17, %s9929_s16 }
0x113c   : > { %5236 = vrot.lane.b32.xlu0 %v9562_v24, %s9929_s16 }
0x113e   : > { %5234 = vrot.lane.b32.xlu1 %v9568_v30, %s9929_s16  ;;  %s7084_s16 = sshll.u32 %s7165_s22, 4  ;;  %s7085_s16 = int_to_ptr.vmem [resolvable:$false] %s7084_s16 }
0x113f   : > { %s7086_s15 = scalar_lea.vmem %s7085_s16, 256  ;;  %p7087_p0 = scmp.lt.s32.totalorder %s5930_s12, %s7085_s16 }
0x1140   : > { %p7088_p1 = scmp.lt.s32.totalorder %s7086_s15, %s7080_s7 }
0x1142   : > { %p7089_p2 = por %p7088_p1, %p7087_p0 }
0x1144   : > { %p7090_p3 = pnand %p7089_p2, %p7083_p13 }
0x1182   : > { %v5310_v2 = vpop.permute.xlu0 %5309 }
0x1183   : > { %5328 = vst.msk [vmem:[#allocation2 + $0x150] sm:$0xff] %vm9922_vm13, %v5310_v2  ;;  %5533 = vst.msk [vmem:[#allocation2 + $0x2e0] sm:$0xff] %vm9922_vm13, %v5310_v2 }
0x1184   : > { %v5308_v5 = vpop.permute.xlu1 %5307 }
0x1185   : > { %5327 = vst.msk [vmem:[#allocation2 + $0x140] sm:$0xff] %vm9922_vm13, %v5308_v5  ;;  %5532 = vst.msk [vmem:[#allocation2 + $0x2d0] sm:$0xff] %vm9922_vm13, %v5308_v5  ;;  %v5367_v5 = vld [vmem:[#allocation2 + $0x1a0] sm:$0xff] }
0x1186   : > { %v5314_v6 = vpop.permute.xlu0 %5313 }
0x1187   : > { %5330 = vst.msk [vmem:[#allocation2 + $0x170] sm:$0xff] %vm9922_vm13, %v5314_v6  ;;  %5535 = vst.msk [vmem:[#allocation2 + $0x300] sm:$0xff] %vm9922_vm13, %v5314_v6 }
0x1188   : > { %v5312_v35 = vpop.permute.xlu1 %5311 }
0x1189   : > { %5329 = vst.msk [vmem:[#allocation2 + $0x160] sm:$0xff] %vm9922_vm13, %v5312_v35  ;;  %5534 = vst.msk [vmem:[#allocation2 + $0x2f0] sm:$0xff] %vm9922_vm13, %v5312_v35 }
0x118a   : > { %v5306_v42 = vpop.permute.xlu0 %5305  ;;  %v5558_v30 = vld [vmem:[#allocation2 + $0x2e0] sm:$0xff] }
0x118b   : > { %5326 = vst.msk [vmem:[#allocation2 + $0x130] sm:$0xff] %vm9922_vm13, %v5306_v42  ;;  %5531 = vst.msk [vmem:[#allocation2 + $0x2c0] sm:$0xff] %vm9922_vm13, %v5306_v42 }
0x118c   : > { %v5304_v7 = vpop.permute.xlu1 %5303  ;;  %v5557_v40 = vld [vmem:[#allocation2 + $0x2d0] sm:$0xff] }
0x118d   : > { %5325 = vst.msk [vmem:[#allocation2 + $0x120] sm:$0xff] %vm9922_vm13, %v5304_v7  ;;  %5530 = vst.msk [vmem:[#allocation2 + $0x2b0] sm:$0xff] %vm9922_vm13, %v5304_v7  ;;  %v5366_v7 = vld [vmem:[#allocation2 + $0x190] sm:$0xff] }
0x118e   : > { %v5282_v59 = vpop.permute.xlu0 %5281  ;;  %v5560_v24 = vld [vmem:[#allocation2 + $0x300] sm:$0xff] }
0x118f   : > { %5298 = vst.msk [vmem:[#allocation2 + $0xf0] sm:$0xff] %vm9922_vm13, %v5282_v59  ;;  %5527 = vst.msk [vmem:[#allocation2 + $0x280] sm:$0xff] %vm9922_vm13, %v5282_v59  ;;  %5577 = vmatpush1.msra.mxu0 %v5560_v24 }
0x1190   : > { %5578 = vmatprep.subr.mxu0 %v7143_v3  ;;  %v5302_v9 = vpop.permute.xlu1 %5301  ;;  %v5559_v43 = vld [vmem:[#allocation2 + $0x2f0] sm:$0xff] }
0x1191   : > { %5324 = vst.msk [vmem:[#allocation2 + $0x110] sm:$0xff] %vm9922_vm13, %v5302_v9  ;;  %5529 = vst.msk [vmem:[#allocation2 + $0x2a0] sm:$0xff] %vm9922_vm13, %v5302_v9  ;;  %5579 = vmatpush1.msra.mxu0 %v5559_v43  ;;  %v5365_v43 = vld [vmem:[#allocation2 + $0x180] sm:$0xff] }
0x1192   : > { %v5280_v26 = vpop.permute.xlu0 %5279  ;;  %5580 = vmatprep.subr.mxu0 %v7143_v3  ;;  %v5556_v37 = vld [vmem:[#allocation2 + $0x2c0] sm:$0xff] }
0x1193   : > { %5297 = vst.msk [vmem:[#allocation2 + $0xe0] sm:$0xff] %vm9922_vm13, %v5280_v26  ;;  %5526 = vst.msk [vmem:[#allocation2 + $0x270] sm:$0xff] %vm9922_vm13, %v5280_v26  ;;  %5581 = vmatpush1.msra.mxu0 %v5558_v30 }
0x1194   : > { %5582 = vmatprep.subr.mxu0 %v7143_v3  ;;  %v5300_v45 = vpop.permute.xlu1 %5299  ;;  %v5555_v17 = vld [vmem:[#allocation2 + $0x2b0] sm:$0xff] }
0x1195   : > { %5323 = vst.msk [vmem:[#allocation2 + $0x100] sm:$0xff] %vm9922_vm13, %v5300_v45  ;;  %5528 = vst.msk [vmem:[#allocation2 + $0x290] sm:$0xff] %vm9922_vm13, %v5300_v45  ;;  %5583 = vmatpush1.msra.mxu0 %v5557_v40  ;;  %v5364_v40 = vld [vmem:[#allocation2 + $0x170] sm:$0xff] }
0x1196   : > { %v5278_v49 = vpop.permute.xlu0 %5277  ;;  %5584 = vmatprep.subr.mxu0 %v7143_v3  ;;  %v5356_v46 = vld [vmem:[#allocation2 + $0xf0] sm:$0xff]  ;;  %v5552_v55 = vld [vmem:[#allocation2 + $0x280] sm:$0xff] }
0x1197   : > { %5296 = vst.msk [vmem:[#allocation2 + $0xd0] sm:$0xff] %vm9922_vm13, %v5278_v49  ;;  %5525 = vst.msk [vmem:[#allocation2 + $0x260] sm:$0xff] %vm9922_vm13, %v5278_v49  ;;  %6710 = vmatpush3.msra.mxu1 %v5356_v46  ;;  %5585 = vmatpush1.msra.mxu0 %v5556_v37 }
0x1198   : > { %6711 = vmatprep.subr.mxu1 %v5371_v16  ;;  %5586 = vmatprep.subr.mxu0 %v7143_v3  ;;  %v5276_v57 = vpop.permute.xlu1 %5275  ;;  %v5554_v33 = vld [vmem:[#allocation2 + $0x2a0] sm:$0xff] }
0x1199   : > { %5295 = vst.msk [vmem:[#allocation2 + $0xc0] sm:$0xff] %vm9922_vm13, %v5276_v57  ;;  %5524 = vst.msk [vmem:[#allocation2 + $0x250] sm:$0xff] %vm9922_vm13, %v5276_v57  ;;  %5587 = vmatpush1.msra.mxu0 %v5555_v17  ;;  %v5363_v16 = vld [vmem:[#allocation2 + $0x160] sm:$0xff] }
0x119a   : > { %v5274_v29 = vpop.permute.xlu0 %5273  ;;  %5588 = vmatprep.subr.mxu0 %v7143_v3  ;;  %v5355_v32 = vld [vmem:[#allocation2 + $0xe0] sm:$0xff]  ;;  %v5551_v36 = vld [vmem:[#allocation2 + $0x270] sm:$0xff] }
0x119b   : > { %5294 = vst.msk [vmem:[#allocation2 + $0xb0] sm:$0xff] %vm9922_vm13, %v5274_v29  ;;  %5523 = vst.msk [vmem:[#allocation2 + $0x240] sm:$0xff] %vm9922_vm13, %v5274_v29  ;;  %6712 = vmatpush3.msra.mxu1 %v5355_v32  ;;  %5589 = vmatpush1.msra.mxu0 %v5554_v33  ;;  %v5569_v32 = vld [vmem:[#allocation2 + $0x390] sm:$0x1] }
0x119c   : > { %6713 = vmatprep.subr.mxu1 %v5370_v52  ;;  %5590 = vmatprep.subr.mxu0 %v7143_v3  ;;  %v5272_v58 = vpop.permute.xlu1 %5271  ;;  %v5553_v25 = vld [vmem:[#allocation2 + $0x290] sm:$0xff] }
0x119d   : > { %5293 = vst.msk [vmem:[#allocation2 + $0xa0] sm:$0xff] %vm9922_vm13, %v5272_v58  ;;  %5522 = vst.msk [vmem:[#allocation2 + $0x230] sm:$0xff] %vm9922_vm13, %v5272_v58  ;;  %5591 = vmatpush1.msra.mxu0 %v5553_v25  ;;  %v5362_v33 = vld [vmem:[#allocation2 + $0x150] sm:$0xff]  ;;  %v5361_v25 = vld [vmem:[#allocation2 + $0x140] sm:$0xff] }
0x119e   : > { %v5270_v56 = vpop.permute.xlu0 %5269  ;;  %5592 = vmatprep.subr.mxu0 %v7143_v3  ;;  %v5354_v38 = vld [vmem:[#allocation2 + $0xd0] sm:$0xff]  ;;  %v5550_v2 = vld [vmem:[#allocation2 + $0x260] sm:$0xff] }
0x119f   : > { %5292 = vst.msk [vmem:[#allocation2 + $0x90] sm:$0xff] %vm9922_vm13, %v5270_v56  ;;  %5521 = vst.msk [vmem:[#allocation2 + $0x220] sm:$0xff] %vm9922_vm13, %v5270_v56  ;;  %6714 = vmatpush3.msra.mxu1 %v5354_v38  ;;  %5593 = vmatpush1.msra.mxu0 %v5552_v55  ;;  %v5568_v55 = vld [vmem:[#allocation2 + $0x380] sm:$0xff] }
0x11a0   : > { %6715 = vmatprep.subr.mxu1 %v5369_v54  ;;  %5594 = vmatprep.subr.mxu0 %v7143_v3  ;;  %v5268_v39 = vpop.permute.xlu1 %5267  ;;  %v5353_v41 = vld [vmem:[#allocation2 + $0xc0] sm:$0xff]  ;;  %v5549_v42 = vld [vmem:[#allocation2 + $0x250] sm:$0xff] }
0x11a1   : > { %5291 = vst.msk [vmem:[#allocation2 + $0x80] sm:$0xff] %vm9922_vm13, %v5268_v39  ;;  %5520 = vst.msk [vmem:[#allocation2 + $0x210] sm:$0xff] %vm9922_vm13, %v5268_v39  ;;  %6716 = vmatpush3.msra.mxu1 %v5353_v41  ;;  %5595 = vmatpush1.msra.mxu0 %v5551_v36  ;;  %v5360_v54 = vld [vmem:[#allocation2 + $0x130] sm:$0xff]  ;;  %v5359_v36 = vld [vmem:[#allocation2 + $0x120] sm:$0xff] }
0x11a2   : > { %v5249_v1 = vpop.permute.xlu0 %5248  ;;  %6717 = vmatprep.subr.mxu1 %v5368_v62  ;;  %5596 = vmatprep.subr.mxu0 %v7143_v3  ;;  %v5352_v60 = vld [vmem:[#allocation2 + $0xb0] sm:$0xff]  ;;  %v5548_v9 = vld [vmem:[#allocation2 + $0x240] sm:$0xff] }
0x11a3   : > { %5266 = vst.msk [vmem:[#allocation2 + $0x70] sm:$0xff] %vm9922_vm13, %v5249_v1  ;;  %6718 = vmatpush3.msra.mxu1 %v5352_v60  ;;  %5597 = vmatpush1.msra.mxu0 %v5550_v2  ;;  %v5567_v41 = vld [vmem:[#allocation2 + $0x370] sm:$0xff]  ;;  %v5566_v1 = vld [vmem:[#allocation2 + $0x360] sm:$0xff]  ;;  %v5651_v60 = vmul.u32 2, %v7465_v0 }
0x11a4   : > { %6719 = vmatprep.subr.mxu1 %v5367_v5  ;;  %5598 = vmatprep.subr.mxu0 %v7143_v3  ;;  %v5247_v6 = vpop.permute.xlu1 %5246  ;;  %v5351_v35 = vld [vmem:[#allocation2 + $0xa0] sm:$0xff]  ;;  %v5547_v45 = vld [vmem:[#allocation2 + $0x230] sm:$0xff] }
0x11a5   : > { %5265 = vst.msk [vmem:[#allocation2 + $0x60] sm:$0xff] %vm9922_vm13, %v5247_v6  ;;  %6720 = vmatpush3.msra.mxu1 %v5351_v35  ;;  %5599 = vmatpush1.msra.mxu0 %v5549_v42  ;;  %v5358_v2 = vld [vmem:[#allocation2 + $0x110] sm:$0xff]  ;;  %v5650_v35 = vmul.u32 2, %v7471_v18  ;;  %v5357_v42 = vld [vmem:[#allocation2 + $0x100] sm:$0xff] }
0x11a6   : > { %v5245_v59 = vpop.permute.xlu0 %5244  ;;  %6721 = vmatprep.subr.mxu1 %v5366_v7  ;;  %5600 = vmatprep.subr.mxu0 %v7143_v3  ;;  %v5350_v24 = vld [vmem:[#allocation2 + $0x90] sm:$0xff]  ;;  %v5546_v37 = vld [vmem:[#allocation2 + $0x220] sm:$0xff]  ;;  %v5221_v7 = vld [vmem:[%s9883_s2 + $0x588] sm:$0xf] }
0x11a7   : > { %5264 = vst.msk [vmem:[#allocation2 + $0x50] sm:$0xff] %vm9922_vm13, %v5245_v59  ;;  %6722 = vmatpush3.msra.mxu1 %v5350_v24  ;;  %5601 = vmatpush1.msra.mxu0 %v5548_v9  ;;  %v5565_v6 = vld [vmem:[#allocation2 + $0x350] sm:$0xff]  ;;  %v5564_v59 = vld [vmem:[#allocation2 + $0x340] sm:$0xff]  ;;  %v9691_v24 = vadd.s32 128, %v7450_v11  ;;  %v5649_v9 = vmul.u32 2, %v7478_v19  ;;  %vm5721_vm2 = vcmp.eq.s32.totalorder %v7450_v11, %v5650_v35 }
0x11a8   : > { %5602 = vmatprep.subr.mxu0 %v7143_v3  ;;  %v5243_v26 = vpop.permute.xlu1 %5242  ;;  %6723 = vmatprep.subr.mxu1 %v5365_v43  ;;  %v5349_v30 = vld [vmem:[#allocation2 + $0x80] sm:$0xff]  ;;  %v5545_v29 = vld [vmem:[#allocation2 + $0x210] sm:$0xff]  ;;  %v5656_v43 = vadd.s32 1, %v5651_v60 }
0x11a9   : > { %5263 = vst.msk [vmem:[#allocation2 + $0x40] sm:$0xff] %vm9922_vm13, %v5243_v26  ;;  %6724 = vmatpush3.msra.mxu1 %v5349_v30  ;;  %5603 = vmatpush1.msra.mxu0 %v5547_v45  ;;  %v5373_v18 = vld [vmem:[#allocation2 + $0x200] sm:$0x1]  ;;  %v5563_v26 = vld [vmem:[#allocation2 + $0x330] sm:$0xff]  ;;  %v5648_v30 = vmul.u32 2, %v7485_v20  ;;  %vm5724_vm6 = vcmp.eq.s32.totalorder %v9691_v24, %v5651_v60  ;;  %vm5719_vm10 = vcmp.eq.s32.totalorder %v7450_v11, %v5649_v9 }
0x11aa   : > { %v5241_v49 = vpop.permute.xlu0 %5240  ;;  %6725 = vmatprep.subr.mxu1 %v5364_v40  ;;  %5604 = vmatprep.subr.mxu0 %v7143_v3  ;;  %v5348_v46 = vld [vmem:[#allocation2 + $0x70] sm:$0xff]  ;;  %v5223_v45 = vld [vmem:[%s9883_s2 + $0x598] sm:$0xf]  ;;  %v5655_v40 = vadd.s32 1, %v5650_v35  ;;  %v5562_v19 = vld [vmem:[#allocation2 + $0x320] sm:$0xff]  ;;  %vm5673_vm7 = vcmp.eq.s32.totalorder %v9691_v24, %v5656_v43  ;;  %vm5672_vm1 = vcmp.eq.s32.totalorder %v7450_v11, %v5656_v43 }
0x11ab   : > { %5262 = vst.msk [vmem:[#allocation2 + $0x30] sm:$0xff] %vm9922_vm13, %v5241_v49  ;;  %6726 = vmatpush3.msra.mxu1 %v5348_v46  ;;  %5605 = vmatpush1.msra.mxu0 %v5546_v37  ;;  %v5224_v20 = vld [vmem:[%s9883_s2 + $0x5a0] sm:$0xf]  ;;  %v5654_v49 = vadd.s32 1, %v5649_v9  ;;  %v5647_v46 = vmul.u32 2, %v7492_v21  ;;  %v5561_v37 = vld [vmem:[#allocation2 + $0x310] sm:$0xff] }
0x11ac   : > { %5606 = vmatprep.subr.mxu0 %v7143_v3  ;;  %v5239_v57 = vpop.permute.xlu1 %5238  ;;  %6727 = vmatprep.subr.mxu1 %v5363_v16  ;;  %v5347_v17 = vld [vmem:[#allocation2 + $0x60] sm:$0xff]  ;;  %v5653_v16 = vadd.s32 1, %v5648_v30  ;;  %vm5670_vm0 = vcmp.eq.s32.totalorder %v7450_v11, %v5655_v40 }
0x11ad   : > { %5261 = vst.msk [vmem:[#allocation2 + $0x20] sm:$0xff] %vm9922_vm13, %v5239_v57  ;;  %6728 = vmatpush3.msra.mxu1 %v5347_v17  ;;  %5607 = vmatpush1.msra.mxu0 %v5545_v29  ;;  %v5652_v21 = vadd.s32 1, %v5647_v46 }
0x11ae   : > { %v5237_v52 = vpop.permute.xlu0 %5236  ;;  %6729 = vmatprep.subr.mxu1 %v5362_v33  ;;  %5622 = vmatprep.subr.mxu0 %v7143_v3  ;;  %v5346_v58 = vld [vmem:[#allocation2 + $0x50] sm:$0xff] }
0x11af   : > { %5260 = vst.msk [vmem:[#allocation2 + $0x10] sm:$0xff] %vm9922_vm13, %v5237_v52  ;;  %6730 = vmatpush3.msra.mxu1 %v5346_v58  ;;  %6231 = vmatpush2.msk.msra.mxu0 %vm1318_vm8, %v5569_v32 }
0x11b0   : > { %5624 = vmatprep.subr.mxu0 %v7143_v3  ;;  %v5235_v56 = vpop.permute.xlu1 %5234  ;;  %6731 = vmatprep.subr.mxu1 %v5361_v25  ;;  %v5345_v38 = vld [vmem:[#allocation2 + $0x40] sm:$0xff] }
0x11b1   : > { %5259 = vst.msk [vmem:[#allocation2] sm:$0xff] %vm9922_vm13, %v5235_v56  ;;  %6732 = vmatpush3.msra.mxu1 %v5345_v38  ;;  %5625 = vmatpush2.msra.mxu0 %v5568_v55  ;;  %vm5671_vm13 = vcmp.eq.s32.totalorder %v9691_v24, %v5655_v40 }
0x11b2   : > { %6733 = vmatprep.subr.mxu1 %v5360_v54  ;;  %5626 = vmatprep.subr.mxu0 %v7143_v3  ;;  %v5344_v39 = vld [vmem:[#allocation2 + $0x30] sm:$0xff] }
0x11b3   : > { %6734 = vmatpush3.msra.mxu1 %v5344_v39  ;;  %5627 = vmatpush2.msra.mxu0 %v5567_v41 }
0x11b4   : > { %6735 = vmatprep.subr.mxu1 %v5359_v36  ;;  %5628 = vmatprep.subr.mxu0 %v7143_v3  ;;  %v5343_v62 = vld [vmem:[#allocation2 + $0x20] sm:$0xff] }
0x11b5   : > { %6736 = vmatpush3.msra.mxu1 %v5343_v62  ;;  %5629 = vmatpush2.msra.mxu0 %v5566_v1 }
0x11b6   : > { %6737 = vmatprep.subr.mxu1 %v5358_v2  ;;  %5630 = vmatprep.subr.mxu0 %v7143_v3  ;;  %v5342_v5 = vld [vmem:[#allocation2 + $0x10] sm:$0xff] }
0x11b7   : > { %6738 = vmatpush3.msra.mxu1 %v5342_v5  ;;  %5631 = vmatpush2.msra.mxu0 %v5565_v6 }
0x11b8   : > { %6739 = vmatprep.subr.mxu1 %v5357_v42  ;;  %5632 = vmatprep.subr.mxu0 %v7143_v3  ;;  %v5341_v0 = vld [vmem:[#allocation2] sm:$0xff] }
0x11b9   : > { %6740 = vmatpush3.msra.mxu1 %v5341_v0  ;;  %5633 = vmatpush2.msra.mxu0 %v5564_v59 }
0x11ba   : > { %5634 = vmatprep.subr.mxu0 %v7143_v3  ;;  %5445 = vmatmul.mubr.f32.vlgmr.msra.gmra.mxu1 %v5221_v7 }
0x11bb   : > { %5635 = vmatpush2.msra.mxu0 %v5563_v26  ;;  %6995 = vmatprep.subr.mxu1 %v7143_v3 }
0x11bc   : > { %5636 = vmatprep.subr.mxu0 %v7143_v3  ;;  %6996 = vmatpush3.msk.msra.mxu1 %vm1318_vm8, %v5373_v18  ;;  %vm5723_vm8 = vcmp.eq.s32.totalorder %v7450_v11, %v5651_v60 }
0x11bd   : > { %5637 = vmatpush2.msra.mxu0 %v5562_v19  ;;  %6997 = vmatprep.mubr.msk.f32.mxu1 %vm9982_vm15, %v7143_v3  ;;  %vm5722_vm15 = vcmp.eq.s32.totalorder %v9691_v24, %v5650_v35 }
0x11be   : > { %5638 = vmatprep.subr.mxu0 %v7143_v3  ;;  %6998 = vmatmul.mubr.msk.f32.vlgmr.msra.gmra.mxu1 %vm9983_vm12, %v5223_v45  ;;  %vm5720_vm12 = vcmp.eq.s32.totalorder %v9691_v24, %v5649_v9 }
0x11bf   : > { %5639 = vmatpush2.msra.mxu0 %v5561_v37  ;;  %6267 = vmatprep.subr.msk.mxu1 %vm5724_vm6, %v7146_v12  ;;  %vm5669_vm6 = vcmp.eq.s32.totalorder %v9691_v24, %v5654_v49 }
0x11c0   : > { %5641 = vmatmul.mubr.f32.vlgmr.msra.gmra.mxu0 %v5224_v20  ;;  %6292 = vmatprep.subr.msk.mxu0 %vm5673_vm7, %v7146_v12  ;;  %vm5668_vm7 = vcmp.eq.s32.totalorder %v7450_v11, %v5654_v49 }
0x11c1   : > { %6268 = vmatpush1.msk.msra.mxu1 %vm5723_vm8, %v7146_v12  ;;  %6293 = vmatpush1.msk.msra.mxu0 %vm5672_vm1, %v7146_v12  ;;  %vm5718_vm8 = vcmp.eq.s32.totalorder %v9691_v24, %v5648_v30  ;;  %vm5667_vm1 = vcmp.eq.s32.totalorder %v9691_v24, %v5653_v16 }
0x11c2   : > { %6269 = vmatprep.subr.msk.mxu1 %vm5722_vm15, %v7146_v12  ;;  %6294 = vmatprep.subr.msk.mxu0 %vm5671_vm13, %v7146_v12  ;;  %vm5717_vm15 = vcmp.eq.s32.totalorder %v7450_v11, %v5648_v30  ;;  %vm5666_vm13 = vcmp.eq.s32.totalorder %v7450_v11, %v5653_v16 }
0x11c3   : > { %6270 = vmatpush1.msk.msra.mxu1 %vm5721_vm2, %v7146_v12  ;;  %6295 = vmatpush1.msk.msra.mxu0 %vm5670_vm0, %v7146_v12  ;;  %vm5716_vm2 = vcmp.eq.s32.totalorder %v9691_v24, %v5647_v46  ;;  %vm5665_vm0 = vcmp.eq.s32.totalorder %v9691_v24, %v5652_v21 }
0x11c4   : > { %6271 = vmatprep.subr.msk.mxu1 %vm5720_vm12, %v7146_v12  ;;  %6296 = vmatprep.subr.msk.mxu0 %vm5669_vm6, %v7146_v12  ;;  %vm5715_vm12 = vcmp.eq.s32.totalorder %v7450_v11, %v5647_v46  ;;  %vm5664_vm6 = vcmp.eq.s32.totalorder %v7450_v11, %v5652_v21 }
0x11c5   : > { %6272 = vmatpush1.msk.msra.mxu1 %vm5719_vm10, %v7146_v12  ;;  %6297 = vmatpush1.msk.msra.mxu0 %vm5668_vm7, %v7146_v12  ;;  %vm5714_vm10 = vcmp.eq.s32.totalorder %v9691_v24, %v9406_v8  ;;  %vm5663_vm7 = vcmp.eq.s32.totalorder %v9691_v24, %v9409_v10 }
0x11c6   : > { %6273 = vmatprep.subr.msk.mxu1 %vm5718_vm8, %v7146_v12  ;;  %6298 = vmatprep.subr.msk.mxu0 %vm5667_vm1, %v7146_v12  ;;  %vm5713_vm8 = vcmp.eq.s32.totalorder %v9691_v24, %v9412_v13  ;;  %vm5662_vm1 = vcmp.eq.s32.totalorder %v9691_v24, %v9421_v15 }
0x11c7   : > { %6274 = vmatpush1.msk.msra.mxu1 %vm5717_vm15, %v7146_v12  ;;  %6299 = vmatpush1.msk.msra.mxu0 %vm5666_vm13, %v7146_v12  ;;  %vm9984_vm15 = vcmp.eq.s32.totalorder %v7450_v11, %v9406_v8  ;;  %vm9985_vm13 = vcmp.eq.s32.totalorder %v7450_v11, %v9409_v10 }
0x11c8   : > { %6275 = vmatprep.subr.msk.mxu1 %vm5716_vm2, %v7146_v12  ;;  %6300 = vmatprep.subr.msk.mxu0 %vm5665_vm0, %v7146_v12  ;;  %vm5712_vm2 = vcmp.eq.s32.totalorder %v9691_v24, %v9436_v22  ;;  %vm5661_vm0 = vcmp.eq.s32.totalorder %v9691_v24, %v9439_v23 }
0x11c9   : > { %6276 = vmatpush1.msk.msra.mxu1 %vm5715_vm12, %v7146_v12  ;;  %6301 = vmatpush1.msk.msra.mxu0 %vm5664_vm6, %v7146_v12  ;;  %vm9986_vm12 = vcmp.eq.s32.totalorder %v7450_v11, %v9412_v13  ;;  %vm9987_vm6 = vcmp.eq.s32.totalorder %v7450_v11, %v9421_v15 }
0x11ca   : > { %6277 = vmatprep.subr.msk.mxu1 %vm5714_vm10, %v7146_v12  ;;  %6302 = vmatprep.subr.msk.mxu0 %vm5663_vm7, %v7146_v12  ;;  %vm5711_vm10 = vcmp.eq.s32.totalorder %v9691_v24, %v8966_v28  ;;  %vm5660_vm7 = vcmp.eq.s32.totalorder %v9691_v24, %v9093_v14 }
0x11cb   : > { %6278 = vmatpush1.msk.msra.mxu1 %vm9984_vm15, %v7146_v12  ;;  %6303 = vmatpush1.msk.msra.mxu0 %vm9985_vm13, %v7146_v12  ;;  %vm9990_vm15 = vcmp.eq.s32.totalorder %v7450_v11, %v8966_v28  ;;  %vm9991_vm13 = vcmp.eq.s32.totalorder %v7450_v11, %v9093_v14 }
0x11cc   : > { %6279 = vmatprep.subr.msk.mxu1 %vm5713_vm8, %v7146_v12  ;;  %6304 = vmatprep.subr.msk.mxu0 %vm5662_vm1, %v7146_v12  ;;  %vm9988_vm8 = vcmp.eq.s32.totalorder %v7450_v11, %v9436_v22  ;;  %vm9989_vm1 = vcmp.eq.s32.totalorder %v7450_v11, %v9439_v23 }
0x11cd   : > { %6280 = vmatpush1.msk.msra.mxu1 %vm9986_vm12, %v7146_v12  ;;  %6305 = vmatpush1.msk.msra.mxu0 %vm9987_vm6, %v7146_v12  ;;  %vm5709_vm12 = vcmp.eq.s32.totalorder %v9691_v24, %v8848_v48  ;;  %vm5658_vm6 = vcmp.eq.s32.totalorder %v9691_v24, %v8877_v4 }
0x11ce   : > { %6281 = vmatprep.subr.msk.mxu1 %vm5712_vm2, %v7146_v12  ;;  %6306 = vmatprep.subr.msk.mxu0 %vm5661_vm0, %v7146_v12  ;;  %vm5710_vm2 = vcmp.eq.s32.totalorder %v9691_v24, %v8987_v34  ;;  %vm5659_vm0 = vcmp.eq.s32.totalorder %v9691_v24, %v9103_v31 }
0x11cf   : > { %6282 = vmatpush1.msk.msra.mxu1 %vm9988_vm8, %v7146_v12  ;;  %6307 = vmatpush1.msk.msra.mxu0 %vm9989_vm1, %v7146_v12 }
0x11d0   : > { %6283 = vmatprep.subr.msk.mxu1 %vm5711_vm10, %v7146_v12  ;;  %6308 = vmatprep.subr.msk.mxu0 %vm5660_vm7, %v7146_v12 }
0x11d1   : > { %6284 = vmatpush1.msk.msra.mxu1 %vm9990_vm15, %v7146_v12  ;;  %6309 = vmatpush1.msk.msra.mxu0 %vm9991_vm13, %v7146_v12 }
0x11d2   : > { %5826 = vmatprep.mubr.f32.mxu1 %v7143_v3  ;;  %5900 = vmatprep.mubr.f32.mxu0 %v7143_v3 }
0x11d3   : > { %6285 = vmatprep.subr.msk.mxu1 %vm5710_vm2, %v7146_v12  ;;  %6310 = vmatprep.subr.msk.mxu0 %vm5659_vm0, %v7146_v12 }
0x11d4   : > { %6286 = vmatpush1.msk.msra.mxu1 %vm9001_vm14, %v7146_v12  ;;  %6311 = vmatpush1.msk.msra.mxu0 %vm9108_vm4, %v7146_v12  ;;  %vm5708_vm14 = vcmp.eq.s32.totalorder %v9691_v24, %v8860_v50  ;;  %vm5657_vm4 = vcmp.eq.s32.totalorder %v9691_v24, %v8889_v63 }
0x11d5   : > { %6287 = vmatprep.subr.msk.mxu1 %vm5709_vm12, %v7146_v12  ;;  %6312 = vmatprep.subr.msk.mxu0 %vm5658_vm6, %v7146_v12 }
0x11d6   : > { %6288 = vmatpush1.msk.msra.mxu1 %vm8852_vm3, %v7146_v12  ;;  %6313 = vmatpush1.msk.msra.mxu0 %vm8881_vm9, %v7146_v12  ;;  %vm9992_vm3 = vcmask 785408  }
0x11d7   : > { %6289 = vmatprep.subr.msk.mxu1 %vm5708_vm14, %v7146_v12  ;;  %6314 = vmatprep.subr.msk.mxu0 %vm5657_vm4, %v7146_v12  ;;  %vm9993_vm9 = vmmov %vm9992_vm3 }
0x11d8   : > { %6290 = vmatpush1.msk.msra.mxu1 %vm8866_vm5, %v7146_v12  ;;  %6315 = vmatpush1.msk.msra.mxu0 %vm8895_vm11, %v7146_v12  ;;  %vm5911_vm5 = vcmask 523268   ;;  %vm9994_vm11 = vcmask 1043456  }
0x11d9   : > { %vm5912_vm10 = vmor %vm5911_vm5, %vm9994_vm11 }
0x127a   : > { %v6741_v3 = vpop.f32.mrf.mxu1 }
0x127c   : > { %v6742_v11 = vpop.f32.mrf.mxu1 }
0x127d   : > { %v6743_v48 = vadd.f32 %v6742_v11, %v6741_v3 }
0x127e   : > { %v5516_v44 = vpop.f32.mrf.mxu1 }
0x127f   : > { %v5517_v50 = vadd.f32 %v6743_v48, %v5516_v44 }
0x1280   : > { %v5642_v4 = vpop.f32.mrf.mxu0  ;;  %v6999_v51 = vpop.f32.mrf.mxu1 }
0x1281   : > { %6291 = vmatmul.mubr.msk.f32.vlgmr.msra.gmra.mxu1 %vm9992_vm3, %v5642_v4  ;;  %6316 = vmatmul.mubr.msk.f32.vlgmr.msra.gmra.mxu0 %vm9993_vm9, %v5517_v50 }
0x1282   : > { %v5644_v63 = vpop.f32.mrf.mxu0 }
0x1341   : > { %v5828_v27 = vpop.f32.mrf.mxu1  ;;  %v5902_v28 = vpop.f32.mrf.mxu0 }
0x1342   : > { %v5903_v34 = vadd.f32 %v5902_v28, %v5828_v27 }
0x1343   : > { %v5830_v12 = vpop.f32.mrf.mxu1  ;;  %v5904_v53 = vpop.f32.mrf.mxu0 }
0x1344   : > { %v5905_v47 = vadd.f32 %v5904_v53, %v5830_v12 }
0x1346   : > { %v5909_v14 = vcombine.low %v5903_v34, %v5905_v47 }
0x1348   : > { %5913 = vst.msk [vmem:[%s228_s14] sm:$0xff] %vm5912_vm10, %v5909_v14 }
0x1349   : > { %7093 = shalt.err (!%p7090_p3)
}
0x134a   : > { %s7094_s9 = scalar_lea.hbm %s5927_s30, 128  ;;  %s7098_s11 = scalar_lea.hbm %s9886_s5, 256 }
0x134b   : > { %p7095_p4 = scmp.ne.s32.totalorder %s5927_s30, %s7094_s9  ;;  %p7099_p9 = scmp.lt.s32.totalorder %s5927_s30, %s9886_s5 }
0x134c   : > { %p7100_p10 = scmp.lt.s32.totalorder %s7098_s11, %s7094_s9 }
0x134d   : > { %p7096_p7 = pnand %p7095_p4, %p7234_p5 }
0x134e   : > { %p7101_p11 = por %p7100_p10, %p7099_p9 }
0x134f   : > { %p7097_p8 = pneg %p7096_p7 }
0x1351   : > { %p7102_p12 = pnand %p7101_p11, %p7097_p8 }
0x1353   : > { %7105 = shalt.err (!%p7102_p12)
}
0x1354   : > { %7000 = dma.vmem_to_hbm [thread:$0]  (%p7234_p5), %s5930_s12, 128, %s5927_s30, %s5915_s17  }
0x1355 PF: > { %p7006_p13 = scmp.ge.s32.totalorder %s7140_s21, 2  ;;  %s5941_s25 = sand.u32 1, %s7128_s18  }
0x1356   : > { %s5942_s14 = scalar_lea.sflag [#allocation4], %s5941_s25 }
0x1357   : > { %p7003_p0 = pnand %p7006_p13, %p7238_p6 }
0x1359   : > { %p7004_p1 = pneg %p7003_p0 }
0x135b   : > { %7123 = dma.done.wait (%p7004_p1), %s5942_s14, 128  }
0x135c   : > { %7125 = vsyncadd (%p7004_p1), %s5942_s14, 4294967168  ;;  %p15_p2 = scmp.ge.s32.totalorder %s7221_s24, 4   ;;  %s9995_s18 = smov %s7132_s19 }
0x135d   : > { %s9996_s19 = smov %s7136_s20  ;;  %s9997_s20 = smov %s7232_s27 }
0x135e   : > { %s9998_s21 = smov %s7221_s24  ;;  %17 = sbr.rel (!%p15_p2) target bundleno = 3 (0x3), region = 79 }
0x1363   :  { %5947 = vsyncpa [#allocation4], 1 }
0x1364   :  { %5949 = vsyncpa [#allocation4 + $0x1], 1 }

</bundles_post_ra>
